<compile_context>
chip_gen: v7x
topology: tpu7x:2x2x1
jax: 0.10.0
libtpu: 0.0.40
codegen_flags: <defaults>
</compile_context>

<pallas_src>
import jax
import jax.numpy as jnp
from jax import lax
from jax.experimental import pallas as pl
from jax.experimental.pallas import tpu as pltpu

EMB_DIM = 400
HID = 256
N_LAYERS = 2
NUM_DIR = 2   # bidirectional


# ----------------------------------------------------------------------------
# Stage 1: fused-direction, row-tiled input projection
#   gx_all = X @ [W_ih_fwd | W_ih_rev] + [b_fwd | b_rev]  ->  (N, 8H) bf16
# ----------------------------------------------------------------------------
def _input_proj_kernel(x_ref, w_ref, b_ref, gx_ref):
    acc = jnp.dot(x_ref[...].astype(jnp.bfloat16), w_ref[...],
                  preferred_element_type=jnp.float32)
    gx_ref[...] = (acc + b_ref[...]).astype(jnp.bfloat16)


def input_proj(x_flat, w_packed, b_packed, *, row_tile=512):
    """x_flat: (N, D) f32, w_packed: (D, 8H) bf16, b_packed: (1, 8H) f32
    -> gx_all: (N, 8H) bf16."""
    N, D = x_flat.shape
    G = w_packed.shape[-1]
    tn = min(row_tile, N)                      # N is a multiple of 8 (B padded)
    return pl.pallas_call(
        _input_proj_kernel,
        grid=(pl.cdiv(N, tn),),
        in_specs=[
            pl.BlockSpec((tn, D), lambda i: (i, 0)),   # X row tile
            pl.BlockSpec((D, G), lambda i: (0, 0)),    # packed W_ih (resident)
            pl.BlockSpec((1, G), lambda i: (0, 0)),    # packed bias
        ],
        out_specs=pl.BlockSpec((tn, G), lambda i: (i, 0)),
        out_shape=jax.ShapeDtypeStruct((N, G), jnp.bfloat16),
        compiler_params=pltpu.CompilerParams(
            dimension_semantics=("parallel",),
            vmem_limit_bytes=48 * 1024 * 1024),
    )(x_flat, w_packed, b_packed)


# ----------------------------------------------------------------------------
# Stage 2: fused bidirectional LSTM recurrence, time-blocked.
# grid = (direction, T // TT); per grid step an unrolled loop over TT steps.
# Carry (h, c) lives in VMEM scratch; h_seq written directly as (T, B, 2H).
# ----------------------------------------------------------------------------
def _make_lstm_kernel(tt):
    def kernel(gx_ref, whh_ref, h0_ref, c0_ref,
               hseq_ref, hn_ref, cn_ref, h_sc, c_sc):
        d = pl.program_id(0)

        @pl.when(pl.program_id(1) == 0)
        def _():
            h_sc[...] = h0_ref[0]
            c_sc[...] = c0_ref[0]

        whh = whh_ref[0]                                   # (H, 4H) bf16

        def step(s, carry):
            # local time inside the block; reversed order for d == 1
            lt = s + d * (tt - 1 - 2 * s)
            gates = gx_ref[lt].astype(jnp.float32) + jnp.dot(
                h_sc[...].astype(jnp.bfloat16), whh,
                preferred_element_type=jnp.float32)        # (B, 4H) f32
            # gate order [i, f, o, g]: one contiguous sigmoid + one tanh (EUP)
            sig = jax.nn.sigmoid(gates[:, :3 * HID])
            i_g = sig[:, 0 * HID:1 * HID]
            f_g = sig[:, 1 * HID:2 * HID]
            o_g = sig[:, 2 * HID:3 * HID]
            g_g = jnp.tanh(gates[:, 3 * HID:4 * HID])
            c_new = f_g * c_sc[...] + i_g * g_g
            h_new = o_g * jnp.tanh(c_new)
            c_sc[...] = c_new
            h_sc[...] = h_new
            hseq_ref[lt] = h_new                           # natural time order
            return carry

        lax.fori_loop(0, tt, step, 0, unroll=True)

        @pl.when(pl.program_id(1) == pl.num_programs(1) - 1)
        def _():
            hn_ref[0] = h_sc[...]
            cn_ref[0] = c_sc[...]

    return kernel


def lstm_bidir_layer(gx_all, whh, h0, c0, *, tt):
    """gx_all: (T, B, 8H) bf16 (fwd gates in [0:4H], rev in [4H:8H]),
    whh: (2, H, 4H) bf16, h0/c0: (2, B, H) f32.
    Returns h_seq (T, B, 2H) f32 (fwd cols [0:H], rev cols [H:2H]),
            h_n, c_n (2, B, H) f32."""
    T, B, _ = gx_all.shape
    H = HID
    assert T % tt == 0
    nb = T // tt

    def tmap(d, tb):
        # forward walks time blocks 0..nb-1, reverse walks nb-1..0
        return (1 - d) * tb + d * (nb - 1 - tb)

    gx_spec = pl.BlockSpec((tt, B, 4 * H), lambda d, tb: (tmap(d, tb), 0, d))
    whh_spec = pl.BlockSpec((1, H, 4 * H), lambda d, tb: (d, 0, 0))
    st_spec = pl.BlockSpec((1, B, H), lambda d, tb: (d, 0, 0))
    hseq_spec = pl.BlockSpec((tt, B, H), lambda d, tb: (tmap(d, tb), 0, d))

    return pl.pallas_call(
        _make_lstm_kernel(tt),
        grid=(NUM_DIR, nb),
        in_specs=[gx_spec, whh_spec, st_spec, st_spec],
        out_specs=[hseq_spec, st_spec, st_spec],
        out_shape=[
            jax.ShapeDtypeStruct((T, B, NUM_DIR * H), jnp.float32),
            jax.ShapeDtypeStruct((NUM_DIR, B, H), jnp.float32),
            jax.ShapeDtypeStruct((NUM_DIR, B, H), jnp.float32),
        ],
        scratch_shapes=[
            pltpu.VMEM((B, H), jnp.float32),               # h carry
            pltpu.VMEM((B, H), jnp.float32),               # c carry
        ],
        compiler_params=pltpu.CompilerParams(
            # TODO(synk): on v7x use pltpu.CORE_PARALLEL / pl.core_map so each
            # direction is guaranteed its own TensorCore; plain "parallel"
            # kept here for portability across v5e/v6e/v7x.
            dimension_semantics=("parallel", "arbitrary")),
    )(gx_all, whh, h0, c0)


def _pick_time_tile(T, max_tt=16):
    tt = min(T, max_tt)
    while T % tt:
        tt -= 1
    return tt


# ----------------------------------------------------------------------------
# Parameter construction (deterministic, PyTorch-distributed).  Gate columns
# permuted [i,f,g,o] -> [i,f,o,g]; W_ih of both directions packed to (D, 8H).
# ----------------------------------------------------------------------------
def _ifgo_to_ifog(w):
    i = w[..., 0 * HID:1 * HID]
    f = w[..., 1 * HID:2 * HID]
    g = w[..., 2 * HID:3 * HID]
    o = w[..., 3 * HID:4 * HID]
    return jnp.concatenate([i, f, o, g], axis=-1)


def init_params(key, vocab_size):
    params = {}
    k_emb, key = jax.random.split(key)
    params["embedding"] = jax.random.normal(
        k_emb, (vocab_size, EMB_DIM), jnp.float32)       # nn.Embedding ~ N(0,1)

    scale = 1.0 / jnp.sqrt(HID)
    for layer in range(N_LAYERS):
        in_dim = EMB_DIM if layer == 0 else HID * NUM_DIR
        wih_d, whh_d, b_d = [], [], []
        for _d in range(NUM_DIR):
            key, k1, k2, k3, k4 = jax.random.split(key, 5)
            wih = jax.random.uniform(k1, (in_dim, 4 * HID), jnp.float32,
                                     -scale, scale)
            whh = jax.random.uniform(k2, (HID, 4 * HID), jnp.float32,
                                     -scale, scale)
            b_ih = jax.random.uniform(k3, (4 * HID,), jnp.float32, -scale, scale)
            b_hh = jax.random.uniform(k4, (4 * HID,), jnp.float32, -scale, scale)
            wih_d.append(_ifgo_to_ifog(wih))
            whh_d.append(_ifgo_to_ifog(whh))
            b_d.append(_ifgo_to_ifog((b_ih + b_hh).reshape(1, 4 * HID)))
        # fused-direction packing: columns [0:4H] = fwd, [4H:8H] = rev
        params[f"w_ihp_l{layer}"] = jnp.concatenate(
            wih_d, axis=-1).astype(jnp.bfloat16)          # (in_dim, 8H) bf16
        params[f"w_hh_l{layer}"] = jnp.stack(
            whh_d, axis=0).astype(jnp.bfloat16)           # (2, H, 4H) bf16
        params[f"b_l{layer}"] = jnp.concatenate(b_d, axis=-1)  # (1, 8H) f32

    key, k1, k2 = jax.random.split(key, 3)
    fc_scale = 1.0 / jnp.sqrt(HID * NUM_DIR)
    params["fc_w"] = jax.random.uniform(
        k1, (HID * NUM_DIR, 1), jnp.float32, -fc_scale, fc_scale)
    params["fc_b"] = jax.random.uniform(
        k2, (1, 1), jnp.float32, -fc_scale, fc_scale)
    return params


# ----------------------------------------------------------------------------
# Full forward pass (matches Net.forward semantics, eval mode).
# ----------------------------------------------------------------------------
@jax.jit
def net_forward(params, x, hidden):
    """
    x:      (B, T) int32 token ids          (torch: x.long())
    hidden: (h0, c0), each (n_layers*2, B, HID)
    returns (sig_out (B,), (h_n, c_n))
    """
    h0_all, c0_all = hidden
    B, T = x.shape
    B_pad = max(8, ((B + 7) // 8) * 8)        # pad batch to sublane multiple
    tt = _pick_time_tile(T)

    # Embedding lookup (gather) -- glue, kept in plain JAX.
    embeds = jnp.take(params["embedding"], x, axis=0)      # (B, T, EMB_DIM)
    layer_in = jnp.transpose(embeds, (1, 0, 2))            # (T, B, EMB_DIM)
    if B_pad != B:
        pad = B_pad - B
        layer_in = jnp.pad(layer_in, ((0, 0), (0, pad), (0, 0)))
        h0_all = jnp.pad(h0_all, ((0, 0), (0, pad), (0, 0)))
        c0_all = jnp.pad(c0_all, ((0, 0), (0, pad), (0, 0)))

    h_n_parts, c_n_parts = [], []
    for layer in range(N_LAYERS):
        in_dim = layer_in.shape[-1]
        # Hoisted input projection, both directions fused, row-tiled.
        gx_all = input_proj(layer_in.reshape(T * B_pad, in_dim),
                            params[f"w_ihp_l{layer}"],
                            params[f"b_l{layer}"])          # (T*B, 8H) bf16
        gx_all = gx_all.reshape(T, B_pad, NUM_DIR * 4 * HID)

        h_seq, h_n, c_n = lstm_bidir_layer(
            gx_all,
            params[f"w_hh_l{layer}"],
            h0_all[2 * layer:2 * layer + 2],
            c0_all[2 * layer:2 * layer + 2],
            tt=tt)
        h_n_parts.append(h_n[:, :B])                        # (2, B, H)
        c_n_parts.append(c_n[:, :B])

        # (T, B, 2H) already in fwd|rev column layout -> next layer input.
        layer_in = h_seq
        # TODO(synk): inter-layer dropout(0.5) omitted (eval mode -> identity).

    # Only the last timestep survives sig_out[:, -1]; per the perf review the
    # 1-lane-wide Linear+Sigmoid is cheaper in plain XLA than a pallas_call.
    last = layer_in[T - 1, :B]                               # (B, 2H)
    # dropout(0.3) -> identity in eval mode
    sig_out = jax.nn.sigmoid(last @ params["fc_w"] + params["fc_b"])[:, 0]

    h_n = jnp.concatenate(h_n_parts, axis=0)   # (4, B, H): [l0_f, l0_b, l1_f, l1_b]
    c_n = jnp.concatenate(c_n_parts, axis=0)
    return sig_out, (h_n, c_n)


if __name__ == "__main__":
    vocab_size = 64
    batch = 2
    seq = 8

    key = jax.random.PRNGKey(0)
    k_param, k_x = jax.random.split(key)
    params = init_params(k_param, vocab_size)

    x = jax.random.randint(k_x, (batch, seq), 0, vocab_size, dtype=jnp.int32)
    h0 = jnp.zeros((N_LAYERS * NUM_DIR, batch, HID), jnp.float32)
    c0 = jnp.zeros((N_LAYERS * NUM_DIR, batch, HID), jnp.float32)

    sig_out, (h_n, c_n) = net_forward(params, x, (h0, c0))
    jax.block_until_ready((sig_out, h_n, c_n))

    assert sig_out.shape == (batch,)
    assert h_n.shape == (N_LAYERS * NUM_DIR, batch, HID)
    assert c_n.shape == (N_LAYERS * NUM_DIR, batch, HID)
    assert bool(jnp.all((sig_out >= 0.0) & (sig_out <= 1.0)))
    assert bool(jnp.all(jnp.isfinite(h_n))) and bool(jnp.all(jnp.isfinite(c_n)))
    print("KERNEL_OK")
</pallas_src>

<mosaic_0001>
module attributes {stable_mosaic.version = 11 : i64} {
  func.func @_input_proj_kernel(%arg0: i32, %arg1: memref<64x400xf32, #tpu.memory_space<vmem>>, %arg2: memref<400x2048xbf16, #tpu.memory_space<vmem>>, %arg3: memref<1x2048xf32, #tpu.memory_space<vmem>>, %arg4: memref<64x2048xbf16, #tpu.memory_space<vmem>>) attributes {dimension_semantics = [#tpu.dimension_semantics<parallel>], iteration_bounds = array<i64: 1>, scalar_prefetch = 0 : i64, scratch_operands = 0 : i64, tpu.core_type = #tpu.core_type<tc>, window_params = [{transform_indices = @transform_0, window_bounds = array<i64: 64, 400>}, {pipeline_mode = #tpu.pipeline_mode<synchronous>, transform_indices = @transform_1, window_bounds = array<i64: 400, 2048>}, {pipeline_mode = #tpu.pipeline_mode<synchronous>, transform_indices = @transform_2, window_bounds = array<i64: 1, 2048>}, {transform_indices = @transform_3, window_bounds = array<i64: 64, 2048>}]} {
    %c0 = arith.constant 0 : index
    %c0_0 = arith.constant 0 : index
    %0 = vector.load %arg1[%c0, %c0_0] : memref<64x400xf32, #tpu.memory_space<vmem>>, vector<64x400xf32>
    %1 = arith.truncf %0 : vector<64x400xf32> to vector<64x400xbf16>
    %c0_1 = arith.constant 0 : index
    %c0_2 = arith.constant 0 : index
    %2 = vector.load %arg2[%c0_1, %c0_2] : memref<400x2048xbf16, #tpu.memory_space<vmem>>, vector<400x2048xbf16>
    %cst = arith.constant dense<0.000000e+00> : vector<64x2048xf32>
    %3 = tpu.matmul %1, %2, %cst {dimension_numbers = #tpu.dot_dimension_numbers<[1], [0], [0], [1], [0, 0, 1, 1], [], []>} : vector<64x400xbf16>, vector<400x2048xbf16>, vector<64x2048xf32> -> vector<64x2048xf32>
    %c0_3 = arith.constant 0 : index
    %c0_4 = arith.constant 0 : index
    %4 = vector.load %arg3[%c0_3, %c0_4] : memref<1x2048xf32, #tpu.memory_space<vmem>>, vector<1x2048xf32>
    %5 = vector.broadcast %4 : vector<1x2048xf32> to vector<64x2048xf32>
    %6 = arith.addf %3, %5 : vector<64x2048xf32>
    %7 = arith.truncf %6 : vector<64x2048xf32> to vector<64x2048xbf16>
    %c0_5 = arith.constant 0 : index
    %c0_6 = arith.constant 0 : index
    %8 = vector.load %arg4[%c0_5, %c0_6] : memref<64x2048xbf16, #tpu.memory_space<vmem>>, vector<64x2048xbf16>
    tpu.vector_store %arg4[%c0_5, %c0_6], %7 {strides = array<i32>} : memref<64x2048xbf16, #tpu.memory_space<vmem>>, vector<64x2048xbf16>,
    return
  }
  func.func @transform_0(%arg0: i32) -> (i32, i32) {
    %c0_i32 = arith.constant 0 : i32
    %c0_i32_0 = arith.constant 0 : i32
    return %arg0, %c0_i32 : i32, i32
  }
  func.func @transform_1(%arg0: i32) -> (i32, i32) {
    %c0_i32 = arith.constant 0 : i32
    %c0_i32_0 = arith.constant 0 : i32
    %c0_i32_1 = arith.constant 0 : i32
    return %c0_i32, %c0_i32_0 : i32, i32
  }
  func.func @transform_2(%arg0: i32) -> (i32, i32) {
    %c0_i32 = arith.constant 0 : i32
    %c0_i32_0 = arith.constant 0 : i32
    %c0_i32_1 = arith.constant 0 : i32
    return %c0_i32, %c0_i32_0 : i32, i32
  }
  func.func @transform_3(%arg0: i32) -> (i32, i32) {
    %c0_i32 = arith.constant 0 : i32
    %c0_i32_0 = arith.constant 0 : i32
    return %arg0, %c0_i32 : i32, i32
  }
}

module attributes {stable_mosaic.version = 11 : i64} {
  func.func @_input_proj_kernel(%arg0: i32, %arg1: memref<64x512xf32, #tpu.memory_space<vmem>>, %arg2: memref<512x2048xbf16, #tpu.memory_space<vmem>>, %arg3: memref<1x2048xf32, #tpu.memory_space<vmem>>, %arg4: memref<64x2048xbf16, #tpu.memory_space<vmem>>) attributes {dimension_semantics = [#tpu.dimension_semantics<parallel>], iteration_bounds = array<i64: 1>, scalar_prefetch = 0 : i64, scratch_operands = 0 : i64, tpu.core_type = #tpu.core_type<tc>, window_params = [{transform_indices = @transform_0, window_bounds = array<i64: 64, 512>}, {pipeline_mode = #tpu.pipeline_mode<synchronous>, transform_indices = @transform_1, window_bounds = array<i64: 512, 2048>}, {pipeline_mode = #tpu.pipeline_mode<synchronous>, transform_indices = @transform_2, window_bounds = array<i64: 1, 2048>}, {transform_indices = @transform_3, window_bounds = array<i64: 64, 2048>}]} {
    %c0 = arith.constant 0 : index
    %c0_0 = arith.constant 0 : index
    %0 = vector.load %arg1[%c0, %c0_0] : memref<64x512xf32, #tpu.memory_space<vmem>>, vector<64x512xf32>
    %1 = arith.truncf %0 : vector<64x512xf32> to vector<64x512xbf16>
    %c0_1 = arith.constant 0 : index
    %c0_2 = arith.constant 0 : index
    %2 = vector.load %arg2[%c0_1, %c0_2] : memref<512x2048xbf16, #tpu.memory_space<vmem>>, vector<512x2048xbf16>
    %cst = arith.constant dense<0.000000e+00> : vector<64x2048xf32>
    %3 = tpu.matmul %1, %2, %cst {dimension_numbers = #tpu.dot_dimension_numbers<[1], [0], [0], [1], [0, 0, 1, 1], [], []>} : vector<64x512xbf16>, vector<512x2048xbf16>, vector<64x2048xf32> -> vector<64x2048xf32>
    %c0_3 = arith.constant 0 : index
    %c0_4 = arith.constant 0 : index
    %4 = vector.load %arg3[%c0_3, %c0_4] : memref<1x2048xf32, #tpu.memory_space<vmem>>, vector<1x2048xf32>
    %5 = vector.broadcast %4 : vector<1x2048xf32> to vector<64x2048xf32>
    %6 = arith.addf %3, %5 : vector<64x2048xf32>
    %7 = arith.truncf %6 : vector<64x2048xf32> to vector<64x2048xbf16>
    %c0_5 = arith.constant 0 : index
    %c0_6 = arith.constant 0 : index
    %8 = vector.load %arg4[%c0_5, %c0_6] : memref<64x2048xbf16, #tpu.memory_space<vmem>>, vector<64x2048xbf16>
    tpu.vector_store %arg4[%c0_5, %c0_6], %7 {strides = array<i32>} : memref<64x2048xbf16, #tpu.memory_space<vmem>>, vector<64x2048xbf16>,
    return
  }
  func.func @transform_0(%arg0: i32) -> (i32, i32) {
    %c0_i32 = arith.constant 0 : i32
    %c0_i32_0 = arith.constant 0 : i32
    return %arg0, %c0_i32 : i32, i32
  }
  func.func @transform_1(%arg0: i32) -> (i32, i32) {
    %c0_i32 = arith.constant 0 : i32
    %c0_i32_0 = arith.constant 0 : i32
    %c0_i32_1 = arith.constant 0 : i32
    return %c0_i32, %c0_i32_0 : i32, i32
  }
  func.func @transform_2(%arg0: i32) -> (i32, i32) {
    %c0_i32 = arith.constant 0 : i32
    %c0_i32_0 = arith.constant 0 : i32
    %c0_i32_1 = arith.constant 0 : i32
    return %c0_i32, %c0_i32_0 : i32, i32
  }
  func.func @transform_3(%arg0: i32) -> (i32, i32) {
    %c0_i32 = arith.constant 0 : i32
    %c0_i32_0 = arith.constant 0 : i32
    return %arg0, %c0_i32 : i32, i32
  }
}

module attributes {stable_mosaic.version = 11 : i64} {
  func.func @kernel(%arg0: i32, %arg1: i32, %arg2: memref<8x8x1024xbf16, #tpu.memory_space<vmem>>, %arg3: memref<1x256x1024xbf16, #tpu.memory_space<vmem>>, %arg4: memref<1x8x256xf32, #tpu.memory_space<vmem>>, %arg5: memref<1x8x256xf32, #tpu.memory_space<vmem>>, %arg6: memref<8x8x256xf32, #tpu.memory_space<vmem>>, %arg7: memref<1x8x256xf32, #tpu.memory_space<vmem>>, %arg8: memref<1x8x256xf32, #tpu.memory_space<vmem>>, %arg9: memref<8x256xf32, #tpu.memory_space<vmem>>, %arg10: memref<8x256xf32, #tpu.memory_space<vmem>>) attributes {dimension_semantics = [#tpu.dimension_semantics<parallel>, #tpu.dimension_semantics<arbitrary>], iteration_bounds = array<i64: 2, 1>, scalar_prefetch = 0 : i64, scratch_operands = 2 : i64, tpu.core_type = #tpu.core_type<tc>, window_params = [{transform_indices = @transform_0, window_bounds = array<i64: 8, 8, 1024>}, {transform_indices = @transform_1, window_bounds = array<i64: 1, 256, 1024>}, {transform_indices = @transform_2, window_bounds = array<i64: 1, 8, 256>}, {transform_indices = @transform_3, window_bounds = array<i64: 1, 8, 256>}, {transform_indices = @transform_4, window_bounds = array<i64: 8, 8, 256>}, {transform_indices = @transform_5, window_bounds = array<i64: 1, 8, 256>}, {transform_indices = @transform_6, window_bounds = array<i64: 1, 8, 256>}]} {
    %c0_i32 = arith.constant 0 : i32
    %0 = arith.cmpi eq, %arg1, %c0_i32 : i32
    %1 = arith.extui %0 : i1 to i32
    %c0_i32_0 = arith.constant 0 : i32
    %2 = arith.cmpi ne, %1, %c0_i32_0 : i32
    scf.if %2 {
      %c0_133 = arith.constant 0 : index
      %c0_134 = arith.constant 0 : index
      %c0_135 = arith.constant 0 : index
      %288 = vector.load %arg4[%c0_133, %c0_134, %c0_135] : memref<1x8x256xf32, #tpu.memory_space<vmem>>, vector<1x8x256xf32>
      %289 = vector.shape_cast %288 : vector<1x8x256xf32> to vector<8x256xf32>
      %c0_136 = arith.constant 0 : index
      %c0_137 = arith.constant 0 : index
      %290 = vector.load %arg9[%c0_136, %c0_137] : memref<8x256xf32, #tpu.memory_space<vmem>>, vector<8x256xf32>
      tpu.vector_store %arg9[%c0_136, %c0_137], %289 {strides = array<i32>} : memref<8x256xf32, #tpu.memory_space<vmem>>, vector<8x256xf32>,
      %c0_138 = arith.constant 0 : index
      %c0_139 = arith.constant 0 : index
      %c0_140 = arith.constant 0 : index
      %291 = vector.load %arg5[%c0_138, %c0_139, %c0_140] : memref<1x8x256xf32, #tpu.memory_space<vmem>>, vector<1x8x256xf32>
      %292 = vector.shape_cast %291 : vector<1x8x256xf32> to vector<8x256xf32>
      %c0_141 = arith.constant 0 : index
      %c0_142 = arith.constant 0 : index
      %293 = vector.load %arg10[%c0_141, %c0_142] : memref<8x256xf32, #tpu.memory_space<vmem>>, vector<8x256xf32>
      tpu.vector_store %arg10[%c0_141, %c0_142], %292 {strides = array<i32>} : memref<8x256xf32, #tpu.memory_space<vmem>>, vector<8x256xf32>,
    } else {
    }
    %c0 = arith.constant 0 : index
    %c0_1 = arith.constant 0 : index
    %c0_2 = arith.constant 0 : index
    %3 = vector.load %arg3[%c0, %c0_1, %c0_2] : memref<1x256x1024xbf16, #tpu.memory_space<vmem>>, vector<1x256x1024xbf16>
    %4 = vector.shape_cast %3 : vector<1x256x1024xbf16> to vector<256x1024xbf16>
    %c0_i32_3 = arith.constant 0 : i32
    %c2_i32 = arith.constant 2 : i32
    %5 = arith.muli %c2_i32, %c0_i32_3 : i32
    %c7_i32 = arith.constant 7 : i32
    %6 = arith.subi %c7_i32, %5 : i32
    %7 = arith.muli %arg0, %6 : i32
    %8 = arith.addi %c0_i32_3, %7 : i32
    %9 = arith.index_cast %8 : i32 to index
    %c0_4 = arith.constant 0 : index
    %c0_5 = arith.constant 0 : index
    %10 = vector.load %arg2[%9, %c0_4, %c0_5] : memref<8x8x1024xbf16, #tpu.memory_space<vmem>>, vector<1x8x1024xbf16>
    %11 = vector.shape_cast %10 : vector<1x8x1024xbf16> to vector<8x1024xbf16>
    %12 = arith.extf %11 : vector<8x1024xbf16> to vector<8x1024xf32>
    %c0_6 = arith.constant 0 : index
    %c0_7 = arith.constant 0 : index
    %13 = vector.load %arg9[%c0_6, %c0_7] : memref<8x256xf32, #tpu.memory_space<vmem>>, vector<8x256xf32>
    %14 = arith.truncf %13 : vector<8x256xf32> to vector<8x256xbf16>
    %cst = arith.constant dense<0.000000e+00> : vector<8x1024xf32>
    %15 = tpu.matmul %14, %4, %cst {dimension_numbers = #tpu.dot_dimension_numbers<[1], [0], [0], [1], [0, 0, 1, 1], [], []>} : vector<8x256xbf16>, vector<256x1024xbf16>, vector<8x1024xf32> -> vector<8x1024xf32>
    %16 = arith.addf %12, %15 : vector<8x1024xf32>
    %17 = vector.extract_strided_slice %16 {offsets = [0, 0], sizes = [8, 768], strides = [1, 1]} : vector<8x1024xf32> to vector<8x768xf32>
    %18 = arith.negf %17 : vector<8x768xf32>
    %19 = math.exp %18 : vector<8x768xf32>
    %cst_8 = arith.constant 1.000000e+00 : f32
    %20 = vector.broadcast %cst_8 : f32 to vector<8x768xf32>
    %21 = arith.addf %20, %19 : vector<8x768xf32>
    %22 = arith.divf %20, %21 : vector<8x768xf32>
    %23 = vector.extract_strided_slice %22 {offsets = [0, 0], sizes = [8, 256], strides = [1, 1]} : vector<8x768xf32> to vector<8x256xf32>
    %24 = vector.extract_strided_slice %22 {offsets = [0, 256], sizes = [8, 256], strides = [1, 1]} : vector<8x768xf32> to vector<8x256xf32>
    %25 = vector.extract_strided_slice %22 {offsets = [0, 512], sizes = [8, 256], strides = [1, 1]} : vector<8x768xf32> to vector<8x256xf32>
    %26 = vector.extract_strided_slice %16 {offsets = [0, 768], sizes = [8, 256], strides = [1, 1]} : vector<8x1024xf32> to vector<8x256xf32>
    %27 = math.tanh %26 : vector<8x256xf32>
    %c0_9 = arith.constant 0 : index
    %c0_10 = arith.constant 0 : index
    %28 = vector.load %arg10[%c0_9, %c0_10] : memref<8x256xf32, #tpu.memory_space<vmem>>, vector<8x256xf32>
    %29 = arith.mulf %24, %28 : vector<8x256xf32>
    %30 = arith.mulf %23, %27 : vector<8x256xf32>
    %31 = arith.addf %29, %30 : vector<8x256xf32>
    %32 = math.tanh %31 : vector<8x256xf32>
    %33 = arith.mulf %25, %32 : vector<8x256xf32>
    %c0_11 = arith.constant 0 : index
    %c0_12 = arith.constant 0 : index
    %34 = vector.load %arg10[%c0_11, %c0_12] : memref<8x256xf32, #tpu.memory_space<vmem>>, vector<8x256xf32>
    tpu.vector_store %arg10[%c0_11, %c0_12], %31 {strides = array<i32>} : memref<8x256xf32, #tpu.memory_space<vmem>>, vector<8x256xf32>,
    %c0_13 = arith.constant 0 : index
    %c0_14 = arith.constant 0 : index
    %35 = vector.load %arg9[%c0_13, %c0_14] : memref<8x256xf32, #tpu.memory_space<vmem>>, vector<8x256xf32>
    tpu.vector_store %arg9[%c0_13, %c0_14], %33 {strides = array<i32>} : memref<8x256xf32, #tpu.memory_space<vmem>>, vector<8x256xf32>,
    %36 = arith.index_cast %8 : i32 to index
    %c0_15 = arith.constant 0 : index
    %c0_16 = arith.constant 0 : index
    %37 = vector.load %arg6[%36, %c0_15, %c0_16] : memref<8x8x256xf32, #tpu.memory_space<vmem>>, vector<1x8x256xf32>
    %38 = vector.shape_cast %37 : vector<1x8x256xf32> to vector<8x256xf32>
    %39 = vector.shape_cast %33 : vector<8x256xf32> to vector<1x8x256xf32>
    tpu.vector_store %arg6[%36, %c0_15, %c0_16], %39 {strides = array<i32>} : memref<8x8x256xf32, #tpu.memory_space<vmem>>, vector<1x8x256xf32>,
    %c1_i32 = arith.constant 1 : i32
    %c2_i32_17 = arith.constant 2 : i32
    %40 = arith.muli %c2_i32_17, %c1_i32 : i32
    %c7_i32_18 = arith.constant 7 : i32
    %41 = arith.subi %c7_i32_18, %40 : i32
    %42 = arith.muli %arg0, %41 : i32
    %43 = arith.addi %c1_i32, %42 : i32
    %44 = arith.index_cast %43 : i32 to index
    %c0_19 = arith.constant 0 : index
    %c0_20 = arith.constant 0 : index
    %45 = vector.load %arg2[%44, %c0_19, %c0_20] : memref<8x8x1024xbf16, #tpu.memory_space<vmem>>, vector<1x8x1024xbf16>
    %46 = vector.shape_cast %45 : vector<1x8x1024xbf16> to vector<8x1024xbf16>
    %47 = arith.extf %46 : vector<8x1024xbf16> to vector<8x1024xf32>
    %c0_21 = arith.constant 0 : index
    %c0_22 = arith.constant 0 : index
    %48 = vector.load %arg9[%c0_21, %c0_22] : memref<8x256xf32, #tpu.memory_space<vmem>>, vector<8x256xf32>
    %49 = arith.truncf %48 : vector<8x256xf32> to vector<8x256xbf16>
    %cst_23 = arith.constant dense<0.000000e+00> : vector<8x1024xf32>
    %50 = tpu.matmul %49, %4, %cst_23 {dimension_numbers = #tpu.dot_dimension_numbers<[1], [0], [0], [1], [0, 0, 1, 1], [], []>} : vector<8x256xbf16>, vector<256x1024xbf16>, vector<8x1024xf32> -> vector<8x1024xf32>
    %51 = arith.addf %47, %50 : vector<8x1024xf32>
    %52 = vector.extract_strided_slice %51 {offsets = [0, 0], sizes = [8, 768], strides = [1, 1]} : vector<8x1024xf32> to vector<8x768xf32>
    %53 = arith.negf %52 : vector<8x768xf32>
    %54 = math.exp %53 : vector<8x768xf32>
    %cst_24 = arith.constant 1.000000e+00 : f32
    %55 = vector.broadcast %cst_24 : f32 to vector<8x768xf32>
    %56 = arith.addf %55, %54 : vector<8x768xf32>
    %57 = arith.divf %55, %56 : vector<8x768xf32>
    %58 = vector.extract_strided_slice %57 {offsets = [0, 0], sizes = [8, 256], strides = [1, 1]} : vector<8x768xf32> to vector<8x256xf32>
    %59 = vector.extract_strided_slice %57 {offsets = [0, 256], sizes = [8, 256], strides = [1, 1]} : vector<8x768xf32> to vector<8x256xf32>
    %60 = vector.extract_strided_slice %57 {offsets = [0, 512], sizes = [8, 256], strides = [1, 1]} : vector<8x768xf32> to vector<8x256xf32>
    %61 = vector.extract_strided_slice %51 {offsets = [0, 768], sizes = [8, 256], strides = [1, 1]} : vector<8x1024xf32> to vector<8x256xf32>
    %62 = math.tanh %61 : vector<8x256xf32>
    %c0_25 = arith.constant 0 : index
    %c0_26 = arith.constant 0 : index
    %63 = vector.load %arg10[%c0_25, %c0_26] : memref<8x256xf32, #tpu.memory_space<vmem>>, vector<8x256xf32>
    %64 = arith.mulf %59, %63 : vector<8x256xf32>
    %65 = arith.mulf %58, %62 : vector<8x256xf32>
    %66 = arith.addf %64, %65 : vector<8x256xf32>
    %67 = math.tanh %66 : vector<8x256xf32>
    %68 = arith.mulf %60, %67 : vector<8x256xf32>
    %c0_27 = arith.constant 0 : index
    %c0_28 = arith.constant 0 : index
    %69 = vector.load %arg10[%c0_27, %c0_28] : memref<8x256xf32, #tpu.memory_space<vmem>>, vector<8x256xf32>
    tpu.vector_store %arg10[%c0_27, %c0_28], %66 {strides = array<i32>} : memref<8x256xf32, #tpu.memory_space<vmem>>, vector<8x256xf32>,
    %c0_29 = arith.constant 0 : index
    %c0_30 = arith.constant 0 : index
    %70 = vector.load %arg9[%c0_29, %c0_30] : memref<8x256xf32, #tpu.memory_space<vmem>>, vector<8x256xf32>
    tpu.vector_store %arg9[%c0_29, %c0_30], %68 {strides = array<i32>} : memref<8x256xf32, #tpu.memory_space<vmem>>, vector<8x256xf32>,
    %71 = arith.index_cast %43 : i32 to index
    %c0_31 = arith.constant 0 : index
    %c0_32 = arith.constant 0 : index
    %72 = vector.load %arg6[%71, %c0_31, %c0_32] : memref<8x8x256xf32, #tpu.memory_space<vmem>>, vector<1x8x256xf32>
    %73 = vector.shape_cast %72 : vector<1x8x256xf32> to vector<8x256xf32>
    %74 = vector.shape_cast %68 : vector<8x256xf32> to vector<1x8x256xf32>
    tpu.vector_store %arg6[%71, %c0_31, %c0_32], %74 {strides = array<i32>} : memref<8x8x256xf32, #tpu.memory_space<vmem>>, vector<1x8x256xf32>,
    %c2_i32_33 = arith.constant 2 : i32
    %c2_i32_34 = arith.constant 2 : i32
    %75 = arith.muli %c2_i32_34, %c2_i32_33 : i32
    %c7_i32_35 = arith.constant 7 : i32
    %76 = arith.subi %c7_i32_35, %75 : i32
    %77 = arith.muli %arg0, %76 : i32
    %78 = arith.addi %c2_i32_33, %77 : i32
    %79 = arith.index_cast %78 : i32 to index
    %c0_36 = arith.constant 0 : index
    %c0_37 = arith.constant 0 : index
    %80 = vector.load %arg2[%79, %c0_36, %c0_37] : memref<8x8x1024xbf16, #tpu.memory_space<vmem>>, vector<1x8x1024xbf16>
    %81 = vector.shape_cast %80 : vector<1x8x1024xbf16> to vector<8x1024xbf16>
    %82 = arith.extf %81 : vector<8x1024xbf16> to vector<8x1024xf32>
    %c0_38 = arith.constant 0 : index
    %c0_39 = arith.constant 0 : index
    %83 = vector.load %arg9[%c0_38, %c0_39] : memref<8x256xf32, #tpu.memory_space<vmem>>, vector<8x256xf32>
    %84 = arith.truncf %83 : vector<8x256xf32> to vector<8x256xbf16>
    %cst_40 = arith.constant dense<0.000000e+00> : vector<8x1024xf32>
    %85 = tpu.matmul %84, %4, %cst_40 {dimension_numbers = #tpu.dot_dimension_numbers<[1], [0], [0], [1], [0, 0, 1, 1], [], []>} : vector<8x256xbf16>, vector<256x1024xbf16>, vector<8x1024xf32> -> vector<8x1024xf32>
    %86 = arith.addf %82, %85 : vector<8x1024xf32>
    %87 = vector.extract_strided_slice %86 {offsets = [0, 0], sizes = [8, 768], strides = [1, 1]} : vector<8x1024xf32> to vector<8x768xf32>
    %88 = arith.negf %87 : vector<8x768xf32>
    %89 = math.exp %88 : vector<8x768xf32>
    %cst_41 = arith.constant 1.000000e+00 : f32
    %90 = vector.broadcast %cst_41 : f32 to vector<8x768xf32>
    %91 = arith.addf %90, %89 : vector<8x768xf32>
    %92 = arith.divf %90, %91 : vector<8x768xf32>
    %93 = vector.extract_strided_slice %92 {offsets = [0, 0], sizes = [8, 256], strides = [1, 1]} : vector<8x768xf32> to vector<8x256xf32>
    %94 = vector.extract_strided_slice %92 {offsets = [0, 256], sizes = [8, 256], strides = [1, 1]} : vector<8x768xf32> to vector<8x256xf32>
    %95 = vector.extract_strided_slice %92 {offsets = [0, 512], sizes = [8, 256], strides = [1, 1]} : vector<8x768xf32> to vector<8x256xf32>
    %96 = vector.extract_strided_slice %86 {offsets = [0, 768], sizes = [8, 256], strides = [1, 1]} : vector<8x1024xf32> to vector<8x256xf32>
    %97 = math.tanh %96 : vector<8x256xf32>
    %c0_42 = arith.constant 0 : index
    %c0_43 = arith.constant 0 : index
    %98 = vector.load %arg10[%c0_42, %c0_43] : memref<8x256xf32, #tpu.memory_space<vmem>>, vector<8x256xf32>
    %99 = arith.mulf %94, %98 : vector<8x256xf32>
    %100 = arith.mulf %93, %97 : vector<8x256xf32>
    %101 = arith.addf %99, %100 : vector<8x256xf32>
    %102 = math.tanh %101 : vector<8x256xf32>
    %103 = arith.mulf %95, %102 : vector<8x256xf32>
    %c0_44 = arith.constant 0 : index
    %c0_45 = arith.constant 0 : index
    %104 = vector.load %arg10[%c0_44, %c0_45] : memref<8x256xf32, #tpu.memory_space<vmem>>, vector<8x256xf32>
    tpu.vector_store %arg10[%c0_44, %c0_45], %101 {strides = array<i32>} : memref<8x256xf32, #tpu.memory_space<vmem>>, vector<8x256xf32>,
    %c0_46 = arith.constant 0 : index
    %c0_47 = arith.constant 0 : index
    %105 = vector.load %arg9[%c0_46, %c0_47] : memref<8x256xf32, #tpu.memory_space<vmem>>, vector<8x256xf32>
    tpu.vector_store %arg9[%c0_46, %c0_47], %103 {strides = array<i32>} : memref<8x256xf32, #tpu.memory_space<vmem>>, vector<8x256xf32>,
    %106 = arith.index_cast %78 : i32 to index
    %c0_48 = arith.constant 0 : index
    %c0_49 = arith.constant 0 : index
    %107 = vector.load %arg6[%106, %c0_48, %c0_49] : memref<8x8x256xf32, #tpu.memory_space<vmem>>, vector<1x8x256xf32>
    %108 = vector.shape_cast %107 : vector<1x8x256xf32> to vector<8x256xf32>
    %109 = vector.shape_cast %103 : vector<8x256xf32> to vector<1x8x256xf32>
    tpu.vector_store %arg6[%106, %c0_48, %c0_49], %109 {strides = array<i32>} : memref<8x8x256xf32, #tpu.memory_space<vmem>>, vector<1x8x256xf32>,
    %c3_i32 = arith.constant 3 : i32
    %c2_i32_50 = arith.constant 2 : i32
    %110 = arith.muli %c2_i32_50, %c3_i32 : i32
    %c7_i32_51 = arith.constant 7 : i32
    %111 = arith.subi %c7_i32_51, %110 : i32
    %112 = arith.muli %arg0, %111 : i32
    %113 = arith.addi %c3_i32, %112 : i32
    %114 = arith.index_cast %113 : i32 to index
    %c0_52 = arith.constant 0 : index
    %c0_53 = arith.constant 0 : index
    %115 = vector.load %arg2[%114, %c0_52, %c0_53] : memref<8x8x1024xbf16, #tpu.memory_space<vmem>>, vector<1x8x1024xbf16>
    %116 = vector.shape_cast %115 : vector<1x8x1024xbf16> to vector<8x1024xbf16>
    %117 = arith.extf %116 : vector<8x1024xbf16> to vector<8x1024xf32>
    %c0_54 = arith.constant 0 : index
    %c0_55 = arith.constant 0 : index
    %118 = vector.load %arg9[%c0_54, %c0_55] : memref<8x256xf32, #tpu.memory_space<vmem>>, vector<8x256xf32>
    %119 = arith.truncf %118 : vector<8x256xf32> to vector<8x256xbf16>
    %cst_56 = arith.constant dense<0.000000e+00> : vector<8x1024xf32>
    %120 = tpu.matmul %119, %4, %cst_56 {dimension_numbers = #tpu.dot_dimension_numbers<[1], [0], [0], [1], [0, 0, 1, 1], [], []>} : vector<8x256xbf16>, vector<256x1024xbf16>, vector<8x1024xf32> -> vector<8x1024xf32>
    %121 = arith.addf %117, %120 : vector<8x1024xf32>
    %122 = vector.extract_strided_slice %121 {offsets = [0, 0], sizes = [8, 768], strides = [1, 1]} : vector<8x1024xf32> to vector<8x768xf32>
    %123 = arith.negf %122 : vector<8x768xf32>
    %124 = math.exp %123 : vector<8x768xf32>
    %cst_57 = arith.constant 1.000000e+00 : f32
    %125 = vector.broadcast %cst_57 : f32 to vector<8x768xf32>
    %126 = arith.addf %125, %124 : vector<8x768xf32>
    %127 = arith.divf %125, %126 : vector<8x768xf32>
    %128 = vector.extract_strided_slice %127 {offsets = [0, 0], sizes = [8, 256], strides = [1, 1]} : vector<8x768xf32> to vector<8x256xf32>
    %129 = vector.extract_strided_slice %127 {offsets = [0, 256], sizes = [8, 256], strides = [1, 1]} : vector<8x768xf32> to vector<8x256xf32>
    %130 = vector.extract_strided_slice %127 {offsets = [0, 512], sizes = [8, 256], strides = [1, 1]} : vector<8x768xf32> to vector<8x256xf32>
    %131 = vector.extract_strided_slice %121 {offsets = [0, 768], sizes = [8, 256], strides = [1, 1]} : vector<8x1024xf32> to vector<8x256xf32>
    %132 = math.tanh %131 : vector<8x256xf32>
    %c0_58 = arith.constant 0 : index
    %c0_59 = arith.constant 0 : index
    %133 = vector.load %arg10[%c0_58, %c0_59] : memref<8x256xf32, #tpu.memory_space<vmem>>, vector<8x256xf32>
    %134 = arith.mulf %129, %133 : vector<8x256xf32>
    %135 = arith.mulf %128, %132 : vector<8x256xf32>
    %136 = arith.addf %134, %135 : vector<8x256xf32>
    %137 = math.tanh %136 : vector<8x256xf32>
    %138 = arith.mulf %130, %137 : vector<8x256xf32>
    %c0_60 = arith.constant 0 : index
    %c0_61 = arith.constant 0 : index
    %139 = vector.load %arg10[%c0_60, %c0_61] : memref<8x256xf32, #tpu.memory_space<vmem>>, vector<8x256xf32>
    tpu.vector_store %arg10[%c0_60, %c0_61], %136 {strides = array<i32>} : memref<8x256xf32, #tpu.memory_space<vmem>>, vector<8x256xf32>,
    %c0_62 = arith.constant 0 : index
    %c0_63 = arith.constant 0 : index
    %140 = vector.load %arg9[%c0_62, %c0_63] : memref<8x256xf32, #tpu.memory_space<vmem>>, vector<8x256xf32>
    tpu.vector_store %arg9[%c0_62, %c0_63], %138 {strides = array<i32>} : memref<8x256xf32, #tpu.memory_space<vmem>>, vector<8x256xf32>,
    %141 = arith.index_cast %113 : i32 to index
    %c0_64 = arith.constant 0 : index
    %c0_65 = arith.constant 0 : index
    %142 = vector.load %arg6[%141, %c0_64, %c0_65] : memref<8x8x256xf32, #tpu.memory_space<vmem>>, vector<1x8x256xf32>
    %143 = vector.shape_cast %142 : vector<1x8x256xf32> to vector<8x256xf32>
    %144 = vector.shape_cast %138 : vector<8x256xf32> to vector<1x8x256xf32>
    tpu.vector_store %arg6[%141, %c0_64, %c0_65], %144 {strides = array<i32>} : memref<8x8x256xf32, #tpu.memory_space<vmem>>, vector<1x8x256xf32>,
    %c4_i32 = arith.constant 4 : i32
    %c2_i32_66 = arith.constant 2 : i32
    %145 = arith.muli %c2_i32_66, %c4_i32 : i32
    %c7_i32_67 = arith.constant 7 : i32
    %146 = arith.subi %c7_i32_67, %145 : i32
    %147 = arith.muli %arg0, %146 : i32
    %148 = arith.addi %c4_i32, %147 : i32
    %149 = arith.index_cast %148 : i32 to index
    %c0_68 = arith.constant 0 : index
    %c0_69 = arith.constant 0 : index
    %150 = vector.load %arg2[%149, %c0_68, %c0_69] : memref<8x8x1024xbf16, #tpu.memory_space<vmem>>, vector<1x8x1024xbf16>
    %151 = vector.shape_cast %150 : vector<1x8x1024xbf16> to vector<8x1024xbf16>
    %152 = arith.extf %151 : vector<8x1024xbf16> to vector<8x1024xf32>
    %c0_70 = arith.constant 0 : index
    %c0_71 = arith.constant 0 : index
    %153 = vector.load %arg9[%c0_70, %c0_71] : memref<8x256xf32, #tpu.memory_space<vmem>>, vector<8x256xf32>
    %154 = arith.truncf %153 : vector<8x256xf32> to vector<8x256xbf16>
    %cst_72 = arith.constant dense<0.000000e+00> : vector<8x1024xf32>
    %155 = tpu.matmul %154, %4, %cst_72 {dimension_numbers = #tpu.dot_dimension_numbers<[1], [0], [0], [1], [0, 0, 1, 1], [], []>} : vector<8x256xbf16>, vector<256x1024xbf16>, vector<8x1024xf32> -> vector<8x1024xf32>
    %156 = arith.addf %152, %155 : vector<8x1024xf32>
    %157 = vector.extract_strided_slice %156 {offsets = [0, 0], sizes = [8, 768], strides = [1, 1]} : vector<8x1024xf32> to vector<8x768xf32>
    %158 = arith.negf %157 : vector<8x768xf32>
    %159 = math.exp %158 : vector<8x768xf32>
    %cst_73 = arith.constant 1.000000e+00 : f32
    %160 = vector.broadcast %cst_73 : f32 to vector<8x768xf32>
    %161 = arith.addf %160, %159 : vector<8x768xf32>
    %162 = arith.divf %160, %161 : vector<8x768xf32>
    %163 = vector.extract_strided_slice %162 {offsets = [0, 0], sizes = [8, 256], strides = [1, 1]} : vector<8x768xf32> to vector<8x256xf32>
    %164 = vector.extract_strided_slice %162 {offsets = [0, 256], sizes = [8, 256], strides = [1, 1]} : vector<8x768xf32> to vector<8x256xf32>
    %165 = vector.extract_strided_slice %162 {offsets = [0, 512], sizes = [8, 256], strides = [1, 1]} : vector<8x768xf32> to vector<8x256xf32>
    %166 = vector.extract_strided_slice %156 {offsets = [0, 768], sizes = [8, 256], strides = [1, 1]} : vector<8x1024xf32> to vector<8x256xf32>
    %167 = math.tanh %166 : vector<8x256xf32>
    %c0_74 = arith.constant 0 : index
    %c0_75 = arith.constant 0 : index
    %168 = vector.load %arg10[%c0_74, %c0_75] : memref<8x256xf32, #tpu.memory_space<vmem>>, vector<8x256xf32>
    %169 = arith.mulf %164, %168 : vector<8x256xf32>
    %170 = arith.mulf %163, %167 : vector<8x256xf32>
    %171 = arith.addf %169, %170 : vector<8x256xf32>
    %172 = math.tanh %171 : vector<8x256xf32>
    %173 = arith.mulf %165, %172 : vector<8x256xf32>
    %c0_76 = arith.constant 0 : index
    %c0_77 = arith.constant 0 : index
    %174 = vector.load %arg10[%c0_76, %c0_77] : memref<8x256xf32, #tpu.memory_space<vmem>>, vector<8x256xf32>
    tpu.vector_store %arg10[%c0_76, %c0_77], %171 {strides = array<i32>} : memref<8x256xf32, #tpu.memory_space<vmem>>, vector<8x256xf32>,
    %c0_78 = arith.constant 0 : index
    %c0_79 = arith.constant 0 : index
    %175 = vector.load %arg9[%c0_78, %c0_79] : memref<8x256xf32, #tpu.memory_space<vmem>>, vector<8x256xf32>
    tpu.vector_store %arg9[%c0_78, %c0_79], %173 {strides = array<i32>} : memref<8x256xf32, #tpu.memory_space<vmem>>, vector<8x256xf32>,
    %176 = arith.index_cast %148 : i32 to index
    %c0_80 = arith.constant 0 : index
    %c0_81 = arith.constant 0 : index
    %177 = vector.load %arg6[%176, %c0_80, %c0_81] : memref<8x8x256xf32, #tpu.memory_space<vmem>>, vector<1x8x256xf32>
    %178 = vector.shape_cast %177 : vector<1x8x256xf32> to vector<8x256xf32>
    %179 = vector.shape_cast %173 : vector<8x256xf32> to vector<1x8x256xf32>
    tpu.vector_store %arg6[%176, %c0_80, %c0_81], %179 {strides = array<i32>} : memref<8x8x256xf32, #tpu.memory_space<vmem>>, vector<1x8x256xf32>,
    %c5_i32 = arith.constant 5 : i32
    %c2_i32_82 = arith.constant 2 : i32
    %180 = arith.muli %c2_i32_82, %c5_i32 : i32
    %c7_i32_83 = arith.constant 7 : i32
    %181 = arith.subi %c7_i32_83, %180 : i32
    %182 = arith.muli %arg0, %181 : i32
    %183 = arith.addi %c5_i32, %182 : i32
    %184 = arith.index_cast %183 : i32 to index
    %c0_84 = arith.constant 0 : index
    %c0_85 = arith.constant 0 : index
    %185 = vector.load %arg2[%184, %c0_84, %c0_85] : memref<8x8x1024xbf16, #tpu.memory_space<vmem>>, vector<1x8x1024xbf16>
    %186 = vector.shape_cast %185 : vector<1x8x1024xbf16> to vector<8x1024xbf16>
    %187 = arith.extf %186 : vector<8x1024xbf16> to vector<8x1024xf32>
    %c0_86 = arith.constant 0 : index
    %c0_87 = arith.constant 0 : index
    %188 = vector.load %arg9[%c0_86, %c0_87] : memref<8x256xf32, #tpu.memory_space<vmem>>, vector<8x256xf32>
    %189 = arith.truncf %188 : vector<8x256xf32> to vector<8x256xbf16>
    %cst_88 = arith.constant dense<0.000000e+00> : vector<8x1024xf32>
    %190 = tpu.matmul %189, %4, %cst_88 {dimension_numbers = #tpu.dot_dimension_numbers<[1], [0], [0], [1], [0, 0, 1, 1], [], []>} : vector<8x256xbf16>, vector<256x1024xbf16>, vector<8x1024xf32> -> vector<8x1024xf32>
    %191 = arith.addf %187, %190 : vector<8x1024xf32>
    %192 = vector.extract_strided_slice %191 {offsets = [0, 0], sizes = [8, 768], strides = [1, 1]} : vector<8x1024xf32> to vector<8x768xf32>
    %193 = arith.negf %192 : vector<8x768xf32>
    %194 = math.exp %193 : vector<8x768xf32>
    %cst_89 = arith.constant 1.000000e+00 : f32
    %195 = vector.broadcast %cst_89 : f32 to vector<8x768xf32>
    %196 = arith.addf %195, %194 : vector<8x768xf32>
    %197 = arith.divf %195, %196 : vector<8x768xf32>
    %198 = vector.extract_strided_slice %197 {offsets = [0, 0], sizes = [8, 256], strides = [1, 1]} : vector<8x768xf32> to vector<8x256xf32>
    %199 = vector.extract_strided_slice %197 {offsets = [0, 256], sizes = [8, 256], strides = [1, 1]} : vector<8x768xf32> to vector<8x256xf32>
    %200 = vector.extract_strided_slice %197 {offsets = [0, 512], sizes = [8, 256], strides = [1, 1]} : vector<8x768xf32> to vector<8x256xf32>
    %201 = vector.extract_strided_slice %191 {offsets = [0, 768], sizes = [8, 256], strides = [1, 1]} : vector<8x1024xf32> to vector<8x256xf32>
    %202 = math.tanh %201 : vector<8x256xf32>
    %c0_90 = arith.constant 0 : index
    %c0_91 = arith.constant 0 : index
    %203 = vector.load %arg10[%c0_90, %c0_91] : memref<8x256xf32, #tpu.memory_space<vmem>>, vector<8x256xf32>
    %204 = arith.mulf %199, %203 : vector<8x256xf32>
    %205 = arith.mulf %198, %202 : vector<8x256xf32>
    %206 = arith.addf %204, %205 : vector<8x256xf32>
    %207 = math.tanh %206 : vector<8x256xf32>
    %208 = arith.mulf %200, %207 : vector<8x256xf32>
    %c0_92 = arith.constant 0 : index
    %c0_93 = arith.constant 0 : index
    %209 = vector.load %arg10[%c0_92, %c0_93] : memref<8x256xf32, #tpu.memory_space<vmem>>, vector<8x256xf32>
    tpu.vector_store %arg10[%c0_92, %c0_93], %206 {strides = array<i32>} : memref<8x256xf32, #tpu.memory_space<vmem>>, vector<8x256xf32>,
    %c0_94 = arith.constant 0 : index
    %c0_95 = arith.constant 0 : index
    %210 = vector.load %arg9[%c0_94, %c0_95] : memref<8x256xf32, #tpu.memory_space<vmem>>, vector<8x256xf32>
    tpu.vector_store %arg9[%c0_94, %c0_95], %208 {strides = array<i32>} : memref<8x256xf32, #tpu.memory_space<vmem>>, vector<8x256xf32>,
    %211 = arith.index_cast %183 : i32 to index
    %c0_96 = arith.constant 0 : index
    %c0_97 = arith.constant 0 : index
    %212 = vector.load %arg6[%211, %c0_96, %c0_97] : memref<8x8x256xf32, #tpu.memory_space<vmem>>, vector<1x8x256xf32>
    %213 = vector.shape_cast %212 : vector<1x8x256xf32> to vector<8x256xf32>
    %214 = vector.shape_cast %208 : vector<8x256xf32> to vector<1x8x256xf32>
    tpu.vector_store %arg6[%211, %c0_96, %c0_97], %214 {strides = array<i32>} : memref<8x8x256xf32, #tpu.memory_space<vmem>>, vector<1x8x256xf32>,
    %c6_i32 = arith.constant 6 : i32
    %c2_i32_98 = arith.constant 2 : i32
    %215 = arith.muli %c2_i32_98, %c6_i32 : i32
    %c7_i32_99 = arith.constant 7 : i32
    %216 = arith.subi %c7_i32_99, %215 : i32
    %217 = arith.muli %arg0, %216 : i32
    %218 = arith.addi %c6_i32, %217 : i32
    %219 = arith.index_cast %218 : i32 to index
    %c0_100 = arith.constant 0 : index
    %c0_101 = arith.constant 0 : index
    %220 = vector.load %arg2[%219, %c0_100, %c0_101] : memref<8x8x1024xbf16, #tpu.memory_space<vmem>>, vector<1x8x1024xbf16>
    %221 = vector.shape_cast %220 : vector<1x8x1024xbf16> to vector<8x1024xbf16>
    %222 = arith.extf %221 : vector<8x1024xbf16> to vector<8x1024xf32>
    %c0_102 = arith.constant 0 : index
    %c0_103 = arith.constant 0 : index
    %223 = vector.load %arg9[%c0_102, %c0_103] : memref<8x256xf32, #tpu.memory_space<vmem>>, vector<8x256xf32>
    %224 = arith.truncf %223 : vector<8x256xf32> to vector<8x256xbf16>
    %cst_104 = arith.constant dense<0.000000e+00> : vector<8x1024xf32>
    %225 = tpu.matmul %224, %4, %cst_104 {dimension_numbers = #tpu.dot_dimension_numbers<[1], [0], [0], [1], [0, 0, 1, 1], [], []>} : vector<8x256xbf16>, vector<256x1024xbf16>, vector<8x1024xf32> -> vector<8x1024xf32>
    %226 = arith.addf %222, %225 : vector<8x1024xf32>
    %227 = vector.extract_strided_slice %226 {offsets = [0, 0], sizes = [8, 768], strides = [1, 1]} : vector<8x1024xf32> to vector<8x768xf32>
    %228 = arith.negf %227 : vector<8x768xf32>
    %229 = math.exp %228 : vector<8x768xf32>
    %cst_105 = arith.constant 1.000000e+00 : f32
    %230 = vector.broadcast %cst_105 : f32 to vector<8x768xf32>
    %231 = arith.addf %230, %229 : vector<8x768xf32>
    %232 = arith.divf %230, %231 : vector<8x768xf32>
    %233 = vector.extract_strided_slice %232 {offsets = [0, 0], sizes = [8, 256], strides = [1, 1]} : vector<8x768xf32> to vector<8x256xf32>
    %234 = vector.extract_strided_slice %232 {offsets = [0, 256], sizes = [8, 256], strides = [1, 1]} : vector<8x768xf32> to vector<8x256xf32>
    %235 = vector.extract_strided_slice %232 {offsets = [0, 512], sizes = [8, 256], strides = [1, 1]} : vector<8x768xf32> to vector<8x256xf32>
    %236 = vector.extract_strided_slice %226 {offsets = [0, 768], sizes = [8, 256], strides = [1, 1]} : vector<8x1024xf32> to vector<8x256xf32>
    %237 = math.tanh %236 : vector<8x256xf32>
    %c0_106 = arith.constant 0 : index
    %c0_107 = arith.constant 0 : index
    %238 = vector.load %arg10[%c0_106, %c0_107] : memref<8x256xf32, #tpu.memory_space<vmem>>, vector<8x256xf32>
    %239 = arith.mulf %234, %238 : vector<8x256xf32>
    %240 = arith.mulf %233, %237 : vector<8x256xf32>
    %241 = arith.addf %239, %240 : vector<8x256xf32>
    %242 = math.tanh %241 : vector<8x256xf32>
    %243 = arith.mulf %235, %242 : vector<8x256xf32>
    %c0_108 = arith.constant 0 : index
    %c0_109 = arith.constant 0 : index
    %244 = vector.load %arg10[%c0_108, %c0_109] : memref<8x256xf32, #tpu.memory_space<vmem>>, vector<8x256xf32>
    tpu.vector_store %arg10[%c0_108, %c0_109], %241 {strides = array<i32>} : memref<8x256xf32, #tpu.memory_space<vmem>>, vector<8x256xf32>,
    %c0_110 = arith.constant 0 : index
    %c0_111 = arith.constant 0 : index
    %245 = vector.load %arg9[%c0_110, %c0_111] : memref<8x256xf32, #tpu.memory_space<vmem>>, vector<8x256xf32>
    tpu.vector_store %arg9[%c0_110, %c0_111], %243 {strides = array<i32>} : memref<8x256xf32, #tpu.memory_space<vmem>>, vector<8x256xf32>,
    %246 = arith.index_cast %218 : i32 to index
    %c0_112 = arith.constant 0 : index
    %c0_113 = arith.constant 0 : index
    %247 = vector.load %arg6[%246, %c0_112, %c0_113] : memref<8x8x256xf32, #tpu.memory_space<vmem>>, vector<1x8x256xf32>
    %248 = vector.shape_cast %247 : vector<1x8x256xf32> to vector<8x256xf32>
    %249 = vector.shape_cast %243 : vector<8x256xf32> to vector<1x8x256xf32>
    tpu.vector_store %arg6[%246, %c0_112, %c0_113], %249 {strides = array<i32>} : memref<8x8x256xf32, #tpu.memory_space<vmem>>, vector<1x8x256xf32>,
    %c7_i32_114 = arith.constant 7 : i32
    %c2_i32_115 = arith.constant 2 : i32
    %250 = arith.muli %c2_i32_115, %c7_i32_114 : i32
    %c7_i32_116 = arith.constant 7 : i32
    %251 = arith.subi %c7_i32_116, %250 : i32
    %252 = arith.muli %arg0, %251 : i32
    %253 = arith.addi %c7_i32_114, %252 : i32
    %254 = arith.index_cast %253 : i32 to index
    %c0_117 = arith.constant 0 : index
    %c0_118 = arith.constant 0 : index
    %255 = vector.load %arg2[%254, %c0_117, %c0_118] : memref<8x8x1024xbf16, #tpu.memory_space<vmem>>, vector<1x8x1024xbf16>
    %256 = vector.shape_cast %255 : vector<1x8x1024xbf16> to vector<8x1024xbf16>
    %257 = arith.extf %256 : vector<8x1024xbf16> to vector<8x1024xf32>
    %c0_119 = arith.constant 0 : index
    %c0_120 = arith.constant 0 : index
    %258 = vector.load %arg9[%c0_119, %c0_120] : memref<8x256xf32, #tpu.memory_space<vmem>>, vector<8x256xf32>
    %259 = arith.truncf %258 : vector<8x256xf32> to vector<8x256xbf16>
    %cst_121 = arith.constant dense<0.000000e+00> : vector<8x1024xf32>
    %260 = tpu.matmul %259, %4, %cst_121 {dimension_numbers = #tpu.dot_dimension_numbers<[1], [0], [0], [1], [0, 0, 1, 1], [], []>} : vector<8x256xbf16>, vector<256x1024xbf16>, vector<8x1024xf32> -> vector<8x1024xf32>
    %261 = arith.addf %257, %260 : vector<8x1024xf32>
    %262 = vector.extract_strided_slice %261 {offsets = [0, 0], sizes = [8, 768], strides = [1, 1]} : vector<8x1024xf32> to vector<8x768xf32>
    %263 = arith.negf %262 : vector<8x768xf32>
    %264 = math.exp %263 : vector<8x768xf32>
    %cst_122 = arith.constant 1.000000e+00 : f32
    %265 = vector.broadcast %cst_122 : f32 to vector<8x768xf32>
    %266 = arith.addf %265, %264 : vector<8x768xf32>
    %267 = arith.divf %265, %266 : vector<8x768xf32>
    %268 = vector.extract_strided_slice %267 {offsets = [0, 0], sizes = [8, 256], strides = [1, 1]} : vector<8x768xf32> to vector<8x256xf32>
    %269 = vector.extract_strided_slice %267 {offsets = [0, 256], sizes = [8, 256], strides = [1, 1]} : vector<8x768xf32> to vector<8x256xf32>
    %270 = vector.extract_strided_slice %267 {offsets = [0, 512], sizes = [8, 256], strides = [1, 1]} : vector<8x768xf32> to vector<8x256xf32>
    %271 = vector.extract_strided_slice %261 {offsets = [0, 768], sizes = [8, 256], strides = [1, 1]} : vector<8x1024xf32> to vector<8x256xf32>
    %272 = math.tanh %271 : vector<8x256xf32>
    %c0_123 = arith.constant 0 : index
    %c0_124 = arith.constant 0 : index
    %273 = vector.load %arg10[%c0_123, %c0_124] : memref<8x256xf32, #tpu.memory_space<vmem>>, vector<8x256xf32>
    %274 = arith.mulf %269, %273 : vector<8x256xf32>
    %275 = arith.mulf %268, %272 : vector<8x256xf32>
    %276 = arith.addf %274, %275 : vector<8x256xf32>
    %277 = math.tanh %276 : vector<8x256xf32>
    %278 = arith.mulf %270, %277 : vector<8x256xf32>
    %c0_125 = arith.constant 0 : index
    %c0_126 = arith.constant 0 : index
    %279 = vector.load %arg10[%c0_125, %c0_126] : memref<8x256xf32, #tpu.memory_space<vmem>>, vector<8x256xf32>
    tpu.vector_store %arg10[%c0_125, %c0_126], %276 {strides = array<i32>} : memref<8x256xf32, #tpu.memory_space<vmem>>, vector<8x256xf32>,
    %c0_127 = arith.constant 0 : index
    %c0_128 = arith.constant 0 : index
    %280 = vector.load %arg9[%c0_127, %c0_128] : memref<8x256xf32, #tpu.memory_space<vmem>>, vector<8x256xf32>
    tpu.vector_store %arg9[%c0_127, %c0_128], %278 {strides = array<i32>} : memref<8x256xf32, #tpu.memory_space<vmem>>, vector<8x256xf32>,
    %281 = arith.index_cast %253 : i32 to index
    %c0_129 = arith.constant 0 : index
    %c0_130 = arith.constant 0 : index
    %282 = vector.load %arg6[%281, %c0_129, %c0_130] : memref<8x8x256xf32, #tpu.memory_space<vmem>>, vector<1x8x256xf32>
    %283 = vector.shape_cast %282 : vector<1x8x256xf32> to vector<8x256xf32>
    %284 = vector.shape_cast %278 : vector<8x256xf32> to vector<1x8x256xf32>
    tpu.vector_store %arg6[%281, %c0_129, %c0_130], %284 {strides = array<i32>} : memref<8x8x256xf32, #tpu.memory_space<vmem>>, vector<1x8x256xf32>,
    %c8_i32 = arith.constant 8 : i32
    %c0_i32_131 = arith.constant 0 : i32
    %285 = arith.cmpi eq, %arg1, %c0_i32_131 : i32
    %286 = arith.extui %285 : i1 to i32
    %c0_i32_132 = arith.constant 0 : i32
    %287 = arith.cmpi ne, %286, %c0_i32_132 : i32
    scf.if %287 {
      %c0_133 = arith.constant 0 : index
      %c0_134 = arith.constant 0 : index
      %288 = vector.load %arg9[%c0_133, %c0_134] : memref<8x256xf32, #tpu.memory_space<vmem>>, vector<8x256xf32>
      %c0_135 = arith.constant 0 : index
      %c0_136 = arith.constant 0 : index
      %c0_137 = arith.constant 0 : index
      %289 = vector.load %arg7[%c0_135, %c0_136, %c0_137] : memref<1x8x256xf32, #tpu.memory_space<vmem>>, vector<1x8x256xf32>
      %290 = vector.shape_cast %289 : vector<1x8x256xf32> to vector<8x256xf32>
      %291 = vector.shape_cast %288 : vector<8x256xf32> to vector<1x8x256xf32>
      tpu.vector_store %arg7[%c0_135, %c0_136, %c0_137], %291 {strides = array<i32>} : memref<1x8x256xf32, #tpu.memory_space<vmem>>, vector<1x8x256xf32>,
      %c0_138 = arith.constant 0 : index
      %c0_139 = arith.constant 0 : index
      %292 = vector.load %arg10[%c0_138, %c0_139] : memref<8x256xf32, #tpu.memory_space<vmem>>, vector<8x256xf32>
      %c0_140 = arith.constant 0 : index
      %c0_141 = arith.constant 0 : index
      %c0_142 = arith.constant 0 : index
      %293 = vector.load %arg8[%c0_140, %c0_141, %c0_142] : memref<1x8x256xf32, #tpu.memory_space<vmem>>, vector<1x8x256xf32>
      %294 = vector.shape_cast %293 : vector<1x8x256xf32> to vector<8x256xf32>
      %295 = vector.shape_cast %292 : vector<8x256xf32> to vector<1x8x256xf32>
      tpu.vector_store %arg8[%c0_140, %c0_141, %c0_142], %295 {strides = array<i32>} : memref<1x8x256xf32, #tpu.memory_space<vmem>>, vector<1x8x256xf32>,
    } else {
    }
    return
  }
  func.func @transform_0(%arg0: i32, %arg1: i32) -> (i32, i32, i32) {
    %c1_i32 = arith.constant 1 : i32
    %0 = arith.subi %c1_i32, %arg0 : i32
    %1 = arith.muli %0, %arg1 : i32
    %c0_i32 = arith.constant 0 : i32
    %2 = arith.subi %c0_i32, %arg1 : i32
    %3 = arith.muli %arg0, %2 : i32
    %4 = arith.addi %1, %3 : i32
    %c0_i32_0 = arith.constant 0 : i32
    %c0_i32_1 = arith.constant 0 : i32
    return %4, %c0_i32_0, %arg0 : i32, i32, i32
  }
  func.func @transform_1(%arg0: i32, %arg1: i32) -> (i32, i32, i32) {
    %c0_i32 = arith.constant 0 : i32
    %c0_i32_0 = arith.constant 0 : i32
    %c0_i32_1 = arith.constant 0 : i32
    return %arg0, %c0_i32, %c0_i32_0 : i32, i32, i32
  }
  func.func @transform_2(%arg0: i32, %arg1: i32) -> (i32, i32, i32) {
    %c0_i32 = arith.constant 0 : i32
    %c0_i32_0 = arith.constant 0 : i32
    %c0_i32_1 = arith.constant 0 : i32
    return %arg0, %c0_i32, %c0_i32_0 : i32, i32, i32
  }
  func.func @transform_3(%arg0: i32, %arg1: i32) -> (i32, i32, i32) {
    %c0_i32 = arith.constant 0 : i32
    %c0_i32_0 = arith.constant 0 : i32
    %c0_i32_1 = arith.constant 0 : i32
    return %arg0, %c0_i32, %c0_i32_0 : i32, i32, i32
  }
  func.func @transform_4(%arg0: i32, %arg1: i32) -> (i32, i32, i32) {
    %c1_i32 = arith.constant 1 : i32
    %0 = arith.subi %c1_i32, %arg0 : i32
    %1 = arith.muli %0, %arg1 : i32
    %c0_i32 = arith.constant 0 : i32
    %2 = arith.subi %c0_i32, %arg1 : i32
    %3 = arith.muli %arg0, %2 : i32
    %4 = arith.addi %1, %3 : i32
    %c0_i32_0 = arith.constant 0 : i32
    %c0_i32_1 = arith.constant 0 : i32
    return %4, %c0_i32_0, %arg0 : i32, i32, i32
  }
  func.func @transform_5(%arg0: i32, %arg1: i32) -> (i32, i32, i32) {
    %c0_i32 = arith.constant 0 : i32
    %c0_i32_0 = arith.constant 0 : i32
    %c0_i32_1 = arith.constant 0 : i32
    return %arg0, %c0_i32, %c0_i32_0 : i32, i32, i32
  }
  func.func @transform_6(%arg0: i32, %arg1: i32) -> (i32, i32, i32) {
    %c0_i32 = arith.constant 0 : i32
    %c0_i32_0 = arith.constant 0 : i32
    %c0_i32_1 = arith.constant 0 : i32
    return %arg0, %c0_i32, %c0_i32_0 : i32, i32, i32
  }
}

</mosaic_0001>

<bundles_post_ra>
// kernel: net_forward.4
= control target key start
LH: loop header
LB: loop body
LE: loop exit
PB: predicated region body
PF: predicated region fallthrough
CT: control target
= control target key end

     0   :  { %8 = vsyncpa [#allocation3], 0  ;;  %s5858_s0 = inlined_call_operand.vmem [shape: f32[64,400], index: 0, kind: input, shape index: {}]   ;;  %s5859_s1 = inlined_call_operand.hbm [shape: bf16[400,2048], index: 1, kind: input, shape index: {}]   ;;  %s5860_s2 = inlined_call_operand.hbm [shape: f32[1,2048], index: 2, kind: input, shape index: {}]   ;;  %s5861_s3 = inlined_call_operand.vmem [shape: bf16[64,2048], index: 3, kind: output, shape index: {}]  }
   0x1   :  { %9 = vsyncpa [#allocation5], 0  ;;  %s5076_s12 = smov [#allocation2]   ;;  %s5028_s16 = scalar_lea.hbm %s5859_s1, 51200 }
   0x2   :  { %s17_s13 = sshll.u32 %s5076_s12, 4  ;;  %p5029_p0 = scmp.ne.s32.totalorder %s5859_s1, %s5028_s16  ;;  %s18_s13 = int_to_ptr.vmem [resolvable:$true] %s17_s13 }
   0x3   :  { %p5032_p1 = scmp.lt.u32.totalorder %s5028_s16, %s5859_s1 }
   0x5   :  { %p5034_p2 = pnand %p5032_p1, %p5029_p0 }
   0x7   :  { %5037 = shalt.err (!%p5034_p2)
}
   0x8   :  { %s5038_s21 = scalar_lea.vmem %s18_s13, 51200  ;;  %p5043_p4 = scmp.lt.s32.totalorder %s18_s13, %s18_s13 }
   0x9   :  { %p5039_p3 = scmp.ne.s32.totalorder %s18_s13, %s5038_s21  ;;  %p5044_p5 = scmp.lt.s32.totalorder %s5038_s21, %s5038_s21 }
   0xb   :  { %p5045_p6 = por %p5044_p5, %p5043_p4 }
   0xd   :  { %p5046_p7 = pnand %p5045_p6, %p5039_p3 }
   0xf   :  { %5049 = shalt.err (!%p5046_p7)
}
  0x10   :  { %s5077_s22 = smov 1024   ;;  %s5078_s23 = smov 64  }
  0x11   :  { %23 = dma.hbm_to_vmem [thread:$0]  %s5859_s1, 51200, %s18_s13, [#allocation3], %s5077_s22, %s5077_s22, %s5078_s23  }
  0x12   :  { %s5079_s26 = smov [#allocation4]   ;;  %s5050_s30 = scalar_lea.hbm %s5860_s2, 256 }
  0x13   :  { %s30_s27 = sshll.u32 %s5079_s26, 4  ;;  %p5051_p8 = scmp.ne.s32.totalorder %s5860_s2, %s5050_s30  ;;  %s31_s27 = int_to_ptr.vmem [resolvable:$true] %s30_s27 }
  0x14   :  { %p5054_p9 = scmp.lt.u32.totalorder %s5050_s30, %s5860_s2 }
  0x16   :  { %p5056_p10 = pnand %p5054_p9, %p5051_p8 }
  0x18   :  { %5059 = shalt.err (!%p5056_p10)
}
  0x19   :  { %s5060_s8 = scalar_lea.vmem %s31_s27, 256  ;;  %p5065_p12 = scmp.lt.s32.totalorder %s31_s27, %s31_s27 }
  0x1a   :  { %p5061_p11 = scmp.ne.s32.totalorder %s31_s27, %s5060_s8  ;;  %p5066_p13 = scmp.lt.s32.totalorder %s5060_s8, %s5060_s8 }
  0x1c   :  { %p5067_p0 = por %p5066_p13, %p5065_p12 }
  0x1e   :  { %p5068_p1 = pnand %p5067_p0, %p5061_p11 }
  0x20   :  { %5071 = shalt.err (!%p5068_p1)
}
  0x21   :  { %33 = dma.hbm_to_vmem [thread:$0]  %s5860_s2, 256, %s31_s27, [#allocation5]  }
  0x22   :  { %5072 = dma.done.wait [#allocation3], 51200  }
  0x23   :  { %5073 = vsyncadd [#allocation3], 4294916096 }
  0x24   :  { %5074 = dma.done.wait [#allocation5], 256  }
  0x25   :  { %5075 = vsyncadd [#allocation5], 4294967040  ;;  %v89_v0 = vld [vmem:[#allocation2] sm:$0xff]  ;;  %v90_v2 = vld [vmem:[#allocation2 + $0x8] sm:$0xff]  ;;  %vm2573_vm0 = vcmask 130048  }
  0x26   :  { %v97_v1 = vld [vmem:[#allocation2 + $0x40] sm:$0xff]  ;;  %v98_v4 = vld [vmem:[#allocation2 + $0x48] sm:$0xff] }
  0x27   :  { %v4209_v3 = vcombine.high %v89_v0, %v97_v1  ;;  %v4208_v5 = vcombine.low %v89_v0, %v97_v1  ;;  %v105_v6 = vld [vmem:[#allocation2 + $0x80] sm:$0xff]  ;;  %v4211_v8 = vcombine.high %v90_v2, %v98_v4  ;;  %v4210_v9 = vcombine.low %v90_v2, %v98_v4  ;;  %v106_v11 = vld [vmem:[#allocation2 + $0x88] sm:$0xff] }
  0x28   :  { %v113_v7 = vld [vmem:[#allocation2 + $0xc0] sm:$0xff]  ;;  %v114_v12 = vld [vmem:[#allocation2 + $0xc8] sm:$0xff] }
  0x29   :  { %v4225_v10 = vcombine.high %v105_v6, %v113_v7  ;;  %v121_v13 = vld [vmem:[#allocation2 + $0x100] sm:$0xff]  ;;  %2586 = vmatprep.subr.bf16.mxu0 %v4209_v3  ;;  %v4227_v14 = vcombine.high %v106_v11, %v114_v12  ;;  %v122_v16 = vld [vmem:[#allocation2 + $0x108] sm:$0xff]  ;;  %2732 = vmatprep.subr.bf16.mxu1 %v4211_v8  ;;  %v4224_v18 = vcombine.low %v105_v6, %v113_v7 }
  0x2a   :  { %v129_v15 = vld [vmem:[#allocation2 + $0x140] sm:$0xff]  ;;  %v130_v17 = vld [vmem:[#allocation2 + $0x148] sm:$0xff]  ;;  %2587 = vmatpush1.bf16.msra.mxu0 %v4208_v5  ;;  %2733 = vmatpush1.bf16.msra.mxu1 %v4210_v9  ;;  %v4226_v19 = vcombine.low %v106_v11, %v114_v12 }
  0x2b   :  { %2588 = vmatprep.subr.bf16.mxu0 %v4225_v10  ;;  %v4241_v20 = vcombine.high %v121_v13, %v129_v15  ;;  %2734 = vmatprep.subr.bf16.mxu1 %v4227_v14  ;;  %v4243_v21 = vcombine.high %v122_v16, %v130_v17  ;;  %v137_v22 = vld [vmem:[#allocation2 + $0x180] sm:$0xff]  ;;  %v138_v24 = vld [vmem:[#allocation2 + $0x188] sm:$0xff]  ;;  %v4240_v26 = vcombine.low %v121_v13, %v129_v15 }
  0x2c   :  { %v145_v23 = vld [vmem:[#allocation2 + $0x1c0] sm:$0xff]  ;;  %v146_v25 = vld [vmem:[#allocation2 + $0x1c8] sm:$0xff]  ;;  %v4242_v27 = vcombine.low %v122_v16, %v130_v17 }
  0x2d   :  { %v4257_v28 = vcombine.high %v137_v22, %v145_v23  ;;  %v4259_v29 = vcombine.high %v138_v24, %v146_v25  ;;  %v153_v30 = vld [vmem:[#allocation2 + $0x200] sm:$0xff]  ;;  %v154_v32 = vld [vmem:[#allocation2 + $0x208] sm:$0xff]  ;;  %v4256_v34 = vcombine.low %v137_v22, %v145_v23  ;;  %v4258_v35 = vcombine.low %v138_v24, %v146_v25 }
  0x2e   :  { %2589 = vmatpush1.bf16.msra.mxu0 %v4224_v18  ;;  %2735 = vmatpush1.bf16.msra.mxu1 %v4226_v19  ;;  %v161_v31 = vld [vmem:[#allocation2 + $0x240] sm:$0xff]  ;;  %v162_v33 = vld [vmem:[#allocation2 + $0x248] sm:$0xff] }
  0x2f   :  { %2590 = vmatprep.subr.bf16.mxu0 %v4241_v20  ;;  %2736 = vmatprep.subr.bf16.mxu1 %v4243_v21  ;;  %v4273_v36 = vcombine.high %v153_v30, %v161_v31  ;;  %v4275_v37 = vcombine.high %v154_v32, %v162_v33  ;;  %v169_v38 = vld [vmem:[#allocation2 + $0x280] sm:$0xff]  ;;  %v170_v40 = vld [vmem:[#allocation2 + $0x288] sm:$0xff]  ;;  %v4272_v42 = vcombine.low %v153_v30, %v161_v31 }
  0x30   :  { %v177_v39 = vld [vmem:[#allocation2 + $0x2c0] sm:$0xff]  ;;  %v178_v41 = vld [vmem:[#allocation2 + $0x2c8] sm:$0xff]  ;;  %v4274_v43 = vcombine.low %v154_v32, %v162_v33 }
  0x31   :  { %v4289_v44 = vcombine.high %v169_v38, %v177_v39  ;;  %v4291_v45 = vcombine.high %v170_v40, %v178_v41  ;;  %v185_v46 = vld [vmem:[#allocation2 + $0x300] sm:$0xff]  ;;  %v186_v48 = vld [vmem:[#allocation2 + $0x308] sm:$0xff]  ;;  %v4288_v50 = vcombine.low %v169_v38, %v177_v39  ;;  %v4290_v51 = vcombine.low %v170_v40, %v178_v41 }
  0x32   :  { %2591 = vmatpush1.bf16.msra.mxu0 %v4240_v26  ;;  %2737 = vmatpush1.bf16.msra.mxu1 %v4242_v27  ;;  %v193_v47 = vld [vmem:[#allocation2 + $0x340] sm:$0xff]  ;;  %v194_v49 = vld [vmem:[#allocation2 + $0x348] sm:$0xff] }
  0x33   :  { %2592 = vmatprep.subr.bf16.mxu0 %v4257_v28  ;;  %2738 = vmatprep.subr.bf16.mxu1 %v4259_v29  ;;  %v4305_v52 = vcombine.high %v185_v46, %v193_v47  ;;  %v42_v53 = vld [vmem:[%s5858_s0 + $0x8] sm:$0xff]  ;;  %v4307_v55 = vcombine.high %v186_v48, %v194_v49  ;;  %v201_v56 = vld [vmem:[#allocation2 + $0x380] sm:$0xff]  ;;  %v4304_v61 = vcombine.low %v185_v46, %v193_v47 }
  0x34   :  { %v46_v54 = vld [vmem:[%s5858_s0 + $0x28] sm:$0xff]  ;;  %v209_v57 = vld [vmem:[#allocation2 + $0x3c0] sm:$0xff]  ;;  %v4306_v62 = vcombine.low %v186_v48, %v194_v49 }
  0x35   :  { %v5130_v58 = vpack.c.bf16 %v46_v54, %v42_v53  ;;  %v202_v59 = vld [vmem:[#allocation2 + $0x388] sm:$0xff]  ;;  %v4321_v63 = vcombine.high %v201_v56, %v209_v57  ;;  %v217_v1 = vld [vmem:[#allocation2 + $0x400] sm:$0xff]  ;;  %v4320_v5 = vcombine.low %v201_v56, %v209_v57 }
  0x36   :  { %2593 = vmatpush1.bf16.msra.mxu0 %v4256_v34  ;;  %2739 = vmatpush1.bf16.msra.mxu1 %v4258_v35  ;;  %v210_v60 = vld [vmem:[#allocation2 + $0x3c8] sm:$0xff]  ;;  %v225_v2 = vld [vmem:[#allocation2 + $0x440] sm:$0xff] }
  0x37   :  { %2594 = vmatprep.subr.bf16.mxu0 %v4273_v36  ;;  %2740 = vmatprep.subr.bf16.mxu1 %v4275_v37  ;;  %v4323_v0 = vcombine.high %v202_v59, %v210_v60  ;;  %v218_v3 = vld [vmem:[#allocation2 + $0x408] sm:$0xff]  ;;  %v4322_v6 = vcombine.low %v202_v59, %v210_v60  ;;  %v4337_v7 = vcombine.high %v217_v1, %v225_v2  ;;  %v233_v9 = vld [vmem:[#allocation2 + $0x480] sm:$0xff] }
  0x38   :  { %2618 = vmatprep.mubr.bf16.mxu0 %v5130_v58  ;;  %2764 = vmatprep.mubr.bf16.mxu1 %v5130_v58  ;;  %v226_v4 = vld [vmem:[#allocation2 + $0x448] sm:$0xff]  ;;  %v241_v10 = vld [vmem:[#allocation2 + $0x4c0] sm:$0xff]  ;;  %v4336_v13 = vcombine.low %v217_v1, %v225_v2 }
  0x39   :  { %v4339_v8 = vcombine.high %v218_v3, %v226_v4  ;;  %v234_v11 = vld [vmem:[#allocation2 + $0x488] sm:$0xff]  ;;  %v4338_v14 = vcombine.low %v218_v3, %v226_v4  ;;  %v4353_v15 = vcombine.high %v233_v9, %v241_v10  ;;  %v249_v17 = vld [vmem:[#allocation2 + $0x500] sm:$0xff]  ;;  %v4352_v21 = vcombine.low %v233_v9, %v241_v10 }
  0x3a   :  { %2595 = vmatpush1.bf16.msra.mxu0 %v4272_v42  ;;  %2741 = vmatpush1.bf16.msra.mxu1 %v4274_v43  ;;  %v242_v12 = vld [vmem:[#allocation2 + $0x4c8] sm:$0xff]  ;;  %v257_v18 = vld [vmem:[#allocation2 + $0x540] sm:$0xff] }
  0x3b   :  { %2596 = vmatprep.subr.bf16.mxu0 %v4289_v44  ;;  %2742 = vmatprep.subr.bf16.mxu1 %v4291_v45  ;;  %v4355_v16 = vcombine.high %v234_v11, %v242_v12  ;;  %v250_v19 = vld [vmem:[#allocation2 + $0x508] sm:$0xff]  ;;  %v4354_v22 = vcombine.low %v234_v11, %v242_v12  ;;  %v4369_v23 = vcombine.high %v249_v17, %v257_v18  ;;  %v265_v25 = vld [vmem:[#allocation2 + $0x580] sm:$0xff] }
  0x3c   :  { %v258_v20 = vld [vmem:[#allocation2 + $0x548] sm:$0xff]  ;;  %v273_v26 = vld [vmem:[#allocation2 + $0x5c0] sm:$0xff]  ;;  %v4368_v29 = vcombine.low %v249_v17, %v257_v18 }
  0x3d   :  { %v4371_v24 = vcombine.high %v250_v19, %v258_v20  ;;  %v266_v27 = vld [vmem:[#allocation2 + $0x588] sm:$0xff]  ;;  %v4370_v30 = vcombine.low %v250_v19, %v258_v20  ;;  %v4385_v31 = vcombine.high %v265_v25, %v273_v26  ;;  %v281_v33 = vld [vmem:[#allocation2 + $0x600] sm:$0xff]  ;;  %v4384_v37 = vcombine.low %v265_v25, %v273_v26 }
  0x3e   :  { %2597 = vmatpush1.bf16.msra.mxu0 %v4288_v50  ;;  %2743 = vmatpush1.bf16.msra.mxu1 %v4290_v51  ;;  %v274_v28 = vld [vmem:[#allocation2 + $0x5c8] sm:$0xff]  ;;  %v289_v34 = vld [vmem:[#allocation2 + $0x640] sm:$0xff] }
  0x3f   :  { %2598 = vmatprep.subr.bf16.mxu0 %v4305_v52  ;;  %2744 = vmatprep.subr.bf16.mxu1 %v4307_v55  ;;  %v4387_v32 = vcombine.high %v266_v27, %v274_v28  ;;  %v282_v35 = vld [vmem:[#allocation2 + $0x608] sm:$0xff]  ;;  %v4386_v38 = vcombine.low %v266_v27, %v274_v28  ;;  %v4401_v39 = vcombine.high %v281_v33, %v289_v34  ;;  %v297_v41 = vld [vmem:[#allocation2 + $0x680] sm:$0xff] }
  0x40   :  { %v290_v36 = vld [vmem:[#allocation2 + $0x648] sm:$0xff]  ;;  %v305_v42 = vld [vmem:[#allocation2 + $0x6c0] sm:$0xff]  ;;  %v4400_v45 = vcombine.low %v281_v33, %v289_v34 }
  0x41   :  { %v4403_v40 = vcombine.high %v282_v35, %v290_v36  ;;  %v298_v43 = vld [vmem:[#allocation2 + $0x688] sm:$0xff]  ;;  %v4402_v46 = vcombine.low %v282_v35, %v290_v36  ;;  %v4417_v47 = vcombine.high %v297_v41, %v305_v42  ;;  %v313_v49 = vld [vmem:[#allocation2 + $0x700] sm:$0xff]  ;;  %v4416_v53 = vcombine.low %v297_v41, %v305_v42 }
  0x42   :  { %2599 = vmatpush1.bf16.msra.mxu0 %v4304_v61  ;;  %2745 = vmatpush1.bf16.msra.mxu1 %v4306_v62  ;;  %v306_v44 = vld [vmem:[#allocation2 + $0x6c8] sm:$0xff]  ;;  %v321_v50 = vld [vmem:[#allocation2 + $0x740] sm:$0xff] }
  0x43   :  { %2600 = vmatprep.subr.bf16.mxu0 %v4321_v63  ;;  %2746 = vmatprep.subr.bf16.mxu1 %v4323_v0  ;;  %v4419_v48 = vcombine.high %v298_v43, %v306_v44  ;;  %v314_v51 = vld [vmem:[#allocation2 + $0x708] sm:$0xff]  ;;  %v4418_v54 = vcombine.low %v298_v43, %v306_v44  ;;  %v4433_v55 = vcombine.high %v313_v49, %v321_v50  ;;  %v329_v57 = vld [vmem:[#allocation2 + $0x780] sm:$0xff] }
  0x44   :  { %v322_v52 = vld [vmem:[#allocation2 + $0x748] sm:$0xff]  ;;  %v337_v59 = vld [vmem:[#allocation2 + $0x7c0] sm:$0xff]  ;;  %v4432_v62 = vcombine.low %v313_v49, %v321_v50 }
  0x45   :  { %v4435_v56 = vcombine.high %v314_v51, %v322_v52  ;;  %v330_v60 = vld [vmem:[#allocation2 + $0x788] sm:$0xff]  ;;  %v4434_v63 = vcombine.low %v314_v51, %v322_v52  ;;  %v4449_v0 = vcombine.high %v329_v57, %v337_v59  ;;  %v345_v2 = vld [vmem:[#allocation2 + $0x800] sm:$0xff] }
  0x46   :  { %2601 = vmatpush1.bf16.msra.mxu0 %v4320_v5  ;;  %2747 = vmatpush1.bf16.msra.mxu1 %v4322_v6  ;;  %v338_v61 = vld [vmem:[#allocation2 + $0x7c8] sm:$0xff]  ;;  %v353_v3 = vld [vmem:[#allocation2 + $0x840] sm:$0xff]  ;;  %v4448_v6 = vcombine.low %v329_v57, %v337_v59 }
  0x47   :  { %2602 = vmatprep.subr.bf16.mxu0 %v4337_v7  ;;  %2748 = vmatprep.subr.bf16.mxu1 %v4339_v8  ;;  %v4451_v1 = vcombine.high %v330_v60, %v338_v61  ;;  %v346_v4 = vld [vmem:[#allocation2 + $0x808] sm:$0xff]  ;;  %v41_v7 = vld [vmem:[%s5858_s0] sm:$0xff]  ;;  %v4450_v9 = vcombine.low %v330_v60, %v338_v61  ;;  %v4465_v10 = vcombine.high %v345_v2, %v353_v3 }
  0x48   :  { %v354_v5 = vld [vmem:[#allocation2 + $0x848] sm:$0xff]  ;;  %v45_v8 = vld [vmem:[%s5858_s0 + $0x20] sm:$0xff]  ;;  %v4464_v19 = vcombine.low %v345_v2, %v353_v3 }
  0x49   :  { %v4467_v11 = vcombine.high %v346_v4, %v354_v5  ;;  %v361_v12 = vld [vmem:[#allocation2 + $0x880] sm:$0xff]  ;;  %v50_v17 = vld [vmem:[%s5858_s0 + $0x48] sm:$0xff]  ;;  %v4466_v20 = vcombine.low %v346_v4, %v354_v5 }
  0x4a   :  { %2603 = vmatpush1.bf16.msra.mxu0 %v4336_v13  ;;  %2749 = vmatpush1.bf16.msra.mxu1 %v4338_v14  ;;  %v369_v13 = vld [vmem:[#allocation2 + $0x8c0] sm:$0xff]  ;;  %v362_v14 = vld [vmem:[#allocation2 + $0x888] sm:$0xff] }
  0x4b   :  { %2604 = vmatprep.subr.bf16.mxu0 %v4353_v15  ;;  %2750 = vmatprep.subr.bf16.mxu1 %v4355_v16  ;;  %v5140_v15 = vpack.c.bf16 %v45_v8, %v41_v7  ;;  %v370_v16 = vld [vmem:[#allocation2 + $0x8c8] sm:$0xff]  ;;  %v4480_v28 = vcombine.low %v361_v12, %v369_v13  ;;  %v393_v34 = vld [vmem:[#allocation2 + $0x980] sm:$0xff] }
  0x4c   :  { %v54_v18 = vld [vmem:[%s5858_s0 + $0x68] sm:$0xff]  ;;  %v401_v35 = vld [vmem:[#allocation2 + $0x9c0] sm:$0xff] }
  0x4d   :  { %v5148_v25 = vpack.c.bf16 %v54_v18, %v50_v17  ;;  %v378_v26 = vld [vmem:[#allocation2 + $0x908] sm:$0xff]  ;;  %v4513_v43 = vcombine.high %v393_v34, %v401_v35  ;;  %v4512_v50 = vcombine.low %v393_v34, %v401_v35  ;;  %v57_v51 = vld [vmem:[%s5858_s0 + $0x80] sm:$0xff] }
  0x4e   :  { %2605 = vmatpush1.bf16.msra.mxu0 %v4352_v21  ;;  %2751 = vmatpush1.bf16.msra.mxu1 %v4354_v22  ;;  %v4481_v21 = vcombine.high %v361_v12, %v369_v13  ;;  %v4483_v22 = vcombine.high %v362_v14, %v370_v16  ;;  %v386_v27 = vld [vmem:[#allocation2 + $0x948] sm:$0xff]  ;;  %v61_v52 = vld [vmem:[%s5858_s0 + $0xa0] sm:$0xff] }
  0x4f   :  { %2606 = vmatprep.subr.bf16.mxu0 %v4369_v23  ;;  %2752 = vmatprep.subr.bf16.mxu1 %v4371_v24  ;;  %v377_v23 = vld [vmem:[#allocation2 + $0x900] sm:$0xff]  ;;  %v4499_v33 = vcombine.high %v378_v26, %v386_v27  ;;  %v394_v36 = vld [vmem:[#allocation2 + $0x988] sm:$0xff]  ;;  %v4498_v42 = vcombine.low %v378_v26, %v386_v27  ;;  %v5180_v60 = vpack.c.bf16 %v61_v52, %v57_v51  ;;  %v108_v51 = vld [vmem:[#allocation2 + $0x98] sm:$0xff] }
  0x50   :  { %v385_v24 = vld [vmem:[#allocation2 + $0x940] sm:$0xff]  ;;  %v418_v49 = vld [vmem:[#allocation2 + $0xa48] sm:$0xff] }
  0x51   :  { %v4496_v41 = vcombine.low %v377_v23, %v385_v24  ;;  %v433_v57 = vld [vmem:[#allocation2 + $0xac0] sm:$0xff]  ;;  %v426_v59 = vld [vmem:[#allocation2 + $0xa88] sm:$0xff] }
  0x52   :  { %2607 = vmatpush1.bf16.msra.mxu0 %v4368_v29  ;;  %2753 = vmatpush1.bf16.msra.mxu1 %v4370_v30  ;;  %v49_v29 = vld [vmem:[%s5858_s0 + $0x40] sm:$0xff]  ;;  %v434_v61 = vld [vmem:[#allocation2 + $0xac8] sm:$0xff] }
  0x53   :  { %2608 = vmatprep.subr.bf16.mxu0 %v4385_v31  ;;  %2754 = vmatprep.subr.bf16.mxu1 %v4387_v32  ;;  %v53_v30 = vld [vmem:[%s5858_s0 + $0x60] sm:$0xff]  ;;  %v4482_v31 = vcombine.low %v362_v14, %v370_v16  ;;  %v4497_v32 = vcombine.high %v377_v23, %v385_v24  ;;  %v4547_v3 = vcombine.high %v426_v59, %v434_v61  ;;  %v442_v7 = vld [vmem:[#allocation2 + $0xb08] sm:$0xff] }
  0x54   :  { %v441_v4 = vld [vmem:[#allocation2 + $0xb00] sm:$0xff]  ;;  %v450_v8 = vld [vmem:[#allocation2 + $0xb48] sm:$0xff]  ;;  %v4546_v12 = vcombine.low %v426_v59, %v434_v61 }
  0x55   :  { %v449_v5 = vld [vmem:[#allocation2 + $0xb40] sm:$0xff]  ;;  %v4563_v14 = vcombine.high %v442_v7, %v450_v8  ;;  %v458_v18 = vld [vmem:[#allocation2 + $0xb88] sm:$0xff]  ;;  %v4562_v24 = vcombine.low %v442_v7, %v450_v8 }
  0x56   :  { %2609 = vmatpush1.bf16.msra.mxu0 %v4384_v37  ;;  %2755 = vmatpush1.bf16.msra.mxu1 %v4386_v38  ;;  %v5160_v37 = vpack.c.bf16 %v53_v30, %v49_v29  ;;  %v402_v38 = vld [vmem:[#allocation2 + $0x9c8] sm:$0xff]  ;;  %v4561_v13 = vcombine.high %v441_v4, %v449_v5  ;;  %v457_v16 = vld [vmem:[#allocation2 + $0xb80] sm:$0xff]  ;;  %v4560_v23 = vcombine.low %v441_v4, %v449_v5  ;;  %v51_v4 = vld [vmem:[%s5858_s0 + $0x50] sm:$0xff] }
  0x57   :  { %2610 = vmatprep.subr.bf16.mxu0 %v4401_v39  ;;  %2756 = vmatprep.subr.bf16.mxu1 %v4403_v40  ;;  %v58_v39 = vld [vmem:[%s5858_s0 + $0x88] sm:$0xff]  ;;  %v4515_v44 = vcombine.high %v394_v36, %v402_v38  ;;  %v465_v17 = vld [vmem:[#allocation2 + $0xbc0] sm:$0xff]  ;;  %v55_v5 = vld [vmem:[%s5858_s0 + $0x70] sm:$0xff] }
  0x58   :  { %v62_v40 = vld [vmem:[%s5858_s0 + $0xa8] sm:$0xff]  ;;  %v4577_v26 = vcombine.high %v457_v16, %v465_v17  ;;  %v481_v29 = vld [vmem:[#allocation2 + $0xc40] sm:$0xff] }
  0x5a   :  { %2611 = vmatpush1.bf16.msra.mxu0 %v4400_v45  ;;  %2757 = vmatpush1.bf16.msra.mxu1 %v4402_v46  ;;  %v409_v45 = vld [vmem:[#allocation2 + $0xa00] sm:$0xff] }
  0x5b   :  { %2612 = vmatprep.subr.bf16.mxu0 %v4417_v47  ;;  %2758 = vmatprep.subr.bf16.mxu1 %v4419_v48  ;;  %v417_v46 = vld [vmem:[#allocation2 + $0xa40] sm:$0xff]  ;;  %v5168_v47 = vpack.c.bf16 %v62_v40, %v58_v39  ;;  %v410_v48 = vld [vmem:[#allocation2 + $0xa08] sm:$0xff]  ;;  %v99_v39 = vld [vmem:[#allocation2 + $0x50] sm:$0xff] }
  0x5c   :  { %v92_v40 = vld [vmem:[#allocation2 + $0x18] sm:$0xff] }
  0x5e   :  { %2613 = vmatpush1.bf16.msra.mxu0 %v4416_v53  ;;  %2759 = vmatpush1.bf16.msra.mxu1 %v4418_v54  ;;  %v4514_v53 = vcombine.low %v394_v36, %v402_v38  ;;  %v4529_v54 = vcombine.high %v409_v45, %v417_v46  ;;  %v91_v38 = vld [vmem:[#allocation2 + $0x10] sm:$0xff] }
  0x5f   :  { %2614 = vmatprep.subr.bf16.mxu0 %v4433_v55  ;;  %2760 = vmatprep.subr.bf16.mxu1 %v4435_v56  ;;  %v4531_v55 = vcombine.high %v410_v48, %v418_v49  ;;  %v425_v56 = vld [vmem:[#allocation2 + $0xa80] sm:$0xff] }
  0x60   :  { %v4545_v2 = vcombine.high %v425_v56, %v433_v57 }
  0x62   :  { %2615 = vmatpush1.bf16.msra.mxu0 %v4432_v62  ;;  %2761 = vmatpush1.bf16.msra.mxu1 %v4434_v63  ;;  %v66_v62 = vld [vmem:[%s5858_s0 + $0xc8] sm:$0xff] }
  0x63   :  { %2616 = vmatprep.subr.bf16.mxu0 %v4449_v0  ;;  %2762 = vmatprep.subr.bf16.mxu1 %v4451_v1  ;;  %v70_v63 = vld [vmem:[%s5858_s0 + $0xe8] sm:$0xff]  ;;  %v4528_v0 = vcombine.low %v409_v45, %v417_v46  ;;  %v4530_v1 = vcombine.low %v410_v48, %v418_v49  ;;  %v4213_v46 = vcombine.high %v91_v38, %v99_v39  ;;  %v107_v49 = vld [vmem:[#allocation2 + $0x90] sm:$0xff] }
  0x66   :  { %2617 = vmatpush1.bf16.msra.mxu0 %v4448_v6  ;;  %2763 = vmatpush1.bf16.msra.mxu1 %v4450_v9  ;;  %v5188_v6 = vpack.c.bf16 %v70_v63, %v66_v62  ;;  %v4544_v9 = vcombine.low %v425_v56, %v433_v57  ;;  %v4212_v56 = vcombine.low %v91_v38, %v99_v39  ;;  %v123_v63 = vld [vmem:[#allocation2 + $0x110] sm:$0xff]  ;;  %v172_v39 = vld [vmem:[#allocation2 + $0x298] sm:$0xff] }
  0x67   :  { %2659 = vmatprep.subr.bf16.mxu0 %v4465_v10  ;;  %2805 = vmatprep.subr.bf16.mxu1 %v4467_v11  ;;  %v65_v10 = vld [vmem:[%s5858_s0 + $0xc0] sm:$0xff]  ;;  %v179_v38 = vld [vmem:[#allocation2 + $0x2d0] sm:$0xff] }
  0x68   :  { %v69_v11 = vld [vmem:[%s5858_s0 + $0xe0] sm:$0xff] }
  0x69   :  { %2619 = vmatmul.mubr.bf16.vlgmr.msra.gmra.mrb[0].mxu0 %v5140_v15  ;;  %2765 = vmatmul.mubr.bf16.vlgmr.msra.gmra.mrb[0].mxu1 %v5140_v15 }
  0x6a   :  { %2660 = vmatpush1.bf16.msra.mxu0 %v4464_v19  ;;  %2806 = vmatpush1.bf16.msra.mxu1 %v4466_v20  ;;  %v5200_v19 = vpack.c.bf16 %v69_v11, %v65_v10  ;;  %v466_v20 = vld [vmem:[#allocation2 + $0xbc8] sm:$0xff]  ;;  %v139_v10 = vld [vmem:[#allocation2 + $0x190] sm:$0xff] }
  0x6b   :  { %2661 = vmatprep.subr.bf16.mxu0 %v4481_v21  ;;  %2807 = vmatprep.subr.bf16.mxu1 %v4483_v22  ;;  %v44_v21 = vld [vmem:[%s5858_s0 + $0x18] sm:$0xff]  ;;  %v4579_v27 = vcombine.high %v458_v18, %v466_v20  ;;  %v4578_v34 = vcombine.low %v458_v18, %v466_v20  ;;  %v147_v11 = vld [vmem:[#allocation2 + $0x1d0] sm:$0xff] }
  0x6c   :  { %2628 = vmatprep.mubr.bf16.mxu0 %v5148_v25  ;;  %2774 = vmatprep.mubr.bf16.mxu1 %v5148_v25  ;;  %v48_v22 = vld [vmem:[%s5858_s0 + $0x38] sm:$0xff] }
  0x6d   :  { %v5208_v30 = vpack.c.bf16 %v48_v22, %v44_v21  ;;  %v4261_v21 = vcombine.high %v139_v10, %v147_v11 }
  0x6e   :  { %2662 = vmatpush1.bf16.msra.mxu0 %v4480_v28  ;;  %2808 = vmatpush1.bf16.msra.mxu1 %v4482_v31  ;;  %v473_v28 = vld [vmem:[#allocation2 + $0xc00] sm:$0xff]  ;;  %v474_v31 = vld [vmem:[#allocation2 + $0xc08] sm:$0xff] }
  0x6f   :  { %2663 = vmatprep.subr.bf16.mxu0 %v4497_v32  ;;  %2809 = vmatprep.subr.bf16.mxu1 %v4499_v33  ;;  %v482_v32 = vld [vmem:[#allocation2 + $0xc48] sm:$0xff]  ;;  %v4576_v33 = vcombine.low %v457_v16, %v465_v17  ;;  %v4593_v35 = vcombine.high %v473_v28, %v481_v29  ;;  %v60_v16 = vld [vmem:[%s5858_s0 + $0x98] sm:$0xff] }
  0x70   :  { %v4595_v36 = vcombine.high %v474_v31, %v482_v32  ;;  %v4594_v45 = vcombine.low %v474_v31, %v482_v32  ;;  %v64_v17 = vld [vmem:[%s5858_s0 + $0xb8] sm:$0xff]  ;;  %v59_v31 = vld [vmem:[%s5858_s0 + $0x90] sm:$0xff] }
  0x71   :  { %2629 = vmatmul.mubr.bf16.gmra.mrb[4].mxu0 %v5160_v37  ;;  %2775 = vmatmul.mubr.bf16.gmra.mrb[4].mxu1 %v5160_v37  ;;  %v63_v32 = vld [vmem:[%s5858_s0 + $0xb0] sm:$0xff] }
  0x72   :  { %2664 = vmatpush1.bf16.msra.mxu0 %v4496_v41  ;;  %2810 = vmatpush1.bf16.msra.mxu1 %v4498_v42  ;;  %v100_v41 = vld [vmem:[#allocation2 + $0x58] sm:$0xff]  ;;  %v4592_v42 = vcombine.low %v473_v28, %v481_v29  ;;  %v4260_v29 = vcombine.low %v139_v10, %v147_v11  ;;  %v219_v10 = vld [vmem:[#allocation2 + $0x410] sm:$0xff] }
  0x73   :  { %2665 = vmatprep.subr.bf16.mxu0 %v4513_v43  ;;  %2811 = vmatprep.subr.bf16.mxu1 %v4515_v44  ;;  %v43_v43 = vld [vmem:[%s5858_s0 + $0x10] sm:$0xff]  ;;  %v4215_v48 = vcombine.high %v92_v40, %v100_v41  ;;  %v4214_v57 = vcombine.low %v92_v40, %v100_v41  ;;  %v164_v28 = vld [vmem:[#allocation2 + $0x258] sm:$0xff]  ;;  %v5266_v40 = vpack.c.bf16 %v63_v32, %v59_v31 }
  0x74   :  { %2638 = vmatprep.mubr.bf16.mxu0 %v5168_v47  ;;  %2784 = vmatprep.mubr.bf16.mxu1 %v5168_v47  ;;  %v47_v44 = vld [vmem:[%s5858_s0 + $0x30] sm:$0xff]  ;;  %v180_v41 = vld [vmem:[#allocation2 + $0x2d8] sm:$0xff] }
  0x75   :  { %v5222_v52 = vpack.c.bf16 %v47_v44, %v43_v43  ;;  %v72_v43 = vld [vmem:[%s5858_s0 + $0xf8] sm:$0xff]  ;;  %v227_v11 = vld [vmem:[#allocation2 + $0x450] sm:$0xff] }
  0x76   :  { %2666 = vmatpush1.bf16.msra.mxu0 %v4512_v50  ;;  %2812 = vmatpush1.bf16.msra.mxu1 %v4514_v53  ;;  %v115_v50 = vld [vmem:[#allocation2 + $0xd0] sm:$0xff]  ;;  %v116_v53 = vld [vmem:[#allocation2 + $0xd8] sm:$0xff] }
  0x77   :  { %2667 = vmatprep.subr.bf16.mxu0 %v4529_v54  ;;  %2813 = vmatprep.subr.bf16.mxu1 %v4531_v55  ;;  %v52_v54 = vld [vmem:[%s5858_s0 + $0x58] sm:$0xff]  ;;  %v4229_v59 = vcombine.high %v107_v49, %v115_v50  ;;  %v4231_v61 = vcombine.high %v108_v51, %v116_v53  ;;  %v4230_v7 = vcombine.low %v108_v51, %v116_v53  ;;  %v195_v51 = vld [vmem:[#allocation2 + $0x350] sm:$0xff] }
  0x78   :  { %v56_v55 = vld [vmem:[%s5858_s0 + $0x78] sm:$0xff]  ;;  %v251_v32 = vld [vmem:[#allocation2 + $0x510] sm:$0xff] }
  0x79   :  { %2639 = vmatmul.mubr.bf16.gmra.mrb[8].mxu0 %v5180_v60  ;;  %2785 = vmatmul.mubr.bf16.gmra.mrb[8].mxu1 %v5180_v60  ;;  %v5230_v62 = vpack.c.bf16 %v56_v55, %v52_v54  ;;  %v188_v53 = vld [vmem:[#allocation2 + $0x318] sm:$0xff] }
  0x7a   :  { %2668 = vmatpush1.bf16.msra.mxu0 %v4528_v0  ;;  %2814 = vmatpush1.bf16.msra.mxu1 %v4530_v1  ;;  %v131_v0 = vld [vmem:[#allocation2 + $0x150] sm:$0xff]  ;;  %v124_v1 = vld [vmem:[#allocation2 + $0x118] sm:$0xff] }
  0x7b   :  { %2669 = vmatprep.subr.bf16.mxu0 %v4545_v2  ;;  %2815 = vmatprep.subr.bf16.mxu1 %v4547_v3  ;;  %v132_v2 = vld [vmem:[#allocation2 + $0x158] sm:$0xff]  ;;  %v4228_v3 = vcombine.low %v107_v49, %v115_v50  ;;  %v4245_v8 = vcombine.high %v123_v63, %v131_v0  ;;  %v4244_v18 = vcombine.low %v123_v63, %v131_v0  ;;  %v187_v50 = vld [vmem:[#allocation2 + $0x310] sm:$0xff] }
  0x7c   :  { %2648 = vmatprep.mubr.bf16.mxu0 %v5188_v6  ;;  %2794 = vmatprep.mubr.bf16.mxu1 %v5188_v6  ;;  %v4246_v20 = vcombine.low %v124_v1, %v132_v2  ;;  %v196_v54 = vld [vmem:[#allocation2 + $0x358] sm:$0xff]  ;;  %v203_v0 = vld [vmem:[#allocation2 + $0x390] sm:$0xff] }
  0x7d   :  { %v4311_v63 = vcombine.high %v188_v53, %v196_v54 }
  0x7e   :  { %2670 = vmatpush1.bf16.msra.mxu0 %v4544_v9  ;;  %2816 = vmatpush1.bf16.msra.mxu1 %v4546_v12  ;;  %v4247_v9 = vcombine.high %v124_v1, %v132_v2  ;;  %v140_v12 = vld [vmem:[#allocation2 + $0x198] sm:$0xff]  ;;  %v211_v1 = vld [vmem:[#allocation2 + $0x3d0] sm:$0xff] }
  0x7f   :  { %2671 = vmatprep.subr.bf16.mxu0 %v4561_v13  ;;  %2817 = vmatprep.subr.bf16.mxu1 %v4563_v14  ;;  %v5244_v13 = vpack.c.bf16 %v55_v5, %v51_v4  ;;  %v148_v14 = vld [vmem:[#allocation2 + $0x1d8] sm:$0xff]  ;;  %v4308_v5 = vcombine.low %v187_v50, %v195_v51 }
  0x80   :  { %v4263_v22 = vcombine.high %v140_v12, %v148_v14  ;;  %v212_v4 = vld [vmem:[#allocation2 + $0x3d8] sm:$0xff] }
  0x81   :  { %2649 = vmatmul.mubr.bf16.gmra.mrb[12].mxu0 %v5200_v19  ;;  %2795 = vmatmul.mubr.bf16.gmra.mrb[12].mxu1 %v5200_v19 }
  0x82   :  { %2672 = vmatpush1.bf16.msra.mxu0 %v4560_v23  ;;  %2818 = vmatpush1.bf16.msra.mxu1 %v4562_v24  ;;  %v5252_v23 = vpack.c.bf16 %v64_v17, %v60_v16  ;;  %v155_v24 = vld [vmem:[#allocation2 + $0x210] sm:$0xff]  ;;  %v4324_v16 = vcombine.low %v203_v0, %v211_v1 }
  0x83   :  { %2673 = vmatprep.subr.bf16.mxu0 %v4577_v26  ;;  %2819 = vmatprep.subr.bf16.mxu1 %v4579_v27  ;;  %v163_v26 = vld [vmem:[#allocation2 + $0x250] sm:$0xff]  ;;  %v156_v27 = vld [vmem:[#allocation2 + $0x218] sm:$0xff] }
  0x84   :  { %4608 = vmatprep.mubr.msk.bf16.mxu0 %vm2573_vm0, %v5208_v30  ;;  %4612 = vmatprep.mubr.msk.bf16.mxu1 %vm2573_vm0, %v5208_v30  ;;  %v4276_v44 = vcombine.low %v155_v24, %v163_v26 }
  0x86   :  { %2674 = vmatpush1.bf16.msra.mxu0 %v4576_v33  ;;  %2820 = vmatpush1.bf16.msra.mxu1 %v4578_v34  ;;  %v4262_v33 = vcombine.low %v140_v12, %v148_v14  ;;  %v4277_v34 = vcombine.high %v155_v24, %v163_v26  ;;  %v220_v12 = vld [vmem:[#allocation2 + $0x418] sm:$0xff] }
  0x87   :  { %2675 = vmatprep.subr.bf16.mxu0 %v4593_v35  ;;  %2821 = vmatprep.subr.bf16.mxu1 %v4595_v36  ;;  %v4279_v35 = vcombine.high %v156_v27, %v164_v28  ;;  %v171_v36 = vld [vmem:[#allocation2 + $0x290] sm:$0xff]  ;;  %v228_v14 = vld [vmem:[#allocation2 + $0x458] sm:$0xff] }
  0x88   :  { %v4292_v55 = vcombine.low %v171_v36, %v179_v38  ;;  %v236_v24 = vld [vmem:[#allocation2 + $0x498] sm:$0xff] }
  0x89   :  { %v244_v26 = vld [vmem:[#allocation2 + $0x4d8] sm:$0xff] }
  0x8a   :  { %2676 = vmatpush1.bf16.msra.mxu0 %v4592_v42  ;;  %2822 = vmatpush1.bf16.msra.mxu1 %v4594_v45  ;;  %v68_v42 = vld [vmem:[%s5858_s0 + $0xd8] sm:$0xff]  ;;  %v4278_v45 = vcombine.low %v156_v27, %v164_v28  ;;  %v4340_v27 = vcombine.low %v219_v10, %v227_v11  ;;  %v4342_v28 = vcombine.low %v220_v12, %v228_v14 }
  0x8b   :  { %2878 = vmatprep.subr.bf16.mxu0 %v4213_v46  ;;  %3024 = vmatprep.subr.bf16.mxu1 %v4215_v48  ;;  %v4293_v46 = vcombine.high %v171_v36, %v179_v38  ;;  %v4295_v48 = vcombine.high %v172_v39, %v180_v41  ;;  %v5274_v49 = vpack.c.bf16 %v72_v43, %v68_v42  ;;  %v267_v42 = vld [vmem:[#allocation2 + $0x590] sm:$0xff] }
  0x8c   :  { %v4359_v31 = vcombine.high %v236_v24, %v244_v26  ;;  %v4358_v38 = vcombine.low %v236_v24, %v244_v26  ;;  %v275_v43 = vld [vmem:[#allocation2 + $0x5d0] sm:$0xff]  ;;  %v332_v24 = vld [vmem:[#allocation2 + $0x798] sm:$0xff] }
  0x8d   :  { %2692 = vmatmul.mubr.bf16.vlgmr.msra.gmra.mrb[0].mxu0 %v5222_v52  ;;  %2838 = vmatmul.mubr.bf16.vlgmr.msra.gmra.mrb[0].mxu1 %v5222_v52  ;;  %v340_v26 = vld [vmem:[#allocation2 + $0x7d8] sm:$0xff] }
  0x8e   :  { %2879 = vmatpush1.bf16.msra.mxu0 %v4212_v56  ;;  %3025 = vmatpush1.bf16.msra.mxu1 %v4214_v57  ;;  %v67_v56 = vld [vmem:[%s5858_s0 + $0xd0] sm:$0xff] }
  0x8f   :  { %2880 = vmatprep.subr.bf16.mxu0 %v4229_v59  ;;  %3026 = vmatprep.subr.bf16.mxu1 %v4231_v61  ;;  %v71_v57 = vld [vmem:[%s5858_s0 + $0xf0] sm:$0xff]  ;;  %v4294_v59 = vcombine.low %v172_v39, %v180_v41  ;;  %v4309_v61 = vcombine.high %v187_v50, %v195_v51  ;;  %v4389_v50 = vcombine.high %v267_v42, %v275_v43 }
  0x90   :  { %4609 = vmatprep.mubr.msk.bf16.mxu0 %vm2573_vm0, %v5230_v62  ;;  %4613 = vmatprep.mubr.msk.bf16.mxu1 %vm2573_vm0, %v5230_v62  ;;  %v5288_v2 = vpack.c.bf16 %v71_v57, %v67_v56  ;;  %v292_v56 = vld [vmem:[#allocation2 + $0x658] sm:$0xff]  ;;  %v4388_v57 = vcombine.low %v267_v42, %v275_v43  ;;  %v363_v42 = vld [vmem:[#allocation2 + $0x890] sm:$0xff] }
  0x91   :  { %v371_v43 = vld [vmem:[#allocation2 + $0x8d0] sm:$0xff] }
  0x92   :  { %2881 = vmatpush1.bf16.msra.mxu0 %v4228_v3  ;;  %3027 = vmatpush1.bf16.msra.mxu1 %v4230_v7  ;;  %v204_v3 = vld [vmem:[#allocation2 + $0x398] sm:$0xff]  ;;  %v4310_v7 = vcombine.low %v188_v53, %v196_v54  ;;  %v283_v53 = vld [vmem:[#allocation2 + $0x610] sm:$0xff] }
  0x93   :  { %2882 = vmatprep.subr.bf16.mxu0 %v4245_v8  ;;  %3028 = vmatprep.subr.bf16.mxu1 %v4247_v9  ;;  %v4325_v8 = vcombine.high %v203_v0, %v211_v1  ;;  %v4327_v9 = vcombine.high %v204_v3, %v212_v4  ;;  %v4326_v17 = vcombine.low %v204_v3, %v212_v4  ;;  %v291_v54 = vld [vmem:[#allocation2 + $0x650] sm:$0xff]  ;;  %v300_v3 = vld [vmem:[#allocation2 + $0x698] sm:$0xff] }
  0x94   :  { %v299_v0 = vld [vmem:[#allocation2 + $0x690] sm:$0xff]  ;;  %v308_v4 = vld [vmem:[#allocation2 + $0x6d8] sm:$0xff] }
  0x95   :  { %2702 = vmatmul.mubr.bf16.gmra.mrb[4].mxu0 %v5244_v13  ;;  %2848 = vmatmul.mubr.bf16.gmra.mrb[4].mxu1 %v5244_v13  ;;  %v307_v1 = vld [vmem:[#allocation2 + $0x6d0] sm:$0xff] }
  0x96   :  { %2883 = vmatpush1.bf16.msra.mxu0 %v4244_v18  ;;  %3029 = vmatpush1.bf16.msra.mxu1 %v4246_v20  ;;  %v4341_v18 = vcombine.high %v219_v10, %v227_v11  ;;  %v4343_v20 = vcombine.high %v220_v12, %v228_v14  ;;  %v315_v10 = vld [vmem:[#allocation2 + $0x710] sm:$0xff]  ;;  %v316_v12 = vld [vmem:[#allocation2 + $0x718] sm:$0xff] }
  0x97   :  { %2884 = vmatprep.subr.bf16.mxu0 %v4261_v21  ;;  %3030 = vmatprep.subr.bf16.mxu1 %v4263_v22  ;;  %v235_v21 = vld [vmem:[#allocation2 + $0x490] sm:$0xff]  ;;  %v324_v14 = vld [vmem:[#allocation2 + $0x758] sm:$0xff] }
  0x98   :  { %4610 = vmatprep.mubr.msk.bf16.mxu0 %vm2573_vm0, %v5252_v23  ;;  %4614 = vmatprep.mubr.msk.bf16.mxu1 %vm2573_vm0, %v5252_v23  ;;  %v243_v22 = vld [vmem:[#allocation2 + $0x4d0] sm:$0xff] }
  0x99   :  { %v4356_v36 = vcombine.low %v235_v21, %v243_v22  ;;  %v323_v11 = vld [vmem:[#allocation2 + $0x750] sm:$0xff] }
  0x9a   :  { %2885 = vmatpush1.bf16.msra.mxu0 %v4260_v29  ;;  %3031 = vmatpush1.bf16.msra.mxu1 %v4262_v33  ;;  %v4357_v29 = vcombine.high %v235_v21, %v243_v22  ;;  %v259_v33 = vld [vmem:[#allocation2 + $0x550] sm:$0xff] }
  0x9b   :  { %2886 = vmatprep.subr.bf16.mxu0 %v4277_v34  ;;  %3032 = vmatprep.subr.bf16.mxu1 %v4279_v35  ;;  %v252_v34 = vld [vmem:[#allocation2 + $0x518] sm:$0xff]  ;;  %v4373_v39 = vcombine.high %v251_v32, %v259_v33  ;;  %v331_v21 = vld [vmem:[#allocation2 + $0x790] sm:$0xff] }
  0x9c   :  { %v260_v35 = vld [vmem:[#allocation2 + $0x558] sm:$0xff]  ;;  %v339_v22 = vld [vmem:[#allocation2 + $0x7d0] sm:$0xff] }
  0x9d   :  { %2712 = vmatmul.mubr.bf16.gmra.mrb[8].mxu0 %v5266_v40  ;;  %2858 = vmatmul.mubr.bf16.gmra.mrb[8].mxu1 %v5266_v40  ;;  %v4375_v41 = vcombine.high %v252_v34, %v260_v35 }
  0x9e   :  { %2887 = vmatpush1.bf16.msra.mxu0 %v4276_v44  ;;  %3033 = vmatpush1.bf16.msra.mxu1 %v4278_v45  ;;  %v268_v44 = vld [vmem:[#allocation2 + $0x598] sm:$0xff] }
  0x9f   :  { %2888 = vmatprep.subr.bf16.mxu0 %v4293_v46  ;;  %3034 = vmatprep.subr.bf16.mxu1 %v4295_v48  ;;  %v276_v45 = vld [vmem:[#allocation2 + $0x5d8] sm:$0xff]  ;;  %v4372_v46 = vcombine.low %v251_v32, %v259_v33  ;;  %v4374_v48 = vcombine.low %v252_v34, %v260_v35  ;;  %v347_v32 = vld [vmem:[#allocation2 + $0x810] sm:$0xff] }
  0xa0   :  { %4611 = vmatprep.mubr.msk.bf16.mxu0 %vm2573_vm0, %v5274_v49  ;;  %4615 = vmatprep.mubr.msk.bf16.mxu1 %vm2573_vm0, %v5274_v49  ;;  %v4391_v51 = vcombine.high %v268_v44, %v276_v45  ;;  %v355_v33 = vld [vmem:[#allocation2 + $0x850] sm:$0xff]  ;;  %v348_v34 = vld [vmem:[#allocation2 + $0x818] sm:$0xff] }
  0xa1   :  { %v356_v35 = vld [vmem:[#allocation2 + $0x858] sm:$0xff] }
  0xa2   :  { %2889 = vmatpush1.bf16.msra.mxu0 %v4292_v55  ;;  %3035 = vmatpush1.bf16.msra.mxu1 %v4294_v59  ;;  %v284_v55 = vld [vmem:[#allocation2 + $0x618] sm:$0xff]  ;;  %v4390_v59 = vcombine.low %v268_v44, %v276_v45 }
  0xa3   :  { %2890 = vmatprep.subr.bf16.mxu0 %v4309_v61  ;;  %3036 = vmatprep.subr.bf16.mxu1 %v4311_v63  ;;  %v4405_v61 = vcombine.high %v283_v53, %v291_v54  ;;  %v4407_v63 = vcombine.high %v284_v55, %v292_v56  ;;  %v364_v44 = vld [vmem:[#allocation2 + $0x898] sm:$0xff] }
  0xa4   :  { %v372_v45 = vld [vmem:[#allocation2 + $0x8d8] sm:$0xff] }
  0xa5   :  { %2722 = vmatmul.mubr.bf16.gmra.mrb[12].mxu0 %v5288_v2  ;;  %2868 = vmatmul.mubr.bf16.gmra.mrb[12].mxu1 %v5288_v2 }
  0xa6   :  { %2891 = vmatpush1.bf16.msra.mxu0 %v4308_v5  ;;  %3037 = vmatpush1.bf16.msra.mxu1 %v4310_v7  ;;  %v4404_v5 = vcombine.low %v283_v53, %v291_v54  ;;  %v4406_v7 = vcombine.low %v284_v55, %v292_v56  ;;  %v379_v53 = vld [vmem:[#allocation2 + $0x910] sm:$0xff]  ;;  %v380_v55 = vld [vmem:[#allocation2 + $0x918] sm:$0xff] }
  0xa7   :  { %2892 = vmatprep.subr.bf16.mxu0 %v4325_v8  ;;  %3038 = vmatprep.subr.bf16.mxu1 %v4327_v9  ;;  %v4421_v8 = vcombine.high %v299_v0, %v307_v1  ;;  %v4423_v9 = vcombine.high %v300_v3, %v308_v4  ;;  %v387_v54 = vld [vmem:[#allocation2 + $0x950] sm:$0xff]  ;;  %v388_v56 = vld [vmem:[#allocation2 + $0x958] sm:$0xff] }
  0xa8   :  { %2910 = vmatprep.mubr.bf16.mxu0 %v5130_v58  ;;  %3056 = vmatprep.mubr.bf16.mxu1 %v5130_v58 }
  0xaa   :  { %2893 = vmatpush1.bf16.msra.mxu0 %v4324_v16  ;;  %3039 = vmatpush1.bf16.msra.mxu1 %v4326_v17  ;;  %v4420_v16 = vcombine.low %v299_v0, %v307_v1  ;;  %v4422_v17 = vcombine.low %v300_v3, %v308_v4  ;;  %v395_v0 = vld [vmem:[#allocation2 + $0x990] sm:$0xff]  ;;  %v396_v3 = vld [vmem:[#allocation2 + $0x998] sm:$0xff] }
  0xab   :  { %2894 = vmatprep.subr.bf16.mxu0 %v4341_v18  ;;  %3040 = vmatprep.subr.bf16.mxu1 %v4343_v20  ;;  %v4437_v18 = vcombine.high %v315_v10, %v323_v11  ;;  %v4439_v20 = vcombine.high %v316_v12, %v324_v14  ;;  %v403_v1 = vld [vmem:[#allocation2 + $0x9d0] sm:$0xff]  ;;  %v404_v4 = vld [vmem:[#allocation2 + $0x9d8] sm:$0xff] }
  0xae   :  { %2895 = vmatpush1.bf16.msra.mxu0 %v4340_v27  ;;  %3041 = vmatpush1.bf16.msra.mxu1 %v4342_v28  ;;  %v4436_v27 = vcombine.low %v315_v10, %v323_v11  ;;  %v4438_v28 = vcombine.low %v316_v12, %v324_v14  ;;  %v411_v10 = vld [vmem:[#allocation2 + $0xa10] sm:$0xff]  ;;  %v412_v12 = vld [vmem:[#allocation2 + $0xa18] sm:$0xff] }
  0xaf   :  { %2896 = vmatprep.subr.bf16.mxu0 %v4357_v29  ;;  %3042 = vmatprep.subr.bf16.mxu1 %v4359_v31  ;;  %v4453_v29 = vcombine.high %v331_v21, %v339_v22  ;;  %v4455_v31 = vcombine.high %v332_v24, %v340_v26  ;;  %v419_v11 = vld [vmem:[#allocation2 + $0xa50] sm:$0xff]  ;;  %v420_v14 = vld [vmem:[#allocation2 + $0xa58] sm:$0xff] }
  0xb2   :  { %2897 = vmatpush1.bf16.msra.mxu0 %v4356_v36  ;;  %3043 = vmatpush1.bf16.msra.mxu1 %v4358_v38  ;;  %v4452_v36 = vcombine.low %v331_v21, %v339_v22  ;;  %v4454_v38 = vcombine.low %v332_v24, %v340_v26  ;;  %v427_v21 = vld [vmem:[#allocation2 + $0xa90] sm:$0xff]  ;;  %v428_v24 = vld [vmem:[#allocation2 + $0xa98] sm:$0xff] }
  0xb3   :  { %2898 = vmatprep.subr.bf16.mxu0 %v4373_v39  ;;  %3044 = vmatprep.subr.bf16.mxu1 %v4375_v41  ;;  %v4469_v39 = vcombine.high %v347_v32, %v355_v33  ;;  %v4471_v41 = vcombine.high %v348_v34, %v356_v35  ;;  %v435_v22 = vld [vmem:[#allocation2 + $0xad0] sm:$0xff]  ;;  %v436_v26 = vld [vmem:[#allocation2 + $0xad8] sm:$0xff] }
  0xb6   :  { %2899 = vmatpush1.bf16.msra.mxu0 %v4372_v46  ;;  %3045 = vmatpush1.bf16.msra.mxu1 %v4374_v48  ;;  %v4468_v46 = vcombine.low %v347_v32, %v355_v33  ;;  %v4470_v48 = vcombine.low %v348_v34, %v356_v35  ;;  %v443_v32 = vld [vmem:[#allocation2 + $0xb10] sm:$0xff]  ;;  %v444_v34 = vld [vmem:[#allocation2 + $0xb18] sm:$0xff] }
  0xb7   :  { %2900 = vmatprep.subr.bf16.mxu0 %v4389_v50  ;;  %3046 = vmatprep.subr.bf16.mxu1 %v4391_v51  ;;  %v4485_v50 = vcombine.high %v363_v42, %v371_v43  ;;  %v4487_v51 = vcombine.high %v364_v44, %v372_v45  ;;  %v451_v33 = vld [vmem:[#allocation2 + $0xb50] sm:$0xff]  ;;  %v452_v35 = vld [vmem:[#allocation2 + $0xb58] sm:$0xff] }
  0xba   :  { %2901 = vmatpush1.bf16.msra.mxu0 %v4388_v57  ;;  %3047 = vmatpush1.bf16.msra.mxu1 %v4390_v59  ;;  %v4484_v57 = vcombine.low %v363_v42, %v371_v43  ;;  %v4486_v59 = vcombine.low %v364_v44, %v372_v45  ;;  %v459_v42 = vld [vmem:[#allocation2 + $0xb90] sm:$0xff]  ;;  %v460_v44 = vld [vmem:[#allocation2 + $0xb98] sm:$0xff] }
  0xbb   :  { %2902 = vmatprep.subr.bf16.mxu0 %v4405_v61  ;;  %3048 = vmatprep.subr.bf16.mxu1 %v4407_v63  ;;  %v4501_v61 = vcombine.high %v379_v53, %v387_v54  ;;  %v4503_v63 = vcombine.high %v380_v55, %v388_v56  ;;  %v467_v43 = vld [vmem:[#allocation2 + $0xbd0] sm:$0xff]  ;;  %v468_v45 = vld [vmem:[#allocation2 + $0xbd8] sm:$0xff] }
  0xbe   :  { %2903 = vmatpush1.bf16.msra.mxu0 %v4404_v5  ;;  %3049 = vmatpush1.bf16.msra.mxu1 %v4406_v7  ;;  %v4500_v5 = vcombine.low %v379_v53, %v387_v54  ;;  %v4502_v7 = vcombine.low %v380_v55, %v388_v56  ;;  %v475_v53 = vld [vmem:[#allocation2 + $0xc10] sm:$0xff]  ;;  %v476_v55 = vld [vmem:[#allocation2 + $0xc18] sm:$0xff] }
  0xbf   :  { %2904 = vmatprep.subr.bf16.mxu0 %v4421_v8  ;;  %3050 = vmatprep.subr.bf16.mxu1 %v4423_v9  ;;  %v4517_v8 = vcombine.high %v395_v0, %v403_v1  ;;  %v4519_v9 = vcombine.high %v396_v3, %v404_v4  ;;  %v483_v54 = vld [vmem:[#allocation2 + $0xc50] sm:$0xff]  ;;  %v484_v56 = vld [vmem:[#allocation2 + $0xc58] sm:$0xff] }
  0xc2   :  { %2905 = vmatpush1.bf16.msra.mxu0 %v4420_v16  ;;  %3051 = vmatpush1.bf16.msra.mxu1 %v4422_v17  ;;  %v4516_v16 = vcombine.low %v395_v0, %v403_v1  ;;  %v4518_v17 = vcombine.low %v396_v3, %v404_v4  ;;  %v93_v0 = vld [vmem:[#allocation2 + $0x20] sm:$0xff]  ;;  %v94_v3 = vld [vmem:[#allocation2 + $0x28] sm:$0xff] }
  0xc3   :  { %2906 = vmatprep.subr.bf16.mxu0 %v4437_v18  ;;  %3052 = vmatprep.subr.bf16.mxu1 %v4439_v20  ;;  %v4533_v18 = vcombine.high %v411_v10, %v419_v11  ;;  %v4535_v20 = vcombine.high %v412_v12, %v420_v14  ;;  %v101_v1 = vld [vmem:[#allocation2 + $0x60] sm:$0xff]  ;;  %v102_v4 = vld [vmem:[#allocation2 + $0x68] sm:$0xff] }
  0xc6   :  { %2907 = vmatpush1.bf16.msra.mxu0 %v4436_v27  ;;  %3053 = vmatpush1.bf16.msra.mxu1 %v4438_v28  ;;  %v4532_v27 = vcombine.low %v411_v10, %v419_v11  ;;  %v4534_v28 = vcombine.low %v412_v12, %v420_v14  ;;  %v109_v10 = vld [vmem:[#allocation2 + $0xa0] sm:$0xff]  ;;  %v110_v12 = vld [vmem:[#allocation2 + $0xa8] sm:$0xff] }
  0xc7   :  { %2908 = vmatprep.subr.bf16.mxu0 %v4453_v29  ;;  %3054 = vmatprep.subr.bf16.mxu1 %v4455_v31  ;;  %v4549_v29 = vcombine.high %v427_v21, %v435_v22  ;;  %v4551_v31 = vcombine.high %v428_v24, %v436_v26  ;;  %v117_v11 = vld [vmem:[#allocation2 + $0xe0] sm:$0xff]  ;;  %v118_v14 = vld [vmem:[#allocation2 + $0xe8] sm:$0xff] }
  0xca   :  { %2909 = vmatpush1.bf16.msra.mxu0 %v4452_v36  ;;  %3055 = vmatpush1.bf16.msra.mxu1 %v4454_v38  ;;  %v4548_v36 = vcombine.low %v427_v21, %v435_v22  ;;  %v4550_v38 = vcombine.low %v428_v24, %v436_v26  ;;  %v125_v21 = vld [vmem:[#allocation2 + $0x120] sm:$0xff]  ;;  %v126_v24 = vld [vmem:[#allocation2 + $0x128] sm:$0xff] }
  0xcb   :  { %2951 = vmatprep.subr.bf16.mxu0 %v4469_v39  ;;  %3097 = vmatprep.subr.bf16.mxu1 %v4471_v41  ;;  %v4565_v39 = vcombine.high %v443_v32, %v451_v33  ;;  %v4567_v41 = vcombine.high %v444_v34, %v452_v35  ;;  %v133_v22 = vld [vmem:[#allocation2 + $0x160] sm:$0xff]  ;;  %v134_v26 = vld [vmem:[#allocation2 + $0x168] sm:$0xff] }
  0xcd   :  { %2911 = vmatmul.mubr.bf16.vlgmr.msra.gmra.mrb[16].mxu0 %v5140_v15  ;;  %3057 = vmatmul.mubr.bf16.vlgmr.msra.gmra.mrb[16].mxu1 %v5140_v15 }
  0xce   :  { %2952 = vmatpush1.bf16.msra.mxu0 %v4468_v46  ;;  %3098 = vmatpush1.bf16.msra.mxu1 %v4470_v48  ;;  %v4564_v46 = vcombine.low %v443_v32, %v451_v33  ;;  %v4566_v48 = vcombine.low %v444_v34, %v452_v35  ;;  %v141_v32 = vld [vmem:[#allocation2 + $0x1a0] sm:$0xff]  ;;  %v142_v34 = vld [vmem:[#allocation2 + $0x1a8] sm:$0xff] }
  0xcf   :  { %2953 = vmatprep.subr.bf16.mxu0 %v4485_v50  ;;  %3099 = vmatprep.subr.bf16.mxu1 %v4487_v51  ;;  %v4581_v50 = vcombine.high %v459_v42, %v467_v43  ;;  %v4583_v51 = vcombine.high %v460_v44, %v468_v45  ;;  %v149_v33 = vld [vmem:[#allocation2 + $0x1e0] sm:$0xff]  ;;  %v150_v35 = vld [vmem:[#allocation2 + $0x1e8] sm:$0xff] }
  0xd0   :  { %2920 = vmatprep.mubr.bf16.mxu0 %v5148_v25  ;;  %3066 = vmatprep.mubr.bf16.mxu1 %v5148_v25 }
  0xd2   :  { %2954 = vmatpush1.bf16.msra.mxu0 %v4484_v57  ;;  %3100 = vmatpush1.bf16.msra.mxu1 %v4486_v59  ;;  %v4580_v57 = vcombine.low %v459_v42, %v467_v43  ;;  %v4582_v59 = vcombine.low %v460_v44, %v468_v45  ;;  %v157_v42 = vld [vmem:[#allocation2 + $0x220] sm:$0xff]  ;;  %v158_v44 = vld [vmem:[#allocation2 + $0x228] sm:$0xff] }
  0xd3   :  { %2955 = vmatprep.subr.bf16.mxu0 %v4501_v61  ;;  %3101 = vmatprep.subr.bf16.mxu1 %v4503_v63  ;;  %v4597_v61 = vcombine.high %v475_v53, %v483_v54  ;;  %v4599_v63 = vcombine.high %v476_v55, %v484_v56  ;;  %v165_v43 = vld [vmem:[#allocation2 + $0x260] sm:$0xff]  ;;  %v166_v45 = vld [vmem:[#allocation2 + $0x268] sm:$0xff] }
  0xd5   :  { %2921 = vmatmul.mubr.bf16.gmra.mrb[20].mxu0 %v5160_v37  ;;  %3067 = vmatmul.mubr.bf16.gmra.mrb[20].mxu1 %v5160_v37 }
  0xd6   :  { %2956 = vmatpush1.bf16.msra.mxu0 %v4500_v5  ;;  %3102 = vmatpush1.bf16.msra.mxu1 %v4502_v7  ;;  %v4596_v5 = vcombine.low %v475_v53, %v483_v54  ;;  %v4598_v7 = vcombine.low %v476_v55, %v484_v56  ;;  %v173_v53 = vld [vmem:[#allocation2 + $0x2a0] sm:$0xff]  ;;  %v174_v55 = vld [vmem:[#allocation2 + $0x2a8] sm:$0xff] }
  0xd7   :  { %2957 = vmatprep.subr.bf16.mxu0 %v4517_v8  ;;  %3103 = vmatprep.subr.bf16.mxu1 %v4519_v9  ;;  %v4217_v8 = vcombine.high %v93_v0, %v101_v1  ;;  %v4219_v9 = vcombine.high %v94_v3, %v102_v4  ;;  %v181_v54 = vld [vmem:[#allocation2 + $0x2e0] sm:$0xff]  ;;  %v182_v56 = vld [vmem:[#allocation2 + $0x2e8] sm:$0xff] }
  0xd8   :  { %2930 = vmatprep.mubr.bf16.mxu0 %v5168_v47  ;;  %3076 = vmatprep.mubr.bf16.mxu1 %v5168_v47 }
  0xda   :  { %2958 = vmatpush1.bf16.msra.mxu0 %v4516_v16  ;;  %3104 = vmatpush1.bf16.msra.mxu1 %v4518_v17  ;;  %v4216_v16 = vcombine.low %v93_v0, %v101_v1  ;;  %v4218_v17 = vcombine.low %v94_v3, %v102_v4  ;;  %v189_v0 = vld [vmem:[#allocation2 + $0x320] sm:$0xff]  ;;  %v190_v3 = vld [vmem:[#allocation2 + $0x328] sm:$0xff] }
  0xdb   :  { %2959 = vmatprep.subr.bf16.mxu0 %v4533_v18  ;;  %3105 = vmatprep.subr.bf16.mxu1 %v4535_v20  ;;  %v4233_v18 = vcombine.high %v109_v10, %v117_v11  ;;  %v4235_v20 = vcombine.high %v110_v12, %v118_v14  ;;  %v197_v1 = vld [vmem:[#allocation2 + $0x360] sm:$0xff]  ;;  %v198_v4 = vld [vmem:[#allocation2 + $0x368] sm:$0xff] }
  0xdd   :  { %2931 = vmatmul.mubr.bf16.gmra.mrb[24].mxu0 %v5180_v60  ;;  %3077 = vmatmul.mubr.bf16.gmra.mrb[24].mxu1 %v5180_v60 }
  0xde   :  { %2960 = vmatpush1.bf16.msra.mxu0 %v4532_v27  ;;  %3106 = vmatpush1.bf16.msra.mxu1 %v4534_v28  ;;  %v4232_v27 = vcombine.low %v109_v10, %v117_v11  ;;  %v4234_v28 = vcombine.low %v110_v12, %v118_v14  ;;  %v205_v10 = vld [vmem:[#allocation2 + $0x3a0] sm:$0xff]  ;;  %v206_v12 = vld [vmem:[#allocation2 + $0x3a8] sm:$0xff] }
  0xdf   :  { %2961 = vmatprep.subr.bf16.mxu0 %v4549_v29  ;;  %3107 = vmatprep.subr.bf16.mxu1 %v4551_v31  ;;  %v4249_v29 = vcombine.high %v125_v21, %v133_v22  ;;  %v4251_v31 = vcombine.high %v126_v24, %v134_v26  ;;  %v213_v11 = vld [vmem:[#allocation2 + $0x3e0] sm:$0xff]  ;;  %v214_v14 = vld [vmem:[#allocation2 + $0x3e8] sm:$0xff] }
  0xe0   :  { %2940 = vmatprep.mubr.bf16.mxu0 %v5188_v6  ;;  %3086 = vmatprep.mubr.bf16.mxu1 %v5188_v6 }
  0xe2   :  { %2962 = vmatpush1.bf16.msra.mxu0 %v4548_v36  ;;  %3108 = vmatpush1.bf16.msra.mxu1 %v4550_v38  ;;  %v4248_v36 = vcombine.low %v125_v21, %v133_v22  ;;  %v4250_v38 = vcombine.low %v126_v24, %v134_v26  ;;  %v221_v21 = vld [vmem:[#allocation2 + $0x420] sm:$0xff]  ;;  %v222_v24 = vld [vmem:[#allocation2 + $0x428] sm:$0xff] }
  0xe3   :  { %2963 = vmatprep.subr.bf16.mxu0 %v4565_v39  ;;  %3109 = vmatprep.subr.bf16.mxu1 %v4567_v41  ;;  %v4265_v39 = vcombine.high %v141_v32, %v149_v33  ;;  %v4267_v41 = vcombine.high %v142_v34, %v150_v35  ;;  %v229_v22 = vld [vmem:[#allocation2 + $0x460] sm:$0xff]  ;;  %v230_v26 = vld [vmem:[#allocation2 + $0x468] sm:$0xff] }
  0xe5   :  { %2941 = vmatmul.mubr.bf16.gmra.mrb[28].mxu0 %v5200_v19  ;;  %3087 = vmatmul.mubr.bf16.gmra.mrb[28].mxu1 %v5200_v19 }
  0xe6   :  { %2964 = vmatpush1.bf16.msra.mxu0 %v4564_v46  ;;  %3110 = vmatpush1.bf16.msra.mxu1 %v4566_v48  ;;  %v4264_v46 = vcombine.low %v141_v32, %v149_v33  ;;  %v4266_v48 = vcombine.low %v142_v34, %v150_v35  ;;  %v237_v32 = vld [vmem:[#allocation2 + $0x4a0] sm:$0xff]  ;;  %v238_v34 = vld [vmem:[#allocation2 + $0x4a8] sm:$0xff] }
  0xe7   :  { %2965 = vmatprep.subr.bf16.mxu0 %v4581_v50  ;;  %3111 = vmatprep.subr.bf16.mxu1 %v4583_v51  ;;  %v4281_v50 = vcombine.high %v157_v42, %v165_v43  ;;  %v4283_v51 = vcombine.high %v158_v44, %v166_v45  ;;  %v245_v33 = vld [vmem:[#allocation2 + $0x4e0] sm:$0xff]  ;;  %v246_v35 = vld [vmem:[#allocation2 + $0x4e8] sm:$0xff] }
  0xe8   :  { %4616 = vmatprep.mubr.msk.bf16.mxu0 %vm2573_vm0, %v5208_v30  ;;  %4620 = vmatprep.mubr.msk.bf16.mxu1 %vm2573_vm0, %v5208_v30 }
  0xea   :  { %2966 = vmatpush1.bf16.msra.mxu0 %v4580_v57  ;;  %3112 = vmatpush1.bf16.msra.mxu1 %v4582_v59  ;;  %v4280_v57 = vcombine.low %v157_v42, %v165_v43  ;;  %v4282_v59 = vcombine.low %v158_v44, %v166_v45  ;;  %v253_v42 = vld [vmem:[#allocation2 + $0x520] sm:$0xff]  ;;  %v254_v44 = vld [vmem:[#allocation2 + $0x528] sm:$0xff] }
  0xeb   :  { %2967 = vmatprep.subr.bf16.mxu0 %v4597_v61  ;;  %3113 = vmatprep.subr.bf16.mxu1 %v4599_v63  ;;  %v4297_v61 = vcombine.high %v173_v53, %v181_v54  ;;  %v4299_v63 = vcombine.high %v174_v55, %v182_v56  ;;  %v261_v43 = vld [vmem:[#allocation2 + $0x560] sm:$0xff]  ;;  %v262_v45 = vld [vmem:[#allocation2 + $0x568] sm:$0xff] }
  0xee   :  { %2968 = vmatpush1.bf16.msra.mxu0 %v4596_v5  ;;  %3114 = vmatpush1.bf16.msra.mxu1 %v4598_v7  ;;  %v4296_v5 = vcombine.low %v173_v53, %v181_v54  ;;  %v4298_v7 = vcombine.low %v174_v55, %v182_v56  ;;  %v269_v53 = vld [vmem:[#allocation2 + $0x5a0] sm:$0xff]  ;;  %v270_v55 = vld [vmem:[#allocation2 + $0x5a8] sm:$0xff] }
  0xef   :  { %3170 = vmatprep.subr.bf16.mxu0 %v4217_v8  ;;  %3316 = vmatprep.subr.bf16.mxu1 %v4219_v9  ;;  %v4313_v8 = vcombine.high %v189_v0, %v197_v1  ;;  %v4315_v9 = vcombine.high %v190_v3, %v198_v4  ;;  %v277_v54 = vld [vmem:[#allocation2 + $0x5e0] sm:$0xff]  ;;  %v278_v56 = vld [vmem:[#allocation2 + $0x5e8] sm:$0xff] }
  0xf1   :  { %2984 = vmatmul.mubr.bf16.vlgmr.msra.gmra.mrb[16].mxu0 %v5222_v52  ;;  %3130 = vmatmul.mubr.bf16.vlgmr.msra.gmra.mrb[16].mxu1 %v5222_v52 }
  0xf2   :  { %3171 = vmatpush1.bf16.msra.mxu0 %v4216_v16  ;;  %3317 = vmatpush1.bf16.msra.mxu1 %v4218_v17  ;;  %v4312_v16 = vcombine.low %v189_v0, %v197_v1  ;;  %v4314_v17 = vcombine.low %v190_v3, %v198_v4  ;;  %v285_v0 = vld [vmem:[#allocation2 + $0x620] sm:$0xff]  ;;  %v286_v3 = vld [vmem:[#allocation2 + $0x628] sm:$0xff] }
  0xf3   :  { %3172 = vmatprep.subr.bf16.mxu0 %v4233_v18  ;;  %3318 = vmatprep.subr.bf16.mxu1 %v4235_v20  ;;  %v4329_v18 = vcombine.high %v205_v10, %v213_v11  ;;  %v4331_v20 = vcombine.high %v206_v12, %v214_v14  ;;  %v293_v1 = vld [vmem:[#allocation2 + $0x660] sm:$0xff]  ;;  %v294_v4 = vld [vmem:[#allocation2 + $0x668] sm:$0xff] }
  0xf4   :  { %4617 = vmatprep.mubr.msk.bf16.mxu0 %vm2573_vm0, %v5230_v62  ;;  %4621 = vmatprep.mubr.msk.bf16.mxu1 %vm2573_vm0, %v5230_v62 }
  0xf6   :  { %3173 = vmatpush1.bf16.msra.mxu0 %v4232_v27  ;;  %3319 = vmatpush1.bf16.msra.mxu1 %v4234_v28  ;;  %v4328_v27 = vcombine.low %v205_v10, %v213_v11  ;;  %v4330_v28 = vcombine.low %v206_v12, %v214_v14  ;;  %v301_v10 = vld [vmem:[#allocation2 + $0x6a0] sm:$0xff]  ;;  %v302_v12 = vld [vmem:[#allocation2 + $0x6a8] sm:$0xff] }
  0xf7   :  { %3174 = vmatprep.subr.bf16.mxu0 %v4249_v29  ;;  %3320 = vmatprep.subr.bf16.mxu1 %v4251_v31  ;;  %v4345_v29 = vcombine.high %v221_v21, %v229_v22  ;;  %v4347_v31 = vcombine.high %v222_v24, %v230_v26  ;;  %v309_v11 = vld [vmem:[#allocation2 + $0x6e0] sm:$0xff]  ;;  %v310_v14 = vld [vmem:[#allocation2 + $0x6e8] sm:$0xff] }
  0xf9   :  { %2994 = vmatmul.mubr.bf16.gmra.mrb[20].mxu0 %v5244_v13  ;;  %3140 = vmatmul.mubr.bf16.gmra.mrb[20].mxu1 %v5244_v13 }
  0xfa   :  { %3175 = vmatpush1.bf16.msra.mxu0 %v4248_v36  ;;  %3321 = vmatpush1.bf16.msra.mxu1 %v4250_v38  ;;  %v4344_v36 = vcombine.low %v221_v21, %v229_v22  ;;  %v4346_v38 = vcombine.low %v222_v24, %v230_v26  ;;  %v317_v21 = vld [vmem:[#allocation2 + $0x720] sm:$0xff]  ;;  %v318_v24 = vld [vmem:[#allocation2 + $0x728] sm:$0xff] }
  0xfb   :  { %3176 = vmatprep.subr.bf16.mxu0 %v4265_v39  ;;  %3322 = vmatprep.subr.bf16.mxu1 %v4267_v41  ;;  %v4361_v39 = vcombine.high %v237_v32, %v245_v33  ;;  %v4363_v41 = vcombine.high %v238_v34, %v246_v35  ;;  %v325_v22 = vld [vmem:[#allocation2 + $0x760] sm:$0xff]  ;;  %v326_v26 = vld [vmem:[#allocation2 + $0x768] sm:$0xff] }
  0xfc   :  { %4618 = vmatprep.mubr.msk.bf16.mxu0 %vm2573_vm0, %v5252_v23  ;;  %4622 = vmatprep.mubr.msk.bf16.mxu1 %vm2573_vm0, %v5252_v23 }
  0xfe   :  { %3177 = vmatpush1.bf16.msra.mxu0 %v4264_v46  ;;  %3323 = vmatpush1.bf16.msra.mxu1 %v4266_v48  ;;  %v4360_v46 = vcombine.low %v237_v32, %v245_v33  ;;  %v4362_v48 = vcombine.low %v238_v34, %v246_v35  ;;  %v333_v32 = vld [vmem:[#allocation2 + $0x7a0] sm:$0xff]  ;;  %v334_v34 = vld [vmem:[#allocation2 + $0x7a8] sm:$0xff] }
  0xff   :  { %3178 = vmatprep.subr.bf16.mxu0 %v4281_v50  ;;  %3324 = vmatprep.subr.bf16.mxu1 %v4283_v51  ;;  %v4377_v50 = vcombine.high %v253_v42, %v261_v43  ;;  %v4379_v51 = vcombine.high %v254_v44, %v262_v45  ;;  %v341_v33 = vld [vmem:[#allocation2 + $0x7e0] sm:$0xff]  ;;  %v342_v35 = vld [vmem:[#allocation2 + $0x7e8] sm:$0xff] }
 0x101   :  { %3004 = vmatmul.mubr.bf16.gmra.mrb[24].mxu0 %v5266_v40  ;;  %3150 = vmatmul.mubr.bf16.gmra.mrb[24].mxu1 %v5266_v40 }
 0x102   :  { %3179 = vmatpush1.bf16.msra.mxu0 %v4280_v57  ;;  %3325 = vmatpush1.bf16.msra.mxu1 %v4282_v59  ;;  %v4376_v57 = vcombine.low %v253_v42, %v261_v43  ;;  %v4378_v59 = vcombine.low %v254_v44, %v262_v45  ;;  %v349_v42 = vld [vmem:[#allocation2 + $0x820] sm:$0xff]  ;;  %v350_v44 = vld [vmem:[#allocation2 + $0x828] sm:$0xff] }
 0x103   :  { %3180 = vmatprep.subr.bf16.mxu0 %v4297_v61  ;;  %3326 = vmatprep.subr.bf16.mxu1 %v4299_v63  ;;  %v4393_v61 = vcombine.high %v269_v53, %v277_v54  ;;  %v4395_v63 = vcombine.high %v270_v55, %v278_v56  ;;  %v357_v43 = vld [vmem:[#allocation2 + $0x860] sm:$0xff]  ;;  %v358_v45 = vld [vmem:[#allocation2 + $0x868] sm:$0xff] }
 0x104   :  { %4619 = vmatprep.mubr.msk.bf16.mxu0 %vm2573_vm0, %v5274_v49  ;;  %4623 = vmatprep.mubr.msk.bf16.mxu1 %vm2573_vm0, %v5274_v49 }
 0x106   :  { %3181 = vmatpush1.bf16.msra.mxu0 %v4296_v5  ;;  %3327 = vmatpush1.bf16.msra.mxu1 %v4298_v7  ;;  %v4392_v5 = vcombine.low %v269_v53, %v277_v54  ;;  %v4394_v7 = vcombine.low %v270_v55, %v278_v56  ;;  %v365_v53 = vld [vmem:[#allocation2 + $0x8a0] sm:$0xff]  ;;  %v366_v55 = vld [vmem:[#allocation2 + $0x8a8] sm:$0xff] }
 0x107   :  { %3182 = vmatprep.subr.bf16.mxu0 %v4313_v8  ;;  %3328 = vmatprep.subr.bf16.mxu1 %v4315_v9  ;;  %v4409_v8 = vcombine.high %v285_v0, %v293_v1  ;;  %v4411_v9 = vcombine.high %v286_v3, %v294_v4  ;;  %v373_v54 = vld [vmem:[#allocation2 + $0x8e0] sm:$0xff]  ;;  %v374_v56 = vld [vmem:[#allocation2 + $0x8e8] sm:$0xff] }
 0x109   :  { %3014 = vmatmul.mubr.bf16.gmra.mrb[28].mxu0 %v5288_v2  ;;  %3160 = vmatmul.mubr.bf16.gmra.mrb[28].mxu1 %v5288_v2 }
 0x10a   :  { %3183 = vmatpush1.bf16.msra.mxu0 %v4312_v16  ;;  %3329 = vmatpush1.bf16.msra.mxu1 %v4314_v17  ;;  %v4408_v16 = vcombine.low %v285_v0, %v293_v1  ;;  %v4410_v17 = vcombine.low %v286_v3, %v294_v4  ;;  %v381_v0 = vld [vmem:[#allocation2 + $0x920] sm:$0xff]  ;;  %v382_v3 = vld [vmem:[#allocation2 + $0x928] sm:$0xff] }
 0x10b   :  { %3184 = vmatprep.subr.bf16.mxu0 %v4329_v18  ;;  %3330 = vmatprep.subr.bf16.mxu1 %v4331_v20  ;;  %v4425_v18 = vcombine.high %v301_v10, %v309_v11  ;;  %v4427_v20 = vcombine.high %v302_v12, %v310_v14  ;;  %v389_v1 = vld [vmem:[#allocation2 + $0x960] sm:$0xff]  ;;  %v390_v4 = vld [vmem:[#allocation2 + $0x968] sm:$0xff] }
 0x10c   :  { %3202 = vmatprep.mubr.bf16.mxu0 %v5130_v58  ;;  %3348 = vmatprep.mubr.bf16.mxu1 %v5130_v58 }
 0x10e   :  { %3185 = vmatpush1.bf16.msra.mxu0 %v4328_v27  ;;  %3331 = vmatpush1.bf16.msra.mxu1 %v4330_v28  ;;  %v4424_v27 = vcombine.low %v301_v10, %v309_v11  ;;  %v4426_v28 = vcombine.low %v302_v12, %v310_v14  ;;  %v397_v10 = vld [vmem:[#allocation2 + $0x9a0] sm:$0xff]  ;;  %v398_v12 = vld [vmem:[#allocation2 + $0x9a8] sm:$0xff] }
 0x10f   :  { %3186 = vmatprep.subr.bf16.mxu0 %v4345_v29  ;;  %3332 = vmatprep.subr.bf16.mxu1 %v4347_v31  ;;  %v4441_v29 = vcombine.high %v317_v21, %v325_v22  ;;  %v4443_v31 = vcombine.high %v318_v24, %v326_v26  ;;  %v405_v11 = vld [vmem:[#allocation2 + $0x9e0] sm:$0xff]  ;;  %v406_v14 = vld [vmem:[#allocation2 + $0x9e8] sm:$0xff] }
 0x112   :  { %3187 = vmatpush1.bf16.msra.mxu0 %v4344_v36  ;;  %3333 = vmatpush1.bf16.msra.mxu1 %v4346_v38  ;;  %v4440_v36 = vcombine.low %v317_v21, %v325_v22  ;;  %v4442_v38 = vcombine.low %v318_v24, %v326_v26  ;;  %v413_v21 = vld [vmem:[#allocation2 + $0xa20] sm:$0xff]  ;;  %v414_v24 = vld [vmem:[#allocation2 + $0xa28] sm:$0xff] }
 0x113   :  { %3188 = vmatprep.subr.bf16.mxu0 %v4361_v39  ;;  %3334 = vmatprep.subr.bf16.mxu1 %v4363_v41  ;;  %v4457_v39 = vcombine.high %v333_v32, %v341_v33  ;;  %v4459_v41 = vcombine.high %v334_v34, %v342_v35  ;;  %v421_v22 = vld [vmem:[#allocation2 + $0xa60] sm:$0xff]  ;;  %v422_v26 = vld [vmem:[#allocation2 + $0xa68] sm:$0xff] }
 0x116   :  { %3189 = vmatpush1.bf16.msra.mxu0 %v4360_v46  ;;  %3335 = vmatpush1.bf16.msra.mxu1 %v4362_v48  ;;  %v4456_v46 = vcombine.low %v333_v32, %v341_v33  ;;  %v4458_v48 = vcombine.low %v334_v34, %v342_v35  ;;  %v429_v32 = vld [vmem:[#allocation2 + $0xaa0] sm:$0xff]  ;;  %v430_v34 = vld [vmem:[#allocation2 + $0xaa8] sm:$0xff] }
 0x117   :  { %3190 = vmatprep.subr.bf16.mxu0 %v4377_v50  ;;  %3336 = vmatprep.subr.bf16.mxu1 %v4379_v51  ;;  %v4473_v50 = vcombine.high %v349_v42, %v357_v43  ;;  %v4475_v51 = vcombine.high %v350_v44, %v358_v45  ;;  %v437_v33 = vld [vmem:[#allocation2 + $0xae0] sm:$0xff]  ;;  %v438_v35 = vld [vmem:[#allocation2 + $0xae8] sm:$0xff] }
 0x11a   :  { %3191 = vmatpush1.bf16.msra.mxu0 %v4376_v57  ;;  %3337 = vmatpush1.bf16.msra.mxu1 %v4378_v59  ;;  %v4472_v57 = vcombine.low %v349_v42, %v357_v43  ;;  %v4474_v59 = vcombine.low %v350_v44, %v358_v45  ;;  %v445_v42 = vld [vmem:[#allocation2 + $0xb20] sm:$0xff]  ;;  %v446_v44 = vld [vmem:[#allocation2 + $0xb28] sm:$0xff] }
 0x11b   :  { %3192 = vmatprep.subr.bf16.mxu0 %v4393_v61  ;;  %3338 = vmatprep.subr.bf16.mxu1 %v4395_v63  ;;  %v4489_v61 = vcombine.high %v365_v53, %v373_v54  ;;  %v4491_v63 = vcombine.high %v366_v55, %v374_v56  ;;  %v453_v43 = vld [vmem:[#allocation2 + $0xb60] sm:$0xff]  ;;  %v454_v45 = vld [vmem:[#allocation2 + $0xb68] sm:$0xff] }
 0x11e   :  { %3193 = vmatpush1.bf16.msra.mxu0 %v4392_v5  ;;  %3339 = vmatpush1.bf16.msra.mxu1 %v4394_v7  ;;  %v4488_v5 = vcombine.low %v365_v53, %v373_v54  ;;  %v4490_v7 = vcombine.low %v366_v55, %v374_v56  ;;  %v461_v53 = vld [vmem:[#allocation2 + $0xba0] sm:$0xff]  ;;  %v462_v55 = vld [vmem:[#allocation2 + $0xba8] sm:$0xff] }
 0x11f   :  { %3194 = vmatprep.subr.bf16.mxu0 %v4409_v8  ;;  %3340 = vmatprep.subr.bf16.mxu1 %v4411_v9  ;;  %v4505_v8 = vcombine.high %v381_v0, %v389_v1  ;;  %v4507_v9 = vcombine.high %v382_v3, %v390_v4  ;;  %v469_v54 = vld [vmem:[#allocation2 + $0xbe0] sm:$0xff]  ;;  %v470_v56 = vld [vmem:[#allocation2 + $0xbe8] sm:$0xff] }
 0x122   :  { %3195 = vmatpush1.bf16.msra.mxu0 %v4408_v16  ;;  %3341 = vmatpush1.bf16.msra.mxu1 %v4410_v17  ;;  %v4504_v16 = vcombine.low %v381_v0, %v389_v1  ;;  %v4506_v17 = vcombine.low %v382_v3, %v390_v4  ;;  %v477_v0 = vld [vmem:[#allocation2 + $0xc20] sm:$0xff]  ;;  %v478_v3 = vld [vmem:[#allocation2 + $0xc28] sm:$0xff] }
 0x123   :  { %3196 = vmatprep.subr.bf16.mxu0 %v4425_v18  ;;  %3342 = vmatprep.subr.bf16.mxu1 %v4427_v20  ;;  %v4521_v18 = vcombine.high %v397_v10, %v405_v11  ;;  %v4523_v20 = vcombine.high %v398_v12, %v406_v14  ;;  %v485_v1 = vld [vmem:[#allocation2 + $0xc60] sm:$0xff]  ;;  %v486_v4 = vld [vmem:[#allocation2 + $0xc68] sm:$0xff] }
 0x126   :  { %3197 = vmatpush1.bf16.msra.mxu0 %v4424_v27  ;;  %3343 = vmatpush1.bf16.msra.mxu1 %v4426_v28  ;;  %v4520_v27 = vcombine.low %v397_v10, %v405_v11  ;;  %v4522_v28 = vcombine.low %v398_v12, %v406_v14  ;;  %v95_v10 = vld [vmem:[#allocation2 + $0x30] sm:$0xff]  ;;  %v96_v12 = vld [vmem:[#allocation2 + $0x38] sm:$0xff] }
 0x127   :  { %3198 = vmatprep.subr.bf16.mxu0 %v4441_v29  ;;  %3344 = vmatprep.subr.bf16.mxu1 %v4443_v31  ;;  %v4537_v29 = vcombine.high %v413_v21, %v421_v22  ;;  %v4539_v31 = vcombine.high %v414_v24, %v422_v26  ;;  %v103_v11 = vld [vmem:[#allocation2 + $0x70] sm:$0xff]  ;;  %v104_v14 = vld [vmem:[#allocation2 + $0x78] sm:$0xff] }
 0x12a   :  { %3199 = vmatpush1.bf16.msra.mxu0 %v4440_v36  ;;  %3345 = vmatpush1.bf16.msra.mxu1 %v4442_v38  ;;  %v4536_v36 = vcombine.low %v413_v21, %v421_v22  ;;  %v4538_v38 = vcombine.low %v414_v24, %v422_v26  ;;  %v111_v21 = vld [vmem:[#allocation2 + $0xb0] sm:$0xff]  ;;  %v112_v24 = vld [vmem:[#allocation2 + $0xb8] sm:$0xff] }
 0x12b   :  { %3200 = vmatprep.subr.bf16.mxu0 %v4457_v39  ;;  %3346 = vmatprep.subr.bf16.mxu1 %v4459_v41  ;;  %v4553_v39 = vcombine.high %v429_v32, %v437_v33  ;;  %v4555_v41 = vcombine.high %v430_v34, %v438_v35  ;;  %v119_v22 = vld [vmem:[#allocation2 + $0xf0] sm:$0xff]  ;;  %v120_v26 = vld [vmem:[#allocation2 + $0xf8] sm:$0xff] }
 0x12e   :  { %3201 = vmatpush1.bf16.msra.mxu0 %v4456_v46  ;;  %3347 = vmatpush1.bf16.msra.mxu1 %v4458_v48  ;;  %v4552_v46 = vcombine.low %v429_v32, %v437_v33  ;;  %v4554_v48 = vcombine.low %v430_v34, %v438_v35  ;;  %v4239_v32 = vcombine.high %v112_v24, %v120_v26  ;;  %v127_v33 = vld [vmem:[#allocation2 + $0x130] sm:$0xff]  ;;  %v128_v35 = vld [vmem:[#allocation2 + $0x138] sm:$0xff] }
 0x12f   :  { %3243 = vmatprep.subr.bf16.mxu0 %v4473_v50  ;;  %3389 = vmatprep.subr.bf16.mxu1 %v4475_v51  ;;  %v4569_v50 = vcombine.high %v445_v42, %v453_v43  ;;  %v4571_v51 = vcombine.high %v446_v44, %v454_v45  ;;  %v135_v34 = vld [vmem:[#allocation2 + $0x170] sm:$0xff] }
 0x131   :  { %3203 = vmatmul.mubr.bf16.vlgmr.msra.gmra.mrb[32].mxu0 %v5140_v15  ;;  %3349 = vmatmul.mubr.bf16.vlgmr.msra.gmra.mrb[32].mxu1 %v5140_v15 }
 0x132   :  { %3244 = vmatpush1.bf16.msra.mxu0 %v4472_v57  ;;  %3390 = vmatpush1.bf16.msra.mxu1 %v4474_v59  ;;  %v4568_v57 = vcombine.low %v445_v42, %v453_v43  ;;  %v4570_v59 = vcombine.low %v446_v44, %v454_v45  ;;  %v4253_v42 = vcombine.high %v127_v33, %v135_v34  ;;  %v143_v44 = vld [vmem:[#allocation2 + $0x1b0] sm:$0xff] }
 0x133   :  { %3245 = vmatprep.subr.bf16.mxu0 %v4489_v61  ;;  %3391 = vmatprep.subr.bf16.mxu1 %v4491_v63  ;;  %v4585_v61 = vcombine.high %v461_v53, %v469_v54  ;;  %v4587_v63 = vcombine.high %v462_v55, %v470_v56  ;;  %v151_v45 = vld [vmem:[#allocation2 + $0x1f0] sm:$0xff] }
 0x134   :  { %3212 = vmatprep.mubr.bf16.mxu0 %v5148_v25  ;;  %3358 = vmatprep.mubr.bf16.mxu1 %v5148_v25 }
 0x136   :  { %3246 = vmatpush1.bf16.msra.mxu0 %v4488_v5  ;;  %3392 = vmatpush1.bf16.msra.mxu1 %v4490_v7  ;;  %v4584_v5 = vcombine.low %v461_v53, %v469_v54  ;;  %v4586_v7 = vcombine.low %v462_v55, %v470_v56  ;;  %v5361_v53 = vld [vmem:[#allocation4] sm:$0xff] }
 0x137   :  { %3247 = vmatprep.subr.bf16.mxu0 %v4505_v8  ;;  %3393 = vmatprep.subr.bf16.mxu1 %v4507_v9  ;;  %v4601_v8 = vcombine.high %v477_v0, %v485_v1  ;;  %v4603_v9 = vcombine.high %v478_v3, %v486_v4 }
 0x139   :  { %3213 = vmatmul.mubr.bf16.gmra.mrb[36].mxu0 %v5160_v37  ;;  %3359 = vmatmul.mubr.bf16.gmra.mrb[36].mxu1 %v5160_v37 }
 0x13a   :  { %3248 = vmatpush1.bf16.msra.mxu0 %v4504_v16  ;;  %3394 = vmatpush1.bf16.msra.mxu1 %v4506_v17  ;;  %v4600_v16 = vcombine.low %v477_v0, %v485_v1  ;;  %v4602_v17 = vcombine.low %v478_v3, %v486_v4  ;;  %v167_v0 = vld [vmem:[#allocation2 + $0x270] sm:$0xff]  ;;  %v160_v3 = vld [vmem:[#allocation2 + $0x238] sm:$0xff] }
 0x13b   :  { %3249 = vmatprep.subr.bf16.mxu0 %v4521_v18  ;;  %3395 = vmatprep.subr.bf16.mxu1 %v4523_v20  ;;  %v4221_v18 = vcombine.high %v95_v10, %v103_v11  ;;  %v4223_v20 = vcombine.high %v96_v12, %v104_v14  ;;  %v168_v4 = vld [vmem:[#allocation2 + $0x278] sm:$0xff] }
 0x13c   :  { %3222 = vmatprep.mubr.bf16.mxu0 %v5168_v47  ;;  %3368 = vmatprep.mubr.bf16.mxu1 %v5168_v47 }
 0x13e   :  { %3250 = vmatpush1.bf16.msra.mxu0 %v4520_v27  ;;  %3396 = vmatpush1.bf16.msra.mxu1 %v4522_v28  ;;  %v493_v27 = vlaneseq  ;;  %v4220_v28 = vcombine.low %v95_v10, %v103_v11 }
 0x13f   :  { %3251 = vmatprep.subr.bf16.mxu0 %v4537_v29  ;;  %3397 = vmatprep.subr.bf16.mxu1 %v4539_v31  ;;  %v4222_v29 = vcombine.low %v96_v12, %v104_v14  ;;  %v4237_v31 = vcombine.high %v111_v21, %v119_v22  ;;  %v4287_v14 = vcombine.high %v160_v3, %v168_v4 }
 0x141   :  { %3223 = vmatmul.mubr.bf16.gmra.mrb[40].mxu0 %v5180_v60  ;;  %3369 = vmatmul.mubr.bf16.gmra.mrb[40].mxu1 %v5180_v60 }
 0x142   :  { %3252 = vmatpush1.bf16.msra.mxu0 %v4536_v36  ;;  %3398 = vmatpush1.bf16.msra.mxu1 %v4538_v38  ;;  %v136_v36 = vld [vmem:[#allocation2 + $0x178] sm:$0xff]  ;;  %v5353_v38 = vshrl.u32 %v493_v27, 7 }
 0x143   :  { %3253 = vmatprep.subr.bf16.mxu0 %v4553_v39  ;;  %3399 = vmatprep.subr.bf16.mxu1 %v4555_v41  ;;  %v4236_v39 = vcombine.low %v111_v21, %v119_v22  ;;  %v4238_v41 = vcombine.low %v112_v24, %v120_v26  ;;  %v4255_v43 = vcombine.high %v128_v35, %v136_v36  ;;  %v5397_v22 = vld [vmem:[#allocation2 + $0x2b8] sm:$0xff] }
 0x144   :  { %3232 = vmatprep.mubr.bf16.mxu0 %v5188_v6  ;;  %3378 = vmatprep.mubr.bf16.mxu1 %v5188_v6  ;;  %v503_v54 = vsub.s32 2, %v5353_v38  ;;  %v499_v55 = vsub.s32 1, %v5353_v38  ;;  %v4254_v56 = vcombine.low %v128_v35, %v136_v36  ;;  %v5399_v24 = vld [vmem:[#allocation2 + $0x2f8] sm:$0xff] }
 0x146   :  { %3254 = vmatpush1.bf16.msra.mxu0 %v4552_v46  ;;  %3400 = vmatpush1.bf16.msra.mxu1 %v4554_v48  ;;  %v495_v46 = vsub.s32 0, %v5353_v38  ;;  %v144_v48 = vld [vmem:[#allocation2 + $0x1b8] sm:$0xff] }
 0x147   :  { %3255 = vmatprep.subr.bf16.mxu0 %v4569_v50  ;;  %3401 = vmatprep.subr.bf16.mxu1 %v4571_v51  ;;  %v152_v50 = vld [vmem:[#allocation2 + $0x1f8] sm:$0xff]  ;;  %v4252_v51 = vcombine.low %v127_v33, %v135_v34 }
 0x148   :  { %v5370_v1 = vrot.slane %v5361_v53, %v495_v46  ;;  %v4270_v10 = vcombine.low %v144_v48, %v152_v50 }
 0x149   :  { %3233 = vmatmul.mubr.bf16.gmra.mrb[44].mxu0 %v5200_v19  ;;  %3379 = vmatmul.mubr.bf16.gmra.mrb[44].mxu1 %v5200_v19 }
 0x14a   :  { %3256 = vmatpush1.bf16.msra.mxu0 %v4568_v57  ;;  %3402 = vmatpush1.bf16.msra.mxu1 %v4570_v59  ;;  %v507_v57 = vsub.s32 3, %v5353_v38  ;;  %v4269_v59 = vcombine.high %v143_v44, %v151_v45 }
 0x14b   :  { %3257 = vmatprep.subr.bf16.mxu0 %v4585_v61  ;;  %3403 = vmatprep.subr.bf16.mxu1 %v4587_v63  ;;  %v4271_v61 = vcombine.high %v144_v48, %v152_v50  ;;  %v159_v63 = vld [vmem:[#allocation2 + $0x230] sm:$0xff] }
 0x14c   :  { %4624 = vmatprep.mubr.msk.bf16.mxu0 %vm2573_vm0, %v5208_v30  ;;  %4628 = vmatprep.mubr.msk.bf16.mxu1 %vm2573_vm0, %v5208_v30  ;;  %v4285_v11 = vcombine.high %v159_v63, %v167_v0  ;;  %v191_v48 = vld [vmem:[#allocation2 + $0x330] sm:$0xff] }
 0x14d   :  { %v199_v50 = vld [vmem:[#allocation2 + $0x370] sm:$0xff] }
 0x14e   :  { %3258 = vmatpush1.bf16.msra.mxu0 %v4584_v5  ;;  %3404 = vmatpush1.bf16.msra.mxu1 %v4586_v7  ;;  %v5376_v5 = vrot.slane %v5361_v53, %v503_v54  ;;  %v5381_v7 = vrot.slane %v5361_v53, %v499_v55 }
 0x14f   :  { %3259 = vmatprep.subr.bf16.mxu0 %v4601_v8  ;;  %3405 = vmatprep.subr.bf16.mxu1 %v4603_v9  ;;  %v4268_v8 = vcombine.low %v143_v44, %v151_v45  ;;  %v5386_v9 = vrot.slane %v5361_v53, %v507_v57  ;;  %v4303_v45 = vcombine.high %v5397_v22, %v5399_v24 }
 0x152   :  { %3260 = vmatpush1.bf16.msra.mxu0 %v4600_v16  ;;  %3406 = vmatpush1.bf16.msra.mxu1 %v4602_v17  ;;  %v5390_v16 = vld [vmem:[#allocation2 + $0x2b0] sm:$0xff] }
 0x153   :  { %3462 = vmatprep.subr.bf16.mxu0 %v4221_v18  ;;  %3608 = vmatprep.subr.bf16.mxu1 %v4223_v20  ;;  %v5392_v17 = vld [vmem:[#allocation2 + $0x2f0] sm:$0xff] }
 0x155   :  { %3276 = vmatmul.mubr.bf16.vlgmr.msra.gmra.mrb[32].mxu0 %v5222_v52  ;;  %3422 = vmatmul.mubr.bf16.vlgmr.msra.gmra.mrb[32].mxu1 %v5222_v52 }
 0x156   :  { %3463 = vmatpush1.bf16.msra.mxu0 %v4220_v28  ;;  %3609 = vmatpush1.bf16.msra.mxu1 %v4222_v29 }
 0x157   :  { %3464 = vmatprep.subr.bf16.mxu0 %v4237_v31  ;;  %3610 = vmatprep.subr.bf16.mxu1 %v4239_v32  ;;  %v4284_v31 = vcombine.low %v159_v63, %v167_v0  ;;  %v4286_v32 = vcombine.low %v160_v3, %v168_v4  ;;  %v4300_v0 = vcombine.low %v5390_v16, %v5392_v17 }
 0x158   :  { %4625 = vmatprep.mubr.msk.bf16.mxu0 %vm2573_vm0, %v5230_v62  ;;  %4629 = vmatprep.mubr.msk.bf16.mxu1 %vm2573_vm0, %v5230_v62  ;;  %v4302_v4 = vcombine.low %v5397_v22, %v5399_v24 }
 0x15a   :  { %3465 = vmatpush1.bf16.msra.mxu0 %v4236_v39  ;;  %3611 = vmatpush1.bf16.msra.mxu1 %v4238_v41  ;;  %v4301_v39 = vcombine.high %v5390_v16, %v5392_v17 }
 0x15b   :  { %3466 = vmatprep.subr.bf16.mxu0 %v4253_v42  ;;  %3612 = vmatprep.subr.bf16.mxu1 %v4255_v43 }
 0x15d   :  { %3286 = vmatmul.mubr.bf16.gmra.mrb[36].mxu0 %v5244_v13  ;;  %3432 = vmatmul.mubr.bf16.gmra.mrb[36].mxu1 %v5244_v13 }
 0x15e   :  { %3467 = vmatpush1.bf16.msra.mxu0 %v4252_v51  ;;  %3613 = vmatpush1.bf16.msra.mxu1 %v4254_v56 }
 0x15f   :  { %3468 = vmatprep.subr.bf16.mxu0 %v4269_v59  ;;  %3614 = vmatprep.subr.bf16.mxu1 %v4271_v61  ;;  %v192_v59 = vld [vmem:[#allocation2 + $0x338] sm:$0xff] }
 0x160   :  { %v2693_v12 = vpop.f32.mrb[0].mxu0  ;;  %4626 = vmatprep.mubr.msk.bf16.mxu0 %vm2573_vm0, %v5252_v23  ;;  %v2839_v20 = vpop.f32.mrb[0].mxu1  ;;  %4630 = vmatprep.mubr.msk.bf16.mxu1 %vm2573_vm0, %v5252_v23  ;;  %v200_v61 = vld [vmem:[#allocation2 + $0x378] sm:$0xff] }
 0x161   :  { %v4768_v18 = vadd.f32 %v2693_v12, %v5370_v1  ;;  %v2695_v21 = vpop.f32.mrb[1].mxu0  ;;  %v4784_v26 = vadd.f32 %v2839_v20, %v5376_v5  ;;  %v2841_v28 = vpop.f32.mrb[1].mxu1  ;;  %v5429_v12 = vld [vmem:[#allocation2 + $0x3b0] sm:$0xff]  ;;  %v5439_v20 = vld [vmem:[#allocation2 + $0x3b8] sm:$0xff] }
 0x162   :  { %v4769_v27 = vadd.f32 %v2695_v21, %v5381_v7  ;;  %v2697_v29 = vpop.f32.mrb[2].mxu0  ;;  %3469 = vmatpush1.bf16.msra.mxu0 %v4268_v8  ;;  %v4785_v33 = vadd.f32 %v2841_v28, %v5386_v9  ;;  %v2843_v35 = vpop.f32.mrb[2].mxu1  ;;  %3615 = vmatpush1.bf16.msra.mxu1 %v4270_v10  ;;  %v4317_v8 = vcombine.high %v191_v48, %v199_v50  ;;  %v5441_v21 = vld [vmem:[#allocation2 + $0x3f8] sm:$0xff] }
 0x163   :  { %v4770_v34 = vadd.f32 %v2697_v29, %v5370_v1  ;;  %v2699_v36 = vpop.f32.mrb[3].mxu0  ;;  %3470 = vmatprep.subr.bf16.mxu0 %v4285_v11  ;;  %v4786_v42 = vadd.f32 %v2843_v35, %v5376_v5  ;;  %v2845_v44 = vpop.f32.mrb[3].mxu1  ;;  %3616 = vmatprep.subr.bf16.mxu1 %v4287_v14  ;;  %v4319_v11 = vcombine.high %v192_v59, %v200_v61  ;;  %v5431_v14 = vld [vmem:[#allocation2 + $0x3f0] sm:$0xff] }
 0x164   :  { %v4704_v41 = vpack.c.bf16 %v4769_v27, %v4768_v18  ;;  %v4771_v43 = vadd.f32 %v2699_v36, %v5381_v7  ;;  %v4705_v51 = vpack.c.bf16 %v4785_v33, %v4784_v26  ;;  %v4787_v56 = vadd.f32 %v2845_v44, %v5386_v9  ;;  %v223_v44 = vld [vmem:[#allocation2 + $0x430] sm:$0xff] }
 0x165   :  { %3296 = vmatmul.mubr.bf16.gmra.mrb[40].mxu0 %v5266_v40  ;;  %3442 = vmatmul.mubr.bf16.gmra.mrb[40].mxu1 %v5266_v40  ;;  %v4316_v28 = vcombine.low %v191_v48, %v199_v50  ;;  %v4318_v29 = vcombine.low %v192_v59, %v200_v61  ;;  %v4333_v35 = vcombine.high %v5429_v12, %v5431_v14 }
 0x166   :  { %4138 = vst [vmem:[%s5861_s3] sm:$0xff] %v4704_v41  ;;  %v4712_v63 = vpack.c.bf16 %v4771_v43, %v4770_v34  ;;  %3471 = vmatpush1.bf16.msra.mxu0 %v4284_v31  ;;  %4139 = vst [vmem:[%s5861_s3 + $0x8] sm:$0xff] %v4705_v51  ;;  %v4713_v3 = vpack.c.bf16 %v4787_v56, %v4786_v42  ;;  %3617 = vmatpush1.bf16.msra.mxu1 %v4286_v32  ;;  %v224_v51 = vld [vmem:[#allocation2 + $0x438] sm:$0xff] }
 0x167   :  { %3472 = vmatprep.subr.bf16.mxu0 %v4301_v39  ;;  %3618 = vmatprep.subr.bf16.mxu1 %v4303_v45  ;;  %v4335_v43 = vcombine.high %v5439_v20, %v5441_v21  ;;  %v231_v45 = vld [vmem:[#allocation2 + $0x470] sm:$0xff]  ;;  %v232_v56 = vld [vmem:[#allocation2 + $0x478] sm:$0xff]  ;;  %v4332_v61 = vcombine.low %v5429_v12, %v5431_v14 }
 0x168   :  { %4146 = vst [vmem:[%s5861_s3 + $0x40] sm:$0xff] %v4712_v63  ;;  %v2703_v10 = vpop.f32.mrb[4].mxu0  ;;  %4627 = vmatprep.mubr.msk.bf16.mxu0 %vm2573_vm0, %v5274_v49  ;;  %4147 = vst [vmem:[%s5861_s3 + $0x48] sm:$0xff] %v4713_v3  ;;  %v2849_v17 = vpop.f32.mrb[4].mxu1  ;;  %4631 = vmatprep.mubr.msk.bf16.mxu1 %vm2573_vm0, %v5274_v49  ;;  %v4349_v3 = vcombine.high %v223_v44, %v231_v45 }
 0x169   :  { %v4772_v16 = vadd.f32 %v2703_v10, %v5370_v1  ;;  %v2705_v18 = vpop.f32.mrb[5].mxu0  ;;  %v4788_v22 = vadd.f32 %v2849_v17, %v5376_v5  ;;  %v2851_v26 = vpop.f32.mrb[5].mxu1  ;;  %v239_v10 = vld [vmem:[#allocation2 + $0x4b0] sm:$0xff]  ;;  %v240_v17 = vld [vmem:[#allocation2 + $0x4b8] sm:$0xff] }
 0x16a   :  { %v4773_v24 = vadd.f32 %v2705_v18, %v5381_v7  ;;  %v2707_v27 = vpop.f32.mrb[6].mxu0  ;;  %3473 = vmatpush1.bf16.msra.mxu0 %v4300_v0  ;;  %v4789_v31 = vadd.f32 %v2851_v26, %v5386_v9  ;;  %v2853_v33 = vpop.f32.mrb[6].mxu1  ;;  %3619 = vmatpush1.bf16.msra.mxu1 %v4302_v4  ;;  %v4334_v0 = vcombine.low %v5439_v20, %v5441_v21  ;;  %v248_v18 = vld [vmem:[#allocation2 + $0x4f8] sm:$0xff] }
 0x16b   :  { %v4774_v32 = vadd.f32 %v2707_v27, %v5370_v1  ;;  %v2709_v34 = vpop.f32.mrb[7].mxu0  ;;  %3474 = vmatprep.subr.bf16.mxu0 %v4317_v8  ;;  %v4790_v39 = vadd.f32 %v2853_v33, %v5376_v5  ;;  %v2855_v42 = vpop.f32.mrb[7].mxu1  ;;  %3620 = vmatprep.subr.bf16.mxu1 %v4319_v11  ;;  %v4351_v8 = vcombine.high %v224_v51, %v232_v56  ;;  %v247_v11 = vld [vmem:[#allocation2 + $0x4f0] sm:$0xff] }
 0x16c   :  { %v4720_v36 = vpack.c.bf16 %v4773_v24, %v4772_v16  ;;  %v4775_v41 = vadd.f32 %v2709_v34, %v5381_v7  ;;  %v4721_v48 = vpack.c.bf16 %v4789_v31, %v4788_v22  ;;  %v4791_v50 = vadd.f32 %v2855_v42, %v5386_v9  ;;  %v263_v42 = vld [vmem:[#allocation2 + $0x570] sm:$0xff] }
 0x16d   :  { %3306 = vmatmul.mubr.bf16.gmra.mrb[44].mxu0 %v5288_v2  ;;  %3452 = vmatmul.mubr.bf16.gmra.mrb[44].mxu1 %v5288_v2  ;;  %v4348_v26 = vcombine.low %v223_v44, %v231_v45  ;;  %v4350_v27 = vcombine.low %v224_v51, %v232_v56  ;;  %v4365_v33 = vcombine.high %v239_v10, %v247_v11  ;;  %v256_v45 = vld [vmem:[#allocation2 + $0x538] sm:$0xff] }
 0x16e   :  { %4154 = vst [vmem:[%s5861_s3 + $0x80] sm:$0xff] %v4720_v36  ;;  %v4728_v59 = vpack.c.bf16 %v4775_v41, %v4774_v32  ;;  %3475 = vmatpush1.bf16.msra.mxu0 %v4316_v28  ;;  %4155 = vst [vmem:[%s5861_s3 + $0x88] sm:$0xff] %v4721_v48  ;;  %v4729_v63 = vpack.c.bf16 %v4791_v50, %v4790_v39  ;;  %3621 = vmatpush1.bf16.msra.mxu1 %v4318_v29  ;;  %v255_v41 = vld [vmem:[#allocation2 + $0x530] sm:$0xff]  ;;  %v264_v48 = vld [vmem:[#allocation2 + $0x578] sm:$0xff] }
 0x16f   :  { %3476 = vmatprep.subr.bf16.mxu0 %v4333_v35  ;;  %3622 = vmatprep.subr.bf16.mxu1 %v4335_v43  ;;  %v4367_v39 = vcombine.high %v240_v17, %v248_v18  ;;  %v4364_v51 = vcombine.low %v239_v10, %v247_v11 }
 0x170   :  { %4162 = vst [vmem:[%s5861_s3 + $0xc0] sm:$0xff] %v4728_v59  ;;  %v2713_v4 = vpop.f32.mrb[8].mxu0  ;;  %3494 = vmatprep.mubr.bf16.mxu0 %v5130_v58  ;;  %4163 = vst [vmem:[%s5861_s3 + $0xc8] sm:$0xff] %v4729_v63  ;;  %v2859_v14 = vpop.f32.mrb[8].mxu1  ;;  %3640 = vmatprep.mubr.bf16.mxu1 %v5130_v58  ;;  %v4366_v59 = vcombine.low %v240_v17, %v248_v18 }
 0x171   :  { %v4776_v12 = vadd.f32 %v2713_v4, %v5370_v1  ;;  %v2715_v16 = vpop.f32.mrb[9].mxu0  ;;  %v4792_v20 = vadd.f32 %v2859_v14, %v5376_v5  ;;  %v2861_v22 = vpop.f32.mrb[9].mxu1  ;;  %v279_v4 = vld [vmem:[#allocation2 + $0x5f0] sm:$0xff]  ;;  %v280_v14 = vld [vmem:[#allocation2 + $0x5f8] sm:$0xff] }
 0x172   :  { %v4777_v21 = vadd.f32 %v2715_v16, %v5381_v7  ;;  %v2717_v24 = vpop.f32.mrb[10].mxu0  ;;  %3477 = vmatpush1.bf16.msra.mxu0 %v4332_v61  ;;  %v4793_v28 = vadd.f32 %v2861_v22, %v5386_v9  ;;  %v2863_v31 = vpop.f32.mrb[10].mxu1  ;;  %3623 = vmatpush1.bf16.msra.mxu1 %v4334_v0  ;;  %v4381_v61 = vcombine.high %v255_v41, %v263_v42 }
 0x173   :  { %v4778_v29 = vadd.f32 %v2717_v24, %v5370_v1  ;;  %v2719_v32 = vpop.f32.mrb[11].mxu0  ;;  %3478 = vmatprep.subr.bf16.mxu0 %v4349_v3  ;;  %v4794_v58 = vadd.f32 %v2863_v31, %v5376_v5  ;;  %v2865_v36 = vpop.f32.mrb[11].mxu1  ;;  %3624 = vmatprep.subr.bf16.mxu1 %v4351_v8  ;;  %v4383_v0 = vcombine.high %v256_v45, %v264_v48  ;;  %v271_v3 = vld [vmem:[#allocation2 + $0x5b0] sm:$0xff] }
 0x174   :  { %v4736_v34 = vpack.c.bf16 %v4777_v21, %v4776_v12  ;;  %v4779_v35 = vadd.f32 %v2719_v32, %v5381_v7  ;;  %v4737_v43 = vpack.c.bf16 %v4793_v28, %v4792_v20  ;;  %v4795_v44 = vadd.f32 %v2865_v36, %v5386_v9  ;;  %v272_v12 = vld [vmem:[#allocation2 + $0x5b8] sm:$0xff]  ;;  %v295_v36 = vld [vmem:[#allocation2 + $0x670] sm:$0xff] }
 0x175   :  { %v4380_v21 = vcombine.low %v255_v41, %v263_v42  ;;  %v4382_v22 = vcombine.low %v256_v45, %v264_v48  ;;  %v288_v42 = vld [vmem:[#allocation2 + $0x638] sm:$0xff]  ;;  %v303_v48 = vld [vmem:[#allocation2 + $0x6b0] sm:$0xff] }
 0x176   :  { %4170 = vst [vmem:[%s5861_s3 + $0x100] sm:$0xff] %v4736_v34  ;;  %v4744_v50 = vpack.c.bf16 %v4779_v35, %v4778_v29  ;;  %3479 = vmatpush1.bf16.msra.mxu0 %v4348_v26  ;;  %4171 = vst [vmem:[%s5861_s3 + $0x108] sm:$0xff] %v4737_v43  ;;  %v4745_v56 = vpack.c.bf16 %v4795_v44, %v4794_v58  ;;  %3625 = vmatpush1.bf16.msra.mxu1 %v4350_v27  ;;  %v287_v35 = vld [vmem:[#allocation2 + $0x630] sm:$0xff] }
 0x177   :  { %3480 = vmatprep.subr.bf16.mxu0 %v4365_v33  ;;  %3626 = vmatprep.subr.bf16.mxu1 %v4367_v39  ;;  %v4397_v29 = vcombine.high %v271_v3, %v279_v4  ;;  %v4399_v58 = vcombine.high %v272_v12, %v280_v14  ;;  %v4396_v44 = vcombine.low %v271_v3, %v279_v4  ;;  %v319_v3 = vld [vmem:[#allocation2 + $0x730] sm:$0xff] }
 0x178   :  { %4178 = vst [vmem:[%s5861_s3 + $0x140] sm:$0xff] %v4744_v50  ;;  %v2723_v63 = vpop.f32.mrb[12].mxu0  ;;  %4179 = vst [vmem:[%s5861_s3 + $0x148] sm:$0xff] %v4745_v56  ;;  %v2869_v10 = vpop.f32.mrb[12].mxu1  ;;  %v4413_v45 = vcombine.high %v287_v35, %v295_v36  ;;  %v311_v50 = vld [vmem:[#allocation2 + $0x6f0] sm:$0xff]  ;;  %v312_v56 = vld [vmem:[#allocation2 + $0x6f8] sm:$0xff] }
 0x179   :  { %v4780_v8 = vadd.f32 %v2723_v63, %v5370_v1  ;;  %v2725_v11 = vpop.f32.mrb[13].mxu0  ;;  %v4796_v16 = vadd.f32 %v2869_v10, %v5376_v5  ;;  %v2871_v18 = vpop.f32.mrb[13].mxu1  ;;  %v4429_v63 = vcombine.high %v303_v48, %v311_v50  ;;  %v327_v4 = vld [vmem:[#allocation2 + $0x770] sm:$0xff]  ;;  %v328_v10 = vld [vmem:[#allocation2 + $0x778] sm:$0xff] }
 0x17a   :  { %v4781_v17 = vadd.f32 %v2725_v11, %v5381_v7  ;;  %v2727_v20 = vpop.f32.mrb[14].mxu0  ;;  %3481 = vmatpush1.bf16.msra.mxu0 %v4364_v51  ;;  %v4797_v24 = vadd.f32 %v2871_v18, %v5386_v9  ;;  %v2873_v27 = vpop.f32.mrb[14].mxu1  ;;  %3627 = vmatpush1.bf16.msra.mxu1 %v4366_v59  ;;  %v304_v51 = vld [vmem:[#allocation2 + $0x6b8] sm:$0xff]  ;;  %v4412_v59 = vcombine.low %v287_v35, %v295_v36  ;;  %v343_v18 = vld [vmem:[#allocation2 + $0x7f0] sm:$0xff] }
 0x17b   :  { %v4782_v26 = vadd.f32 %v2727_v20, %v5370_v1  ;;  %v2729_v28 = vpop.f32.mrb[15].mxu0  ;;  %3482 = vmatprep.subr.bf16.mxu0 %v4381_v61  ;;  %v4798_v32 = vadd.f32 %v2873_v27, %v5376_v5  ;;  %v2875_v34 = vpop.f32.mrb[15].mxu1  ;;  %3628 = vmatprep.subr.bf16.mxu1 %v4383_v0  ;;  %v296_v1 = vld [vmem:[#allocation2 + $0x678] sm:$0xff]  ;;  %v4431_v0 = vcombine.high %v304_v51, %v312_v56  ;;  %v367_v36 = vld [vmem:[#allocation2 + $0x8b0] sm:$0xff] }
 0x17c   :  { %v4752_v31 = vpack.c.bf16 %v4781_v17, %v4780_v8  ;;  %v4783_v33 = vadd.f32 %v2729_v28, %v5381_v7  ;;  %v4753_v39 = vpack.c.bf16 %v4797_v24, %v4796_v16  ;;  %v4799_v41 = vadd.f32 %v2875_v34, %v5386_v9  ;;  %v320_v8 = vld [vmem:[#allocation2 + $0x738] sm:$0xff]  ;;  %v335_v17 = vld [vmem:[#allocation2 + $0x7b0] sm:$0xff] }
 0x17d   :  { %v4398_v7 = vcombine.low %v272_v12, %v280_v14  ;;  %v4415_v9 = vcombine.high %v288_v42, %v296_v1  ;;  %v4414_v61 = vcombine.low %v288_v42, %v296_v1  ;;  %v4428_v11 = vcombine.low %v303_v48, %v311_v50  ;;  %v336_v20 = vld [vmem:[#allocation2 + $0x7b8] sm:$0xff]  ;;  %v351_v28 = vld [vmem:[#allocation2 + $0x830] sm:$0xff] }
 0x17e   :  { %4186 = vst [vmem:[%s5861_s3 + $0x180] sm:$0xff] %v4752_v31  ;;  %v4760_v43 = vpack.c.bf16 %v4783_v33, %v4782_v26  ;;  %3483 = vmatpush1.bf16.msra.mxu0 %v4380_v21  ;;  %4187 = vst [vmem:[%s5861_s3 + $0x188] sm:$0xff] %v4753_v39  ;;  %v4761_v5 = vpack.c.bf16 %v4799_v41, %v4798_v32  ;;  %3629 = vmatpush1.bf16.msra.mxu1 %v4382_v22  ;;  %v344_v21 = vld [vmem:[#allocation2 + $0x7f8] sm:$0xff]  ;;  %v375_v39 = vld [vmem:[#allocation2 + $0x8f0] sm:$0xff] }
 0x17f   :  { %3484 = vmatprep.subr.bf16.mxu0 %v4397_v29  ;;  %3630 = vmatprep.subr.bf16.mxu1 %v4399_v58  ;;  %v4430_v12 = vcombine.low %v304_v51, %v312_v56  ;;  %v4445_v14 = vcombine.high %v319_v3, %v327_v4  ;;  %v4447_v16 = vcombine.high %v320_v8, %v328_v10  ;;  %v359_v29 = vld [vmem:[#allocation2 + $0x870] sm:$0xff]  ;;  %v352_v31 = vld [vmem:[#allocation2 + $0x838] sm:$0xff] }
 0x180   :  { %4194 = vst [vmem:[%s5861_s3 + $0x1c0] sm:$0xff] %v4760_v43  ;;  %4195 = vst [vmem:[%s5861_s3 + $0x1c8] sm:$0xff] %v4761_v5  ;;  %v4444_v22 = vcombine.low %v319_v3, %v327_v4  ;;  %v4446_v24 = vcombine.low %v320_v8, %v328_v10  ;;  %v4461_v26 = vcombine.high %v335_v17, %v343_v18  ;;  %v360_v32 = vld [vmem:[#allocation2 + $0x878] sm:$0xff] }
 0x181   :  { %v4463_v27 = vcombine.high %v336_v20, %v344_v21  ;;  %v4460_v33 = vcombine.low %v335_v17, %v343_v18  ;;  %v4462_v34 = vcombine.low %v336_v20, %v344_v21  ;;  %v4477_v58 = vcombine.high %v351_v28, %v359_v29  ;;  %v368_v41 = vld [vmem:[#allocation2 + $0x8b8] sm:$0xff]  ;;  %v431_v21 = vld [vmem:[#allocation2 + $0xab0] sm:$0xff] }
 0x182   :  { %3485 = vmatpush1.bf16.msra.mxu0 %v4396_v44  ;;  %3631 = vmatpush1.bf16.msra.mxu1 %v4398_v7  ;;  %v4479_v35 = vcombine.high %v352_v31, %v360_v32  ;;  %v376_v42 = vld [vmem:[#allocation2 + $0x8f8] sm:$0xff]  ;;  %v4476_v1 = vcombine.low %v351_v28, %v359_v29  ;;  %v4478_v43 = vcombine.low %v352_v31, %v360_v32  ;;  %v383_v7 = vld [vmem:[#allocation2 + $0x930] sm:$0xff] }
 0x183   :  { %3486 = vmatprep.subr.bf16.mxu0 %v4413_v45  ;;  %3632 = vmatprep.subr.bf16.mxu1 %v4415_v9  ;;  %v4493_v44 = vcombine.high %v367_v36, %v375_v39  ;;  %v4495_v5 = vcombine.high %v368_v41, %v376_v42  ;;  %v391_v45 = vld [vmem:[#allocation2 + $0x970] sm:$0xff]  ;;  %v384_v9 = vld [vmem:[#allocation2 + $0x938] sm:$0xff]  ;;  %v4492_v50 = vcombine.low %v367_v36, %v375_v39 }
 0x184   :  { %v392_v48 = vld [vmem:[#allocation2 + $0x978] sm:$0xff]  ;;  %v4494_v51 = vcombine.low %v368_v41, %v376_v42  ;;  %v4509_v56 = vcombine.high %v383_v7, %v391_v45  ;;  %v4508_v4 = vcombine.low %v383_v7, %v391_v45  ;;  %v447_v31 = vld [vmem:[#allocation2 + $0xb30] sm:$0xff] }
 0x185   :  { %v408_v3 = vld [vmem:[#allocation2 + $0x9f8] sm:$0xff]  ;;  %v455_v32 = vld [vmem:[#allocation2 + $0xb70] sm:$0xff] }
 0x186   :  { %3487 = vmatpush1.bf16.msra.mxu0 %v4412_v59  ;;  %3633 = vmatpush1.bf16.msra.mxu1 %v4414_v61  ;;  %v4511_v59 = vcombine.high %v384_v9, %v392_v48  ;;  %v399_v61 = vld [vmem:[#allocation2 + $0x9b0] sm:$0xff]  ;;  %v464_v42 = vld [vmem:[#allocation2 + $0xbb8] sm:$0xff] }
 0x187   :  { %3488 = vmatprep.subr.bf16.mxu0 %v4429_v63  ;;  %3634 = vmatprep.subr.bf16.mxu1 %v4431_v0  ;;  %v407_v63 = vld [vmem:[#allocation2 + $0x9f0] sm:$0xff]  ;;  %v400_v0 = vld [vmem:[#allocation2 + $0x9b8] sm:$0xff] }
 0x188   :  { %v4525_v8 = vcombine.high %v399_v61, %v407_v63  ;;  %v4527_v10 = vcombine.high %v400_v0, %v408_v3  ;;  %v4524_v17 = vcombine.low %v399_v61, %v407_v63  ;;  %v463_v39 = vld [vmem:[#allocation2 + $0xbb0] sm:$0xff]  ;;  %v515_v63 = vsub.s32 5, %v5353_v38 }
 0x189   :  { %v471_v41 = vld [vmem:[#allocation2 + $0xbf0] sm:$0xff] }
 0x18a   :  { %3489 = vmatpush1.bf16.msra.mxu0 %v4428_v11  ;;  %3635 = vmatpush1.bf16.msra.mxu1 %v4430_v12  ;;  %v415_v11 = vld [vmem:[#allocation2 + $0xa30] sm:$0xff] }
 0x18b   :  { %3490 = vmatprep.subr.bf16.mxu0 %v4445_v14  ;;  %3636 = vmatprep.subr.bf16.mxu1 %v4447_v16  ;;  %v423_v12 = vld [vmem:[#allocation2 + $0xa70] sm:$0xff]  ;;  %v416_v14 = vld [vmem:[#allocation2 + $0xa38] sm:$0xff] }
 0x18c   :  { %v424_v16 = vld [vmem:[#allocation2 + $0xa78] sm:$0xff]  ;;  %v4541_v18 = vcombine.high %v415_v11, %v423_v12  ;;  %v479_v7 = vld [vmem:[#allocation2 + $0xc30] sm:$0xff] }
 0x18d   :  { %v4543_v20 = vcombine.high %v416_v14, %v424_v16  ;;  %v4542_v28 = vcombine.low %v416_v14, %v424_v16  ;;  %v487_v45 = vld [vmem:[#allocation2 + $0xc70] sm:$0xff] }
 0x18e   :  { %3491 = vmatpush1.bf16.msra.mxu0 %v4444_v22  ;;  %3637 = vmatpush1.bf16.msra.mxu1 %v4446_v24  ;;  %v439_v22 = vld [vmem:[#allocation2 + $0xaf0] sm:$0xff]  ;;  %v432_v24 = vld [vmem:[#allocation2 + $0xab8] sm:$0xff] }
 0x18f   :  { %3492 = vmatprep.subr.bf16.mxu0 %v4461_v26  ;;  %3638 = vmatprep.subr.bf16.mxu1 %v4463_v27  ;;  %v440_v26 = vld [vmem:[#allocation2 + $0xaf8] sm:$0xff]  ;;  %v4540_v27 = vcombine.low %v415_v11, %v423_v12 }
 0x190   :  { %v4559_v29 = vcombine.high %v432_v24, %v440_v26 }
 0x192   :  { %3493 = vmatpush1.bf16.msra.mxu0 %v4460_v33  ;;  %3639 = vmatpush1.bf16.msra.mxu1 %v4462_v34  ;;  %v448_v33 = vld [vmem:[#allocation2 + $0xb38] sm:$0xff] }
 0x193   :  { %3535 = vmatprep.subr.bf16.mxu0 %v4477_v58  ;;  %3681 = vmatprep.subr.bf16.mxu1 %v4479_v35  ;;  %v456_v34 = vld [vmem:[#allocation2 + $0xb78] sm:$0xff]  ;;  %v4556_v58 = vcombine.low %v431_v21, %v439_v22  ;;  %v4573_v35 = vcombine.high %v447_v31, %v455_v32 }
 0x194   :  { %v4575_v36 = vcombine.high %v448_v33, %v456_v34 }
 0x195   :  { %3495 = vmatmul.mubr.bf16.vlgmr.msra.gmra.mrb[48].mxu0 %v5140_v15  ;;  %3641 = vmatmul.mubr.bf16.vlgmr.msra.gmra.mrb[48].mxu1 %v5140_v15  ;;  %v4510_v15 = vcombine.low %v384_v9, %v392_v48  ;;  %v480_v9 = vld [vmem:[#allocation2 + $0xc38] sm:$0xff] }
 0x196   :  { %3536 = vmatpush1.bf16.msra.mxu0 %v4476_v1  ;;  %3682 = vmatpush1.bf16.msra.mxu1 %v4478_v43  ;;  %v472_v1 = vld [vmem:[#allocation2 + $0xbf8] sm:$0xff]  ;;  %v4572_v43 = vcombine.low %v447_v31, %v455_v32 }
 0x197   :  { %3537 = vmatprep.subr.bf16.mxu0 %v4493_v44  ;;  %3683 = vmatprep.subr.bf16.mxu1 %v4495_v5  ;;  %v4574_v44 = vcombine.low %v448_v33, %v456_v34  ;;  %v4591_v5 = vcombine.high %v464_v42, %v472_v1  ;;  %v488_v48 = vld [vmem:[#allocation2 + $0xc78] sm:$0xff] }
 0x198   :  { %3504 = vmatprep.mubr.bf16.mxu0 %v5148_v25  ;;  %3650 = vmatprep.mubr.bf16.mxu1 %v5148_v25  ;;  %v4526_v25 = vcombine.low %v400_v0, %v408_v3  ;;  %v4606_v61 = vcombine.low %v480_v9, %v488_v48  ;;  %v523_v0 = vsub.s32 7, %v5353_v38  ;;  %v5557_v3 = vrot.slane %v5361_v53, %v515_v63 }
 0x19a   :  { %3538 = vmatpush1.bf16.msra.mxu0 %v4492_v50  ;;  %3684 = vmatpush1.bf16.msra.mxu1 %v4494_v51  ;;  %v4588_v50 = vcombine.low %v463_v39, %v471_v41  ;;  %v4605_v51 = vcombine.high %v479_v7, %v487_v45 }
 0x19b   :  { %3539 = vmatprep.subr.bf16.mxu0 %v4509_v56  ;;  %3685 = vmatprep.subr.bf16.mxu1 %v4511_v59  ;;  %v4607_v56 = vcombine.high %v480_v9, %v488_v48  ;;  %v4604_v59 = vcombine.low %v479_v7, %v487_v45 }
 0x19d   :  { %3505 = vmatmul.mubr.bf16.gmra.mrb[52].mxu0 %v5160_v37  ;;  %3651 = vmatmul.mubr.bf16.gmra.mrb[52].mxu1 %v5160_v37  ;;  %v4557_v37 = vcombine.high %v431_v21, %v439_v22 }
 0x19e   :  { %3540 = vmatpush1.bf16.msra.mxu0 %v4508_v4  ;;  %3686 = vmatpush1.bf16.msra.mxu1 %v4510_v15  ;;  %v5564_v4 = vrot.slane %v5361_v53, %v523_v0 }
 0x19f   :  { %3541 = vmatprep.subr.bf16.mxu0 %v4525_v8  ;;  %3687 = vmatprep.subr.bf16.mxu1 %v4527_v10 }
 0x1a0   :  { %3514 = vmatprep.mubr.bf16.mxu0 %v5168_v47  ;;  %3660 = vmatprep.mubr.bf16.mxu1 %v5168_v47  ;;  %v4558_v47 = vcombine.low %v432_v24, %v440_v26 }
 0x1a2   :  { %3542 = vmatpush1.bf16.msra.mxu0 %v4524_v17  ;;  %3688 = vmatpush1.bf16.msra.mxu1 %v4526_v25 }
 0x1a3   :  { %3543 = vmatprep.subr.bf16.mxu0 %v4541_v18  ;;  %3689 = vmatprep.subr.bf16.mxu1 %v4543_v20 }
 0x1a5   :  { %3515 = vmatmul.mubr.bf16.gmra.mrb[56].mxu0 %v5180_v60  ;;  %3661 = vmatmul.mubr.bf16.gmra.mrb[56].mxu1 %v5180_v60  ;;  %v4589_v60 = vcombine.high %v463_v39, %v471_v41 }
 0x1a6   :  { %3544 = vmatpush1.bf16.msra.mxu0 %v4540_v27  ;;  %3690 = vmatpush1.bf16.msra.mxu1 %v4542_v28 }
 0x1a7   :  { %3545 = vmatprep.subr.bf16.mxu0 %v4557_v37  ;;  %3691 = vmatprep.subr.bf16.mxu1 %v4559_v29 }
 0x1a8   :  { %3524 = vmatprep.mubr.bf16.mxu0 %v5188_v6  ;;  %3670 = vmatprep.mubr.bf16.mxu1 %v5188_v6  ;;  %v4590_v6 = vcombine.low %v464_v42, %v472_v1 }
 0x1aa   :  { %3546 = vmatpush1.bf16.msra.mxu0 %v4556_v58  ;;  %3692 = vmatpush1.bf16.msra.mxu1 %v4558_v47 }
 0x1ab   :  { %3547 = vmatprep.subr.bf16.mxu0 %v4573_v35  ;;  %3693 = vmatprep.subr.bf16.mxu1 %v4575_v36 }
 0x1ad   :  { %3525 = vmatmul.mubr.bf16.gmra.mrb[60].mxu0 %v5200_v19  ;;  %3671 = vmatmul.mubr.bf16.gmra.mrb[60].mxu1 %v5200_v19  ;;  %v511_v19 = vsub.s32 4, %v5353_v38 }
 0x1ae   :  { %3548 = vmatpush1.bf16.msra.mxu0 %v4572_v43  ;;  %3694 = vmatpush1.bf16.msra.mxu1 %v4574_v44 }
 0x1af   :  { %3549 = vmatprep.subr.bf16.mxu0 %v4589_v60  ;;  %3695 = vmatprep.subr.bf16.mxu1 %v4591_v5 }
 0x1b0   :  { %4632 = vmatprep.mubr.msk.bf16.mxu0 %vm2573_vm0, %v5208_v30  ;;  %4636 = vmatprep.mubr.msk.bf16.mxu1 %vm2573_vm0, %v5208_v30  ;;  %v519_v30 = vsub.s32 6, %v5353_v38 }
 0x1b2   :  { %3550 = vmatpush1.bf16.msra.mxu0 %v4588_v50  ;;  %3696 = vmatpush1.bf16.msra.mxu1 %v4590_v6 }
 0x1b3   :  { %3551 = vmatprep.subr.bf16.mxu0 %v4605_v51  ;;  %3697 = vmatprep.subr.bf16.mxu1 %v4607_v56 }
 0x1b6   :  { %3552 = vmatpush1.bf16.msra.mxu0 %v4604_v59  ;;  %3698 = vmatpush1.bf16.msra.mxu1 %v4606_v61 }
 0x1b9   :  { %3568 = vmatmul.mubr.bf16.vlgmr.msra.gmra.mrb[48].mxu0 %v5222_v52  ;;  %3714 = vmatmul.mubr.bf16.vlgmr.msra.gmra.mrb[48].mxu1 %v5222_v52  ;;  %v5546_v52 = vrot.slane %v5361_v53, %v511_v19 }
 0x1ba   :  { %4633 = vmatprep.mubr.msk.bf16.mxu0 %vm2573_vm0, %v5230_v62  ;;  %4637 = vmatprep.mubr.msk.bf16.mxu1 %vm2573_vm0, %v5230_v62  ;;  %v5552_v62 = vrot.slane %v5361_v53, %v519_v30 }
 0x1c1   :  { %3578 = vmatmul.mubr.bf16.gmra.mrb[52].mxu0 %v5244_v13  ;;  %3724 = vmatmul.mubr.bf16.gmra.mrb[52].mxu1 %v5244_v13 }
 0x1c2   :  { %4634 = vmatprep.mubr.msk.bf16.mxu0 %vm2573_vm0, %v5252_v23  ;;  %4638 = vmatprep.mubr.msk.bf16.mxu1 %vm2573_vm0, %v5252_v23 }
 0x1c4   :  { %v2985_v13 = vpop.f32.mrb[16].mxu0  ;;  %v3131_v8 = vpop.f32.mrb[16].mxu1 }
 0x1c5   :  { %v4800_v15 = vadd.f32 %v2985_v13, %v5546_v52  ;;  %v2987_v10 = vpop.f32.mrb[17].mxu0  ;;  %v4816_v11 = vadd.f32 %v3131_v8, %v5552_v62  ;;  %v3133_v14 = vpop.f32.mrb[17].mxu1 }
 0x1c6   :  { %v4801_v12 = vadd.f32 %v2987_v10, %v5557_v3  ;;  %v2989_v16 = vpop.f32.mrb[18].mxu0  ;;  %v4817_v17 = vadd.f32 %v3133_v14, %v5564_v4  ;;  %v3135_v53 = vpop.f32.mrb[18].mxu1 }
 0x1c7   :  { %v4802_v25 = vadd.f32 %v2989_v16, %v5546_v52  ;;  %v2991_v18 = vpop.f32.mrb[19].mxu0  ;;  %v4818_v23 = vadd.f32 %v3135_v53, %v5552_v62  ;;  %v3137_v22 = vpop.f32.mrb[19].mxu1 }
 0x1c8   :  { %v4706_v20 = vpack.c.bf16 %v4801_v12, %v4800_v15  ;;  %v4803_v21 = vadd.f32 %v2991_v18, %v5557_v3  ;;  %v4707_v24 = vpack.c.bf16 %v4817_v17, %v4816_v11  ;;  %v4819_v26 = vadd.f32 %v3137_v22, %v5564_v4 }
 0x1c9   :  { %3588 = vmatmul.mubr.bf16.gmra.mrb[56].mxu0 %v5266_v40  ;;  %3734 = vmatmul.mubr.bf16.gmra.mrb[56].mxu1 %v5266_v40 }
 0x1ca   :  { %4140 = vst [vmem:[%s5861_s3 + $0x10] sm:$0xff] %v4706_v20  ;;  %v4714_v27 = vpack.c.bf16 %v4803_v21, %v4802_v25  ;;  %4635 = vmatprep.mubr.msk.bf16.mxu0 %vm2573_vm0, %v5274_v49  ;;  %4141 = vst [vmem:[%s5861_s3 + $0x18] sm:$0xff] %v4707_v24  ;;  %v4715_v28 = vpack.c.bf16 %v4819_v26, %v4818_v23  ;;  %4639 = vmatprep.mubr.msk.bf16.mxu1 %vm2573_vm0, %v5274_v49 }
 0x1cc   :  { %4148 = vst [vmem:[%s5861_s3 + $0x50] sm:$0xff] %v4714_v27  ;;  %v2995_v37 = vpop.f32.mrb[20].mxu0  ;;  %4149 = vst [vmem:[%s5861_s3 + $0x58] sm:$0xff] %v4715_v28  ;;  %v3141_v29 = vpop.f32.mrb[20].mxu1 }
 0x1cd   :  { %v4804_v40 = vadd.f32 %v2995_v37, %v5546_v52  ;;  %v2997_v31 = vpop.f32.mrb[21].mxu0  ;;  %v4820_v32 = vadd.f32 %v3141_v29, %v5552_v62  ;;  %v3143_v34 = vpop.f32.mrb[21].mxu1 }
 0x1ce   :  { %v4805_v33 = vadd.f32 %v2997_v31, %v5557_v3  ;;  %v2999_v58 = vpop.f32.mrb[22].mxu0  ;;  %v4821_v49 = vadd.f32 %v3143_v34, %v5564_v4  ;;  %v3145_v35 = vpop.f32.mrb[22].mxu1 }
 0x1cf   :  { %v4806_v47 = vadd.f32 %v2999_v58, %v5546_v52  ;;  %v3001_v36 = vpop.f32.mrb[23].mxu0  ;;  %v4822_v41 = vadd.f32 %v3145_v35, %v5552_v62  ;;  %v3147_v1 = vpop.f32.mrb[23].mxu1 }
 0x1d0   :  { %v4722_v39 = vpack.c.bf16 %v4805_v33, %v4804_v40  ;;  %v4807_v42 = vadd.f32 %v3001_v36, %v5557_v3  ;;  %v4723_v43 = vpack.c.bf16 %v4821_v49, %v4820_v32  ;;  %v4823_v44 = vadd.f32 %v3147_v1, %v5564_v4 }
 0x1d1   :  { %3598 = vmatmul.mubr.bf16.gmra.mrb[60].mxu0 %v5288_v2  ;;  %3744 = vmatmul.mubr.bf16.gmra.mrb[60].mxu1 %v5288_v2 }
 0x1d2   :  { %4156 = vst [vmem:[%s5861_s3 + $0x90] sm:$0xff] %v4722_v39  ;;  %v4730_v60 = vpack.c.bf16 %v4807_v42, %v4806_v47  ;;  %4157 = vst [vmem:[%s5861_s3 + $0x98] sm:$0xff] %v4723_v43  ;;  %v4731_v5 = vpack.c.bf16 %v4823_v44, %v4822_v41 }
 0x1d4   :  { %4164 = vst [vmem:[%s5861_s3 + $0xd0] sm:$0xff] %v4730_v60  ;;  %v3005_v7 = vpop.f32.mrb[24].mxu0  ;;  %4165 = vst [vmem:[%s5861_s3 + $0xd8] sm:$0xff] %v4731_v5  ;;  %v3151_v9 = vpop.f32.mrb[24].mxu1 }
 0x1d5   :  { %v4808_v45 = vadd.f32 %v3005_v7, %v5546_v52  ;;  %v3007_v48 = vpop.f32.mrb[25].mxu0  ;;  %v4824_v2 = vadd.f32 %v3151_v9, %v5552_v62  ;;  %v3153_v6 = vpop.f32.mrb[25].mxu1 }
 0x1d6   :  { %v4809_v50 = vadd.f32 %v3007_v48, %v5557_v3  ;;  %v3009_v51 = vpop.f32.mrb[26].mxu0  ;;  %v4825_v56 = vadd.f32 %v3153_v6, %v5564_v4  ;;  %v3155_v61 = vpop.f32.mrb[26].mxu1 }
 0x1d7   :  { %v4810_v59 = vadd.f32 %v3009_v51, %v5546_v52  ;;  %v3011_v13 = vpop.f32.mrb[27].mxu0  ;;  %v4826_v8 = vadd.f32 %v3155_v61, %v5552_v62  ;;  %v3157_v11 = vpop.f32.mrb[27].mxu1 }
 0x1d8   :  { %v4738_v15 = vpack.c.bf16 %v4809_v50, %v4808_v45  ;;  %v4811_v10 = vadd.f32 %v3011_v13, %v5557_v3  ;;  %v4739_v12 = vpack.c.bf16 %v4825_v56, %v4824_v2  ;;  %v4827_v14 = vadd.f32 %v3157_v11, %v5564_v4 }
 0x1da   :  { %4172 = vst [vmem:[%s5861_s3 + $0x110] sm:$0xff] %v4738_v15  ;;  %v4746_v16 = vpack.c.bf16 %v4811_v10, %v4810_v59  ;;  %4173 = vst [vmem:[%s5861_s3 + $0x118] sm:$0xff] %v4739_v12  ;;  %v4747_v17 = vpack.c.bf16 %v4827_v14, %v4826_v8 }
 0x1dc   :  { %4180 = vst [vmem:[%s5861_s3 + $0x150] sm:$0xff] %v4746_v16  ;;  %v3015_v25 = vpop.f32.mrb[28].mxu0  ;;  %4181 = vst [vmem:[%s5861_s3 + $0x158] sm:$0xff] %v4747_v17  ;;  %v3161_v18 = vpop.f32.mrb[28].mxu1 }
 0x1dd   :  { %v4812_v53 = vadd.f32 %v3015_v25, %v5546_v52  ;;  %v3017_v20 = vpop.f32.mrb[29].mxu0  ;;  %v4828_v23 = vadd.f32 %v3161_v18, %v5552_v62  ;;  %v3163_v22 = vpop.f32.mrb[29].mxu1 }
 0x1de   :  { %v4813_v21 = vadd.f32 %v3017_v20, %v5557_v3  ;;  %v3019_v24 = vpop.f32.mrb[30].mxu0  ;;  %v4829_v26 = vadd.f32 %v3163_v22, %v5564_v4  ;;  %v3165_v28 = vpop.f32.mrb[30].mxu1 }
 0x1df   :  { %v4814_v27 = vadd.f32 %v3019_v24, %v5546_v52  ;;  %v3021_v37 = vpop.f32.mrb[31].mxu0  ;;  %v4830_v29 = vadd.f32 %v3165_v28, %v5552_v62  ;;  %v3167_v32 = vpop.f32.mrb[31].mxu1  ;;  %v5656_v62 = vld [vmem:[#allocation4 + $0x8] sm:$0xff] }
 0x1e0   :  { %v4754_v40 = vpack.c.bf16 %v4813_v21, %v4812_v53  ;;  %v4815_v31 = vadd.f32 %v3021_v37, %v5557_v3  ;;  %v4755_v33 = vpack.c.bf16 %v4829_v26, %v4828_v23  ;;  %v4831_v34 = vadd.f32 %v3167_v32, %v5564_v4 }
 0x1e1   :  { %v5661_v3 = vrot.slane %v5656_v62, %v495_v46  ;;  %v5666_v4 = vrot.slane %v5656_v62, %v503_v54  ;;  %v5671_v49 = vrot.slane %v5656_v62, %v499_v55  ;;  %v5676_v47 = vrot.slane %v5656_v62, %v507_v57 }
 0x1e2   :  { %4188 = vst [vmem:[%s5861_s3 + $0x190] sm:$0xff] %v4754_v40  ;;  %v4762_v58 = vpack.c.bf16 %v4815_v31, %v4814_v27  ;;  %4189 = vst [vmem:[%s5861_s3 + $0x198] sm:$0xff] %v4755_v33  ;;  %v4763_v52 = vpack.c.bf16 %v4831_v34, %v4830_v29 }
 0x1e4   :  { %4196 = vst [vmem:[%s5861_s3 + $0x1d0] sm:$0xff] %v4762_v58  ;;  %4197 = vst [vmem:[%s5861_s3 + $0x1d8] sm:$0xff] %v4763_v52 }
 0x228   :  { %v3277_v35 = vpop.f32.mrb[32].mxu0  ;;  %v3423_v46 = vpop.f32.mrb[32].mxu1 }
 0x229   :  { %v4832_v36 = vadd.f32 %v3277_v35, %v5661_v3  ;;  %v3279_v39 = vpop.f32.mrb[33].mxu0  ;;  %v4848_v41 = vadd.f32 %v3423_v46, %v5666_v4  ;;  %v3425_v42 = vpop.f32.mrb[33].mxu1 }
 0x22a   :  { %v4833_v54 = vadd.f32 %v3279_v39, %v5671_v49  ;;  %v3281_v1 = vpop.f32.mrb[34].mxu0  ;;  %v4849_v43 = vadd.f32 %v3425_v42, %v5676_v47  ;;  %v3427_v44 = vpop.f32.mrb[34].mxu1 }
 0x22b   :  { %v4834_v55 = vadd.f32 %v3281_v1, %v5661_v3  ;;  %v3283_v60 = vpop.f32.mrb[35].mxu0  ;;  %v4850_v57 = vadd.f32 %v3427_v44, %v5666_v4  ;;  %v3429_v45 = vpop.f32.mrb[35].mxu1 }
 0x22c   :  { %v4708_v5 = vpack.c.bf16 %v4833_v54, %v4832_v36  ;;  %v4835_v7 = vadd.f32 %v3283_v60, %v5671_v49  ;;  %v4709_v9 = vpack.c.bf16 %v4849_v43, %v4848_v41  ;;  %v4851_v48 = vadd.f32 %v3429_v45, %v5676_v47 }
 0x22e   :  { %4142 = vst [vmem:[%s5861_s3 + $0x20] sm:$0xff] %v4708_v5  ;;  %v4716_v2 = vpack.c.bf16 %v4835_v7, %v4834_v55  ;;  %4143 = vst [vmem:[%s5861_s3 + $0x28] sm:$0xff] %v4709_v9  ;;  %v4717_v50 = vpack.c.bf16 %v4851_v48, %v4850_v57 }
 0x230   :  { %4150 = vst [vmem:[%s5861_s3 + $0x60] sm:$0xff] %v4716_v2  ;;  %v3287_v6 = vpop.f32.mrb[36].mxu0  ;;  %4151 = vst [vmem:[%s5861_s3 + $0x68] sm:$0xff] %v4717_v50  ;;  %v3433_v56 = vpop.f32.mrb[36].mxu1 }
 0x231   :  { %v4836_v51 = vadd.f32 %v3287_v6, %v5661_v3  ;;  %v3289_v59 = vpop.f32.mrb[37].mxu0  ;;  %v4852_v61 = vadd.f32 %v3433_v56, %v5666_v4  ;;  %v3435_v15 = vpop.f32.mrb[37].mxu1 }
 0x232   :  { %v4837_v13 = vadd.f32 %v3289_v59, %v5671_v49  ;;  %v3291_v8 = vpop.f32.mrb[38].mxu0  ;;  %v4853_v10 = vadd.f32 %v3435_v15, %v5676_v47  ;;  %v3437_v12 = vpop.f32.mrb[38].mxu1 }
 0x233   :  { %v4838_v11 = vadd.f32 %v3291_v8, %v5661_v3  ;;  %v3293_v14 = vpop.f32.mrb[39].mxu0  ;;  %v4854_v17 = vadd.f32 %v3437_v12, %v5666_v4  ;;  %v3439_v53 = vpop.f32.mrb[39].mxu1 }
 0x234   :  { %v4724_v16 = vpack.c.bf16 %v4837_v13, %v4836_v51  ;;  %v4839_v25 = vadd.f32 %v3293_v14, %v5671_v49  ;;  %v4725_v18 = vpack.c.bf16 %v4853_v10, %v4852_v61  ;;  %v4855_v20 = vadd.f32 %v3439_v53, %v5676_v47 }
 0x235   :  { %v5776_v13 = vrot.slane %v5656_v62, %v523_v0 }
 0x236   :  { %4158 = vst [vmem:[%s5861_s3 + $0xa0] sm:$0xff] %v4724_v16  ;;  %v4732_v23 = vpack.c.bf16 %v4839_v25, %v4838_v11  ;;  %4159 = vst [vmem:[%s5861_s3 + $0xa8] sm:$0xff] %v4725_v18  ;;  %v4733_v21 = vpack.c.bf16 %v4855_v20, %v4854_v17 }
 0x238   :  { %4166 = vst [vmem:[%s5861_s3 + $0xe0] sm:$0xff] %v4732_v23  ;;  %v3297_v22 = vpop.f32.mrb[40].mxu0  ;;  %4167 = vst [vmem:[%s5861_s3 + $0xe8] sm:$0xff] %v4733_v21  ;;  %v3443_v26 = vpop.f32.mrb[40].mxu1 }
 0x239   :  { %v4840_v24 = vadd.f32 %v3297_v22, %v5661_v3  ;;  %v3299_v27 = vpop.f32.mrb[41].mxu0  ;;  %v4856_v28 = vadd.f32 %v3443_v26, %v5666_v4  ;;  %v3445_v40 = vpop.f32.mrb[41].mxu1 }
 0x23a   :  { %v4841_v37 = vadd.f32 %v3299_v27, %v5671_v49  ;;  %v3301_v29 = vpop.f32.mrb[42].mxu0  ;;  %v4857_v31 = vadd.f32 %v3445_v40, %v5676_v47  ;;  %v3447_v33 = vpop.f32.mrb[42].mxu1 }
 0x23b   :  { %v4842_v32 = vadd.f32 %v3301_v29, %v5661_v3  ;;  %v3303_v34 = vpop.f32.mrb[43].mxu0  ;;  %v4858_v52 = vadd.f32 %v3447_v33, %v5666_v4  ;;  %v3449_v36 = vpop.f32.mrb[43].mxu1 }
 0x23c   :  { %v4740_v58 = vpack.c.bf16 %v4841_v37, %v4840_v24  ;;  %v4843_v35 = vadd.f32 %v3303_v34, %v5671_v49  ;;  %v4741_v46 = vpack.c.bf16 %v4857_v31, %v4856_v28  ;;  %v4859_v39 = vadd.f32 %v3449_v36, %v5676_v47 }
 0x23e   :  { %4174 = vst [vmem:[%s5861_s3 + $0x120] sm:$0xff] %v4740_v58  ;;  %v4748_v41 = vpack.c.bf16 %v4843_v35, %v4842_v32  ;;  %4175 = vst [vmem:[%s5861_s3 + $0x128] sm:$0xff] %v4741_v46  ;;  %v4749_v54 = vpack.c.bf16 %v4859_v39, %v4858_v52 }
 0x240   :  { %4182 = vst [vmem:[%s5861_s3 + $0x160] sm:$0xff] %v4748_v41  ;;  %v3307_v42 = vpop.f32.mrb[44].mxu0  ;;  %4183 = vst [vmem:[%s5861_s3 + $0x168] sm:$0xff] %v4749_v54  ;;  %v3453_v43 = vpop.f32.mrb[44].mxu1 }
 0x241   :  { %v4844_v1 = vadd.f32 %v3307_v42, %v5661_v3  ;;  %v3309_v55 = vpop.f32.mrb[45].mxu0  ;;  %v4860_v44 = vadd.f32 %v3453_v43, %v5666_v4  ;;  %v3455_v5 = vpop.f32.mrb[45].mxu1 }
 0x242   :  { %v4845_v60 = vadd.f32 %v3309_v55, %v5671_v49  ;;  %v3311_v57 = vpop.f32.mrb[46].mxu0  ;;  %v4861_v7 = vadd.f32 %v3455_v5, %v5676_v47  ;;  %v3457_v9 = vpop.f32.mrb[46].mxu1 }
 0x243   :  { %v4846_v45 = vadd.f32 %v3311_v57, %v5661_v3  ;;  %v3313_v48 = vpop.f32.mrb[47].mxu0  ;;  %v4862_v50 = vadd.f32 %v3457_v9, %v5666_v4  ;;  %v3459_v51 = vpop.f32.mrb[47].mxu1  ;;  %v5761_v4 = vrot.slane %v5656_v62, %v511_v19 }
 0x244   :  { %v4756_v2 = vpack.c.bf16 %v4845_v60, %v4844_v1  ;;  %v4847_v6 = vadd.f32 %v3313_v48, %v5671_v49  ;;  %v4757_v56 = vpack.c.bf16 %v4861_v7, %v4860_v44  ;;  %v4863_v59 = vadd.f32 %v3459_v51, %v5676_v47 }
 0x245   :  { %v5766_v49 = vrot.slane %v5656_v62, %v519_v30  ;;  %v5771_v47 = vrot.slane %v5656_v62, %v515_v63 }
 0x246   :  { %4190 = vst [vmem:[%s5861_s3 + $0x1a0] sm:$0xff] %v4756_v2  ;;  %v4764_v61 = vpack.c.bf16 %v4847_v6, %v4846_v45  ;;  %4191 = vst [vmem:[%s5861_s3 + $0x1a8] sm:$0xff] %v4757_v56  ;;  %v4765_v3 = vpack.c.bf16 %v4863_v59, %v4862_v50 }
 0x248   :  { %4198 = vst [vmem:[%s5861_s3 + $0x1e0] sm:$0xff] %v4764_v61  ;;  %4199 = vst [vmem:[%s5861_s3 + $0x1e8] sm:$0xff] %v4765_v3 }
 0x28c   :  { %v3569_v15 = vpop.f32.mrb[48].mxu0  ;;  %v3715_v19 = vpop.f32.mrb[48].mxu1 }
 0x28d   :  { %v4864_v8 = vadd.f32 %v3569_v15, %v5761_v4  ;;  %v3571_v10 = vpop.f32.mrb[49].mxu0  ;;  %v4880_v11 = vadd.f32 %v3715_v19, %v5766_v49  ;;  %v3717_v12 = vpop.f32.mrb[49].mxu1 }
 0x28e   :  { %v4865_v30 = vadd.f32 %v3571_v10, %v5771_v47  ;;  %v3573_v14 = vpop.f32.mrb[50].mxu0  ;;  %v4881_v16 = vadd.f32 %v3717_v12, %v5776_v13  ;;  %v3719_v17 = vpop.f32.mrb[50].mxu1 }
 0x28f   :  { %v4866_v63 = vadd.f32 %v3573_v14, %v5761_v4  ;;  %v3575_v38 = vpop.f32.mrb[51].mxu0  ;;  %v4882_v0 = vadd.f32 %v3719_v17, %v5766_v49  ;;  %v3721_v53 = vpop.f32.mrb[51].mxu1 }
 0x290   :  { %v4710_v25 = vpack.c.bf16 %v4865_v30, %v4864_v8  ;;  %v4867_v62 = vadd.f32 %v3575_v38, %v5771_v47  ;;  %v4711_v18 = vpack.c.bf16 %v4881_v16, %v4880_v11  ;;  %v4883_v20 = vadd.f32 %v3721_v53, %v5776_v13 }
 0x292   :  { %4144 = vst [vmem:[%s5861_s3 + $0x30] sm:$0xff] %v4710_v25  ;;  %v4718_v23 = vpack.c.bf16 %v4867_v62, %v4866_v63  ;;  %4145 = vst [vmem:[%s5861_s3 + $0x38] sm:$0xff] %v4711_v18  ;;  %v4719_v21 = vpack.c.bf16 %v4883_v20, %v4882_v0 }
 0x294   :  { %4152 = vst [vmem:[%s5861_s3 + $0x70] sm:$0xff] %v4718_v23  ;;  %v3579_v22 = vpop.f32.mrb[52].mxu0  ;;  %4153 = vst [vmem:[%s5861_s3 + $0x78] sm:$0xff] %v4719_v21  ;;  %v3725_v26 = vpop.f32.mrb[52].mxu1 }
 0x295   :  { %v4868_v24 = vadd.f32 %v3579_v22, %v5761_v4  ;;  %v3581_v27 = vpop.f32.mrb[53].mxu0  ;;  %v4884_v28 = vadd.f32 %v3725_v26, %v5766_v49  ;;  %v3727_v40 = vpop.f32.mrb[53].mxu1 }
 0x296   :  { %v4869_v37 = vadd.f32 %v3581_v27, %v5771_v47  ;;  %v3583_v29 = vpop.f32.mrb[54].mxu0  ;;  %v4885_v31 = vadd.f32 %v3727_v40, %v5776_v13  ;;  %v3729_v33 = vpop.f32.mrb[54].mxu1 }
 0x297   :  { %v4870_v32 = vadd.f32 %v3583_v29, %v5761_v4  ;;  %v3585_v34 = vpop.f32.mrb[55].mxu0  ;;  %v4886_v52 = vadd.f32 %v3729_v33, %v5766_v49  ;;  %v3731_v36 = vpop.f32.mrb[55].mxu1 }
 0x298   :  { %v4726_v58 = vpack.c.bf16 %v4869_v37, %v4868_v24  ;;  %v4871_v35 = vadd.f32 %v3585_v34, %v5771_v47  ;;  %v4727_v46 = vpack.c.bf16 %v4885_v31, %v4884_v28  ;;  %v4887_v39 = vadd.f32 %v3731_v36, %v5776_v13 }
 0x29a   :  { %4160 = vst [vmem:[%s5861_s3 + $0xb0] sm:$0xff] %v4726_v58  ;;  %v4734_v41 = vpack.c.bf16 %v4871_v35, %v4870_v32  ;;  %4161 = vst [vmem:[%s5861_s3 + $0xb8] sm:$0xff] %v4727_v46  ;;  %v4735_v54 = vpack.c.bf16 %v4887_v39, %v4886_v52 }
 0x29c   :  { %4168 = vst [vmem:[%s5861_s3 + $0xf0] sm:$0xff] %v4734_v41  ;;  %v3589_v42 = vpop.f32.mrb[56].mxu0  ;;  %4169 = vst [vmem:[%s5861_s3 + $0xf8] sm:$0xff] %v4735_v54  ;;  %v3735_v43 = vpop.f32.mrb[56].mxu1 }
 0x29d   :  { %v4872_v1 = vadd.f32 %v3589_v42, %v5761_v4  ;;  %v3591_v55 = vpop.f32.mrb[57].mxu0  ;;  %v4888_v44 = vadd.f32 %v3735_v43, %v5766_v49  ;;  %v3737_v5 = vpop.f32.mrb[57].mxu1 }
 0x29e   :  { %v4873_v60 = vadd.f32 %v3591_v55, %v5771_v47  ;;  %v3593_v57 = vpop.f32.mrb[58].mxu0  ;;  %v4889_v7 = vadd.f32 %v3737_v5, %v5776_v13  ;;  %v3739_v9 = vpop.f32.mrb[58].mxu1 }
 0x29f   :  { %v4874_v45 = vadd.f32 %v3593_v57, %v5761_v4  ;;  %v3595_v48 = vpop.f32.mrb[59].mxu0  ;;  %v4890_v50 = vadd.f32 %v3739_v9, %v5766_v49  ;;  %v3741_v51 = vpop.f32.mrb[59].mxu1 }
 0x2a0   :  { %v4742_v2 = vpack.c.bf16 %v4873_v60, %v4872_v1  ;;  %v4875_v6 = vadd.f32 %v3595_v48, %v5771_v47  ;;  %v4743_v56 = vpack.c.bf16 %v4889_v7, %v4888_v44  ;;  %v4891_v59 = vadd.f32 %v3741_v51, %v5776_v13 }
 0x2a2   :  { %4176 = vst [vmem:[%s5861_s3 + $0x130] sm:$0xff] %v4742_v2  ;;  %v4750_v61 = vpack.c.bf16 %v4875_v6, %v4874_v45  ;;  %4177 = vst [vmem:[%s5861_s3 + $0x138] sm:$0xff] %v4743_v56  ;;  %v4751_v3 = vpack.c.bf16 %v4891_v59, %v4890_v50 }
 0x2a4   :  { %4184 = vst [vmem:[%s5861_s3 + $0x170] sm:$0xff] %v4750_v61  ;;  %v3599_v15 = vpop.f32.mrb[60].mxu0  ;;  %4185 = vst [vmem:[%s5861_s3 + $0x178] sm:$0xff] %v4751_v3  ;;  %v3745_v19 = vpop.f32.mrb[60].mxu1 }
 0x2a5   :  { %v4876_v8 = vadd.f32 %v3599_v15, %v5761_v4  ;;  %v3601_v10 = vpop.f32.mrb[61].mxu0  ;;  %v4892_v11 = vadd.f32 %v3745_v19, %v5766_v49  ;;  %v3747_v12 = vpop.f32.mrb[61].mxu1 }
 0x2a6   :  { %v4877_v30 = vadd.f32 %v3601_v10, %v5771_v47  ;;  %v3603_v14 = vpop.f32.mrb[62].mxu0  ;;  %v4893_v16 = vadd.f32 %v3747_v12, %v5776_v13  ;;  %v3749_v17 = vpop.f32.mrb[62].mxu1 }
 0x2a7   :  { %v4878_v63 = vadd.f32 %v3603_v14, %v5761_v4  ;;  %v3605_v38 = vpop.f32.mrb[63].mxu0  ;;  %v4894_v0 = vadd.f32 %v3749_v17, %v5766_v49  ;;  %v3751_v53 = vpop.f32.mrb[63].mxu1 }
 0x2a8   :  { %v4758_v25 = vpack.c.bf16 %v4877_v30, %v4876_v8  ;;  %v4879_v62 = vadd.f32 %v3605_v38, %v5771_v47  ;;  %v4759_v18 = vpack.c.bf16 %v4893_v16, %v4892_v11  ;;  %v4895_v20 = vadd.f32 %v3751_v53, %v5776_v13 }
 0x2aa   :  { %4192 = vst [vmem:[%s5861_s3 + $0x1b0] sm:$0xff] %v4758_v25  ;;  %v4766_v23 = vpack.c.bf16 %v4879_v62, %v4878_v63  ;;  %4193 = vst [vmem:[%s5861_s3 + $0x1b8] sm:$0xff] %v4759_v18  ;;  %v4767_v4 = vpack.c.bf16 %v4895_v20, %v4894_v0 }
 0x2ac   :  { %4200 = vst [vmem:[%s5861_s3 + $0x1f0] sm:$0xff] %v4766_v23  ;;  %4201 = vst [vmem:[%s5861_s3 + $0x1f8] sm:$0xff] %v4767_v4 }
 0x2ad   :  { %4206 = vsyncpa [#allocation3], 1 }
 0x2ae   :  { %4207 = vsyncpa [#allocation5], 1 }

// kernel: net_forward.5
= control target key start
LH: loop header
LB: loop body
LE: loop exit
PB: predicated region body
PF: predicated region fallthrough
CT: control target
= control target key end

     0   :  { %s4208_s21 = smov 0   ;;  %s4210_s22 = smov 0   ;;  %s5985_s0 = inlined_call_operand.vmem [shape: bf16[8,8,2048], index: 0, kind: input, shape index: {}]   ;;  %s5986_s1 = inlined_call_operand.vmem [shape: bf16[2,256,1024], index: 1, kind: input, shape index: {}]   ;;  %s5987_s2 = inlined_call_operand.vmem [shape: f32[2,8,256], index: 2, kind: input, shape index: {}]   ;;  %s5988_s3 = inlined_call_operand.vmem [shape: f32[2,8,256], index: 3, kind: input, shape index: {}]   ;;  %s5989_s4 = inlined_call_operand.vmem [shape: f32[8,8,512], index: 4, kind: output, shape index: {0}]   ;;  %s5990_s5 = inlined_call_operand.vmem [shape: f32[2,8,256], index: 5, kind: output, shape index: {1}]   ;;  %s5991_s6 = inlined_call_operand.vmem [shape: f32[2,8,256], index: 6, kind: output, shape index: {2}]  }
   0x1   :  { %s4212_s23 = smov 0   ;;  %s4214_s24 = smov 0  }
   0x2   :  { %s4216_s25 = smov 0  }
   0x3 LB: > { %s29_s26 = sadd.s32 1, %s4167_s24  ;;  %s3569_s27 = sadd.s32 4294967295, %s4171_s25   ;;  %s4171_s25 = sphi %s4216_s25, %s17_s25   ;;  %s4167_s24 = sphi %s4214_s24, %s6977_s24   ;;  %s4163_s23 = sphi %s4212_s23, %s6976_s23   ;;  %s4159_s22 = sphi %s4210_s22, %s6975_s22   ;;  %s4155_s21 = sphi %s4208_s21, %s6974_s21  }
   0x4   : > { %p31_p0 = scmp.ge.s32.totalorder %s29_s26, 2  ;;  %p55_p1 = scmp.ne.s32.totalorder %s4159_s22, %s4155_s21 }
   0x5   : > { %p56_p2 = scmp.eq.s32.totalorder %s4171_s25, 0  ;;  %p175_p4 = scmp.eq.s32.totalorder %s3569_s27, 1 }
   0x6   : > { %s6979_s26 = smov (%p31_p0, %s29_s26), 0  ;;  %s48_s29 = sadd.s32 1, %s4159_s22 }
   0x7   : > { %p57_p3 = por %p56_p2, %p55_p1  ;;  %s44_s28 = ssub.s32 %s4167_s24, %s6979_s26 }
   0x8   : > { %p46_p5 = scmp.eq.s32.totalorder %s44_s28, 0  ;;  %p4243_p6 = por %p175_p4, %p55_p1 }
   0x9   : > { %p3572_p7 = scmp.ge.s32.totalorder %s4171_s25, 2 }
   0xa   : > { %s4248_s7 = scalar_select %p46_p5, %s4159_s22, %s48_s29  }
   0xb   : > { %249 = sbr.rel (%p3572_p7) target bundleno = 38 (0x26), region = 16 }
  0x12   : > { %252 = sbr.rel (!%p57_p3) target bundleno = 38 (0x26), region = 20  ;;  %s254_s8 = sand.u32 (%p57_p3), 1, %s4159_s22  }
  0x13   : > { %s3826_s9 = sshll.u32 (%p57_p3), %s4167_s24, 5  ;;  %s3573_s10 = sshll.u32 (%p57_p3), %s254_s8, 8 }
  0x14   : > { %s4256_s13 = scalar_lea.vmem (%p57_p3), %s5985_s0, %s3826_s9  ;;  %s4261_s14 = scalar_lea.vmem (%p57_p3), [#allocation4], %s3573_s10 }
  0x15   : > { %v280_v0 = vld [vmem:[%s4256_s13] sm:$0xff] (%p57_p3)  ;;  %v282_v1 = vld [vmem:[%s4256_s13 + $0x8] sm:$0xff] (%p57_p3)  ;;  %v284_v2 = vld [vmem:[%s4256_s13 + $0x10] sm:$0xff] (%p57_p3) }
  0x16   : > { %281 = vst [vmem:[%s4261_s14] sm:$0xff] (%p57_p3), %v280_v0  ;;  %283 = vst [vmem:[%s4261_s14 + $0x8] sm:$0xff] (%p57_p3), %v282_v1  ;;  %v286_v3 = vld [vmem:[%s4256_s13 + $0x18] sm:$0xff] (%p57_p3)  ;;  %v288_v4 = vld [vmem:[%s4256_s13 + $0x40] sm:$0xff] (%p57_p3) }
  0x17   : > { %285 = vst [vmem:[%s4261_s14 + $0x10] sm:$0xff] (%p57_p3), %v284_v2  ;;  %v290_v5 = vld [vmem:[%s4256_s13 + $0x48] sm:$0xff] (%p57_p3)  ;;  %287 = vst [vmem:[%s4261_s14 + $0x18] sm:$0xff] (%p57_p3), %v286_v3  ;;  %v292_v6 = vld [vmem:[%s4256_s13 + $0x50] sm:$0xff] (%p57_p3) }
  0x18   : > { %289 = vst [vmem:[%s4261_s14 + $0x20] sm:$0xff] (%p57_p3), %v288_v4  ;;  %291 = vst [vmem:[%s4261_s14 + $0x28] sm:$0xff] (%p57_p3), %v290_v5  ;;  %v294_v7 = vld [vmem:[%s4256_s13 + $0x58] sm:$0xff] (%p57_p3)  ;;  %v296_v8 = vld [vmem:[%s4256_s13 + $0x80] sm:$0xff] (%p57_p3) }
  0x19   : > { %293 = vst [vmem:[%s4261_s14 + $0x30] sm:$0xff] %v292_v6  ;;  %295 = vst [vmem:[%s4261_s14 + $0x38] sm:$0xff] %v294_v7  ;;  %v298_v9 = vld [vmem:[%s4256_s13 + $0x88] sm:$0xff]  ;;  %v300_v10 = vld [vmem:[%s4256_s13 + $0x90] sm:$0xff] }
  0x1a   : > { %297 = vst [vmem:[%s4261_s14 + $0x40] sm:$0xff] %v296_v8  ;;  %v302_v11 = vld [vmem:[%s4256_s13 + $0x98] sm:$0xff]  ;;  %299 = vst [vmem:[%s4261_s14 + $0x48] sm:$0xff] %v298_v9  ;;  %v304_v12 = vld [vmem:[%s4256_s13 + $0xc0] sm:$0xff] }
  0x1b   : > { %301 = vst [vmem:[%s4261_s14 + $0x50] sm:$0xff] %v300_v10  ;;  %303 = vst [vmem:[%s4261_s14 + $0x58] sm:$0xff] %v302_v11  ;;  %v306_v13 = vld [vmem:[%s4256_s13 + $0xc8] sm:$0xff]  ;;  %v308_v14 = vld [vmem:[%s4256_s13 + $0xd0] sm:$0xff] }
  0x1c   : > { %305 = vst [vmem:[%s4261_s14 + $0x60] sm:$0xff] %v304_v12  ;;  %307 = vst [vmem:[%s4261_s14 + $0x68] sm:$0xff] %v306_v13  ;;  %v310_v15 = vld [vmem:[%s4256_s13 + $0xd8] sm:$0xff]  ;;  %v312_v16 = vld [vmem:[%s4256_s13 + $0x100] sm:$0xff] }
  0x1d   : > { %309 = vst [vmem:[%s4261_s14 + $0x70] sm:$0xff] %v308_v14  ;;  %v314_v17 = vld [vmem:[%s4256_s13 + $0x108] sm:$0xff]  ;;  %311 = vst [vmem:[%s4261_s14 + $0x78] sm:$0xff] %v310_v15  ;;  %v316_v18 = vld [vmem:[%s4256_s13 + $0x110] sm:$0xff] }
  0x1e   : > { %313 = vst [vmem:[%s4261_s14 + $0x80] sm:$0xff] %v312_v16  ;;  %315 = vst [vmem:[%s4261_s14 + $0x88] sm:$0xff] %v314_v17  ;;  %v318_v19 = vld [vmem:[%s4256_s13 + $0x118] sm:$0xff]  ;;  %v320_v20 = vld [vmem:[%s4256_s13 + $0x140] sm:$0xff] }
  0x1f   : > { %317 = vst [vmem:[%s4261_s14 + $0x90] sm:$0xff] %v316_v18  ;;  %319 = vst [vmem:[%s4261_s14 + $0x98] sm:$0xff] %v318_v19  ;;  %v322_v21 = vld [vmem:[%s4256_s13 + $0x148] sm:$0xff]  ;;  %v324_v22 = vld [vmem:[%s4256_s13 + $0x150] sm:$0xff] }
  0x20   : > { %321 = vst [vmem:[%s4261_s14 + $0xa0] sm:$0xff] %v320_v20  ;;  %v326_v23 = vld [vmem:[%s4256_s13 + $0x158] sm:$0xff]  ;;  %323 = vst [vmem:[%s4261_s14 + $0xa8] sm:$0xff] %v322_v21  ;;  %v328_v24 = vld [vmem:[%s4256_s13 + $0x180] sm:$0xff] }
  0x21   : > { %325 = vst [vmem:[%s4261_s14 + $0xb0] sm:$0xff] %v324_v22  ;;  %327 = vst [vmem:[%s4261_s14 + $0xb8] sm:$0xff] %v326_v23  ;;  %v330_v25 = vld [vmem:[%s4256_s13 + $0x188] sm:$0xff]  ;;  %v332_v26 = vld [vmem:[%s4256_s13 + $0x190] sm:$0xff] }
  0x22   : > { %329 = vst [vmem:[%s4261_s14 + $0xc0] sm:$0xff] %v328_v24  ;;  %331 = vst [vmem:[%s4261_s14 + $0xc8] sm:$0xff] %v330_v25  ;;  %v334_v27 = vld [vmem:[%s4256_s13 + $0x198] sm:$0xff]  ;;  %v336_v28 = vld [vmem:[%s4256_s13 + $0x1c0] sm:$0xff] }
  0x23   : > { %333 = vst [vmem:[%s4261_s14 + $0xd0] sm:$0xff] %v332_v26  ;;  %v338_v29 = vld [vmem:[%s4256_s13 + $0x1c8] sm:$0xff]  ;;  %335 = vst [vmem:[%s4261_s14 + $0xd8] sm:$0xff] %v334_v27  ;;  %v340_v30 = vld [vmem:[%s4256_s13 + $0x1d0] sm:$0xff] }
  0x24   : > { %337 = vst [vmem:[%s4261_s14 + $0xe0] sm:$0xff] %v336_v28  ;;  %339 = vst [vmem:[%s4261_s14 + $0xe8] sm:$0xff] %v338_v29  ;;  %v342_v31 = vld [vmem:[%s4256_s13 + $0x1d8] sm:$0xff] }
  0x25   : > { %341 = vst [vmem:[%s4261_s14 + $0xf0] sm:$0xff] %v340_v30  ;;  %343 = vst [vmem:[%s4261_s14 + $0xf8] sm:$0xff] %v342_v31 }
  0x26 PF: > { %p3576_p8 = scmp.ge.s32.totalorder %s4171_s25, 1  ;;  %p372_p9 = scmp.lt.s32.totalorder %s4171_s25, 3 }
  0x28   : > { %p373_p10 = pnand %p3576_p8, %p372_p9 }
  0x2a   : > { %376 = sbr.rel (%p373_p10) target bundleno = 2633 (0xa49), region = 55 }
  0x31   : > { %p439_p11 = scmp.lt.s32.totalorder %s4163_s23, 1  ;;  %s379_s8 = sand.u32 1, %s4155_s21  }
  0x32   : > { %s3577_s9 = sshll.u32 %s379_s8, 8  ;;  %s3832_s10 = smul.u32 224, %s4163_s23 }
  0x33   : > { %s4328_s15 = scalar_select %p439_p11, %s4163_s23, 1 }
  0x34   : > { %s4941_s11 = scalar_lea.vmem [#allocation4], %s3577_s9  ;;  %s3833_s17 = smul.u32 112, %s4163_s23 }
  0x35   : > { %s3827_s16 = sshll.u32 %s4328_s15, 10  ;;  %s4411_s20 = sshll.u32 %s4328_s15, 4 }
  0x36   : > { %s4334_s19 = scalar_lea.vmem %s5986_s1, %s3827_s16  ;;  %s4431_s29 = scalar_lea.vmem %s5987_s2, %s4411_s20 }
  0x37   : > { %v483_v32 = vld [vmem:[%s4334_s19] sm:$0xff]  ;;  %v484_v34 = vld [vmem:[%s4334_s19 + $0x8] sm:$0xff]  ;;  %s4944_s12 = scalar_lea.vmem %s4941_s11, %s3832_s10 [#allocation4]  ;;  %s453_s15 = scalar_lea.vmem %s5988_s3, %s4411_s20 }
  0x38   : > { %v487_v33 = vld [vmem:[%s4334_s19 + $0x20] sm:$0xff]  ;;  %v488_v36 = vld [vmem:[%s4334_s19 + $0x28] sm:$0xff]  ;;  %s3578_s16 = sshll.u32 %s379_s8, 7  ;;  %s3727_s21 = smul.u32 160, %s4163_s23 }
  0x39   : > { %v4339_v35 = vcombine.high %v483_v32, %v487_v33  ;;  %v4342_v37 = vcombine.low %v483_v32, %v487_v33  ;;  %v491_v38 = vld [vmem:[%s4334_s19 + $0x40] sm:$0xff]  ;;  %v4346_v40 = vcombine.high %v484_v34, %v488_v36  ;;  %v4348_v41 = vcombine.low %v484_v34, %v488_v36  ;;  %v492_v43 = vld [vmem:[%s4334_s19 + $0x48] sm:$0xff]  ;;  %s4963_s18 = scalar_lea.vmem [#allocation5], %s3578_s16  ;;  %s3738_s28 = smul.u32 80, %s4163_s23 }
  0x3a   : > { %v495_v39 = vld [vmem:[%s4334_s19 + $0x60] sm:$0xff]  ;;  %v496_v44 = vld [vmem:[%s4334_s19 + $0x68] sm:$0xff]  ;;  %s3430_s27 = scalar_lea.vmem %s4941_s11, %s3727_s21 [#allocation4]  ;;  %s3741_s8 = smul.u32 96, %s4163_s23 }
  0x3b   : > { %6260 = vst [vmem:[#allocation6_spill] sm:$0xff] %v4339_v35  ;;  %6261 = vst [vmem:[#allocation7_spill] sm:$0xff] %v4342_v37  ;;  %v4350_v42 = vcombine.high %v491_v38, %v495_v39  ;;  %v499_v45 = vld [vmem:[%s4334_s19 + $0x80] sm:$0xff]  ;;  %1271 = vmatprep.subr.bf16.mxu0 %v4339_v35  ;;  %v4356_v46 = vcombine.high %v492_v43, %v496_v44  ;;  %v500_v48 = vld [vmem:[%s4334_s19 + $0x88] sm:$0xff]  ;;  %1312 = vmatprep.subr.bf16.mxu1 %v4346_v40  ;;  %s3752_s10 = smul.u32 48, %s4163_s23  ;;  %s3755_s13 = sshll.u32 %s4163_s23, 5 }
  0x3c   : > { %6262 = vst [vmem:[#allocation8_spill] sm:$0xff] %v4346_v40  ;;  %6263 = vst [vmem:[#allocation9_spill] sm:$0xff] %v4348_v41  ;;  %v503_v47 = vld [vmem:[%s4334_s19 + $0xa0] sm:$0xff]  ;;  %v504_v49 = vld [vmem:[%s4334_s19 + $0xa8] sm:$0xff]  ;;  %1272 = vmatpush1.bf16.msra.mxu0 %v4342_v37  ;;  %v4363_v50 = vcombine.low %v491_v38, %v495_v39  ;;  %1313 = vmatpush1.bf16.msra.mxu1 %v4348_v41  ;;  %v4367_v51 = vcombine.low %v492_v43, %v496_v44  ;;  %s3438_s9 = scalar_lea.vmem %s4941_s11, %s3741_s8 [#allocation4]  ;;  %s3445_s14 = scalar_lea.vmem %s4941_s11, %s3755_s13 [#allocation4] }
  0x3d   : > { %6264 = vst [vmem:[#allocation10_spill] sm:$0xff] %v4350_v42  ;;  %6265 = vst [vmem:[#allocation11_spill] sm:$0xff] %v4356_v46  ;;  %1273 = vmatprep.subr.bf16.mxu0 %v4350_v42  ;;  %v4369_v52 = vcombine.high %v499_v45, %v503_v47  ;;  %1314 = vmatprep.subr.bf16.mxu1 %v4356_v46  ;;  %v4372_v53 = vcombine.high %v500_v48, %v504_v49  ;;  %v507_v54 = vld [vmem:[%s4334_s19 + $0xc0] sm:$0xff]  ;;  %v508_v56 = vld [vmem:[%s4334_s19 + $0xc8] sm:$0xff] }
  0x3e   : > { %6266 = vst [vmem:[#allocation12_spill] sm:$0xff] %v4363_v50  ;;  %6267 = vst [vmem:[#allocation13_spill] sm:$0xff] %v4367_v51  ;;  %v511_v55 = vld [vmem:[%s4334_s19 + $0xe0] sm:$0xff]  ;;  %v512_v57 = vld [vmem:[%s4334_s19 + $0xe8] sm:$0xff]  ;;  %v4379_v58 = vcombine.low %v499_v45, %v503_v47  ;;  %v4383_v59 = vcombine.low %v500_v48, %v504_v49 }
  0x3f   : > { %6268 = vst [vmem:[#allocation14_spill] sm:$0xff] %v4369_v52  ;;  %6269 = vst [vmem:[#allocation15_spill] sm:$0xff] %v4372_v53  ;;  %v4385_v60 = vcombine.high %v507_v54, %v511_v55  ;;  %v4388_v61 = vcombine.high %v508_v56, %v512_v57  ;;  %v515_v62 = vld [vmem:[%s4334_s19 + $0x100] sm:$0xff]  ;;  %v516_v0 = vld [vmem:[%s4334_s19 + $0x108] sm:$0xff]  ;;  %v4395_v2 = vcombine.low %v507_v54, %v511_v55 }
  0x40   : > { %1274 = vmatpush1.bf16.msra.mxu0 %v4363_v50  ;;  %6270 = vst [vmem:[#allocation16_spill] sm:$0xff] %v4379_v58  ;;  %1315 = vmatpush1.bf16.msra.mxu1 %v4367_v51  ;;  %6271 = vst [vmem:[#allocation17_spill] sm:$0xff] %v4383_v59  ;;  %v519_v63 = vld [vmem:[%s4334_s19 + $0x120] sm:$0xff]  ;;  %v520_v1 = vld [vmem:[%s4334_s19 + $0x128] sm:$0xff]  ;;  %v4399_v3 = vcombine.low %v508_v56, %v512_v57 }
  0x41   : > { %1275 = vmatprep.subr.bf16.mxu0 %v4369_v52  ;;  %6272 = vst [vmem:[#allocation18_spill] sm:$0xff] %v4385_v60  ;;  %1316 = vmatprep.subr.bf16.mxu1 %v4372_v53  ;;  %6273 = vst [vmem:[#allocation19_spill] sm:$0xff] %v4388_v61  ;;  %v4401_v4 = vcombine.high %v515_v62, %v519_v63  ;;  %v4404_v5 = vcombine.high %v516_v0, %v520_v1  ;;  %v523_v6 = vld [vmem:[%s4334_s19 + $0x140] sm:$0xff]  ;;  %v524_v8 = vld [vmem:[%s4334_s19 + $0x148] sm:$0xff] }
  0x42   : > { %6274 = vst [vmem:[#allocation20_spill] sm:$0xff] %v4395_v2  ;;  %6275 = vst [vmem:[#allocation21_spill] sm:$0xff] %v4399_v3  ;;  %v527_v7 = vld [vmem:[%s4334_s19 + $0x160] sm:$0xff]  ;;  %v528_v9 = vld [vmem:[%s4334_s19 + $0x168] sm:$0xff]  ;;  %v4414_v10 = vcombine.low %v515_v62, %v519_v63  ;;  %v4418_v11 = vcombine.low %v516_v0, %v520_v1 }
  0x43   : > { %6276 = vst [vmem:[#allocation22_spill] sm:$0xff] %v4401_v4  ;;  %6277 = vst [vmem:[#allocation23_spill] sm:$0xff] %v4404_v5  ;;  %v4420_v12 = vcombine.high %v523_v6, %v527_v7  ;;  %v4423_v13 = vcombine.high %v524_v8, %v528_v9  ;;  %v531_v14 = vld [vmem:[%s4334_s19 + $0x180] sm:$0xff]  ;;  %v532_v16 = vld [vmem:[%s4334_s19 + $0x188] sm:$0xff]  ;;  %v4436_v18 = vcombine.low %v523_v6, %v527_v7 }
  0x44   : > { %1276 = vmatpush1.bf16.msra.mxu0 %v4379_v58  ;;  %1317 = vmatpush1.bf16.msra.mxu1 %v4383_v59  ;;  %6278 = vst [vmem:[#allocation24_spill] sm:$0xff] %v4414_v10  ;;  %6279 = vst [vmem:[#allocation25_spill] sm:$0xff] %v4418_v11  ;;  %v535_v15 = vld [vmem:[%s4334_s19 + $0x1a0] sm:$0xff]  ;;  %v536_v17 = vld [vmem:[%s4334_s19 + $0x1a8] sm:$0xff]  ;;  %v4440_v19 = vcombine.low %v524_v8, %v528_v9 }
  0x45   : > { %1277 = vmatprep.subr.bf16.mxu0 %v4385_v60  ;;  %1318 = vmatprep.subr.bf16.mxu1 %v4388_v61  ;;  %6280 = vst [vmem:[#allocation26_spill] sm:$0xff] %v4420_v12  ;;  %6281 = vst [vmem:[#allocation27_spill] sm:$0xff] %v4423_v13  ;;  %v4442_v20 = vcombine.high %v531_v14, %v535_v15  ;;  %v476_v21 = vld [vmem:[%s4431_s29 + $0x8] sm:$0xff]  ;;  %v4446_v22 = vcombine.high %v532_v16, %v536_v17  ;;  %v539_v23 = vld [vmem:[%s4334_s19 + $0x1c0] sm:$0xff] }
  0x46   : > { %6282 = vst [vmem:[#allocation28_spill] sm:$0xff] %v4436_v18  ;;  %6283 = vst [vmem:[#allocation29_spill] sm:$0xff] %v4440_v19  ;;  %v543_v24 = vld [vmem:[%s4334_s19 + $0x1e0] sm:$0xff]  ;;  %v4450_v25 = vpack.c.bf16 %v476_v21, %v476_v21  ;;  %v540_v26 = vld [vmem:[%s4334_s19 + $0x1c8] sm:$0xff]  ;;  %v4455_v28 = vcombine.low %v531_v14, %v535_v15  ;;  %v4460_v29 = vcombine.low %v532_v16, %v536_v17 }
  0x47   : > { %6284 = vst [vmem:[#allocation30_spill] sm:$0xff] %v4442_v20  ;;  %6285 = vst [vmem:[#allocation31_spill] sm:$0xff] %v4446_v22  ;;  %v544_v27 = vld [vmem:[%s4334_s19 + $0x1e8] sm:$0xff]  ;;  %v4462_v30 = vcombine.high %v539_v23, %v543_v24  ;;  %v547_v32 = vld [vmem:[%s4334_s19 + $0x200] sm:$0xff]  ;;  %v4473_v38 = vcombine.low %v539_v23, %v543_v24 }
  0x48   : > { %1278 = vmatpush1.bf16.msra.mxu0 %v4395_v2  ;;  %1319 = vmatpush1.bf16.msra.mxu1 %v4399_v3  ;;  %6286 = vst [vmem:[#allocation32_spill] sm:$0xff] %v4455_v28  ;;  %6287 = vst [vmem:[#allocation33_spill] sm:$0xff] %v4460_v29  ;;  %v4465_v31 = vcombine.high %v540_v26, %v544_v27  ;;  %v551_v33 = vld [vmem:[%s4334_s19 + $0x220] sm:$0xff]  ;;  %v548_v34 = vld [vmem:[%s4334_s19 + $0x208] sm:$0xff]  ;;  %v4477_v39 = vcombine.low %v540_v26, %v544_v27 }
  0x49   : > { %1279 = vmatprep.subr.bf16.mxu0 %v4401_v4  ;;  %1320 = vmatprep.subr.bf16.mxu1 %v4404_v5  ;;  %6288 = vst [vmem:[#allocation34_spill] sm:$0xff] %v4462_v30  ;;  %v552_v36 = vld [vmem:[%s4334_s19 + $0x228] sm:$0xff]  ;;  %6290 = vst [vmem:[#allocation36_spill] sm:$0xff] %v4473_v38  ;;  %v4479_v43 = vcombine.high %v547_v32, %v551_v33  ;;  %v555_v45 = vld [vmem:[%s4334_s19 + $0x240] sm:$0xff]  ;;  %v4489_v54 = vcombine.low %v547_v32, %v551_v33 }
  0x4a   : > { %1303 = vmatprep.mubr.bf16.mxu0 %v4450_v25  ;;  %6289 = vst [vmem:[#allocation35_spill] sm:$0xff] %v4465_v31  ;;  %1344 = vmatprep.mubr.bf16.mxu1 %v4450_v25  ;;  %6291 = vst [vmem:[#allocation37_spill] sm:$0xff] %v4477_v39  ;;  %v4482_v44 = vcombine.high %v548_v34, %v552_v36  ;;  %v559_v47 = vld [vmem:[%s4334_s19 + $0x260] sm:$0xff]  ;;  %v556_v48 = vld [vmem:[%s4334_s19 + $0x248] sm:$0xff]  ;;  %v4493_v55 = vcombine.low %v548_v34, %v552_v36 }
  0x4b   : > { %6292 = vst [vmem:[#allocation38_spill] sm:$0xff] %v4479_v43  ;;  %v560_v49 = vld [vmem:[%s4334_s19 + $0x268] sm:$0xff]  ;;  %6294 = vst [vmem:[#allocation40_spill] sm:$0xff] %v4489_v54  ;;  %v4495_v56 = vcombine.high %v555_v45, %v559_v47  ;;  %v563_v62 = vld [vmem:[%s4334_s19 + $0x280] sm:$0xff]  ;;  %v4505_v6 = vcombine.low %v555_v45, %v559_v47 }
  0x4c   : > { %1280 = vmatpush1.bf16.msra.mxu0 %v4414_v10  ;;  %1321 = vmatpush1.bf16.msra.mxu1 %v4418_v11  ;;  %6293 = vst [vmem:[#allocation39_spill] sm:$0xff] %v4482_v44  ;;  %6295 = vst [vmem:[#allocation41_spill] sm:$0xff] %v4493_v55  ;;  %v4498_v57 = vcombine.high %v556_v48, %v560_v49  ;;  %v567_v63 = vld [vmem:[%s4334_s19 + $0x2a0] sm:$0xff]  ;;  %v564_v0 = vld [vmem:[%s4334_s19 + $0x288] sm:$0xff]  ;;  %v4509_v7 = vcombine.low %v556_v48, %v560_v49 }
  0x4d   : > { %1281 = vmatprep.subr.bf16.mxu0 %v4420_v12  ;;  %1322 = vmatprep.subr.bf16.mxu1 %v4423_v13  ;;  %6296 = vst [vmem:[#allocation42_spill] sm:$0xff] %v4495_v56  ;;  %v568_v1 = vld [vmem:[%s4334_s19 + $0x2a8] sm:$0xff]  ;;  %6298 = vst [vmem:[#allocation44_spill] sm:$0xff] %v4505_v6  ;;  %v4511_v8 = vcombine.high %v563_v62, %v567_v63  ;;  %v571_v14 = vld [vmem:[%s4334_s19 + $0x2c0] sm:$0xff]  ;;  %v4521_v21 = vcombine.low %v563_v62, %v567_v63 }
  0x4e   : > { %6297 = vst [vmem:[#allocation43_spill] sm:$0xff] %v4498_v57  ;;  %6299 = vst [vmem:[#allocation45_spill] sm:$0xff] %v4509_v7  ;;  %v4514_v9 = vcombine.high %v564_v0, %v568_v1  ;;  %v575_v15 = vld [vmem:[%s4334_s19 + $0x2e0] sm:$0xff]  ;;  %v572_v16 = vld [vmem:[%s4334_s19 + $0x2c8] sm:$0xff]  ;;  %v4525_v23 = vcombine.low %v564_v0, %v568_v1 }
  0x4f   : > { %6300 = vst [vmem:[#allocation46_spill] sm:$0xff] %v4511_v8  ;;  %v576_v17 = vld [vmem:[%s4334_s19 + $0x2e8] sm:$0xff]  ;;  %6302 = vst [vmem:[#allocation48_spill] sm:$0xff] %v4521_v21  ;;  %v4527_v24 = vcombine.high %v571_v14, %v575_v15  ;;  %v579_v27 = vld [vmem:[%s4334_s19 + $0x300] sm:$0xff]  ;;  %v4537_v36 = vcombine.low %v571_v14, %v575_v15 }
  0x50   : > { %1282 = vmatpush1.bf16.msra.mxu0 %v4436_v18  ;;  %1323 = vmatpush1.bf16.msra.mxu1 %v4440_v19  ;;  %6301 = vst [vmem:[#allocation47_spill] sm:$0xff] %v4514_v9  ;;  %6303 = vst [vmem:[#allocation49_spill] sm:$0xff] %v4525_v23  ;;  %v4530_v26 = vcombine.high %v572_v16, %v576_v17  ;;  %v583_v32 = vld [vmem:[%s4334_s19 + $0x320] sm:$0xff]  ;;  %v580_v33 = vld [vmem:[%s4334_s19 + $0x308] sm:$0xff]  ;;  %v4541_v45 = vcombine.low %v572_v16, %v576_v17 }
  0x51   : > { %1283 = vmatprep.subr.bf16.mxu0 %v4442_v20  ;;  %1324 = vmatprep.subr.bf16.mxu1 %v4446_v22  ;;  %6304 = vst [vmem:[#allocation50_spill] sm:$0xff] %v4527_v24  ;;  %v584_v34 = vld [vmem:[%s4334_s19 + $0x328] sm:$0xff]  ;;  %6306 = vst [vmem:[#allocation52_spill] sm:$0xff] %v4537_v36  ;;  %v4543_v47 = vcombine.high %v579_v27, %v583_v32  ;;  %v587_v49 = vld [vmem:[%s4334_s19 + $0x340] sm:$0xff]  ;;  %v4553_v1 = vcombine.low %v579_v27, %v583_v32 }
  0x52   : > { %6305 = vst [vmem:[#allocation51_spill] sm:$0xff] %v4530_v26  ;;  %6307 = vst [vmem:[#allocation53_spill] sm:$0xff] %v4541_v45  ;;  %v4546_v48 = vcombine.high %v580_v33, %v584_v34  ;;  %v591_v62 = vld [vmem:[%s4334_s19 + $0x360] sm:$0xff]  ;;  %v588_v63 = vld [vmem:[%s4334_s19 + $0x348] sm:$0xff]  ;;  %v4557_v14 = vcombine.low %v580_v33, %v584_v34 }
  0x53   : > { %6308 = vst [vmem:[#allocation54_spill] sm:$0xff] %v4543_v47  ;;  %v592_v0 = vld [vmem:[%s4334_s19 + $0x368] sm:$0xff]  ;;  %6310 = vst [vmem:[#allocation56_spill] sm:$0xff] %v4553_v1  ;;  %v4559_v15 = vcombine.high %v587_v49, %v591_v62  ;;  %v595_v17 = vld [vmem:[%s4334_s19 + $0x380] sm:$0xff] }
  0x54   : > { %1284 = vmatpush1.bf16.msra.mxu0 %v4455_v28  ;;  %1325 = vmatpush1.bf16.msra.mxu1 %v4460_v29  ;;  %6309 = vst [vmem:[#allocation55_spill] sm:$0xff] %v4546_v48  ;;  %6311 = vst [vmem:[#allocation57_spill] sm:$0xff] %v4557_v14  ;;  %v4562_v16 = vcombine.high %v588_v63, %v592_v0  ;;  %v596_v27 = vld [vmem:[%s4334_s19 + $0x388] sm:$0xff]  ;;  %v4573_v33 = vcombine.low %v588_v63, %v592_v0 }
  0x55   : > { %1285 = vmatprep.subr.bf16.mxu0 %v4462_v30  ;;  %1326 = vmatprep.subr.bf16.mxu1 %v4465_v31  ;;  %6312 = vst [vmem:[#allocation58_spill] sm:$0xff] %v4559_v15  ;;  %v600_v32 = vld [vmem:[%s4334_s19 + $0x3a8] sm:$0xff] }
  0x56   : > { %6313 = vst [vmem:[#allocation59_spill] sm:$0xff] %v4562_v16  ;;  %6315 = vst [vmem:[#allocation61_spill] sm:$0xff] %v4573_v33  ;;  %v4589_v63 = vcombine.low %v596_v27, %v600_v32 }
  0x58   : > { %1286 = vmatpush1.bf16.msra.mxu0 %v4473_v38  ;;  %1327 = vmatpush1.bf16.msra.mxu1 %v4477_v39  ;;  %6319 = vst [vmem:[#allocation65_spill] sm:$0xff] %v4589_v63 }
  0x59   : > { %1287 = vmatprep.subr.bf16.mxu0 %v4479_v43  ;;  %1328 = vmatprep.subr.bf16.mxu1 %v4482_v44 }
  0x5c   : > { %1288 = vmatpush1.bf16.msra.mxu0 %v4489_v54  ;;  %1329 = vmatpush1.bf16.msra.mxu1 %v4493_v55 }
  0x5d   : > { %1289 = vmatprep.subr.bf16.mxu0 %v4495_v56  ;;  %1330 = vmatprep.subr.bf16.mxu1 %v4498_v57 }
  0x60   : > { %1290 = vmatpush1.bf16.msra.mxu0 %v4505_v6  ;;  %1331 = vmatpush1.bf16.msra.mxu1 %v4509_v7 }
  0x61   : > { %1291 = vmatprep.subr.bf16.mxu0 %v4511_v8  ;;  %1332 = vmatprep.subr.bf16.mxu1 %v4514_v9 }
  0x64   : > { %1292 = vmatpush1.bf16.msra.mxu0 %v4521_v21  ;;  %1333 = vmatpush1.bf16.msra.mxu1 %v4525_v23  ;;  %v610_v23 = vld [vmem:[%s4334_s19 + $0x3f8] sm:$0xff] }
  0x65   : > { %1293 = vmatprep.subr.bf16.mxu0 %v4527_v24  ;;  %1334 = vmatprep.subr.bf16.mxu1 %v4530_v26  ;;  %v489_v26 = vld [vmem:[%s4334_s19 + $0x30] sm:$0xff] }
  0x66   : > { %v505_v24 = vld [vmem:[%s4334_s19 + $0xb0] sm:$0xff] }
  0x68   : > { %1294 = vmatpush1.bf16.msra.mxu0 %v4537_v36  ;;  %1335 = vmatpush1.bf16.msra.mxu1 %v4541_v45  ;;  %v599_v36 = vld [vmem:[%s4334_s19 + $0x3a0] sm:$0xff]  ;;  %v4569_v45 = vcombine.low %v587_v49, %v591_v62  ;;  %v604_v49 = vld [vmem:[%s4334_s19 + $0x3c8] sm:$0xff] }
  0x69   : > { %1295 = vmatprep.subr.bf16.mxu0 %v4543_v47  ;;  %1336 = vmatprep.subr.bf16.mxu1 %v4546_v48  ;;  %v4575_v34 = vcombine.high %v595_v17, %v599_v36  ;;  %v4578_v48 = vcombine.high %v596_v27, %v600_v32  ;;  %v603_v47 = vld [vmem:[%s4334_s19 + $0x3c0] sm:$0xff]  ;;  %v608_v62 = vld [vmem:[%s4334_s19 + $0x3e8] sm:$0xff] }
  0x6a   : > { %6314 = vst [vmem:[#allocation60_spill] sm:$0xff] %v4569_v45  ;;  %v475_v27 = vld [vmem:[%s4431_s29] sm:$0xff]  ;;  %v4606_v32 = vcombine.low %v604_v49, %v608_v62  ;;  %s3434_s29 = scalar_lea.vmem %s4963_s18, %s3738_s28 [#allocation5] }
  0x6b   : > { %6316 = vst [vmem:[#allocation62_spill] sm:$0xff] %v4575_v34  ;;  %6317 = vst [vmem:[#allocation63_spill] sm:$0xff] %v4578_v48 }
  0x6c   : > { %1296 = vmatpush1.bf16.msra.mxu0 %v4553_v1  ;;  %1337 = vmatpush1.bf16.msra.mxu1 %v4557_v14  ;;  %v607_v1 = vld [vmem:[%s4334_s19 + $0x3e0] sm:$0xff]  ;;  %v485_v14 = vld [vmem:[%s4334_s19 + $0x10] sm:$0xff]  ;;  %6323 = vst [vmem:[#allocation69_spill] sm:$0xff] %v4606_v32 }
  0x6d   : > { %1297 = vmatprep.subr.bf16.mxu0 %v4559_v15  ;;  %1338 = vmatprep.subr.bf16.mxu1 %v4562_v16  ;;  %v4585_v15 = vcombine.low %v595_v17, %v599_v36  ;;  %v4591_v0 = vcombine.high %v603_v47, %v607_v1  ;;  %v4594_v16 = vcombine.high %v604_v49, %v608_v62  ;;  %v486_v36 = vld [vmem:[%s4334_s19 + $0x18] sm:$0xff] }
  0x6e   : > { %v490_v17 = vld [vmem:[%s4334_s19 + $0x38] sm:$0xff]  ;;  %v4620_v49 = vcombine.low %v485_v14, %v489_v26 }
  0x6f   : > { %6318 = vst [vmem:[#allocation64_spill] sm:$0xff] %v4585_v15  ;;  %6320 = vst [vmem:[#allocation66_spill] sm:$0xff] %v4591_v0  ;;  %v4624_v62 = vcombine.low %v486_v36, %v490_v17 }
  0x70   : > { %1298 = vmatpush1.bf16.msra.mxu0 %v4569_v45  ;;  %1339 = vmatpush1.bf16.msra.mxu1 %v4573_v33  ;;  %6321 = vst [vmem:[#allocation67_spill] sm:$0xff] %v4594_v16  ;;  %v4601_v33 = vcombine.low %v603_v47, %v607_v1  ;;  %v493_v45 = vld [vmem:[%s4334_s19 + $0x50] sm:$0xff]  ;;  %v4615_v47 = vpack.c.bf16 %v475_v27, %v475_v27  ;;  %v494_v1 = vld [vmem:[%s4334_s19 + $0x58] sm:$0xff]  ;;  %6326 = vst [vmem:[#allocation72_spill] sm:$0xff] %v4620_v49 }
  0x71   : > { %1299 = vmatprep.subr.bf16.mxu0 %v4575_v34  ;;  %1340 = vmatprep.subr.bf16.mxu1 %v4578_v48  ;;  %v4608_v48 = vcombine.high %v485_v14, %v489_v26  ;;  %v4611_v34 = vcombine.high %v486_v36, %v490_v17  ;;  %6327 = vst [vmem:[#allocation73_spill] sm:$0xff] %v4624_v62  ;;  %v501_v27 = vld [vmem:[%s4334_s19 + $0x90] sm:$0xff]  ;;  %v502_v26 = vld [vmem:[%s4334_s19 + $0x98] sm:$0xff] }
  0x72   : > { %6322 = vst [vmem:[#allocation68_spill] sm:$0xff] %v4601_v33  ;;  %v506_v14 = vld [vmem:[%s4334_s19 + $0xb8] sm:$0xff] }
  0x73   : > { %6324 = vst [vmem:[#allocation70_spill] sm:$0xff] %v4608_v48  ;;  %6325 = vst [vmem:[#allocation71_spill] sm:$0xff] %v4611_v34 }
  0x74   : > { %1300 = vmatpush1.bf16.msra.mxu0 %v4585_v15  ;;  %1341 = vmatpush1.bf16.msra.mxu1 %v4589_v63  ;;  %v497_v15 = vld [vmem:[%s4334_s19 + $0x70] sm:$0xff]  ;;  %v498_v63 = vld [vmem:[%s4334_s19 + $0x78] sm:$0xff] }
  0x75   : > { %1301 = vmatprep.subr.bf16.mxu0 %v4591_v0  ;;  %1342 = vmatprep.subr.bf16.mxu1 %v4594_v16  ;;  %v4626_v16 = vcombine.high %v493_v45, %v497_v15  ;;  %v4629_v0 = vcombine.high %v494_v1, %v498_v63  ;;  %v4638_v36 = vcombine.low %v493_v45, %v497_v15  ;;  %v510_v45 = vld [vmem:[%s4334_s19 + $0xd8] sm:$0xff] }
  0x76   : > { %v4642_v17 = vcombine.low %v494_v1, %v498_v63  ;;  %v514_v15 = vld [vmem:[%s4334_s19 + $0xf8] sm:$0xff]  ;;  %v4656_v63 = vcombine.low %v501_v27, %v505_v24  ;;  %v4660_v1 = vcombine.low %v502_v26, %v506_v14 }
  0x77   : > { %6328 = vst [vmem:[#allocation74_spill] sm:$0xff] %v4626_v16  ;;  %6329 = vst [vmem:[#allocation75_spill] sm:$0xff] %v4629_v0 }
  0x78   : > { %1302 = vmatpush1.bf16.msra.mxu0 %v4601_v33  ;;  %1343 = vmatpush1.bf16.msra.mxu1 %v4606_v32  ;;  %6330 = vst [vmem:[#allocation76_spill] sm:$0xff] %v4638_v36  ;;  %6331 = vst [vmem:[#allocation77_spill] sm:$0xff] %v4642_v17  ;;  %v509_v32 = vld [vmem:[%s4334_s19 + $0xd0] sm:$0xff] }
  0x79   : > { %1353 = vmatprep.subr.bf16.mxu0 %v4608_v48  ;;  %1394 = vmatprep.subr.bf16.mxu1 %v4611_v34  ;;  %v4644_v34 = vcombine.high %v501_v27, %v505_v24  ;;  %v4647_v48 = vcombine.high %v502_v26, %v506_v14  ;;  %v513_v33 = vld [vmem:[%s4334_s19 + $0xf0] sm:$0xff]  ;;  %6334 = vst [vmem:[#allocation80_spill] sm:$0xff] %v4656_v63  ;;  %6335 = vst [vmem:[#allocation81_spill] sm:$0xff] %v4660_v1  ;;  %v518_v24 = vld [vmem:[%s4334_s19 + $0x118] sm:$0xff] }
  0x7a   : > { %v522_v27 = vld [vmem:[%s4334_s19 + $0x138] sm:$0xff]  ;;  %v4676_v26 = vcombine.low %v510_v45, %v514_v15 }
  0x7b   : > { %1304 = vmatmul.mubr.bf16.vlgmr.msra.gmra.mrb[0].mxu0 %v4615_v47  ;;  %1345 = vmatmul.mubr.bf16.vlgmr.msra.gmra.mrb[0].mxu1 %v4615_v47  ;;  %6332 = vst [vmem:[#allocation78_spill] sm:$0xff] %v4644_v34  ;;  %6333 = vst [vmem:[#allocation79_spill] sm:$0xff] %v4647_v48 }
  0x7c   : > { %1354 = vmatpush1.bf16.msra.mxu0 %v4620_v49  ;;  %1395 = vmatpush1.bf16.msra.mxu1 %v4624_v62  ;;  %6339 = vst [vmem:[#allocation85_spill] sm:$0xff] %v4676_v26  ;;  %v609_v62 = vld [vmem:[%s4334_s19 + $0x3f0] sm:$0xff]  ;;  %v606_v49 = vld [vmem:[%s4334_s19 + $0x3d8] sm:$0xff] }
  0x7d   : > { %1355 = vmatprep.subr.bf16.mxu0 %v4626_v16  ;;  %1396 = vmatprep.subr.bf16.mxu1 %v4629_v0  ;;  %v4662_v0 = vcombine.high %v509_v32, %v513_v33  ;;  %v4665_v16 = vcombine.high %v510_v45, %v514_v15  ;;  %v4692_v45 = vcombine.low %v518_v24, %v522_v27 }
  0x7e   : > { %1385 = vmatprep.mubr.bf16.mxu0 %v4450_v25  ;;  %1426 = vmatprep.mubr.bf16.mxu1 %v4450_v25  ;;  %v517_v25 = vld [vmem:[%s4334_s19 + $0x110] sm:$0xff] }
  0x7f   : > { %6336 = vst [vmem:[#allocation82_spill] sm:$0xff] %v4662_v0  ;;  %6337 = vst [vmem:[#allocation83_spill] sm:$0xff] %v4665_v16 }
  0x80   : > { %1356 = vmatpush1.bf16.msra.mxu0 %v4638_v36  ;;  %1397 = vmatpush1.bf16.msra.mxu1 %v4642_v17  ;;  %v521_v36 = vld [vmem:[%s4334_s19 + $0x130] sm:$0xff]  ;;  %v4672_v17 = vcombine.low %v509_v32, %v513_v33  ;;  %v526_v33 = vld [vmem:[%s4334_s19 + $0x158] sm:$0xff]  ;;  %6343 = vst [vmem:[#allocation89_spill] sm:$0xff] %v4692_v45 }
  0x81   : > { %1357 = vmatprep.subr.bf16.mxu0 %v4644_v34  ;;  %1398 = vmatprep.subr.bf16.mxu1 %v4647_v48  ;;  %v4678_v14 = vcombine.high %v517_v25, %v521_v36  ;;  %v4681_v48 = vcombine.high %v518_v24, %v522_v27  ;;  %v525_v34 = vld [vmem:[%s4334_s19 + $0x150] sm:$0xff]  ;;  %v530_v32 = vld [vmem:[%s4334_s19 + $0x178] sm:$0xff] }
  0x82   : > { %6338 = vst [vmem:[#allocation84_spill] sm:$0xff] %v4672_v17  ;;  %v4708_v24 = vcombine.low %v526_v33, %v530_v32 }
  0x83   : > { %6340 = vst [vmem:[#allocation86_spill] sm:$0xff] %v4678_v14  ;;  %6341 = vst [vmem:[#allocation87_spill] sm:$0xff] %v4681_v48 }
  0x84   : > { %1358 = vmatpush1.bf16.msra.mxu0 %v4656_v63  ;;  %1399 = vmatpush1.bf16.msra.mxu1 %v4660_v1  ;;  %v529_v63 = vld [vmem:[%s4334_s19 + $0x170] sm:$0xff]  ;;  %v4688_v1 = vcombine.low %v517_v25, %v521_v36  ;;  %v534_v36 = vld [vmem:[%s4334_s19 + $0x198] sm:$0xff]  ;;  %6347 = vst [vmem:[#allocation93_spill] sm:$0xff] %v4708_v24 }
  0x85   : > { %1359 = vmatprep.subr.bf16.mxu0 %v4662_v0  ;;  %1400 = vmatprep.subr.bf16.mxu1 %v4665_v16  ;;  %v4694_v15 = vcombine.high %v525_v34, %v529_v63  ;;  %v4697_v16 = vcombine.high %v526_v33, %v530_v32  ;;  %v533_v0 = vld [vmem:[%s4334_s19 + $0x190] sm:$0xff]  ;;  %v538_v25 = vld [vmem:[%s4334_s19 + $0x1b8] sm:$0xff] }
  0x86   : > { %6342 = vst [vmem:[#allocation88_spill] sm:$0xff] %v4688_v1  ;;  %v4724_v33 = vcombine.low %v534_v36, %v538_v25 }
  0x87   : > { %6344 = vst [vmem:[#allocation90_spill] sm:$0xff] %v4694_v15  ;;  %6345 = vst [vmem:[#allocation91_spill] sm:$0xff] %v4697_v16 }
  0x88   : > { %1360 = vmatpush1.bf16.msra.mxu0 %v4672_v17  ;;  %1401 = vmatpush1.bf16.msra.mxu1 %v4676_v26  ;;  %v537_v17 = vld [vmem:[%s4334_s19 + $0x1b0] sm:$0xff]  ;;  %v4704_v26 = vcombine.low %v525_v34, %v529_v63  ;;  %v542_v34 = vld [vmem:[%s4334_s19 + $0x1d8] sm:$0xff]  ;;  %6351 = vst [vmem:[#allocation97_spill] sm:$0xff] %v4724_v33 }
  0x89   : > { %1361 = vmatprep.subr.bf16.mxu0 %v4678_v14  ;;  %1402 = vmatprep.subr.bf16.mxu1 %v4681_v48  ;;  %v4710_v27 = vcombine.high %v533_v0, %v537_v17  ;;  %v4713_v48 = vcombine.high %v534_v36, %v538_v25  ;;  %v541_v14 = vld [vmem:[%s4334_s19 + $0x1d0] sm:$0xff]  ;;  %v546_v63 = vld [vmem:[%s4334_s19 + $0x1f8] sm:$0xff] }
  0x8a   : > { %6346 = vst [vmem:[#allocation92_spill] sm:$0xff] %v4704_v26  ;;  %v4740_v36 = vcombine.low %v542_v34, %v546_v63 }
  0x8b   : > { %6348 = vst [vmem:[#allocation94_spill] sm:$0xff] %v4710_v27  ;;  %6349 = vst [vmem:[#allocation95_spill] sm:$0xff] %v4713_v48 }
  0x8c   : > { %1362 = vmatpush1.bf16.msra.mxu0 %v4688_v1  ;;  %1403 = vmatpush1.bf16.msra.mxu1 %v4692_v45  ;;  %v545_v1 = vld [vmem:[%s4334_s19 + $0x1f0] sm:$0xff]  ;;  %v4720_v45 = vcombine.low %v533_v0, %v537_v17  ;;  %v550_v0 = vld [vmem:[%s4334_s19 + $0x218] sm:$0xff]  ;;  %6355 = vst [vmem:[#allocation101_spill] sm:$0xff] %v4740_v36 }
  0x8d   : > { %1363 = vmatprep.subr.bf16.mxu0 %v4694_v15  ;;  %1404 = vmatprep.subr.bf16.mxu1 %v4697_v16  ;;  %v4726_v32 = vcombine.high %v541_v14, %v545_v1  ;;  %v4729_v16 = vcombine.high %v542_v34, %v546_v63  ;;  %v549_v15 = vld [vmem:[%s4334_s19 + $0x210] sm:$0xff]  ;;  %v554_v17 = vld [vmem:[%s4334_s19 + $0x238] sm:$0xff] }
  0x8e   : > { %6350 = vst [vmem:[#allocation96_spill] sm:$0xff] %v4720_v45  ;;  %v4756_v34 = vcombine.low %v550_v0, %v554_v17 }
  0x8f   : > { %6352 = vst [vmem:[#allocation98_spill] sm:$0xff] %v4726_v32  ;;  %6353 = vst [vmem:[#allocation99_spill] sm:$0xff] %v4729_v16 }
  0x90   : > { %1364 = vmatpush1.bf16.msra.mxu0 %v4704_v26  ;;  %1405 = vmatpush1.bf16.msra.mxu1 %v4708_v24  ;;  %v553_v26 = vld [vmem:[%s4334_s19 + $0x230] sm:$0xff]  ;;  %v4736_v24 = vcombine.low %v541_v14, %v545_v1  ;;  %v558_v1 = vld [vmem:[%s4334_s19 + $0x258] sm:$0xff]  ;;  %6359 = vst [vmem:[#allocation105_spill] sm:$0xff] %v4756_v34 }
  0x91   : > { %1365 = vmatprep.subr.bf16.mxu0 %v4710_v27  ;;  %1406 = vmatprep.subr.bf16.mxu1 %v4713_v48  ;;  %v4742_v25 = vcombine.high %v549_v15, %v553_v26  ;;  %v4745_v48 = vcombine.high %v550_v0, %v554_v17  ;;  %v557_v27 = vld [vmem:[%s4334_s19 + $0x250] sm:$0xff]  ;;  %v562_v14 = vld [vmem:[%s4334_s19 + $0x278] sm:$0xff] }
  0x92   : > { %6354 = vst [vmem:[#allocation100_spill] sm:$0xff] %v4736_v24  ;;  %v4772_v0 = vcombine.low %v558_v1, %v562_v14 }
  0x93   : > { %6356 = vst [vmem:[#allocation102_spill] sm:$0xff] %v4742_v25  ;;  %6357 = vst [vmem:[#allocation103_spill] sm:$0xff] %v4745_v48 }
  0x94   : > { %1366 = vmatpush1.bf16.msra.mxu0 %v4720_v45  ;;  %1407 = vmatpush1.bf16.msra.mxu1 %v4724_v33  ;;  %v561_v45 = vld [vmem:[%s4334_s19 + $0x270] sm:$0xff]  ;;  %v4752_v33 = vcombine.low %v549_v15, %v553_v26  ;;  %v566_v26 = vld [vmem:[%s4334_s19 + $0x298] sm:$0xff]  ;;  %6363 = vst [vmem:[#allocation109_spill] sm:$0xff] %v4772_v0 }
  0x95   : > { %1367 = vmatprep.subr.bf16.mxu0 %v4726_v32  ;;  %1408 = vmatprep.subr.bf16.mxu1 %v4729_v16  ;;  %v4758_v63 = vcombine.high %v557_v27, %v561_v45  ;;  %v4761_v16 = vcombine.high %v558_v1, %v562_v14  ;;  %v565_v32 = vld [vmem:[%s4334_s19 + $0x290] sm:$0xff]  ;;  %v570_v15 = vld [vmem:[%s4334_s19 + $0x2b8] sm:$0xff] }
  0x96   : > { %6358 = vst [vmem:[#allocation104_spill] sm:$0xff] %v4752_v33  ;;  %v4788_v1 = vcombine.low %v566_v26, %v570_v15 }
  0x97   : > { %6360 = vst [vmem:[#allocation106_spill] sm:$0xff] %v4758_v63  ;;  %6361 = vst [vmem:[#allocation107_spill] sm:$0xff] %v4761_v16 }
  0x98   : > { %1368 = vmatpush1.bf16.msra.mxu0 %v4736_v24  ;;  %1409 = vmatpush1.bf16.msra.mxu1 %v4740_v36  ;;  %v569_v24 = vld [vmem:[%s4334_s19 + $0x2b0] sm:$0xff]  ;;  %v4768_v36 = vcombine.low %v557_v27, %v561_v45  ;;  %v574_v45 = vld [vmem:[%s4334_s19 + $0x2d8] sm:$0xff]  ;;  %6367 = vst [vmem:[#allocation113_spill] sm:$0xff] %v4788_v1 }
  0x99   : > { %1369 = vmatprep.subr.bf16.mxu0 %v4742_v25  ;;  %1410 = vmatprep.subr.bf16.mxu1 %v4745_v48  ;;  %v4774_v17 = vcombine.high %v565_v32, %v569_v24  ;;  %v4777_v48 = vcombine.high %v566_v26, %v570_v15  ;;  %v573_v25 = vld [vmem:[%s4334_s19 + $0x2d0] sm:$0xff]  ;;  %v578_v27 = vld [vmem:[%s4334_s19 + $0x2f8] sm:$0xff] }
  0x9a   : > { %6362 = vst [vmem:[#allocation108_spill] sm:$0xff] %v4768_v36  ;;  %v4804_v26 = vcombine.low %v574_v45, %v578_v27 }
  0x9b   : > { %6364 = vst [vmem:[#allocation110_spill] sm:$0xff] %v4774_v17  ;;  %6365 = vst [vmem:[#allocation111_spill] sm:$0xff] %v4777_v48 }
  0x9c   : > { %1370 = vmatpush1.bf16.msra.mxu0 %v4752_v33  ;;  %1411 = vmatpush1.bf16.msra.mxu1 %v4756_v34  ;;  %v577_v33 = vld [vmem:[%s4334_s19 + $0x2f0] sm:$0xff]  ;;  %v4784_v34 = vcombine.low %v565_v32, %v569_v24  ;;  %v582_v24 = vld [vmem:[%s4334_s19 + $0x318] sm:$0xff]  ;;  %6371 = vst [vmem:[#allocation117_spill] sm:$0xff] %v4804_v26 }
  0x9d   : > { %1371 = vmatprep.subr.bf16.mxu0 %v4758_v63  ;;  %1412 = vmatprep.subr.bf16.mxu1 %v4761_v16  ;;  %v4790_v14 = vcombine.high %v573_v25, %v577_v33  ;;  %v4793_v16 = vcombine.high %v574_v45, %v578_v27  ;;  %v581_v63 = vld [vmem:[%s4334_s19 + $0x310] sm:$0xff]  ;;  %v586_v32 = vld [vmem:[%s4334_s19 + $0x338] sm:$0xff] }
  0x9e   : > { %6366 = vst [vmem:[#allocation112_spill] sm:$0xff] %v4784_v34  ;;  %v4820_v45 = vcombine.low %v582_v24, %v586_v32 }
  0x9f   : > { %6368 = vst [vmem:[#allocation114_spill] sm:$0xff] %v4790_v14  ;;  %6369 = vst [vmem:[#allocation115_spill] sm:$0xff] %v4793_v16 }
  0xa0   : > { %1372 = vmatpush1.bf16.msra.mxu0 %v4768_v36  ;;  %1413 = vmatpush1.bf16.msra.mxu1 %v4772_v0  ;;  %v585_v36 = vld [vmem:[%s4334_s19 + $0x330] sm:$0xff]  ;;  %v4800_v0 = vcombine.low %v573_v25, %v577_v33  ;;  %v590_v33 = vld [vmem:[%s4334_s19 + $0x358] sm:$0xff]  ;;  %6375 = vst [vmem:[#allocation121_spill] sm:$0xff] %v4820_v45 }
  0xa1   : > { %1373 = vmatprep.subr.bf16.mxu0 %v4774_v17  ;;  %1414 = vmatprep.subr.bf16.mxu1 %v4777_v48  ;;  %v4806_v15 = vcombine.high %v581_v63, %v585_v36  ;;  %v4809_v48 = vcombine.high %v582_v24, %v586_v32  ;;  %v589_v17 = vld [vmem:[%s4334_s19 + $0x350] sm:$0xff]  ;;  %v594_v25 = vld [vmem:[%s4334_s19 + $0x378] sm:$0xff] }
  0xa2   : > { %6370 = vst [vmem:[#allocation116_spill] sm:$0xff] %v4800_v0  ;;  %v4836_v24 = vcombine.low %v590_v33, %v594_v25 }
  0xa3   : > { %6372 = vst [vmem:[#allocation118_spill] sm:$0xff] %v4806_v15  ;;  %6373 = vst [vmem:[#allocation119_spill] sm:$0xff] %v4809_v48 }
  0xa4   : > { %1374 = vmatpush1.bf16.msra.mxu0 %v4784_v34  ;;  %1415 = vmatpush1.bf16.msra.mxu1 %v4788_v1  ;;  %v593_v34 = vld [vmem:[%s4334_s19 + $0x370] sm:$0xff]  ;;  %v4816_v1 = vcombine.low %v581_v63, %v585_v36  ;;  %v598_v36 = vld [vmem:[%s4334_s19 + $0x398] sm:$0xff]  ;;  %6379 = vst [vmem:[#allocation125_spill] sm:$0xff] %v4836_v24 }
  0xa5   : > { %1375 = vmatprep.subr.bf16.mxu0 %v4790_v14  ;;  %1416 = vmatprep.subr.bf16.mxu1 %v4793_v16  ;;  %v4822_v27 = vcombine.high %v589_v17, %v593_v34  ;;  %v4825_v16 = vcombine.high %v590_v33, %v594_v25  ;;  %v597_v14 = vld [vmem:[%s4334_s19 + $0x390] sm:$0xff]  ;;  %v602_v63 = vld [vmem:[%s4334_s19 + $0x3b8] sm:$0xff]  ;;  %v4857_v25 = vcombine.high %v606_v49, %v610_v23 }
  0xa6   : > { %6374 = vst [vmem:[#allocation120_spill] sm:$0xff] %v4816_v1 }
  0xa7   : > { %6376 = vst [vmem:[#allocation122_spill] sm:$0xff] %v4822_v27  ;;  %6377 = vst [vmem:[#allocation123_spill] sm:$0xff] %v4825_v16 }
  0xa8   : > { %1376 = vmatpush1.bf16.msra.mxu0 %v4800_v0  ;;  %1417 = vmatpush1.bf16.msra.mxu1 %v4804_v26  ;;  %v601_v0 = vld [vmem:[%s4334_s19 + $0x3b0] sm:$0xff]  ;;  %v4832_v26 = vcombine.low %v589_v17, %v593_v34  ;;  %v4852_v17 = vcombine.low %v598_v36, %v602_v63  ;;  %6385 = vst [vmem:[#allocation131_spill] sm:$0xff] %v4857_v25 }
  0xa9   : > { %1377 = vmatprep.subr.bf16.mxu0 %v4806_v15  ;;  %1418 = vmatprep.subr.bf16.mxu1 %v4809_v48  ;;  %v4838_v32 = vcombine.high %v597_v14, %v601_v0  ;;  %v4841_v48 = vcombine.high %v598_v36, %v602_v63  ;;  %v605_v15 = vld [vmem:[%s4334_s19 + $0x3d0] sm:$0xff]  ;;  %v4848_v34 = vcombine.low %v597_v14, %v601_v0  ;;  %v6392_v14 = vld [vmem:[#allocation53_spill] sm:$0xff]  ;;  %v6394_v36 = vld [vmem:[#allocation55_spill] sm:$0xff]  ;;  %s1499_s19 = scalar_lea.vmem %s4963_s18, %s3833_s17 [#allocation5]  ;;  %s2257_s17 = ssub.s32 4, %s4163_s23 }
  0xaa   : > { %6378 = vst [vmem:[#allocation124_spill] sm:$0xff] %v4832_v26  ;;  %6383 = vst [vmem:[#allocation129_spill] sm:$0xff] %v4852_v17  ;;  %v4854_v33 = vcombine.high %v605_v15, %v609_v62  ;;  %v4864_v0 = vcombine.low %v606_v49, %v610_v23  ;;  %v6388_v23 = vld [vmem:[#allocation49_spill] sm:$0xff]  ;;  %v6390_v49 = vld [vmem:[#allocation51_spill] sm:$0xff] }
  0xab   : > { %6380 = vst [vmem:[#allocation126_spill] sm:$0xff] %v4838_v32  ;;  %6381 = vst [vmem:[#allocation127_spill] sm:$0xff] %v4841_v48  ;;  %v6395_v63 = vld [vmem:[#allocation56_spill] sm:$0xff] }
  0xac   : > { %1378 = vmatpush1.bf16.msra.mxu0 %v4816_v1  ;;  %1419 = vmatpush1.bf16.msra.mxu1 %v4820_v45  ;;  %6382 = vst [vmem:[#allocation128_spill] sm:$0xff] %v4848_v34  ;;  %6384 = vst [vmem:[#allocation130_spill] sm:$0xff] %v4854_v33 }
  0xad   : > { %1379 = vmatprep.subr.bf16.mxu0 %v4822_v27  ;;  %1420 = vmatprep.subr.bf16.mxu1 %v4825_v16  ;;  %v4860_v16 = vcombine.low %v605_v15, %v609_v62  ;;  %6387 = vst [vmem:[#allocation133_spill] sm:$0xff] %v4864_v0  ;;  %v6391_v62 = vld [vmem:[#allocation52_spill] sm:$0xff]  ;;  %v6393_v15 = vld [vmem:[#allocation54_spill] sm:$0xff] }
  0xaf   : > { %6386 = vst [vmem:[#allocation132_spill] sm:$0xff] %v4860_v16 }
  0xb0   : > { %1380 = vmatpush1.bf16.msra.mxu0 %v4832_v26  ;;  %1421 = vmatpush1.bf16.msra.mxu1 %v4836_v24 }
  0xb1   : > { %1381 = vmatprep.subr.bf16.mxu0 %v4838_v32  ;;  %1422 = vmatprep.subr.bf16.mxu1 %v4841_v48 }
  0xb4   : > { %1382 = vmatpush1.bf16.msra.mxu0 %v4848_v34  ;;  %1423 = vmatpush1.bf16.msra.mxu1 %v4852_v17 }
  0xb5   : > { %1383 = vmatprep.subr.bf16.mxu0 %v4854_v33  ;;  %1424 = vmatprep.subr.bf16.mxu1 %v4857_v25 }
  0xb8   : > { %1384 = vmatpush1.bf16.msra.mxu0 %v4860_v16  ;;  %1425 = vmatpush1.bf16.msra.mxu1 %v4864_v0 }
  0xb9   : > { %1523 = vmatprep.subr.bf16.mxu0 %v4339_v35  ;;  %1564 = vmatprep.subr.bf16.mxu1 %v4346_v40 }
  0xbb   : > { %1386 = vmatmul.mubr.bf16.vlgmr.msra.gmra.mrb[4].mxu0 %v4615_v47  ;;  %1427 = vmatmul.mubr.bf16.vlgmr.msra.gmra.mrb[4].mxu1 %v4615_v47  ;;  %v6389_v47 = vld [vmem:[#allocation50_spill] sm:$0xff] }
  0xbc   : > { %1524 = vmatpush1.bf16.msra.mxu0 %v4342_v37  ;;  %1565 = vmatpush1.bf16.msra.mxu1 %v4348_v41 }
  0xbd   : > { %1525 = vmatprep.subr.bf16.mxu0 %v4350_v42  ;;  %1566 = vmatprep.subr.bf16.mxu1 %v4356_v46 }
  0xc0   : > { %1526 = vmatpush1.bf16.msra.mxu0 %v4363_v50  ;;  %1567 = vmatpush1.bf16.msra.mxu1 %v4367_v51 }
  0xc1   : > { %1527 = vmatprep.subr.bf16.mxu0 %v4369_v52  ;;  %1568 = vmatprep.subr.bf16.mxu1 %v4372_v53 }
  0xc4   : > { %1528 = vmatpush1.bf16.msra.mxu0 %v4379_v58  ;;  %1569 = vmatpush1.bf16.msra.mxu1 %v4383_v59 }
  0xc5   : > { %1529 = vmatprep.subr.bf16.mxu0 %v4385_v60  ;;  %1570 = vmatprep.subr.bf16.mxu1 %v4388_v61 }
  0xc8   : > { %1530 = vmatpush1.bf16.msra.mxu0 %v4395_v2  ;;  %1571 = vmatpush1.bf16.msra.mxu1 %v4399_v3 }
  0xc9   : > { %1531 = vmatprep.subr.bf16.mxu0 %v4401_v4  ;;  %1572 = vmatprep.subr.bf16.mxu1 %v4404_v5 }
  0xcc   : > { %1532 = vmatpush1.bf16.msra.mxu0 %v4414_v10  ;;  %1573 = vmatpush1.bf16.msra.mxu1 %v4418_v11 }
  0xcd   : > { %1533 = vmatprep.subr.bf16.mxu0 %v4420_v12  ;;  %1574 = vmatprep.subr.bf16.mxu1 %v4423_v13 }
  0xd0   : > { %1534 = vmatpush1.bf16.msra.mxu0 %v4436_v18  ;;  %1575 = vmatpush1.bf16.msra.mxu1 %v4440_v19 }
  0xd1   : > { %1535 = vmatprep.subr.bf16.mxu0 %v4442_v20  ;;  %1576 = vmatprep.subr.bf16.mxu1 %v4446_v22 }
  0xd4   : > { %1536 = vmatpush1.bf16.msra.mxu0 %v4455_v28  ;;  %1577 = vmatpush1.bf16.msra.mxu1 %v4460_v29 }
  0xd5   : > { %1537 = vmatprep.subr.bf16.mxu0 %v4462_v30  ;;  %1578 = vmatprep.subr.bf16.mxu1 %v4465_v31 }
  0xd8   : > { %1538 = vmatpush1.bf16.msra.mxu0 %v4473_v38  ;;  %1579 = vmatpush1.bf16.msra.mxu1 %v4477_v39 }
  0xd9   : > { %1539 = vmatprep.subr.bf16.mxu0 %v4479_v43  ;;  %1580 = vmatprep.subr.bf16.mxu1 %v4482_v44 }
  0xdc   : > { %1540 = vmatpush1.bf16.msra.mxu0 %v4489_v54  ;;  %1581 = vmatpush1.bf16.msra.mxu1 %v4493_v55 }
  0xdd   : > { %1541 = vmatprep.subr.bf16.mxu0 %v4495_v56  ;;  %1582 = vmatprep.subr.bf16.mxu1 %v4498_v57 }
  0xe0   : > { %1542 = vmatpush1.bf16.msra.mxu0 %v4505_v6  ;;  %1583 = vmatpush1.bf16.msra.mxu1 %v4509_v7 }
  0xe1   : > { %1543 = vmatprep.subr.bf16.mxu0 %v4511_v8  ;;  %1584 = vmatprep.subr.bf16.mxu1 %v4514_v9  ;;  %v6396_v8 = vld [vmem:[#allocation57_spill] sm:$0xff] }
  0xe2   : > { %v6408_v9 = vld [vmem:[#allocation69_spill] sm:$0xff] }
  0xe4   : > { %1544 = vmatpush1.bf16.msra.mxu0 %v4521_v21  ;;  %1585 = vmatpush1.bf16.msra.mxu1 %v6388_v23  ;;  %v6397_v21 = vld [vmem:[#allocation58_spill] sm:$0xff]  ;;  %v6398_v23 = vld [vmem:[#allocation59_spill] sm:$0xff] }
  0xe5   : > { %1545 = vmatprep.subr.bf16.mxu0 %v6389_v47  ;;  %1586 = vmatprep.subr.bf16.mxu1 %v6390_v49  ;;  %v6399_v49 = vld [vmem:[#allocation60_spill] sm:$0xff]  ;;  %v6405_v47 = vld [vmem:[#allocation66_spill] sm:$0xff] }
  0xe8   : > { %1546 = vmatpush1.bf16.msra.mxu0 %v6391_v62  ;;  %1587 = vmatpush1.bf16.msra.mxu1 %v6392_v14  ;;  %v6400_v62 = vld [vmem:[#allocation61_spill] sm:$0xff]  ;;  %v6401_v14 = vld [vmem:[#allocation62_spill] sm:$0xff] }
  0xe9   : > { %1547 = vmatprep.subr.bf16.mxu0 %v6393_v15  ;;  %1588 = vmatprep.subr.bf16.mxu1 %v6394_v36  ;;  %v6402_v15 = vld [vmem:[#allocation63_spill] sm:$0xff]  ;;  %v6403_v36 = vld [vmem:[#allocation64_spill] sm:$0xff] }
  0xec   : > { %1548 = vmatpush1.bf16.msra.mxu0 %v6395_v63  ;;  %1589 = vmatpush1.bf16.msra.mxu1 %v6396_v8  ;;  %v6404_v63 = vld [vmem:[#allocation65_spill] sm:$0xff]  ;;  %v6406_v8 = vld [vmem:[#allocation67_spill] sm:$0xff] }
  0xed   : > { %1549 = vmatprep.subr.bf16.mxu0 %v6397_v21  ;;  %1590 = vmatprep.subr.bf16.mxu1 %v6398_v23  ;;  %v6407_v21 = vld [vmem:[#allocation68_spill] sm:$0xff]  ;;  %v6409_v23 = vld [vmem:[#allocation70_spill] sm:$0xff] }
  0xf0   : > { %1550 = vmatpush1.bf16.msra.mxu0 %v6399_v49  ;;  %1591 = vmatpush1.bf16.msra.mxu1 %v6400_v62  ;;  %v6410_v49 = vld [vmem:[#allocation71_spill] sm:$0xff] }
  0xf1   : > { %1551 = vmatprep.subr.bf16.mxu0 %v6401_v14  ;;  %1592 = vmatprep.subr.bf16.mxu1 %v6402_v15 }
  0xf4   : > { %1552 = vmatpush1.bf16.msra.mxu0 %v6403_v36  ;;  %1593 = vmatpush1.bf16.msra.mxu1 %v6404_v63 }
  0xf5   : > { %1553 = vmatprep.subr.bf16.mxu0 %v6405_v47  ;;  %1594 = vmatprep.subr.bf16.mxu1 %v6406_v8  ;;  %v616_v47 = vld [vmem:[%s4944_s12 + $0x8] sm:$0xff] }
  0xf6   : > { %v621_v8 = vunpack.c.l.bf16 %v616_v47  ;;  %v622_v63 = vunpack.c.h.bf16 %v616_v47 }
  0xf8   : > { %1554 = vmatpush1.bf16.msra.mxu0 %v6407_v21  ;;  %1595 = vmatpush1.bf16.msra.mxu1 %v6408_v9 }
  0xf9   : > { %1605 = vmatprep.subr.bf16.mxu0 %v6409_v23  ;;  %1646 = vmatprep.subr.bf16.mxu1 %v6410_v49 }
 0x14e   : > { %v1305_v21 = vpop.f32.mrb[0].mxu0  ;;  %v1346_v36 = vpop.f32.mrb[0].mxu1 }
 0x14f   : > { %v1307_v9 = vpop.f32.mrb[1].mxu0  ;;  %v1437_v15 = vadd.f32 %v1346_v36, %v621_v8  ;;  %v1348_v23 = vpop.f32.mrb[1].mxu1  ;;  %v479_v8 = vld [vmem:[%s453_s15] sm:$0xff]  ;;  %v617_v36 = vld [vmem:[%s4944_s12 + $0x10] sm:$0xff] }
 0x150   : > { %v1309_v49 = vpop.f32.mrb[2].mxu0  ;;  %v1438_v14 = vadd.f32 %v1348_v23, %v622_v63  ;;  %v1350_v62 = vpop.f32.mrb[2].mxu1  ;;  %v623_v39 = vunpack.c.l.bf16 %v617_v36  ;;  %v624_v30 = vunpack.c.h.bf16 %v617_v36 }
 0x151   : > { %v1310_v7 = vpop.f32.mrb[3].mxu0  ;;  %v3721_v6 = vmul.f32 -1.442695, %v1437_v15  ;;  %v1351_v57 = vpop.f32.mrb[3].mxu1 }
 0x152   : > { %v3722_v56 = vmul.f32 -1.442695, %v1438_v14  ;;  %v480_v7 = vld [vmem:[%s453_s15 + $0x8] sm:$0xff]  ;;  %s3766_s15 = sshll.u32 %s4163_s23, 4 }
 0x153   : > { %3877 = vpow2.f32 %v3721_v6  ;;  %v615_v6 = vld [vmem:[%s4944_s12] sm:$0xff]  ;;  %s3448_s16 = scalar_lea.vmem %s4963_s18, %s3766_s15 [#allocation5] }
 0x154   : > { %3879 = vpow2.f32 %v3722_v56  ;;  %v619_v56 = vunpack.c.l.bf16 %v615_v6  ;;  %v620_v14 = vunpack.c.h.bf16 %v615_v6 }
 0x156   : > { %v1436_v15 = vadd.f32 %v1307_v9, %v620_v14 }
 0x15d   : > { %v3878_v55 = vpop.eup %3877 }
 0x15e   : > { %v1463_v54 = vadd.f32 1.0, %v3878_v55  ;;  %v3880_v44 = vpop.eup %3879  ;;  %v1435_v55 = vadd.f32 %v1305_v21, %v619_v56 }
 0x15f   : > { %v1464_v47 = vadd.f32 1.0, %v3880_v44  ;;  %v3720_v44 = vmul.f32 -1.442695, %v1436_v15 }
 0x160   : > { %3881 = vrcp.f32 %v1463_v54  ;;  %v3719_v54 = vmul.f32 -1.442695, %v1435_v55 }
 0x161   : > { %3883 = vrcp.f32 %v1464_v47  ;;  %v618_v47 = vld [vmem:[%s4944_s12 + $0x18] sm:$0xff]  ;;  %s3442_s12 = scalar_lea.vmem %s4963_s18, %s3752_s10 [#allocation5] }
 0x162   : > { %3885 = vpow2.f32 %v3719_v54  ;;  %v625_v31 = vunpack.c.l.bf16 %v618_v47 }
 0x163   : > { %3887 = vpow2.f32 %v3720_v44 }
 0x16a   : > { %v3882_v23 = vpop.eup %3881 }
 0x16b   : > { %v1483_v57 = vmul.f32 %v3882_v23, %v479_v8  ;;  %v3884_v49 = vpop.eup %3883  ;;  %v626_v23 = vunpack.c.h.bf16 %v618_v47 }
 0x16c   : > { %v1484_v62 = vmul.f32 %v3884_v49, %v480_v7  ;;  %v3886_v63 = vpop.eup %3885 }
 0x16d   : > { %v3888_v43 = vpop.eup %3887  ;;  %v1461_v38 = vadd.f32 1.0, %v3886_v63 }
 0x16e   : > { %v1462_v8 = vadd.f32 1.0, %v3888_v43 }
 0x16f   : > { %3889 = vrcp.f32 %v1461_v38 }
 0x170   : > { %3891 = vrcp.f32 %v1462_v8 }
 0x179   : > { %v3890_v43 = vpop.eup %3889 }
 0x18e   : > { %v1387_v7 = vpop.f32.mrb[4].mxu0  ;;  %v1428_v29 = vpop.f32.mrb[4].mxu1 }
 0x18f   : > { %v1439_v49 = vadd.f32 %v1387_v7, %v623_v39  ;;  %v1389_v6 = vpop.f32.mrb[5].mxu0  ;;  %v1441_v9 = vadd.f32 %v1428_v29, %v625_v31  ;;  %v1430_v56 = vpop.f32.mrb[5].mxu1 }
 0x190   : > { %v1440_v21 = vadd.f32 %v1389_v6, %v624_v30  ;;  %v1391_v14 = vpop.f32.mrb[6].mxu0  ;;  %v1442_v15 = vadd.f32 %v1430_v56, %v626_v23  ;;  %v1432_v54 = vpop.f32.mrb[6].mxu1 }
 0x191   : > { %v3723_v55 = vmul.f32 -1.442695, %v1439_v49  ;;  %v1392_v44 = vpop.f32.mrb[7].mxu0  ;;  %3893 = vtanh.f32 %v1441_v9  ;;  %v1433_v28 = vpop.f32.mrb[7].mxu1  ;;  %v6413_v54 = vld [vmem:[#allocation74_spill] sm:$0xff] }
 0x192   : > { %v3724_v63 = vmul.f32 -1.442695, %v1440_v21  ;;  %v3892_v39 = vpop.eup %3891  ;;  %v6414_v44 = vld [vmem:[#allocation75_spill] sm:$0xff] }
 0x193   : > { %3895 = vpow2.f32 %v3723_v55  ;;  %v6411_v55 = vld [vmem:[#allocation72_spill] sm:$0xff] }
 0x194   : > { %3897 = vpow2.f32 %v3724_v63  ;;  %v6415_v63 = vld [vmem:[#allocation76_spill] sm:$0xff] }
 0x195   : > { %3899 = vtanh.f32 %v1442_v15  ;;  %v6412_v15 = vld [vmem:[#allocation73_spill] sm:$0xff] }
 0x19b   : > { %v3894_v38 = vpop.eup %3893 }
 0x19c   : > { %v1485_v30 = vmul.f32 %v3894_v38, %v3890_v43  ;;  %v6416_v43 = vld [vmem:[#allocation77_spill] sm:$0xff]  ;;  %v6418_v38 = vld [vmem:[#allocation79_spill] sm:$0xff] }
 0x19d   : > { %v3896_v29 = vpop.eup %3895 }
 0x19e   : > { %v3898_v31 = vpop.eup %3897  ;;  %v1465_v36 = vadd.f32 1.0, %v3896_v29  ;;  %v4954_v8 = vadd.f32 %v1485_v30, %v1483_v57  ;;  %v6419_v29 = vld [vmem:[#allocation80_spill] sm:$0xff]  ;;  %v6420_v30 = vld [vmem:[#allocation81_spill] sm:$0xff] }
 0x19f   : > { %v3900_v47 = vpop.eup %3899  ;;  %v1466_v23 = vadd.f32 1.0, %v3898_v31  ;;  %v6421_v31 = vld [vmem:[#allocation82_spill] sm:$0xff] }
 0x1a0   : > { %3901 = vrcp.f32 %v1465_v36  ;;  %v1486_v7 = vmul.f32 %v3900_v47, %v3892_v39  ;;  %v6417_v39 = vld [vmem:[#allocation78_spill] sm:$0xff]  ;;  %v6422_v36 = vld [vmem:[#allocation83_spill] sm:$0xff]  ;;  %v6423_v47 = vld [vmem:[#allocation84_spill] sm:$0xff] }
 0x1a1   : > { %3903 = vtanh.f32 %v4954_v8 }
 0x1a2   : > { %3905 = vrcp.f32 %v1466_v23  ;;  %v4957_v28 = vadd.f32 %v1486_v7, %v1484_v62  ;;  %v6424_v23 = vld [vmem:[#allocation85_spill] sm:$0xff]  ;;  %v6425_v7 = vld [vmem:[#allocation86_spill] sm:$0xff] }
 0x1a4   : > { %3907 = vtanh.f32 %v4957_v28 }
 0x1aa   : > { %v3902_v49 = vpop.eup %3901 }
 0x1ab   : > { %v3904_v6 = vpop.eup %3903 }
 0x1ac   : > { %v3906_v57 = vpop.eup %3905  ;;  %v1491_v9 = vmul.f32 %v3904_v6, %v3902_v49  ;;  %v6426_v49 = vld [vmem:[#allocation87_spill] sm:$0xff]  ;;  %v6427_v6 = vld [vmem:[#allocation88_spill] sm:$0xff] }
 0x1ae   : > { %v3908_v21 = vpop.eup %3907  ;;  %1500 = vst [vmem:[%s1499_s19] sm:$0xff] %v1491_v9  ;;  %v4966_v62 = vpack.c.bf16 %v1491_v9, %v1491_v9  ;;  %v6429_v9 = vld [vmem:[#allocation90_spill] sm:$0xff] }
 0x1af   : > { %v1492_v56 = vmul.f32 %v3908_v21, %v3906_v57  ;;  %v6428_v57 = vld [vmem:[#allocation89_spill] sm:$0xff]  ;;  %v6430_v21 = vld [vmem:[#allocation91_spill] sm:$0xff] }
 0x1b1   : > { %1501 = vst [vmem:[%s1499_s19 + $0x8] sm:$0xff] %v1492_v56  ;;  %v1522_v14 = vpack.c.bf16 %v1492_v56, %v1492_v56  ;;  %v6431_v56 = vld [vmem:[#allocation92_spill] sm:$0xff]  ;;  %s3834_s19 = sshll.u32 %s2257_s17, 5 }
 0x1b2   : > { %s2260_s21 = scalar_lea.vmem %s4941_s11, %s3834_s19 [#allocation4] }
 0x1b3   : > { %1555 = vmatprep.mubr.bf16.mxu0 %v1522_v14  ;;  %1596 = vmatprep.mubr.bf16.mxu1 %v1522_v14 }
 0x1b4   : > { %1556 = vmatmul.mubr.bf16.vlgmr.msra.gmra.mrb[8].mxu0 %v4966_v62  ;;  %1597 = vmatmul.mubr.bf16.vlgmr.msra.gmra.mrb[8].mxu1 %v4966_v62 }
 0x1b5   : > { %1606 = vmatpush1.bf16.msra.mxu0 %v6411_v55  ;;  %1647 = vmatpush1.bf16.msra.mxu1 %v6412_v15 }
 0x1b6   : > { %1637 = vmatprep.mubr.bf16.mxu0 %v1522_v14  ;;  %1678 = vmatprep.mubr.bf16.mxu1 %v1522_v14  ;;  %v6432_v14 = vld [vmem:[#allocation93_spill] sm:$0xff] }
 0x1b7   : > { %1607 = vmatprep.subr.bf16.mxu0 %v6413_v54  ;;  %1648 = vmatprep.subr.bf16.mxu1 %v6414_v44 }
 0x1b9   : > { %1608 = vmatpush1.bf16.msra.mxu0 %v6415_v63  ;;  %1649 = vmatpush1.bf16.msra.mxu1 %v6416_v43 }
 0x1ba   : > { %1609 = vmatprep.subr.bf16.mxu0 %v6417_v39  ;;  %1650 = vmatprep.subr.bf16.mxu1 %v6418_v38 }
 0x1bd   : > { %1610 = vmatpush1.bf16.msra.mxu0 %v6419_v29  ;;  %1651 = vmatpush1.bf16.msra.mxu1 %v6420_v30 }
 0x1be   : > { %1611 = vmatprep.subr.bf16.mxu0 %v6421_v31  ;;  %1652 = vmatprep.subr.bf16.mxu1 %v6422_v36  ;;  %v6433_v36 = vld [vmem:[#allocation94_spill] sm:$0xff] }
 0x1c1   : > { %1612 = vmatpush1.bf16.msra.mxu0 %v6423_v47  ;;  %1653 = vmatpush1.bf16.msra.mxu1 %v6424_v23  ;;  %v6434_v47 = vld [vmem:[#allocation95_spill] sm:$0xff]  ;;  %v6435_v23 = vld [vmem:[#allocation96_spill] sm:$0xff] }
 0x1c2   : > { %1613 = vmatprep.subr.bf16.mxu0 %v6425_v7  ;;  %1654 = vmatprep.subr.bf16.mxu1 %v6426_v49  ;;  %v6436_v7 = vld [vmem:[#allocation97_spill] sm:$0xff]  ;;  %v6437_v49 = vld [vmem:[#allocation98_spill] sm:$0xff] }
 0x1c5   : > { %1614 = vmatpush1.bf16.msra.mxu0 %v6427_v6  ;;  %1655 = vmatpush1.bf16.msra.mxu1 %v6428_v57  ;;  %v6438_v6 = vld [vmem:[#allocation99_spill] sm:$0xff]  ;;  %v6439_v57 = vld [vmem:[#allocation100_spill] sm:$0xff] }
 0x1c6   : > { %1615 = vmatprep.subr.bf16.mxu0 %v6429_v9  ;;  %1656 = vmatprep.subr.bf16.mxu1 %v6430_v21  ;;  %v6440_v9 = vld [vmem:[#allocation101_spill] sm:$0xff]  ;;  %v6441_v21 = vld [vmem:[#allocation102_spill] sm:$0xff] }
 0x1c9   : > { %1616 = vmatpush1.bf16.msra.mxu0 %v6431_v56  ;;  %1657 = vmatpush1.bf16.msra.mxu1 %v6432_v14  ;;  %v6442_v56 = vld [vmem:[#allocation103_spill] sm:$0xff]  ;;  %v6443_v14 = vld [vmem:[#allocation104_spill] sm:$0xff] }
 0x1ca   : > { %1617 = vmatprep.subr.bf16.mxu0 %v6433_v36  ;;  %1658 = vmatprep.subr.bf16.mxu1 %v6434_v47  ;;  %v6444_v36 = vld [vmem:[#allocation105_spill] sm:$0xff]  ;;  %v6445_v47 = vld [vmem:[#allocation106_spill] sm:$0xff] }
 0x1cd   : > { %1618 = vmatpush1.bf16.msra.mxu0 %v6435_v23  ;;  %1659 = vmatpush1.bf16.msra.mxu1 %v6436_v7  ;;  %v6446_v23 = vld [vmem:[#allocation107_spill] sm:$0xff]  ;;  %v6447_v7 = vld [vmem:[#allocation108_spill] sm:$0xff] }
 0x1ce   : > { %1619 = vmatprep.subr.bf16.mxu0 %v6437_v49  ;;  %1660 = vmatprep.subr.bf16.mxu1 %v6438_v6  ;;  %v6448_v49 = vld [vmem:[#allocation109_spill] sm:$0xff]  ;;  %v6449_v6 = vld [vmem:[#allocation110_spill] sm:$0xff] }
 0x1d1   : > { %1620 = vmatpush1.bf16.msra.mxu0 %v6439_v57  ;;  %1661 = vmatpush1.bf16.msra.mxu1 %v6440_v9  ;;  %v6450_v57 = vld [vmem:[#allocation111_spill] sm:$0xff]  ;;  %v6451_v9 = vld [vmem:[#allocation112_spill] sm:$0xff] }
 0x1d2   : > { %1621 = vmatprep.subr.bf16.mxu0 %v6441_v21  ;;  %1662 = vmatprep.subr.bf16.mxu1 %v6442_v56  ;;  %v6452_v21 = vld [vmem:[#allocation113_spill] sm:$0xff]  ;;  %v6453_v56 = vld [vmem:[#allocation114_spill] sm:$0xff] }
 0x1d5   : > { %1622 = vmatpush1.bf16.msra.mxu0 %v6443_v14  ;;  %1663 = vmatpush1.bf16.msra.mxu1 %v6444_v36  ;;  %v6454_v14 = vld [vmem:[#allocation115_spill] sm:$0xff]  ;;  %v6455_v36 = vld [vmem:[#allocation116_spill] sm:$0xff] }
 0x1d6   : > { %1623 = vmatprep.subr.bf16.mxu0 %v6445_v47  ;;  %1664 = vmatprep.subr.bf16.mxu1 %v6446_v23  ;;  %v6456_v47 = vld [vmem:[#allocation117_spill] sm:$0xff]  ;;  %v6457_v23 = vld [vmem:[#allocation118_spill] sm:$0xff] }
 0x1d9   : > { %1624 = vmatpush1.bf16.msra.mxu0 %v6447_v7  ;;  %1665 = vmatpush1.bf16.msra.mxu1 %v6448_v49  ;;  %v6458_v7 = vld [vmem:[#allocation119_spill] sm:$0xff] }
 0x1da   : > { %1625 = vmatprep.subr.bf16.mxu0 %v6449_v6  ;;  %1666 = vmatprep.subr.bf16.mxu1 %v6450_v57 }
 0x1dd   : > { %1626 = vmatpush1.bf16.msra.mxu0 %v6451_v9  ;;  %1667 = vmatpush1.bf16.msra.mxu1 %v6452_v21  ;;  %v6459_v9 = vld [vmem:[#allocation123_spill] sm:$0xff] }
 0x1de   : > { %1627 = vmatprep.subr.bf16.mxu0 %v6453_v56  ;;  %1668 = vmatprep.subr.bf16.mxu1 %v6454_v14 }
 0x1e1   : > { %1628 = vmatpush1.bf16.msra.mxu0 %v6455_v36  ;;  %1669 = vmatpush1.bf16.msra.mxu1 %v6456_v47 }
 0x1e2   : > { %1629 = vmatprep.subr.bf16.mxu0 %v6457_v23  ;;  %1670 = vmatprep.subr.bf16.mxu1 %v6458_v7 }
 0x1e5   : > { %1630 = vmatpush1.bf16.msra.mxu0 %v4816_v1  ;;  %1671 = vmatpush1.bf16.msra.mxu1 %v4820_v45 }
 0x1e6   : > { %1631 = vmatprep.subr.bf16.mxu0 %v4822_v27  ;;  %1672 = vmatprep.subr.bf16.mxu1 %v6459_v9 }
 0x1e9   : > { %1632 = vmatpush1.bf16.msra.mxu0 %v4832_v26  ;;  %1673 = vmatpush1.bf16.msra.mxu1 %v4836_v24 }
 0x1ea   : > { %1633 = vmatprep.subr.bf16.mxu0 %v4838_v32  ;;  %1674 = vmatprep.subr.bf16.mxu1 %v4841_v48 }
 0x1ed   : > { %1634 = vmatpush1.bf16.msra.mxu0 %v4848_v34  ;;  %1675 = vmatpush1.bf16.msra.mxu1 %v4852_v17 }
 0x1ee   : > { %1635 = vmatprep.subr.bf16.mxu0 %v4854_v33  ;;  %1676 = vmatprep.subr.bf16.mxu1 %v4857_v25 }
 0x1f1   : > { %1636 = vmatpush1.bf16.msra.mxu0 %v4860_v16  ;;  %1677 = vmatpush1.bf16.msra.mxu1 %v4864_v0 }
 0x1f2   : > { %1775 = vmatprep.subr.bf16.mxu0 %v4339_v35  ;;  %1816 = vmatprep.subr.bf16.mxu1 %v4346_v40 }
 0x1f4   : > { %1638 = vmatmul.mubr.bf16.vlgmr.msra.gmra.mrb[12].mxu0 %v4966_v62  ;;  %1679 = vmatmul.mubr.bf16.vlgmr.msra.gmra.mrb[12].mxu1 %v4966_v62  ;;  %v6460_v62 = vld [vmem:[#allocation32_spill] sm:$0xff] }
 0x1f5   : > { %1776 = vmatpush1.bf16.msra.mxu0 %v4342_v37  ;;  %1817 = vmatpush1.bf16.msra.mxu1 %v4348_v41 }
 0x1f6   : > { %1777 = vmatprep.subr.bf16.mxu0 %v4350_v42  ;;  %1818 = vmatprep.subr.bf16.mxu1 %v4356_v46  ;;  %v3731_v42 = vld [vmem:[%s3430_s27 + $0x38] sm:$0xff] }
 0x1f9   : > { %1778 = vmatpush1.bf16.msra.mxu0 %v4363_v50  ;;  %1819 = vmatpush1.bf16.msra.mxu1 %v4367_v51 }
 0x1fa   : > { %1779 = vmatprep.subr.bf16.mxu0 %v4369_v52  ;;  %1820 = vmatprep.subr.bf16.mxu1 %v4372_v53 }
 0x1fd   : > { %1780 = vmatpush1.bf16.msra.mxu0 %v4379_v58  ;;  %1821 = vmatpush1.bf16.msra.mxu1 %v4383_v59 }
 0x1fe   : > { %1781 = vmatprep.subr.bf16.mxu0 %v4385_v60  ;;  %1822 = vmatprep.subr.bf16.mxu1 %v4388_v61 }
 0x201   : > { %1782 = vmatpush1.bf16.msra.mxu0 %v4395_v2  ;;  %1823 = vmatpush1.bf16.msra.mxu1 %v4399_v3 }
 0x202   : > { %1783 = vmatprep.subr.bf16.mxu0 %v4401_v4  ;;  %1824 = vmatprep.subr.bf16.mxu1 %v4404_v5  ;;  %v6461_v4 = vld [vmem:[#allocation33_spill] sm:$0xff]  ;;  %v6462_v5 = vld [vmem:[#allocation34_spill] sm:$0xff] }
 0x205   : > { %1784 = vmatpush1.bf16.msra.mxu0 %v4414_v10  ;;  %1825 = vmatpush1.bf16.msra.mxu1 %v4418_v11  ;;  %v6463_v10 = vld [vmem:[#allocation35_spill] sm:$0xff]  ;;  %v6464_v11 = vld [vmem:[#allocation36_spill] sm:$0xff] }
 0x206   : > { %1785 = vmatprep.subr.bf16.mxu0 %v4420_v12  ;;  %1826 = vmatprep.subr.bf16.mxu1 %v4423_v13  ;;  %v6465_v12 = vld [vmem:[#allocation37_spill] sm:$0xff]  ;;  %v6466_v13 = vld [vmem:[#allocation38_spill] sm:$0xff] }
 0x209   : > { %1786 = vmatpush1.bf16.msra.mxu0 %v4436_v18  ;;  %1827 = vmatpush1.bf16.msra.mxu1 %v4440_v19  ;;  %v6467_v18 = vld [vmem:[#allocation39_spill] sm:$0xff]  ;;  %v6468_v19 = vld [vmem:[#allocation40_spill] sm:$0xff] }
 0x20a   : > { %1787 = vmatprep.subr.bf16.mxu0 %v4442_v20  ;;  %1828 = vmatprep.subr.bf16.mxu1 %v4446_v22  ;;  %v6469_v20 = vld [vmem:[#allocation41_spill] sm:$0xff]  ;;  %v6470_v22 = vld [vmem:[#allocation42_spill] sm:$0xff] }
 0x20d   : > { %1788 = vmatpush1.bf16.msra.mxu0 %v6460_v62  ;;  %1829 = vmatpush1.bf16.msra.mxu1 %v6461_v4  ;;  %v6471_v62 = vld [vmem:[#allocation43_spill] sm:$0xff]  ;;  %v6472_v4 = vld [vmem:[#allocation44_spill] sm:$0xff] }
 0x20e   : > { %1789 = vmatprep.subr.bf16.mxu0 %v6462_v5  ;;  %1830 = vmatprep.subr.bf16.mxu1 %v6463_v10  ;;  %v6473_v5 = vld [vmem:[#allocation45_spill] sm:$0xff]  ;;  %v6474_v10 = vld [vmem:[#allocation46_spill] sm:$0xff] }
 0x211   : > { %1790 = vmatpush1.bf16.msra.mxu0 %v6464_v11  ;;  %1831 = vmatpush1.bf16.msra.mxu1 %v6465_v12  ;;  %v6475_v11 = vld [vmem:[#allocation47_spill] sm:$0xff]  ;;  %v6476_v12 = vld [vmem:[#allocation48_spill] sm:$0xff] }
 0x212   : > { %1791 = vmatprep.subr.bf16.mxu0 %v6466_v13  ;;  %1832 = vmatprep.subr.bf16.mxu1 %v6467_v18  ;;  %v6477_v13 = vld [vmem:[#allocation49_spill] sm:$0xff]  ;;  %v6478_v18 = vld [vmem:[#allocation50_spill] sm:$0xff] }
 0x215   : > { %1792 = vmatpush1.bf16.msra.mxu0 %v6468_v19  ;;  %1833 = vmatpush1.bf16.msra.mxu1 %v6469_v20  ;;  %v6479_v19 = vld [vmem:[#allocation51_spill] sm:$0xff]  ;;  %v6480_v20 = vld [vmem:[#allocation52_spill] sm:$0xff] }
 0x216   : > { %1793 = vmatprep.subr.bf16.mxu0 %v6470_v22  ;;  %1834 = vmatprep.subr.bf16.mxu1 %v6471_v62  ;;  %v6481_v22 = vld [vmem:[#allocation53_spill] sm:$0xff]  ;;  %v6482_v62 = vld [vmem:[#allocation54_spill] sm:$0xff] }
 0x219   : > { %1794 = vmatpush1.bf16.msra.mxu0 %v6472_v4  ;;  %1835 = vmatpush1.bf16.msra.mxu1 %v6473_v5  ;;  %v6483_v4 = vld [vmem:[#allocation55_spill] sm:$0xff]  ;;  %v6484_v5 = vld [vmem:[#allocation56_spill] sm:$0xff] }
 0x21a   : > { %1795 = vmatprep.subr.bf16.mxu0 %v6474_v10  ;;  %1836 = vmatprep.subr.bf16.mxu1 %v6475_v11  ;;  %v6485_v10 = vld [vmem:[#allocation57_spill] sm:$0xff]  ;;  %v6486_v11 = vld [vmem:[#allocation58_spill] sm:$0xff] }
 0x21d   : > { %1796 = vmatpush1.bf16.msra.mxu0 %v6476_v12  ;;  %1837 = vmatpush1.bf16.msra.mxu1 %v6477_v13  ;;  %v6487_v12 = vld [vmem:[#allocation59_spill] sm:$0xff]  ;;  %v6488_v13 = vld [vmem:[#allocation60_spill] sm:$0xff] }
 0x21e   : > { %1797 = vmatprep.subr.bf16.mxu0 %v6478_v18  ;;  %1838 = vmatprep.subr.bf16.mxu1 %v6479_v19  ;;  %v6489_v18 = vld [vmem:[#allocation61_spill] sm:$0xff]  ;;  %v6490_v19 = vld [vmem:[#allocation62_spill] sm:$0xff] }
 0x221   : > { %1798 = vmatpush1.bf16.msra.mxu0 %v6480_v20  ;;  %1839 = vmatpush1.bf16.msra.mxu1 %v6481_v22  ;;  %v6491_v20 = vld [vmem:[#allocation63_spill] sm:$0xff]  ;;  %v6492_v22 = vld [vmem:[#allocation64_spill] sm:$0xff] }
 0x222   : > { %1799 = vmatprep.subr.bf16.mxu0 %v6482_v62  ;;  %1840 = vmatprep.subr.bf16.mxu1 %v6483_v4  ;;  %v6493_v62 = vld [vmem:[#allocation65_spill] sm:$0xff] }
 0x225   : > { %1800 = vmatpush1.bf16.msra.mxu0 %v6484_v5  ;;  %1841 = vmatpush1.bf16.msra.mxu1 %v6485_v10  ;;  %v6494_v5 = vld [vmem:[#allocation66_spill] sm:$0xff]  ;;  %v6495_v10 = vld [vmem:[#allocation67_spill] sm:$0xff] }
 0x226   : > { %1801 = vmatprep.subr.bf16.mxu0 %v6486_v11  ;;  %1842 = vmatprep.subr.bf16.mxu1 %v6487_v12  ;;  %v6496_v11 = vld [vmem:[#allocation68_spill] sm:$0xff]  ;;  %v6497_v12 = vld [vmem:[#allocation69_spill] sm:$0xff] }
 0x229   : > { %1802 = vmatpush1.bf16.msra.mxu0 %v6488_v13  ;;  %1843 = vmatpush1.bf16.msra.mxu1 %v6489_v18  ;;  %v6498_v13 = vld [vmem:[#allocation70_spill] sm:$0xff]  ;;  %v6499_v18 = vld [vmem:[#allocation71_spill] sm:$0xff] }
 0x22a   : > { %1803 = vmatprep.subr.bf16.mxu0 %v6490_v19  ;;  %1844 = vmatprep.subr.bf16.mxu1 %v6491_v20 }
 0x22d   : > { %1804 = vmatpush1.bf16.msra.mxu0 %v6492_v22  ;;  %1845 = vmatpush1.bf16.msra.mxu1 %v6493_v62 }
 0x22e   : > { %1805 = vmatprep.subr.bf16.mxu0 %v6494_v5  ;;  %1846 = vmatprep.subr.bf16.mxu1 %v6495_v10  ;;  %v3728_v5 = vld [vmem:[%s3430_s27 + $0x20] sm:$0xff]  ;;  %v3729_v10 = vld [vmem:[%s3430_s27 + $0x28] sm:$0xff] }
 0x22f   : > { %v1511_v60 = vunpack.c.l.bf16 %v3728_v5  ;;  %v1512_v59 = vunpack.c.h.bf16 %v3728_v5 }
 0x231   : > { %1806 = vmatpush1.bf16.msra.mxu0 %v6496_v11  ;;  %1847 = vmatpush1.bf16.msra.mxu1 %v6497_v12  ;;  %v1513_v11 = vunpack.c.l.bf16 %v3729_v10  ;;  %v1514_v12 = vunpack.c.h.bf16 %v3729_v10 }
 0x232   : > { %1857 = vmatprep.subr.bf16.mxu0 %v6498_v13  ;;  %1898 = vmatprep.subr.bf16.mxu1 %v6499_v18 }
 0x287   : > { %v1557_v19 = vpop.f32.mrb[8].mxu0  ;;  %v1598_v20 = vpop.f32.mrb[8].mxu1 }
 0x288   : > { %v1559_v4 = vpop.f32.mrb[9].mxu0  ;;  %v1600_v22 = vpop.f32.mrb[9].mxu1  ;;  %v1687_v58 = vadd.f32 %v1557_v19, %v1511_v60  ;;  %v1689_v13 = vadd.f32 %v1598_v20, %v1513_v11 }
 0x289   : > { %v1561_v3 = vpop.f32.mrb[10].mxu0  ;;  %v1602_v2 = vpop.f32.mrb[10].mxu1  ;;  %v1688_v53 = vadd.f32 %v1559_v4, %v1512_v59  ;;  %v1690_v18 = vadd.f32 %v1600_v22, %v1514_v12  ;;  %v1517_v59 = vunpack.c.l.bf16 %v3731_v42  ;;  %v1518_v12 = vunpack.c.h.bf16 %v3731_v42 }
 0x28a   : > { %v1562_v62 = vpop.f32.mrb[11].mxu0  ;;  %v1603_v61 = vpop.f32.mrb[11].mxu1  ;;  %v3732_v52 = vmul.f32 -1.442695, %v1687_v58  ;;  %v3734_v51 = vmul.f32 -1.442695, %v1689_v13 }
 0x28b   : > { %v3733_v50 = vmul.f32 -1.442695, %v1688_v53  ;;  %v3735_v46 = vmul.f32 -1.442695, %v1690_v18  ;;  %v3730_v62 = vld [vmem:[%s3430_s27 + $0x30] sm:$0xff]  ;;  %s3835_s27 = sshll.u32 %s2257_s17, 4 }
 0x28c   : > { %3909 = vpow2.f32 %v3732_v52  ;;  %v1515_v11 = vunpack.c.l.bf16 %v3730_v62  ;;  %v1516_v58 = vunpack.c.h.bf16 %v3730_v62  ;;  %s2505_s28 = scalar_lea.vmem %s4963_s18, %s3835_s27 [#allocation5]  ;;  %s3807_s17 = smul.u32 4294967072, %s4163_s23 }
 0x28d   : > { %3911 = vpow2.f32 %v3734_v51  ;;  %s470_s27 = scalar_lea.vmem %s5991_s6, %s4411_s20 }
 0x28e   : > { %3913 = vpow2.f32 %v3733_v50  ;;  %s3472_s19 = scalar_lea.vmem %s4941_s11, %s3807_s17 [#allocation4] }
 0x28f   : > { %3915 = vpow2.f32 %v3735_v46 }
 0x296   : > { %v3910_v61 = vpop.eup %3909 }
 0x297   : > { %v3912_v2 = vpop.eup %3911  ;;  %v1713_v5 = vadd.f32 1.0, %v3910_v61 }
 0x298   : > { %v3914_v3 = vpop.eup %3913  ;;  %v1715_v10 = vadd.f32 1.0, %v3912_v2 }
 0x299   : > { %v3916_v41 = vpop.eup %3915  ;;  %v1714_v60 = vadd.f32 1.0, %v3914_v3  ;;  %3917 = vrcp.f32 %v1713_v5 }
 0x29a   : > { %v1716_v4 = vadd.f32 1.0, %v3916_v41  ;;  %3919 = vrcp.f32 %v1715_v10 }
 0x29b   : > { %3921 = vrcp.f32 %v1714_v60 }
 0x29c   : > { %3923 = vrcp.f32 %v1716_v4 }
 0x2a3   : > { %v3918_v42 = vpop.eup %3917 }
 0x2a4   : > { %v3920_v62 = vpop.eup %3919 }
 0x2a5   : > { %v3922_v5 = vpop.eup %3921 }
 0x2a6   : > { %v3924_v10 = vpop.eup %3923 }
 0x2c7   : > { %v1639_v52 = vpop.f32.mrb[12].mxu0  ;;  %v1680_v51 = vpop.f32.mrb[12].mxu1 }
 0x2c8   : > { %v1691_v46 = vadd.f32 %v1639_v52, %v1515_v11  ;;  %v1693_v50 = vadd.f32 %v1680_v51, %v1517_v59  ;;  %v1641_v53 = vpop.f32.mrb[13].mxu0  ;;  %v1682_v13 = vpop.f32.mrb[13].mxu1  ;;  %v1735_v59 = vmul.f32 %v3920_v62, %v4954_v8  ;;  %v6503_v62 = vld [vmem:[#allocation86_spill] sm:$0xff] }
 0x2c9   : > { %v1692_v18 = vadd.f32 %v1641_v53, %v1516_v58  ;;  %v1694_v19 = vadd.f32 %v1682_v13, %v1518_v12  ;;  %v1643_v20 = vpop.f32.mrb[14].mxu0  ;;  %v1684_v22 = vpop.f32.mrb[14].mxu1  ;;  %v1736_v12 = vmul.f32 %v3924_v10, %v4957_v28  ;;  %v6505_v10 = vld [vmem:[#allocation88_spill] sm:$0xff] }
 0x2ca   : > { %v3736_v61 = vmul.f32 -1.442695, %v1691_v46  ;;  %3925 = vtanh.f32 %v1693_v50  ;;  %v1644_v2 = vpop.f32.mrb[15].mxu0  ;;  %v1685_v41 = vpop.f32.mrb[15].mxu1 }
 0x2cb   : > { %v3737_v3 = vmul.f32 -1.442695, %v1692_v18  ;;  %3927 = vtanh.f32 %v1694_v19  ;;  %v6500_v41 = vld [vmem:[#allocation83_spill] sm:$0xff] }
 0x2cc   : > { %3929 = vpow2.f32 %v3736_v61 }
 0x2cd   : > { %3931 = vpow2.f32 %v3737_v3  ;;  %v6501_v3 = vld [vmem:[#allocation84_spill] sm:$0xff] }
 0x2d4   : > { %v3926_v60 = vpop.eup %3925 }
 0x2d5   : > { %v3928_v11 = vpop.eup %3927  ;;  %v1737_v4 = vmul.f32 %v3926_v60, %v3918_v42  ;;  %v6502_v42 = vld [vmem:[#allocation85_spill] sm:$0xff] }
 0x2d6   : > { %v3930_v58 = vpop.eup %3929  ;;  %v1738_v52 = vmul.f32 %v3928_v11, %v3922_v5  ;;  %v6504_v5 = vld [vmem:[#allocation87_spill] sm:$0xff]  ;;  %v6506_v60 = vld [vmem:[#allocation89_spill] sm:$0xff]  ;;  %v6507_v11 = vld [vmem:[#allocation90_spill] sm:$0xff] }
 0x2d7   : > { %v3932_v51 = vpop.eup %3931  ;;  %v1717_v46 = vadd.f32 1.0, %v3930_v58  ;;  %v5104_v50 = vadd.f32 %v1737_v4, %v1735_v59  ;;  %v6508_v59 = vld [vmem:[#allocation91_spill] sm:$0xff]  ;;  %v6509_v4 = vld [vmem:[#allocation92_spill] sm:$0xff]  ;;  %v6510_v58 = vld [vmem:[#allocation93_spill] sm:$0xff] }
 0x2d8   : > { %v1718_v53 = vadd.f32 1.0, %v3932_v51  ;;  %v5106_v13 = vadd.f32 %v1738_v52, %v1736_v12  ;;  %v6511_v12 = vld [vmem:[#allocation94_spill] sm:$0xff]  ;;  %v6512_v52 = vld [vmem:[#allocation95_spill] sm:$0xff]  ;;  %v6513_v51 = vld [vmem:[#allocation96_spill] sm:$0xff] }
 0x2d9   : > { %3933 = vrcp.f32 %v1717_v46  ;;  %v6514_v46 = vld [vmem:[#allocation97_spill] sm:$0xff] }
 0x2da   : > { %3935 = vtanh.f32 %v5104_v50 }
 0x2db   : > { %3937 = vrcp.f32 %v1718_v53  ;;  %v6515_v53 = vld [vmem:[#allocation98_spill] sm:$0xff] }
 0x2dc   : > { %3939 = vtanh.f32 %v5106_v13 }
 0x2e3   : > { %v3934_v8 = vpop.eup %3933 }
 0x2e4   : > { %v3936_v18 = vpop.eup %3935 }
 0x2e5   : > { %v3938_v19 = vpop.eup %3937  ;;  %v1743_v28 = vmul.f32 %v3936_v18, %v3934_v8  ;;  %v6516_v8 = vld [vmem:[#allocation99_spill] sm:$0xff]  ;;  %v6517_v18 = vld [vmem:[#allocation100_spill] sm:$0xff] }
 0x2e6   : > { %v3940_v20 = vpop.eup %3939 }
 0x2e7   : > { %v1744_v22 = vmul.f32 %v3940_v20, %v3938_v19  ;;  %3739 = vst [vmem:[%s3434_s29 + $0x10] sm:$0xff] %v1743_v28  ;;  %v5112_v2 = vpack.c.bf16 %v1743_v28, %v1743_v28  ;;  %v6518_v19 = vld [vmem:[#allocation101_spill] sm:$0xff]  ;;  %v6519_v28 = vld [vmem:[#allocation102_spill] sm:$0xff]  ;;  %v6520_v20 = vld [vmem:[#allocation103_spill] sm:$0xff] }
 0x2e9   : > { %3740 = vst [vmem:[%s3434_s29 + $0x18] sm:$0xff] %v1744_v22  ;;  %v1774_v61 = vpack.c.bf16 %v1744_v22, %v1744_v22  ;;  %v6521_v22 = vld [vmem:[#allocation104_spill] sm:$0xff]  ;;  %s3779_s29 = smul.u32 4294967200, %s4163_s23 }
 0x2eb   : > { %1807 = vmatprep.mubr.bf16.mxu0 %v1774_v61  ;;  %1848 = vmatprep.mubr.bf16.mxu1 %v1774_v61  ;;  %s3456_s8 = scalar_lea.vmem %s4941_s11, %s3779_s29 [#allocation4] }
 0x2ec   : > { %1808 = vmatmul.mubr.bf16.vlgmr.msra.gmra.mrb[16].mxu0 %v5112_v2  ;;  %1849 = vmatmul.mubr.bf16.vlgmr.msra.gmra.mrb[16].mxu1 %v5112_v2 }
 0x2ed   : > { %1858 = vmatpush1.bf16.msra.mxu0 %v6411_v55  ;;  %1899 = vmatpush1.bf16.msra.mxu1 %v6412_v15 }
 0x2ee   : > { %1889 = vmatprep.mubr.bf16.mxu0 %v1774_v61  ;;  %1930 = vmatprep.mubr.bf16.mxu1 %v1774_v61  ;;  %v6522_v61 = vld [vmem:[#allocation105_spill] sm:$0xff] }
 0x2ef   : > { %1859 = vmatprep.subr.bf16.mxu0 %v6413_v54  ;;  %1900 = vmatprep.subr.bf16.mxu1 %v6414_v44 }
 0x2f1   : > { %1860 = vmatpush1.bf16.msra.mxu0 %v6415_v63  ;;  %1901 = vmatpush1.bf16.msra.mxu1 %v6416_v43 }
 0x2f2   : > { %1861 = vmatprep.subr.bf16.mxu0 %v6417_v39  ;;  %1902 = vmatprep.subr.bf16.mxu1 %v6418_v38 }
 0x2f5   : > { %1862 = vmatpush1.bf16.msra.mxu0 %v6419_v29  ;;  %1903 = vmatpush1.bf16.msra.mxu1 %v6420_v30 }
 0x2f6   : > { %1863 = vmatprep.subr.bf16.mxu0 %v6421_v31  ;;  %1904 = vmatprep.subr.bf16.mxu1 %v6500_v41 }
 0x2f9   : > { %1864 = vmatpush1.bf16.msra.mxu0 %v6501_v3  ;;  %1905 = vmatpush1.bf16.msra.mxu1 %v6502_v42 }
 0x2fa   : > { %1865 = vmatprep.subr.bf16.mxu0 %v6503_v62  ;;  %1906 = vmatprep.subr.bf16.mxu1 %v6504_v5 }
 0x2fd   : > { %1866 = vmatpush1.bf16.msra.mxu0 %v6505_v10  ;;  %1907 = vmatpush1.bf16.msra.mxu1 %v6506_v60 }
 0x2fe   : > { %1867 = vmatprep.subr.bf16.mxu0 %v6507_v11  ;;  %1908 = vmatprep.subr.bf16.mxu1 %v6508_v59 }
 0x301   : > { %1868 = vmatpush1.bf16.msra.mxu0 %v6509_v4  ;;  %1909 = vmatpush1.bf16.msra.mxu1 %v6510_v58 }
 0x302   : > { %1869 = vmatprep.subr.bf16.mxu0 %v6511_v12  ;;  %1910 = vmatprep.subr.bf16.mxu1 %v6512_v52  ;;  %v6523_v52 = vld [vmem:[#allocation106_spill] sm:$0xff] }
 0x305   : > { %1870 = vmatpush1.bf16.msra.mxu0 %v6513_v51  ;;  %1911 = vmatpush1.bf16.msra.mxu1 %v6514_v46  ;;  %v6524_v51 = vld [vmem:[#allocation107_spill] sm:$0xff]  ;;  %v6525_v46 = vld [vmem:[#allocation108_spill] sm:$0xff] }
 0x306   : > { %1871 = vmatprep.subr.bf16.mxu0 %v6515_v53  ;;  %1912 = vmatprep.subr.bf16.mxu1 %v6516_v8 }
 0x309   : > { %1872 = vmatpush1.bf16.msra.mxu0 %v6517_v18  ;;  %1913 = vmatpush1.bf16.msra.mxu1 %v6518_v19  ;;  %v6526_v19 = vld [vmem:[#allocation112_spill] sm:$0xff] }
 0x30a   : > { %1873 = vmatprep.subr.bf16.mxu0 %v6519_v28  ;;  %1914 = vmatprep.subr.bf16.mxu1 %v6520_v20 }
 0x30d   : > { %1874 = vmatpush1.bf16.msra.mxu0 %v6521_v22  ;;  %1915 = vmatpush1.bf16.msra.mxu1 %v6522_v61 }
 0x30e   : > { %1875 = vmatprep.subr.bf16.mxu0 %v6523_v52  ;;  %1916 = vmatprep.subr.bf16.mxu1 %v6524_v51 }
 0x311   : > { %1876 = vmatpush1.bf16.msra.mxu0 %v6525_v46  ;;  %1917 = vmatpush1.bf16.msra.mxu1 %v6448_v49 }
 0x312   : > { %1877 = vmatprep.subr.bf16.mxu0 %v6449_v6  ;;  %1918 = vmatprep.subr.bf16.mxu1 %v6450_v57 }
 0x315   : > { %1878 = vmatpush1.bf16.msra.mxu0 %v6526_v19  ;;  %1919 = vmatpush1.bf16.msra.mxu1 %v6452_v21 }
 0x316   : > { %1879 = vmatprep.subr.bf16.mxu0 %v6453_v56  ;;  %1920 = vmatprep.subr.bf16.mxu1 %v6454_v14  ;;  %v3745_v14 = vld [vmem:[%s3438_s9 + $0x58] sm:$0xff] }
 0x319   : > { %1880 = vmatpush1.bf16.msra.mxu0 %v6455_v36  ;;  %1921 = vmatpush1.bf16.msra.mxu1 %v6456_v47 }
 0x31a   : > { %1881 = vmatprep.subr.bf16.mxu0 %v6457_v23  ;;  %1922 = vmatprep.subr.bf16.mxu1 %v6458_v7 }
 0x31d   : > { %1882 = vmatpush1.bf16.msra.mxu0 %v4816_v1  ;;  %1923 = vmatpush1.bf16.msra.mxu1 %v4820_v45 }
 0x31e   : > { %1883 = vmatprep.subr.bf16.mxu0 %v4822_v27  ;;  %1924 = vmatprep.subr.bf16.mxu1 %v6459_v9 }
 0x321   : > { %1884 = vmatpush1.bf16.msra.mxu0 %v4832_v26  ;;  %1925 = vmatpush1.bf16.msra.mxu1 %v4836_v24 }
 0x322   : > { %1885 = vmatprep.subr.bf16.mxu0 %v4838_v32  ;;  %1926 = vmatprep.subr.bf16.mxu1 %v4841_v48  ;;  %v6535_v48 = vld [vmem:[#allocation17_spill] sm:$0xff] }
 0x325   : > { %1886 = vmatpush1.bf16.msra.mxu0 %v4848_v34  ;;  %1927 = vmatpush1.bf16.msra.mxu1 %v4852_v17  ;;  %v6527_v34 = vld [vmem:[#allocation9_spill] sm:$0xff]  ;;  %v6528_v17 = vld [vmem:[#allocation10_spill] sm:$0xff] }
 0x326   : > { %1887 = vmatprep.subr.bf16.mxu0 %v4854_v33  ;;  %1928 = vmatprep.subr.bf16.mxu1 %v4857_v25  ;;  %v6529_v33 = vld [vmem:[#allocation11_spill] sm:$0xff]  ;;  %v6530_v25 = vld [vmem:[#allocation12_spill] sm:$0xff] }
 0x329   : > { %1888 = vmatpush1.bf16.msra.mxu0 %v4860_v16  ;;  %1929 = vmatpush1.bf16.msra.mxu1 %v4864_v0  ;;  %v6531_v16 = vld [vmem:[#allocation13_spill] sm:$0xff]  ;;  %v6532_v0 = vld [vmem:[#allocation14_spill] sm:$0xff] }
 0x32a   : > { %2026 = vmatprep.subr.bf16.mxu0 %v4339_v35  ;;  %2067 = vmatprep.subr.bf16.mxu1 %v4346_v40  ;;  %v6533_v35 = vld [vmem:[#allocation15_spill] sm:$0xff]  ;;  %v6534_v40 = vld [vmem:[#allocation16_spill] sm:$0xff] }
 0x32c   : > { %1890 = vmatmul.mubr.bf16.vlgmr.msra.gmra.mrb[20].mxu0 %v5112_v2  ;;  %1931 = vmatmul.mubr.bf16.vlgmr.msra.gmra.mrb[20].mxu1 %v5112_v2  ;;  %v6536_v2 = vld [vmem:[#allocation18_spill] sm:$0xff] }
 0x32d   : > { %2027 = vmatpush1.bf16.msra.mxu0 %v4342_v37  ;;  %2068 = vmatpush1.bf16.msra.mxu1 %v6527_v34  ;;  %v6537_v37 = vld [vmem:[#allocation19_spill] sm:$0xff]  ;;  %v6538_v34 = vld [vmem:[#allocation20_spill] sm:$0xff] }
 0x32e   : > { %2028 = vmatprep.subr.bf16.mxu0 %v6528_v17  ;;  %2069 = vmatprep.subr.bf16.mxu1 %v6529_v33  ;;  %v6539_v17 = vld [vmem:[#allocation21_spill] sm:$0xff]  ;;  %v6540_v33 = vld [vmem:[#allocation22_spill] sm:$0xff] }
 0x331   : > { %2029 = vmatpush1.bf16.msra.mxu0 %v6530_v25  ;;  %2070 = vmatpush1.bf16.msra.mxu1 %v6531_v16  ;;  %v6541_v25 = vld [vmem:[#allocation23_spill] sm:$0xff]  ;;  %v6542_v16 = vld [vmem:[#allocation24_spill] sm:$0xff] }
 0x332   : > { %2030 = vmatprep.subr.bf16.mxu0 %v6532_v0  ;;  %2071 = vmatprep.subr.bf16.mxu1 %v6533_v35  ;;  %v6543_v0 = vld [vmem:[#allocation25_spill] sm:$0xff]  ;;  %v6544_v35 = vld [vmem:[#allocation26_spill] sm:$0xff] }
 0x335   : > { %2031 = vmatpush1.bf16.msra.mxu0 %v6534_v40  ;;  %2072 = vmatpush1.bf16.msra.mxu1 %v6535_v48  ;;  %v6545_v40 = vld [vmem:[#allocation27_spill] sm:$0xff]  ;;  %v6546_v48 = vld [vmem:[#allocation28_spill] sm:$0xff] }
 0x336   : > { %2032 = vmatprep.subr.bf16.mxu0 %v6536_v2  ;;  %2073 = vmatprep.subr.bf16.mxu1 %v6537_v37  ;;  %v6547_v2 = vld [vmem:[#allocation29_spill] sm:$0xff]  ;;  %v6548_v37 = vld [vmem:[#allocation30_spill] sm:$0xff] }
 0x339   : > { %2033 = vmatpush1.bf16.msra.mxu0 %v6538_v34  ;;  %2074 = vmatpush1.bf16.msra.mxu1 %v6539_v17  ;;  %v6549_v34 = vld [vmem:[#allocation31_spill] sm:$0xff]  ;;  %v6550_v17 = vld [vmem:[#allocation32_spill] sm:$0xff] }
 0x33a   : > { %2034 = vmatprep.subr.bf16.mxu0 %v6540_v33  ;;  %2075 = vmatprep.subr.bf16.mxu1 %v6541_v25  ;;  %v6551_v33 = vld [vmem:[#allocation33_spill] sm:$0xff]  ;;  %v6552_v25 = vld [vmem:[#allocation34_spill] sm:$0xff] }
 0x33d   : > { %2035 = vmatpush1.bf16.msra.mxu0 %v6542_v16  ;;  %2076 = vmatpush1.bf16.msra.mxu1 %v6543_v0  ;;  %v6553_v16 = vld [vmem:[#allocation35_spill] sm:$0xff]  ;;  %v6554_v0 = vld [vmem:[#allocation36_spill] sm:$0xff] }
 0x33e   : > { %2036 = vmatprep.subr.bf16.mxu0 %v6544_v35  ;;  %2077 = vmatprep.subr.bf16.mxu1 %v6545_v40  ;;  %v6555_v35 = vld [vmem:[#allocation37_spill] sm:$0xff]  ;;  %v6556_v40 = vld [vmem:[#allocation38_spill] sm:$0xff] }
 0x341   : > { %2037 = vmatpush1.bf16.msra.mxu0 %v6546_v48  ;;  %2078 = vmatpush1.bf16.msra.mxu1 %v6547_v2  ;;  %v6557_v48 = vld [vmem:[#allocation39_spill] sm:$0xff]  ;;  %v6558_v2 = vld [vmem:[#allocation40_spill] sm:$0xff] }
 0x342   : > { %2038 = vmatprep.subr.bf16.mxu0 %v6548_v37  ;;  %2079 = vmatprep.subr.bf16.mxu1 %v6549_v34  ;;  %v6559_v37 = vld [vmem:[#allocation41_spill] sm:$0xff]  ;;  %v6560_v34 = vld [vmem:[#allocation42_spill] sm:$0xff] }
 0x345   : > { %2039 = vmatpush1.bf16.msra.mxu0 %v6550_v17  ;;  %2080 = vmatpush1.bf16.msra.mxu1 %v6551_v33  ;;  %v6561_v17 = vld [vmem:[#allocation43_spill] sm:$0xff]  ;;  %v6562_v33 = vld [vmem:[#allocation44_spill] sm:$0xff] }
 0x346   : > { %2040 = vmatprep.subr.bf16.mxu0 %v6552_v25  ;;  %2081 = vmatprep.subr.bf16.mxu1 %v6553_v16  ;;  %v6563_v25 = vld [vmem:[#allocation45_spill] sm:$0xff]  ;;  %v6564_v16 = vld [vmem:[#allocation46_spill] sm:$0xff] }
 0x349   : > { %2041 = vmatpush1.bf16.msra.mxu0 %v6554_v0  ;;  %2082 = vmatpush1.bf16.msra.mxu1 %v6555_v35  ;;  %v6565_v0 = vld [vmem:[#allocation47_spill] sm:$0xff]  ;;  %v6566_v35 = vld [vmem:[#allocation48_spill] sm:$0xff] }
 0x34a   : > { %2042 = vmatprep.subr.bf16.mxu0 %v6556_v40  ;;  %2083 = vmatprep.subr.bf16.mxu1 %v6557_v48  ;;  %v6567_v40 = vld [vmem:[#allocation49_spill] sm:$0xff]  ;;  %v6568_v48 = vld [vmem:[#allocation50_spill] sm:$0xff] }
 0x34d   : > { %2043 = vmatpush1.bf16.msra.mxu0 %v6558_v2  ;;  %2084 = vmatpush1.bf16.msra.mxu1 %v6559_v37  ;;  %v6569_v2 = vld [vmem:[#allocation51_spill] sm:$0xff]  ;;  %v6570_v37 = vld [vmem:[#allocation52_spill] sm:$0xff] }
 0x34e   : > { %2044 = vmatprep.subr.bf16.mxu0 %v6560_v34  ;;  %2085 = vmatprep.subr.bf16.mxu1 %v6561_v17  ;;  %v6571_v34 = vld [vmem:[#allocation53_spill] sm:$0xff]  ;;  %v6572_v17 = vld [vmem:[#allocation54_spill] sm:$0xff] }
 0x351   : > { %2045 = vmatpush1.bf16.msra.mxu0 %v6562_v33  ;;  %2086 = vmatpush1.bf16.msra.mxu1 %v6563_v25  ;;  %v6573_v33 = vld [vmem:[#allocation55_spill] sm:$0xff]  ;;  %v6574_v25 = vld [vmem:[#allocation56_spill] sm:$0xff] }
 0x352   : > { %2046 = vmatprep.subr.bf16.mxu0 %v6564_v16  ;;  %2087 = vmatprep.subr.bf16.mxu1 %v6565_v0  ;;  %v6575_v16 = vld [vmem:[#allocation57_spill] sm:$0xff]  ;;  %v6576_v0 = vld [vmem:[#allocation58_spill] sm:$0xff] }
 0x355   : > { %2047 = vmatpush1.bf16.msra.mxu0 %v6566_v35  ;;  %2088 = vmatpush1.bf16.msra.mxu1 %v6567_v40  ;;  %v6577_v35 = vld [vmem:[#allocation59_spill] sm:$0xff]  ;;  %v6578_v40 = vld [vmem:[#allocation60_spill] sm:$0xff] }
 0x356   : > { %2048 = vmatprep.subr.bf16.mxu0 %v6568_v48  ;;  %2089 = vmatprep.subr.bf16.mxu1 %v6569_v2  ;;  %v6579_v48 = vld [vmem:[#allocation61_spill] sm:$0xff]  ;;  %v6580_v2 = vld [vmem:[#allocation62_spill] sm:$0xff] }
 0x359   : > { %2049 = vmatpush1.bf16.msra.mxu0 %v6570_v37  ;;  %2090 = vmatpush1.bf16.msra.mxu1 %v6571_v34  ;;  %v6581_v37 = vld [vmem:[#allocation63_spill] sm:$0xff]  ;;  %v6582_v34 = vld [vmem:[#allocation64_spill] sm:$0xff] }
 0x35a   : > { %2050 = vmatprep.subr.bf16.mxu0 %v6572_v17  ;;  %2091 = vmatprep.subr.bf16.mxu1 %v6573_v33  ;;  %v6583_v17 = vld [vmem:[#allocation65_spill] sm:$0xff] }
 0x35d   : > { %2051 = vmatpush1.bf16.msra.mxu0 %v6574_v25  ;;  %2092 = vmatpush1.bf16.msra.mxu1 %v6575_v16  ;;  %v6584_v25 = vld [vmem:[#allocation66_spill] sm:$0xff]  ;;  %v6585_v16 = vld [vmem:[#allocation67_spill] sm:$0xff] }
 0x35e   : > { %2052 = vmatprep.subr.bf16.mxu0 %v6576_v0  ;;  %2093 = vmatprep.subr.bf16.mxu1 %v6577_v35  ;;  %v6586_v0 = vld [vmem:[#allocation68_spill] sm:$0xff]  ;;  %v6587_v35 = vld [vmem:[#allocation69_spill] sm:$0xff] }
 0x361   : > { %2053 = vmatpush1.bf16.msra.mxu0 %v6578_v40  ;;  %2094 = vmatpush1.bf16.msra.mxu1 %v6579_v48  ;;  %v6588_v40 = vld [vmem:[#allocation70_spill] sm:$0xff]  ;;  %v6589_v48 = vld [vmem:[#allocation71_spill] sm:$0xff] }
 0x362   : > { %2054 = vmatprep.subr.bf16.mxu0 %v6580_v2  ;;  %2095 = vmatprep.subr.bf16.mxu1 %v6581_v37 }
 0x365   : > { %2055 = vmatpush1.bf16.msra.mxu0 %v6582_v34  ;;  %2096 = vmatpush1.bf16.msra.mxu1 %v6583_v17 }
 0x366   : > { %2056 = vmatprep.subr.bf16.mxu0 %v6584_v25  ;;  %2097 = vmatprep.subr.bf16.mxu1 %v6585_v16  ;;  %v3742_v25 = vld [vmem:[%s3438_s9 + $0x40] sm:$0xff]  ;;  %v3743_v16 = vld [vmem:[%s3438_s9 + $0x48] sm:$0xff] }
 0x367   : > { %v1763_v9 = vunpack.c.l.bf16 %v3742_v25  ;;  %v1764_v27 = vunpack.c.h.bf16 %v3742_v25 }
 0x369   : > { %2057 = vmatpush1.bf16.msra.mxu0 %v6586_v0  ;;  %2098 = vmatpush1.bf16.msra.mxu1 %v6587_v35  ;;  %v1765_v0 = vunpack.c.l.bf16 %v3743_v16  ;;  %v1766_v35 = vunpack.c.h.bf16 %v3743_v16 }
 0x36a   : > { %2108 = vmatprep.subr.bf16.mxu0 %v6588_v40  ;;  %2149 = vmatprep.subr.bf16.mxu1 %v6589_v48 }
 0x3bf   : > { %v1809_v2 = vpop.f32.mrb[16].mxu0  ;;  %v1850_v37 = vpop.f32.mrb[16].mxu1 }
 0x3c0   : > { %v1811_v33 = vpop.f32.mrb[17].mxu0  ;;  %v1852_v34 = vpop.f32.mrb[17].mxu1  ;;  %v1939_v45 = vadd.f32 %v1809_v2, %v1763_v9  ;;  %v1941_v40 = vadd.f32 %v1850_v37, %v1765_v0 }
 0x3c1   : > { %v1813_v32 = vpop.f32.mrb[18].mxu0  ;;  %v1854_v24 = vpop.f32.mrb[18].mxu1  ;;  %v1940_v1 = vadd.f32 %v1811_v33, %v1764_v27  ;;  %v1942_v48 = vadd.f32 %v1852_v34, %v1766_v35  ;;  %v1769_v27 = vunpack.c.l.bf16 %v3745_v14 }
 0x3c2   : > { %v1814_v17 = vpop.f32.mrb[19].mxu0  ;;  %v1855_v26 = vpop.f32.mrb[19].mxu1  ;;  %v3746_v7 = vmul.f32 -1.442695, %v1939_v45  ;;  %v3748_v23 = vmul.f32 -1.442695, %v1941_v40  ;;  %v1770_v40 = vunpack.c.h.bf16 %v3745_v14 }
 0x3c3   : > { %v3747_v47 = vmul.f32 -1.442695, %v1940_v1  ;;  %v3749_v36 = vmul.f32 -1.442695, %v1942_v48  ;;  %v3744_v17 = vld [vmem:[%s3438_s9 + $0x50] sm:$0xff]  ;;  %s3790_s9 = smul.u32 4294967248, %s4163_s23 }
 0x3c4   : > { %3941 = vpow2.f32 %v3746_v7  ;;  %v1767_v37 = vunpack.c.l.bf16 %v3744_v17  ;;  %v1768_v45 = vunpack.c.h.bf16 %v3744_v17 }
 0x3c5   : > { %3943 = vpow2.f32 %v3748_v23  ;;  %s3460_s10 = scalar_lea.vmem %s4963_s18, %s3790_s9 [#allocation5]  ;;  %s465_s9 = scalar_lea.vmem %s5990_s5, %s4411_s20 }
 0x3c6   : > { %3945 = vpow2.f32 %v3747_v47  ;;  %s5936_s20 = scalar_lea.vmem (%p4243_p6), %s5989_s4, %s3766_s15 }
 0x3c7   : > { %3947 = vpow2.f32 %v3749_v36 }
 0x3ce   : > { %v3942_v26 = vpop.eup %3941 }
 0x3cf   : > { %v3944_v24 = vpop.eup %3943  ;;  %v1965_v25 = vadd.f32 1.0, %v3942_v26 }
 0x3d0   : > { %v3946_v32 = vpop.eup %3945  ;;  %v1967_v16 = vadd.f32 1.0, %v3944_v24 }
 0x3d1   : > { %v3948_v56 = vpop.eup %3947  ;;  %v1966_v9 = vadd.f32 1.0, %v3946_v32  ;;  %3949 = vrcp.f32 %v1965_v25 }
 0x3d2   : > { %v1968_v35 = vadd.f32 1.0, %v3948_v56  ;;  %3951 = vrcp.f32 %v1967_v16 }
 0x3d3   : > { %3953 = vrcp.f32 %v1966_v9 }
 0x3d4   : > { %3955 = vrcp.f32 %v1968_v35 }
 0x3db   : > { %v3950_v14 = vpop.eup %3949 }
 0x3dc   : > { %v3952_v17 = vpop.eup %3951 }
 0x3dd   : > { %v3954_v25 = vpop.eup %3953 }
 0x3de   : > { %v3956_v16 = vpop.eup %3955 }
 0x3ff   : > { %v1891_v48 = vpop.f32.mrb[20].mxu0  ;;  %v1932_v1 = vpop.f32.mrb[20].mxu1 }
 0x400   : > { %v1943_v34 = vadd.f32 %v1891_v48, %v1767_v37  ;;  %v1945_v33 = vadd.f32 %v1932_v1, %v1769_v27  ;;  %v1893_v0 = vpop.f32.mrb[21].mxu0  ;;  %v1934_v36 = vpop.f32.mrb[21].mxu1  ;;  %v1987_v27 = vmul.f32 %v3952_v17, %v5104_v50  ;;  %v6593_v17 = vld [vmem:[#allocation101_spill] sm:$0xff] }
 0x401   : > { %v1944_v47 = vadd.f32 %v1893_v0, %v1768_v45  ;;  %v1946_v23 = vadd.f32 %v1934_v36, %v1770_v40  ;;  %v1895_v7 = vpop.f32.mrb[22].mxu0  ;;  %v1936_v2 = vpop.f32.mrb[22].mxu1  ;;  %v1988_v40 = vmul.f32 %v3956_v16, %v5106_v13  ;;  %v6595_v16 = vld [vmem:[#allocation115_spill] sm:$0xff] }
 0x402   : > { %v3750_v26 = vmul.f32 -1.442695, %v1943_v34  ;;  %3957 = vtanh.f32 %v1945_v33  ;;  %v1896_v24 = vpop.f32.mrb[23].mxu0  ;;  %v1937_v56 = vpop.f32.mrb[23].mxu1 }
 0x403   : > { %v3751_v32 = vmul.f32 -1.442695, %v1944_v47  ;;  %3959 = vtanh.f32 %v1946_v23  ;;  %v6590_v56 = vld [vmem:[#allocation95_spill] sm:$0xff] }
 0x404   : > { %3961 = vpow2.f32 %v3750_v26 }
 0x405   : > { %3963 = vpow2.f32 %v3751_v32  ;;  %v6591_v32 = vld [vmem:[#allocation96_spill] sm:$0xff] }
 0x40c   : > { %v3958_v9 = vpop.eup %3957 }
 0x40d   : > { %v3960_v37 = vpop.eup %3959  ;;  %v1989_v35 = vmul.f32 %v3958_v9, %v3950_v14  ;;  %v6592_v14 = vld [vmem:[#allocation97_spill] sm:$0xff]  ;;  %v6596_v9 = vld [vmem:[#allocation116_spill] sm:$0xff] }
 0x40e   : > { %v3962_v45 = vpop.eup %3961  ;;  %v1990_v48 = vmul.f32 %v3960_v37, %v3954_v25  ;;  %v6594_v25 = vld [vmem:[#allocation114_spill] sm:$0xff]  ;;  %v6597_v37 = vld [vmem:[#allocation117_spill] sm:$0xff] }
 0x40f   : > { %v3964_v1 = vpop.eup %3963  ;;  %v1969_v34 = vadd.f32 1.0, %v3962_v45  ;;  %v5250_v33 = vadd.f32 %v1989_v35, %v1987_v27  ;;  %v6598_v27 = vld [vmem:[#allocation118_spill] sm:$0xff]  ;;  %v6599_v35 = vld [vmem:[#allocation119_spill] sm:$0xff]  ;;  %v6600_v45 = vld [vmem:[#allocation120_spill] sm:$0xff] }
 0x410   : > { %v1970_v0 = vadd.f32 1.0, %v3964_v1  ;;  %v5252_v36 = vadd.f32 %v1990_v48, %v1988_v40  ;;  %v6601_v40 = vld [vmem:[#allocation121_spill] sm:$0xff]  ;;  %v6602_v48 = vld [vmem:[#allocation122_spill] sm:$0xff]  ;;  %v6603_v1 = vld [vmem:[#allocation123_spill] sm:$0xff] }
 0x411   : > { %3965 = vrcp.f32 %v1969_v34  ;;  %v6604_v34 = vld [vmem:[#allocation124_spill] sm:$0xff] }
 0x412   : > { %3967 = vtanh.f32 %v5250_v33 }
 0x413   : > { %3969 = vrcp.f32 %v1970_v0  ;;  %v6605_v0 = vld [vmem:[#allocation125_spill] sm:$0xff] }
 0x414   : > { %3971 = vtanh.f32 %v5252_v36 }
 0x41b   : > { %v3966_v50 = vpop.eup %3965 }
 0x41c   : > { %v3968_v47 = vpop.eup %3967 }
 0x41d   : > { %v3970_v23 = vpop.eup %3969  ;;  %v1995_v13 = vmul.f32 %v3968_v47, %v3966_v50  ;;  %v6606_v50 = vld [vmem:[#allocation126_spill] sm:$0xff]  ;;  %v6607_v47 = vld [vmem:[#allocation127_spill] sm:$0xff] }
 0x41e   : > { %v3972_v7 = vpop.eup %3971 }
 0x41f   : > { %v1996_v2 = vmul.f32 %v3972_v7, %v3970_v23  ;;  %3753 = vst [vmem:[%s3442_s12 + $0x20] sm:$0xff] %v1995_v13  ;;  %v5258_v24 = vpack.c.bf16 %v1995_v13, %v1995_v13  ;;  %v6608_v23 = vld [vmem:[#allocation128_spill] sm:$0xff]  ;;  %v6609_v13 = vld [vmem:[#allocation129_spill] sm:$0xff]  ;;  %v6610_v7 = vld [vmem:[#allocation130_spill] sm:$0xff] }
 0x421   : > { %3754 = vst [vmem:[%s3442_s12 + $0x28] sm:$0xff] %v1996_v2  ;;  %v2025_v26 = vpack.c.bf16 %v1996_v2, %v1996_v2  ;;  %v6611_v2 = vld [vmem:[#allocation131_spill] sm:$0xff]  ;;  %s3793_s12 = smul.u32 4294967136, %s4163_s23 }
 0x423   : > { %2058 = vmatprep.mubr.bf16.mxu0 %v2025_v26  ;;  %2099 = vmatprep.mubr.bf16.mxu1 %v2025_v26  ;;  %s3464_s13 = scalar_lea.vmem %s4941_s11, %s3793_s12 [#allocation4] }
 0x424   : > { %2059 = vmatmul.mubr.bf16.vlgmr.msra.gmra.mrb[24].mxu0 %v5258_v24  ;;  %2100 = vmatmul.mubr.bf16.vlgmr.msra.gmra.mrb[24].mxu1 %v5258_v24 }
 0x425   : > { %2109 = vmatpush1.bf16.msra.mxu0 %v6411_v55  ;;  %2150 = vmatpush1.bf16.msra.mxu1 %v6412_v15 }
 0x426   : > { %2140 = vmatprep.mubr.bf16.mxu0 %v2025_v26  ;;  %2181 = vmatprep.mubr.bf16.mxu1 %v2025_v26  ;;  %v6612_v26 = vld [vmem:[#allocation132_spill] sm:$0xff] }
 0x427   : > { %2110 = vmatprep.subr.bf16.mxu0 %v6413_v54  ;;  %2151 = vmatprep.subr.bf16.mxu1 %v6414_v44 }
 0x429   : > { %2111 = vmatpush1.bf16.msra.mxu0 %v6415_v63  ;;  %2152 = vmatpush1.bf16.msra.mxu1 %v6416_v43 }
 0x42a   : > { %2112 = vmatprep.subr.bf16.mxu0 %v6417_v39  ;;  %2153 = vmatprep.subr.bf16.mxu1 %v6418_v38 }
 0x42d   : > { %2113 = vmatpush1.bf16.msra.mxu0 %v6419_v29  ;;  %2154 = vmatpush1.bf16.msra.mxu1 %v6420_v30 }
 0x42e   : > { %2114 = vmatprep.subr.bf16.mxu0 %v6421_v31  ;;  %2155 = vmatprep.subr.bf16.mxu1 %v6500_v41 }
 0x431   : > { %2115 = vmatpush1.bf16.msra.mxu0 %v6501_v3  ;;  %2156 = vmatpush1.bf16.msra.mxu1 %v6502_v42 }
 0x432   : > { %2116 = vmatprep.subr.bf16.mxu0 %v6503_v62  ;;  %2157 = vmatprep.subr.bf16.mxu1 %v6504_v5 }
 0x435   : > { %2117 = vmatpush1.bf16.msra.mxu0 %v6505_v10  ;;  %2158 = vmatpush1.bf16.msra.mxu1 %v6506_v60 }
 0x436   : > { %2118 = vmatprep.subr.bf16.mxu0 %v6507_v11  ;;  %2159 = vmatprep.subr.bf16.mxu1 %v6508_v59 }
 0x439   : > { %2119 = vmatpush1.bf16.msra.mxu0 %v6509_v4  ;;  %2160 = vmatpush1.bf16.msra.mxu1 %v6510_v58 }
 0x43a   : > { %2120 = vmatprep.subr.bf16.mxu0 %v6511_v12  ;;  %2161 = vmatprep.subr.bf16.mxu1 %v6590_v56 }
 0x43d   : > { %2121 = vmatpush1.bf16.msra.mxu0 %v6591_v32  ;;  %2162 = vmatpush1.bf16.msra.mxu1 %v6592_v14 }
 0x43e   : > { %2122 = vmatprep.subr.bf16.mxu0 %v6515_v53  ;;  %2163 = vmatprep.subr.bf16.mxu1 %v6516_v8 }
 0x441   : > { %2123 = vmatpush1.bf16.msra.mxu0 %v6517_v18  ;;  %2164 = vmatpush1.bf16.msra.mxu1 %v6593_v17 }
 0x442   : > { %2124 = vmatprep.subr.bf16.mxu0 %v6519_v28  ;;  %2165 = vmatprep.subr.bf16.mxu1 %v6520_v20 }
 0x445   : > { %2125 = vmatpush1.bf16.msra.mxu0 %v6521_v22  ;;  %2166 = vmatpush1.bf16.msra.mxu1 %v6522_v61 }
 0x446   : > { %2126 = vmatprep.subr.bf16.mxu0 %v6523_v52  ;;  %2167 = vmatprep.subr.bf16.mxu1 %v6524_v51 }
 0x449   : > { %2127 = vmatpush1.bf16.msra.mxu0 %v6525_v46  ;;  %2168 = vmatpush1.bf16.msra.mxu1 %v6448_v49 }
 0x44a   : > { %2128 = vmatprep.subr.bf16.mxu0 %v6449_v6  ;;  %2169 = vmatprep.subr.bf16.mxu1 %v6450_v57  ;;  %v3759_v57 = vld [vmem:[%s3445_s14 + $0x78] sm:$0xff] }
 0x44d   : > { %2129 = vmatpush1.bf16.msra.mxu0 %v6526_v19  ;;  %2170 = vmatpush1.bf16.msra.mxu1 %v6452_v21 }
 0x44e   : > { %2130 = vmatprep.subr.bf16.mxu0 %v6594_v25  ;;  %2171 = vmatprep.subr.bf16.mxu1 %v6595_v16 }
 0x451   : > { %2131 = vmatpush1.bf16.msra.mxu0 %v6596_v9  ;;  %2172 = vmatpush1.bf16.msra.mxu1 %v6597_v37 }
 0x452   : > { %2132 = vmatprep.subr.bf16.mxu0 %v6598_v27  ;;  %2173 = vmatprep.subr.bf16.mxu1 %v6599_v35 }
 0x455   : > { %2133 = vmatpush1.bf16.msra.mxu0 %v6600_v45  ;;  %2174 = vmatpush1.bf16.msra.mxu1 %v6601_v40 }
 0x456   : > { %2134 = vmatprep.subr.bf16.mxu0 %v6602_v48  ;;  %2175 = vmatprep.subr.bf16.mxu1 %v6603_v1  ;;  %v6613_v48 = vld [vmem:[#allocation133_spill] sm:$0xff]  ;;  %v6614_v1 = vld [vmem:[#allocation6_spill] sm:$0xff] }
 0x459   : > { %2135 = vmatpush1.bf16.msra.mxu0 %v6604_v34  ;;  %2176 = vmatpush1.bf16.msra.mxu1 %v6605_v0  ;;  %v6615_v34 = vld [vmem:[#allocation8_spill] sm:$0xff] }
 0x45a   : > { %2136 = vmatprep.subr.bf16.mxu0 %v6606_v50  ;;  %2177 = vmatprep.subr.bf16.mxu1 %v6607_v47  ;;  %v6616_v47 = vld [vmem:[#allocation7_spill] sm:$0xff]  ;;  %v6625_v50 = vld [vmem:[#allocation17_spill] sm:$0xff] }
 0x45d   : > { %2137 = vmatpush1.bf16.msra.mxu0 %v6608_v23  ;;  %2178 = vmatpush1.bf16.msra.mxu1 %v6609_v13  ;;  %v6617_v23 = vld [vmem:[#allocation9_spill] sm:$0xff]  ;;  %v6618_v13 = vld [vmem:[#allocation10_spill] sm:$0xff] }
 0x45e   : > { %2138 = vmatprep.subr.bf16.mxu0 %v6610_v7  ;;  %2179 = vmatprep.subr.bf16.mxu1 %v6611_v2  ;;  %v6619_v7 = vld [vmem:[#allocation11_spill] sm:$0xff]  ;;  %v6620_v2 = vld [vmem:[#allocation12_spill] sm:$0xff] }
 0x461   : > { %2139 = vmatpush1.bf16.msra.mxu0 %v6612_v26  ;;  %2180 = vmatpush1.bf16.msra.mxu1 %v6613_v48  ;;  %v6621_v26 = vld [vmem:[#allocation13_spill] sm:$0xff]  ;;  %v6622_v48 = vld [vmem:[#allocation14_spill] sm:$0xff] }
 0x462   : > { %2277 = vmatprep.subr.bf16.mxu0 %v6614_v1  ;;  %2318 = vmatprep.subr.bf16.mxu1 %v6615_v34  ;;  %v6623_v1 = vld [vmem:[#allocation15_spill] sm:$0xff]  ;;  %v6624_v34 = vld [vmem:[#allocation16_spill] sm:$0xff] }
 0x464   : > { %2141 = vmatmul.mubr.bf16.vlgmr.msra.gmra.mrb[28].mxu0 %v5258_v24  ;;  %2182 = vmatmul.mubr.bf16.vlgmr.msra.gmra.mrb[28].mxu1 %v5258_v24  ;;  %v6626_v24 = vld [vmem:[#allocation18_spill] sm:$0xff] }
 0x465   : > { %2278 = vmatpush1.bf16.msra.mxu0 %v6616_v47  ;;  %2319 = vmatpush1.bf16.msra.mxu1 %v6617_v23  ;;  %v6627_v47 = vld [vmem:[#allocation19_spill] sm:$0xff]  ;;  %v6628_v23 = vld [vmem:[#allocation20_spill] sm:$0xff] }
 0x466   : > { %2279 = vmatprep.subr.bf16.mxu0 %v6618_v13  ;;  %2320 = vmatprep.subr.bf16.mxu1 %v6619_v7  ;;  %v6629_v13 = vld [vmem:[#allocation21_spill] sm:$0xff]  ;;  %v6630_v7 = vld [vmem:[#allocation22_spill] sm:$0xff] }
 0x469   : > { %2280 = vmatpush1.bf16.msra.mxu0 %v6620_v2  ;;  %2321 = vmatpush1.bf16.msra.mxu1 %v6621_v26  ;;  %v6631_v2 = vld [vmem:[#allocation23_spill] sm:$0xff]  ;;  %v6632_v26 = vld [vmem:[#allocation24_spill] sm:$0xff] }
 0x46a   : > { %2281 = vmatprep.subr.bf16.mxu0 %v6622_v48  ;;  %2322 = vmatprep.subr.bf16.mxu1 %v6623_v1  ;;  %v6633_v48 = vld [vmem:[#allocation25_spill] sm:$0xff]  ;;  %v6634_v1 = vld [vmem:[#allocation26_spill] sm:$0xff] }
 0x46d   : > { %2282 = vmatpush1.bf16.msra.mxu0 %v6624_v34  ;;  %2323 = vmatpush1.bf16.msra.mxu1 %v6625_v50  ;;  %v6635_v34 = vld [vmem:[#allocation27_spill] sm:$0xff]  ;;  %v6636_v50 = vld [vmem:[#allocation28_spill] sm:$0xff] }
 0x46e   : > { %2283 = vmatprep.subr.bf16.mxu0 %v6626_v24  ;;  %2324 = vmatprep.subr.bf16.mxu1 %v6627_v47  ;;  %v6637_v24 = vld [vmem:[#allocation29_spill] sm:$0xff]  ;;  %v6638_v47 = vld [vmem:[#allocation30_spill] sm:$0xff] }
 0x471   : > { %2284 = vmatpush1.bf16.msra.mxu0 %v6628_v23  ;;  %2325 = vmatpush1.bf16.msra.mxu1 %v6629_v13  ;;  %v6639_v23 = vld [vmem:[#allocation31_spill] sm:$0xff]  ;;  %v6640_v13 = vld [vmem:[#allocation32_spill] sm:$0xff] }
 0x472   : > { %2285 = vmatprep.subr.bf16.mxu0 %v6630_v7  ;;  %2326 = vmatprep.subr.bf16.mxu1 %v6631_v2  ;;  %v6641_v7 = vld [vmem:[#allocation33_spill] sm:$0xff]  ;;  %v6642_v2 = vld [vmem:[#allocation34_spill] sm:$0xff] }
 0x475   : > { %2286 = vmatpush1.bf16.msra.mxu0 %v6632_v26  ;;  %2327 = vmatpush1.bf16.msra.mxu1 %v6633_v48  ;;  %v6643_v26 = vld [vmem:[#allocation35_spill] sm:$0xff]  ;;  %v6644_v48 = vld [vmem:[#allocation36_spill] sm:$0xff] }
 0x476   : > { %2287 = vmatprep.subr.bf16.mxu0 %v6634_v1  ;;  %2328 = vmatprep.subr.bf16.mxu1 %v6635_v34  ;;  %v6645_v1 = vld [vmem:[#allocation37_spill] sm:$0xff]  ;;  %v6646_v34 = vld [vmem:[#allocation38_spill] sm:$0xff] }
 0x479   : > { %2288 = vmatpush1.bf16.msra.mxu0 %v6636_v50  ;;  %2329 = vmatpush1.bf16.msra.mxu1 %v6637_v24  ;;  %v6647_v50 = vld [vmem:[#allocation39_spill] sm:$0xff]  ;;  %v6648_v24 = vld [vmem:[#allocation40_spill] sm:$0xff] }
 0x47a   : > { %2289 = vmatprep.subr.bf16.mxu0 %v6638_v47  ;;  %2330 = vmatprep.subr.bf16.mxu1 %v6639_v23  ;;  %v6649_v47 = vld [vmem:[#allocation41_spill] sm:$0xff]  ;;  %v6650_v23 = vld [vmem:[#allocation42_spill] sm:$0xff] }
 0x47d   : > { %2290 = vmatpush1.bf16.msra.mxu0 %v6640_v13  ;;  %2331 = vmatpush1.bf16.msra.mxu1 %v6641_v7  ;;  %v6651_v13 = vld [vmem:[#allocation43_spill] sm:$0xff]  ;;  %v6652_v7 = vld [vmem:[#allocation44_spill] sm:$0xff] }
 0x47e   : > { %2291 = vmatprep.subr.bf16.mxu0 %v6642_v2  ;;  %2332 = vmatprep.subr.bf16.mxu1 %v6643_v26  ;;  %v6653_v2 = vld [vmem:[#allocation45_spill] sm:$0xff]  ;;  %v6654_v26 = vld [vmem:[#allocation46_spill] sm:$0xff] }
 0x481   : > { %2292 = vmatpush1.bf16.msra.mxu0 %v6644_v48  ;;  %2333 = vmatpush1.bf16.msra.mxu1 %v6645_v1  ;;  %v6655_v48 = vld [vmem:[#allocation47_spill] sm:$0xff]  ;;  %v6656_v1 = vld [vmem:[#allocation48_spill] sm:$0xff] }
 0x482   : > { %2293 = vmatprep.subr.bf16.mxu0 %v6646_v34  ;;  %2334 = vmatprep.subr.bf16.mxu1 %v6647_v50  ;;  %v6657_v34 = vld [vmem:[#allocation49_spill] sm:$0xff]  ;;  %v6658_v50 = vld [vmem:[#allocation50_spill] sm:$0xff] }
 0x485   : > { %2294 = vmatpush1.bf16.msra.mxu0 %v6648_v24  ;;  %2335 = vmatpush1.bf16.msra.mxu1 %v6649_v47  ;;  %v6659_v24 = vld [vmem:[#allocation51_spill] sm:$0xff]  ;;  %v6660_v47 = vld [vmem:[#allocation52_spill] sm:$0xff] }
 0x486   : > { %2295 = vmatprep.subr.bf16.mxu0 %v6650_v23  ;;  %2336 = vmatprep.subr.bf16.mxu1 %v6651_v13  ;;  %v6661_v23 = vld [vmem:[#allocation53_spill] sm:$0xff]  ;;  %v6662_v13 = vld [vmem:[#allocation54_spill] sm:$0xff] }
 0x489   : > { %2296 = vmatpush1.bf16.msra.mxu0 %v6652_v7  ;;  %2337 = vmatpush1.bf16.msra.mxu1 %v6653_v2  ;;  %v6663_v7 = vld [vmem:[#allocation55_spill] sm:$0xff]  ;;  %v6664_v2 = vld [vmem:[#allocation56_spill] sm:$0xff] }
 0x48a   : > { %2297 = vmatprep.subr.bf16.mxu0 %v6654_v26  ;;  %2338 = vmatprep.subr.bf16.mxu1 %v6655_v48  ;;  %v6665_v26 = vld [vmem:[#allocation57_spill] sm:$0xff]  ;;  %v6666_v48 = vld [vmem:[#allocation58_spill] sm:$0xff] }
 0x48d   : > { %2298 = vmatpush1.bf16.msra.mxu0 %v6656_v1  ;;  %2339 = vmatpush1.bf16.msra.mxu1 %v6657_v34  ;;  %v6667_v1 = vld [vmem:[#allocation59_spill] sm:$0xff]  ;;  %v6668_v34 = vld [vmem:[#allocation60_spill] sm:$0xff] }
 0x48e   : > { %2299 = vmatprep.subr.bf16.mxu0 %v6658_v50  ;;  %2340 = vmatprep.subr.bf16.mxu1 %v6659_v24  ;;  %v6669_v50 = vld [vmem:[#allocation61_spill] sm:$0xff]  ;;  %v6670_v24 = vld [vmem:[#allocation62_spill] sm:$0xff] }
 0x491   : > { %2300 = vmatpush1.bf16.msra.mxu0 %v6660_v47  ;;  %2341 = vmatpush1.bf16.msra.mxu1 %v6661_v23  ;;  %v6671_v47 = vld [vmem:[#allocation63_spill] sm:$0xff]  ;;  %v6672_v23 = vld [vmem:[#allocation64_spill] sm:$0xff] }
 0x492   : > { %2301 = vmatprep.subr.bf16.mxu0 %v6662_v13  ;;  %2342 = vmatprep.subr.bf16.mxu1 %v6663_v7  ;;  %v6673_v13 = vld [vmem:[#allocation65_spill] sm:$0xff] }
 0x495   : > { %2302 = vmatpush1.bf16.msra.mxu0 %v6664_v2  ;;  %2343 = vmatpush1.bf16.msra.mxu1 %v6665_v26  ;;  %v6674_v2 = vld [vmem:[#allocation66_spill] sm:$0xff]  ;;  %v6675_v26 = vld [vmem:[#allocation67_spill] sm:$0xff] }
 0x496   : > { %2303 = vmatprep.subr.bf16.mxu0 %v6666_v48  ;;  %2344 = vmatprep.subr.bf16.mxu1 %v6667_v1  ;;  %v6676_v48 = vld [vmem:[#allocation68_spill] sm:$0xff]  ;;  %v6677_v1 = vld [vmem:[#allocation69_spill] sm:$0xff] }
 0x499   : > { %2304 = vmatpush1.bf16.msra.mxu0 %v6668_v34  ;;  %2345 = vmatpush1.bf16.msra.mxu1 %v6669_v50  ;;  %v6678_v34 = vld [vmem:[#allocation70_spill] sm:$0xff]  ;;  %v6679_v50 = vld [vmem:[#allocation71_spill] sm:$0xff] }
 0x49a   : > { %2305 = vmatprep.subr.bf16.mxu0 %v6670_v24  ;;  %2346 = vmatprep.subr.bf16.mxu1 %v6671_v47 }
 0x49d   : > { %2306 = vmatpush1.bf16.msra.mxu0 %v6672_v23  ;;  %2347 = vmatpush1.bf16.msra.mxu1 %v6673_v13 }
 0x49e   : > { %2307 = vmatprep.subr.bf16.mxu0 %v6674_v2  ;;  %2348 = vmatprep.subr.bf16.mxu1 %v6675_v26  ;;  %v3756_v2 = vld [vmem:[%s3445_s14 + $0x60] sm:$0xff]  ;;  %v3757_v26 = vld [vmem:[%s3445_s14 + $0x68] sm:$0xff] }
 0x49f   : > { %v2014_v35 = vunpack.c.l.bf16 %v3756_v2  ;;  %v2015_v27 = vunpack.c.h.bf16 %v3756_v2 }
 0x4a1   : > { %2308 = vmatpush1.bf16.msra.mxu0 %v6676_v48  ;;  %2349 = vmatpush1.bf16.msra.mxu1 %v6677_v1  ;;  %v2016_v48 = vunpack.c.l.bf16 %v3757_v26  ;;  %v2017_v1 = vunpack.c.h.bf16 %v3757_v26 }
 0x4a2   : > { %2359 = vmatprep.subr.bf16.mxu0 %v6678_v34  ;;  %2400 = vmatprep.subr.bf16.mxu1 %v6679_v50 }
 0x4f7   : > { %v2060_v24 = vpop.f32.mrb[24].mxu0  ;;  %v2101_v47 = vpop.f32.mrb[24].mxu1 }
 0x4f8   : > { %v2062_v7 = vpop.f32.mrb[25].mxu0  ;;  %v2103_v23 = vpop.f32.mrb[25].mxu1  ;;  %v2190_v37 = vadd.f32 %v2060_v24, %v2014_v35  ;;  %v2192_v34 = vadd.f32 %v2101_v47, %v2016_v48 }
 0x4f9   : > { %v2064_v0 = vpop.f32.mrb[26].mxu0  ;;  %v2105_v40 = vpop.f32.mrb[26].mxu1  ;;  %v2191_v9 = vadd.f32 %v2062_v7, %v2015_v27  ;;  %v2193_v50 = vadd.f32 %v2103_v23, %v2017_v1  ;;  %v2020_v27 = vunpack.c.l.bf16 %v3759_v57 }
 0x4fa   : > { %v2065_v13 = vpop.f32.mrb[27].mxu0  ;;  %v2106_v45 = vpop.f32.mrb[27].mxu1  ;;  %v3760_v16 = vmul.f32 -1.442695, %v2190_v37  ;;  %v3762_v25 = vmul.f32 -1.442695, %v2192_v34  ;;  %v2021_v34 = vunpack.c.h.bf16 %v3759_v57 }
 0x4fb   : > { %v3761_v21 = vmul.f32 -1.442695, %v2191_v9  ;;  %v3763_v19 = vmul.f32 -1.442695, %v2193_v50  ;;  %v3758_v13 = vld [vmem:[%s3445_s14 + $0x70] sm:$0xff]  ;;  %s3804_s14 = smul.u32 4294967216, %s4163_s23 }
 0x4fc   : > { %3973 = vpow2.f32 %v3760_v16  ;;  %v2018_v48 = vunpack.c.l.bf16 %v3758_v13  ;;  %v2019_v37 = vunpack.c.h.bf16 %v3758_v13 }
 0x4fd   : > { %3975 = vpow2.f32 %v3762_v25 }
 0x4fe   : > { %3977 = vpow2.f32 %v3761_v21 }
 0x4ff   : > { %3979 = vpow2.f32 %v3763_v19 }
 0x506   : > { %v3974_v45 = vpop.eup %3973 }
 0x507   : > { %v3976_v40 = vpop.eup %3975  ;;  %v2216_v2 = vadd.f32 1.0, %v3974_v45 }
 0x508   : > { %v3978_v0 = vpop.eup %3977  ;;  %v2218_v26 = vadd.f32 1.0, %v3976_v40 }
 0x509   : > { %v3980_v6 = vpop.eup %3979  ;;  %v2217_v35 = vadd.f32 1.0, %v3978_v0  ;;  %3981 = vrcp.f32 %v2216_v2 }
 0x50a   : > { %v2219_v1 = vadd.f32 1.0, %v3980_v6  ;;  %3983 = vrcp.f32 %v2218_v26 }
 0x50b   : > { %3985 = vrcp.f32 %v2217_v35 }
 0x50c   : > { %3987 = vrcp.f32 %v2219_v1 }
 0x513   : > { %v3982_v57 = vpop.eup %3981 }
 0x514   : > { %v3984_v13 = vpop.eup %3983 }
 0x515   : > { %v3986_v2 = vpop.eup %3985 }
 0x516   : > { %v3988_v26 = vpop.eup %3987 }
 0x537   : > { %v2142_v16 = vpop.f32.mrb[28].mxu0  ;;  %v2183_v25 = vpop.f32.mrb[28].mxu1 }
 0x538   : > { %v2194_v21 = vadd.f32 %v2142_v16, %v2018_v48  ;;  %v2196_v19 = vadd.f32 %v2183_v25, %v2020_v27  ;;  %v2144_v9 = vpop.f32.mrb[29].mxu0  ;;  %v2185_v50 = vpop.f32.mrb[29].mxu1  ;;  %v2238_v27 = vmul.f32 %v3984_v13, %v5250_v33  ;;  %v6683_v13 = vld [vmem:[#allocation113_spill] sm:$0xff] }
 0x539   : > { %v2195_v47 = vadd.f32 %v2144_v9, %v2019_v37  ;;  %v2197_v23 = vadd.f32 %v2185_v50, %v2021_v34  ;;  %v2146_v7 = vpop.f32.mrb[30].mxu0  ;;  %v2187_v24 = vpop.f32.mrb[30].mxu1  ;;  %v2239_v34 = vmul.f32 %v3988_v26, %v5252_v36  ;;  %v6685_v26 = vld [vmem:[#allocation115_spill] sm:$0xff] }
 0x53a   : > { %v3764_v45 = vmul.f32 -1.442695, %v2194_v21  ;;  %3989 = vtanh.f32 %v2196_v19  ;;  %v2147_v40 = vpop.f32.mrb[31].mxu0  ;;  %v2188_v6 = vpop.f32.mrb[31].mxu1 }
 0x53b   : > { %v3765_v0 = vmul.f32 -1.442695, %v2195_v47  ;;  %3991 = vtanh.f32 %v2197_v23  ;;  %v6680_v6 = vld [vmem:[#allocation110_spill] sm:$0xff] }
 0x53c   : > { %3993 = vpow2.f32 %v3764_v45 }
 0x53d   : > { %3995 = vpow2.f32 %v3765_v0  ;;  %v6681_v0 = vld [vmem:[#allocation111_spill] sm:$0xff] }
 0x544   : > { %v3990_v35 = vpop.eup %3989 }
 0x545   : > { %v3992_v48 = vpop.eup %3991  ;;  %v2240_v1 = vmul.f32 %v3990_v35, %v3982_v57  ;;  %v6682_v57 = vld [vmem:[#allocation112_spill] sm:$0xff] }
 0x546   : > { %v3994_v37 = vpop.eup %3993  ;;  %v2241_v16 = vmul.f32 %v3992_v48, %v3986_v2  ;;  %v6684_v2 = vld [vmem:[#allocation114_spill] sm:$0xff]  ;;  %v6686_v35 = vld [vmem:[#allocation116_spill] sm:$0xff]  ;;  %v6687_v48 = vld [vmem:[#allocation117_spill] sm:$0xff] }
 0x547   : > { %v3996_v25 = vpop.eup %3995  ;;  %v2220_v21 = vadd.f32 1.0, %v3994_v37  ;;  %v5396_v19 = vadd.f32 %v2240_v1, %v2238_v27  ;;  %v6688_v27 = vld [vmem:[#allocation118_spill] sm:$0xff]  ;;  %v6689_v1 = vld [vmem:[#allocation119_spill] sm:$0xff]  ;;  %v6690_v37 = vld [vmem:[#allocation120_spill] sm:$0xff] }
 0x548   : > { %v2221_v9 = vadd.f32 1.0, %v3996_v25  ;;  %v5398_v50 = vadd.f32 %v2241_v16, %v2239_v34  ;;  %v6691_v34 = vld [vmem:[#allocation121_spill] sm:$0xff]  ;;  %v6692_v16 = vld [vmem:[#allocation122_spill] sm:$0xff]  ;;  %v6693_v25 = vld [vmem:[#allocation123_spill] sm:$0xff] }
 0x549   : > { %3997 = vrcp.f32 %v2220_v21  ;;  %v6694_v21 = vld [vmem:[#allocation124_spill] sm:$0xff] }
 0x54a   : > { %3999 = vtanh.f32 %v5396_v19 }
 0x54b   : > { %4001 = vrcp.f32 %v2221_v9  ;;  %v6695_v9 = vld [vmem:[#allocation125_spill] sm:$0xff] }
 0x54c   : > { %4003 = vtanh.f32 %v5398_v50 }
 0x553   : > { %v3998_v33 = vpop.eup %3997 }
 0x554   : > { %v4000_v47 = vpop.eup %3999 }
 0x555   : > { %v4002_v36 = vpop.eup %4001  ;;  %v2246_v23 = vmul.f32 %v4000_v47, %v3998_v33  ;;  %v6696_v33 = vld [vmem:[#allocation126_spill] sm:$0xff]  ;;  %v6697_v47 = vld [vmem:[#allocation127_spill] sm:$0xff] }
 0x556   : > { %v4004_v7 = vpop.eup %4003 }
 0x557   : > { %v2247_v24 = vmul.f32 %v4004_v7, %v4002_v36  ;;  %3767 = vst [vmem:[%s3448_s16 + $0x30] sm:$0xff] %v2246_v23  ;;  %v5406_v40 = vpack.c.bf16 %v2246_v23, %v2246_v23  ;;  %v6698_v36 = vld [vmem:[#allocation128_spill] sm:$0xff]  ;;  %v6699_v23 = vld [vmem:[#allocation129_spill] sm:$0xff]  ;;  %v6700_v7 = vld [vmem:[#allocation130_spill] sm:$0xff] }
 0x559   : > { %3768 = vst [vmem:[%s3448_s16 + $0x38] sm:$0xff] %v2247_v24  ;;  %v2276_v45 = vpack.c.bf16 %v2247_v24, %v2247_v24  ;;  %v6701_v24 = vld [vmem:[#allocation131_spill] sm:$0xff]  ;;  %s3468_s16 = scalar_lea.vmem %s4963_s18, %s3804_s14 [#allocation5] }
 0x55b   : > { %2309 = vmatprep.mubr.bf16.mxu0 %v2276_v45  ;;  %2350 = vmatprep.mubr.bf16.mxu1 %v2276_v45 }
 0x55c   : > { %2310 = vmatmul.mubr.bf16.vlgmr.msra.gmra.mrb[32].mxu0 %v5406_v40  ;;  %2351 = vmatmul.mubr.bf16.vlgmr.msra.gmra.mrb[32].mxu1 %v5406_v40 }
 0x55d   : > { %2360 = vmatpush1.bf16.msra.mxu0 %v6411_v55  ;;  %2401 = vmatpush1.bf16.msra.mxu1 %v6412_v15 }
 0x55e   : > { %2391 = vmatprep.mubr.bf16.mxu0 %v2276_v45  ;;  %2432 = vmatprep.mubr.bf16.mxu1 %v2276_v45  ;;  %v6702_v45 = vld [vmem:[#allocation132_spill] sm:$0xff] }
 0x55f   : > { %2361 = vmatprep.subr.bf16.mxu0 %v6413_v54  ;;  %2402 = vmatprep.subr.bf16.mxu1 %v6414_v44 }
 0x561   : > { %2362 = vmatpush1.bf16.msra.mxu0 %v6415_v63  ;;  %2403 = vmatpush1.bf16.msra.mxu1 %v6416_v43 }
 0x562   : > { %2363 = vmatprep.subr.bf16.mxu0 %v6417_v39  ;;  %2404 = vmatprep.subr.bf16.mxu1 %v6418_v38 }
 0x565   : > { %2364 = vmatpush1.bf16.msra.mxu0 %v6419_v29  ;;  %2405 = vmatpush1.bf16.msra.mxu1 %v6420_v30 }
 0x566   : > { %2365 = vmatprep.subr.bf16.mxu0 %v6421_v31  ;;  %2406 = vmatprep.subr.bf16.mxu1 %v6500_v41 }
 0x569   : > { %2366 = vmatpush1.bf16.msra.mxu0 %v6501_v3  ;;  %2407 = vmatpush1.bf16.msra.mxu1 %v6502_v42 }
 0x56a   : > { %2367 = vmatprep.subr.bf16.mxu0 %v6503_v62  ;;  %2408 = vmatprep.subr.bf16.mxu1 %v6504_v5 }
 0x56d   : > { %2368 = vmatpush1.bf16.msra.mxu0 %v6505_v10  ;;  %2409 = vmatpush1.bf16.msra.mxu1 %v6506_v60 }
 0x56e   : > { %2369 = vmatprep.subr.bf16.mxu0 %v6507_v11  ;;  %2410 = vmatprep.subr.bf16.mxu1 %v6508_v59 }
 0x571   : > { %2370 = vmatpush1.bf16.msra.mxu0 %v6509_v4  ;;  %2411 = vmatpush1.bf16.msra.mxu1 %v6510_v58 }
 0x572   : > { %2371 = vmatprep.subr.bf16.mxu0 %v6511_v12  ;;  %2412 = vmatprep.subr.bf16.mxu1 %v6590_v56 }
 0x575   : > { %2372 = vmatpush1.bf16.msra.mxu0 %v6591_v32  ;;  %2413 = vmatpush1.bf16.msra.mxu1 %v6592_v14 }
 0x576   : > { %2373 = vmatprep.subr.bf16.mxu0 %v6515_v53  ;;  %2414 = vmatprep.subr.bf16.mxu1 %v6516_v8 }
 0x579   : > { %2374 = vmatpush1.bf16.msra.mxu0 %v6517_v18  ;;  %2415 = vmatpush1.bf16.msra.mxu1 %v6593_v17 }
 0x57a   : > { %2375 = vmatprep.subr.bf16.mxu0 %v6519_v28  ;;  %2416 = vmatprep.subr.bf16.mxu1 %v6520_v20 }
 0x57d   : > { %2376 = vmatpush1.bf16.msra.mxu0 %v6521_v22  ;;  %2417 = vmatpush1.bf16.msra.mxu1 %v6522_v61 }
 0x57e   : > { %2377 = vmatprep.subr.bf16.mxu0 %v6523_v52  ;;  %2418 = vmatprep.subr.bf16.mxu1 %v6524_v51 }
 0x581   : > { %2378 = vmatpush1.bf16.msra.mxu0 %v6525_v46  ;;  %2419 = vmatpush1.bf16.msra.mxu1 %v6448_v49 }
 0x582   : > { %2379 = vmatprep.subr.bf16.mxu0 %v6680_v6  ;;  %2420 = vmatprep.subr.bf16.mxu1 %v6681_v0  ;;  %v2264_v0 = vld [vmem:[%s2260_s21 + $0x18] sm:$0xff] }
 0x585   : > { %2380 = vmatpush1.bf16.msra.mxu0 %v6682_v57  ;;  %2421 = vmatpush1.bf16.msra.mxu1 %v6683_v13  ;;  %v2263_v57 = vld [vmem:[%s2260_s21 + $0x10] sm:$0xff] }
 0x586   : > { %2381 = vmatprep.subr.bf16.mxu0 %v6684_v2  ;;  %2422 = vmatprep.subr.bf16.mxu1 %v6685_v26 }
 0x589   : > { %2382 = vmatpush1.bf16.msra.mxu0 %v6686_v35  ;;  %2423 = vmatpush1.bf16.msra.mxu1 %v6687_v48 }
 0x58a   : > { %2383 = vmatprep.subr.bf16.mxu0 %v6688_v27  ;;  %2424 = vmatprep.subr.bf16.mxu1 %v6689_v1 }
 0x58d   : > { %2384 = vmatpush1.bf16.msra.mxu0 %v6690_v37  ;;  %2425 = vmatpush1.bf16.msra.mxu1 %v6691_v34 }
 0x58e   : > { %2385 = vmatprep.subr.bf16.mxu0 %v6692_v16  ;;  %2426 = vmatprep.subr.bf16.mxu1 %v6693_v25  ;;  %v6703_v16 = vld [vmem:[#allocation133_spill] sm:$0xff]  ;;  %v6704_v25 = vld [vmem:[#allocation6_spill] sm:$0xff] }
 0x591   : > { %2386 = vmatpush1.bf16.msra.mxu0 %v6694_v21  ;;  %2427 = vmatpush1.bf16.msra.mxu1 %v6695_v9  ;;  %v6705_v21 = vld [vmem:[#allocation8_spill] sm:$0xff] }
 0x592   : > { %2387 = vmatprep.subr.bf16.mxu0 %v6696_v33  ;;  %2428 = vmatprep.subr.bf16.mxu1 %v6697_v47  ;;  %v6706_v47 = vld [vmem:[#allocation7_spill] sm:$0xff]  ;;  %v6715_v33 = vld [vmem:[#allocation17_spill] sm:$0xff] }
 0x595   : > { %2388 = vmatpush1.bf16.msra.mxu0 %v6698_v36  ;;  %2429 = vmatpush1.bf16.msra.mxu1 %v6699_v23  ;;  %v6707_v36 = vld [vmem:[#allocation9_spill] sm:$0xff]  ;;  %v6708_v23 = vld [vmem:[#allocation10_spill] sm:$0xff] }
 0x596   : > { %2389 = vmatprep.subr.bf16.mxu0 %v6700_v7  ;;  %2430 = vmatprep.subr.bf16.mxu1 %v6701_v24  ;;  %v6709_v7 = vld [vmem:[#allocation11_spill] sm:$0xff]  ;;  %v6710_v24 = vld [vmem:[#allocation12_spill] sm:$0xff] }
 0x599   : > { %2390 = vmatpush1.bf16.msra.mxu0 %v6702_v45  ;;  %2431 = vmatpush1.bf16.msra.mxu1 %v6703_v16  ;;  %v6711_v45 = vld [vmem:[#allocation13_spill] sm:$0xff]  ;;  %v6712_v16 = vld [vmem:[#allocation14_spill] sm:$0xff] }
 0x59a   : > { %2529 = vmatprep.subr.bf16.mxu0 %v6704_v25  ;;  %2570 = vmatprep.subr.bf16.mxu1 %v6705_v21  ;;  %v6713_v25 = vld [vmem:[#allocation15_spill] sm:$0xff]  ;;  %v6714_v21 = vld [vmem:[#allocation16_spill] sm:$0xff] }
 0x59c   : > { %2392 = vmatmul.mubr.bf16.vlgmr.msra.gmra.mrb[36].mxu0 %v5406_v40  ;;  %2433 = vmatmul.mubr.bf16.vlgmr.msra.gmra.mrb[36].mxu1 %v5406_v40  ;;  %v6716_v40 = vld [vmem:[#allocation18_spill] sm:$0xff] }
 0x59d   : > { %2530 = vmatpush1.bf16.msra.mxu0 %v6706_v47  ;;  %2571 = vmatpush1.bf16.msra.mxu1 %v6707_v36  ;;  %v6717_v47 = vld [vmem:[#allocation19_spill] sm:$0xff]  ;;  %v6718_v36 = vld [vmem:[#allocation20_spill] sm:$0xff] }
 0x59e   : > { %2531 = vmatprep.subr.bf16.mxu0 %v6708_v23  ;;  %2572 = vmatprep.subr.bf16.mxu1 %v6709_v7  ;;  %v6719_v23 = vld [vmem:[#allocation21_spill] sm:$0xff]  ;;  %v6720_v7 = vld [vmem:[#allocation22_spill] sm:$0xff] }
 0x5a1   : > { %2532 = vmatpush1.bf16.msra.mxu0 %v6710_v24  ;;  %2573 = vmatpush1.bf16.msra.mxu1 %v6711_v45  ;;  %v6721_v24 = vld [vmem:[#allocation23_spill] sm:$0xff]  ;;  %v6722_v45 = vld [vmem:[#allocation24_spill] sm:$0xff] }
 0x5a2   : > { %2533 = vmatprep.subr.bf16.mxu0 %v6712_v16  ;;  %2574 = vmatprep.subr.bf16.mxu1 %v6713_v25  ;;  %v6723_v16 = vld [vmem:[#allocation25_spill] sm:$0xff]  ;;  %v6724_v25 = vld [vmem:[#allocation26_spill] sm:$0xff] }
 0x5a5   : > { %2534 = vmatpush1.bf16.msra.mxu0 %v6714_v21  ;;  %2575 = vmatpush1.bf16.msra.mxu1 %v6715_v33  ;;  %v6725_v21 = vld [vmem:[#allocation27_spill] sm:$0xff]  ;;  %v6726_v33 = vld [vmem:[#allocation28_spill] sm:$0xff] }
 0x5a6   : > { %2535 = vmatprep.subr.bf16.mxu0 %v6716_v40  ;;  %2576 = vmatprep.subr.bf16.mxu1 %v6717_v47  ;;  %v6727_v40 = vld [vmem:[#allocation29_spill] sm:$0xff]  ;;  %v6728_v47 = vld [vmem:[#allocation30_spill] sm:$0xff] }
 0x5a9   : > { %2536 = vmatpush1.bf16.msra.mxu0 %v6718_v36  ;;  %2577 = vmatpush1.bf16.msra.mxu1 %v6719_v23  ;;  %v6729_v36 = vld [vmem:[#allocation31_spill] sm:$0xff]  ;;  %v6730_v23 = vld [vmem:[#allocation32_spill] sm:$0xff] }
 0x5aa   : > { %2537 = vmatprep.subr.bf16.mxu0 %v6720_v7  ;;  %2578 = vmatprep.subr.bf16.mxu1 %v6721_v24  ;;  %v6731_v7 = vld [vmem:[#allocation33_spill] sm:$0xff]  ;;  %v6732_v24 = vld [vmem:[#allocation34_spill] sm:$0xff] }
 0x5ad   : > { %2538 = vmatpush1.bf16.msra.mxu0 %v6722_v45  ;;  %2579 = vmatpush1.bf16.msra.mxu1 %v6723_v16  ;;  %v6733_v45 = vld [vmem:[#allocation35_spill] sm:$0xff]  ;;  %v6734_v16 = vld [vmem:[#allocation36_spill] sm:$0xff] }
 0x5ae   : > { %2539 = vmatprep.subr.bf16.mxu0 %v6724_v25  ;;  %2580 = vmatprep.subr.bf16.mxu1 %v6725_v21  ;;  %v6735_v25 = vld [vmem:[#allocation37_spill] sm:$0xff]  ;;  %v6736_v21 = vld [vmem:[#allocation38_spill] sm:$0xff] }
 0x5b1   : > { %2540 = vmatpush1.bf16.msra.mxu0 %v6726_v33  ;;  %2581 = vmatpush1.bf16.msra.mxu1 %v6727_v40  ;;  %v6737_v33 = vld [vmem:[#allocation39_spill] sm:$0xff]  ;;  %v6738_v40 = vld [vmem:[#allocation40_spill] sm:$0xff] }
 0x5b2   : > { %2541 = vmatprep.subr.bf16.mxu0 %v6728_v47  ;;  %2582 = vmatprep.subr.bf16.mxu1 %v6729_v36  ;;  %v6739_v47 = vld [vmem:[#allocation41_spill] sm:$0xff]  ;;  %v6740_v36 = vld [vmem:[#allocation42_spill] sm:$0xff] }
 0x5b5   : > { %2542 = vmatpush1.bf16.msra.mxu0 %v6730_v23  ;;  %2583 = vmatpush1.bf16.msra.mxu1 %v6731_v7  ;;  %v6741_v23 = vld [vmem:[#allocation43_spill] sm:$0xff]  ;;  %v6742_v7 = vld [vmem:[#allocation44_spill] sm:$0xff] }
 0x5b6   : > { %2543 = vmatprep.subr.bf16.mxu0 %v6732_v24  ;;  %2584 = vmatprep.subr.bf16.mxu1 %v6733_v45  ;;  %v6743_v24 = vld [vmem:[#allocation45_spill] sm:$0xff]  ;;  %v6744_v45 = vld [vmem:[#allocation46_spill] sm:$0xff] }
 0x5b9   : > { %2544 = vmatpush1.bf16.msra.mxu0 %v6734_v16  ;;  %2585 = vmatpush1.bf16.msra.mxu1 %v6735_v25  ;;  %v6745_v16 = vld [vmem:[#allocation47_spill] sm:$0xff]  ;;  %v6746_v25 = vld [vmem:[#allocation48_spill] sm:$0xff] }
 0x5ba   : > { %2545 = vmatprep.subr.bf16.mxu0 %v6736_v21  ;;  %2586 = vmatprep.subr.bf16.mxu1 %v6737_v33  ;;  %v6747_v21 = vld [vmem:[#allocation49_spill] sm:$0xff]  ;;  %v6748_v33 = vld [vmem:[#allocation50_spill] sm:$0xff] }
 0x5bd   : > { %2546 = vmatpush1.bf16.msra.mxu0 %v6738_v40  ;;  %2587 = vmatpush1.bf16.msra.mxu1 %v6739_v47  ;;  %v6749_v40 = vld [vmem:[#allocation51_spill] sm:$0xff]  ;;  %v6750_v47 = vld [vmem:[#allocation52_spill] sm:$0xff] }
 0x5be   : > { %2547 = vmatprep.subr.bf16.mxu0 %v6740_v36  ;;  %2588 = vmatprep.subr.bf16.mxu1 %v6741_v23  ;;  %v6751_v36 = vld [vmem:[#allocation53_spill] sm:$0xff]  ;;  %v6752_v23 = vld [vmem:[#allocation54_spill] sm:$0xff] }
 0x5c1   : > { %2548 = vmatpush1.bf16.msra.mxu0 %v6742_v7  ;;  %2589 = vmatpush1.bf16.msra.mxu1 %v6743_v24  ;;  %v6753_v7 = vld [vmem:[#allocation55_spill] sm:$0xff]  ;;  %v6754_v24 = vld [vmem:[#allocation56_spill] sm:$0xff] }
 0x5c2   : > { %2549 = vmatprep.subr.bf16.mxu0 %v6744_v45  ;;  %2590 = vmatprep.subr.bf16.mxu1 %v6745_v16  ;;  %v6755_v45 = vld [vmem:[#allocation57_spill] sm:$0xff]  ;;  %v6756_v16 = vld [vmem:[#allocation58_spill] sm:$0xff] }
 0x5c5   : > { %2550 = vmatpush1.bf16.msra.mxu0 %v6746_v25  ;;  %2591 = vmatpush1.bf16.msra.mxu1 %v6747_v21  ;;  %v6757_v25 = vld [vmem:[#allocation59_spill] sm:$0xff]  ;;  %v6758_v21 = vld [vmem:[#allocation60_spill] sm:$0xff] }
 0x5c6   : > { %2551 = vmatprep.subr.bf16.mxu0 %v6748_v33  ;;  %2592 = vmatprep.subr.bf16.mxu1 %v6749_v40  ;;  %v6759_v33 = vld [vmem:[#allocation61_spill] sm:$0xff]  ;;  %v6760_v40 = vld [vmem:[#allocation62_spill] sm:$0xff] }
 0x5c9   : > { %2552 = vmatpush1.bf16.msra.mxu0 %v6750_v47  ;;  %2593 = vmatpush1.bf16.msra.mxu1 %v6751_v36  ;;  %v6761_v47 = vld [vmem:[#allocation63_spill] sm:$0xff]  ;;  %v6762_v36 = vld [vmem:[#allocation64_spill] sm:$0xff] }
 0x5ca   : > { %2553 = vmatprep.subr.bf16.mxu0 %v6752_v23  ;;  %2594 = vmatprep.subr.bf16.mxu1 %v6753_v7  ;;  %v6763_v23 = vld [vmem:[#allocation65_spill] sm:$0xff] }
 0x5cd   : > { %2554 = vmatpush1.bf16.msra.mxu0 %v6754_v24  ;;  %2595 = vmatpush1.bf16.msra.mxu1 %v6755_v45  ;;  %v6764_v24 = vld [vmem:[#allocation66_spill] sm:$0xff]  ;;  %v6765_v45 = vld [vmem:[#allocation67_spill] sm:$0xff] }
 0x5ce   : > { %2555 = vmatprep.subr.bf16.mxu0 %v6756_v16  ;;  %2596 = vmatprep.subr.bf16.mxu1 %v6757_v25  ;;  %v6766_v25 = vld [vmem:[#allocation68_spill] sm:$0xff] }
 0x5d1   : > { %2556 = vmatpush1.bf16.msra.mxu0 %v6758_v21  ;;  %2597 = vmatpush1.bf16.msra.mxu1 %v6759_v33  ;;  %v6767_v21 = vld [vmem:[#allocation69_spill] sm:$0xff]  ;;  %v6768_v33 = vld [vmem:[#allocation70_spill] sm:$0xff] }
 0x5d2   : > { %2557 = vmatprep.subr.bf16.mxu0 %v6760_v40  ;;  %2598 = vmatprep.subr.bf16.mxu1 %v6761_v47  ;;  %v6769_v40 = vld [vmem:[#allocation71_spill] sm:$0xff] }
 0x5d5   : > { %2558 = vmatpush1.bf16.msra.mxu0 %v6762_v36  ;;  %2599 = vmatpush1.bf16.msra.mxu1 %v6763_v23 }
 0x5d6   : > { %2559 = vmatprep.subr.bf16.mxu0 %v6764_v24  ;;  %2600 = vmatprep.subr.bf16.mxu1 %v6765_v45  ;;  %v2261_v45 = vld [vmem:[%s2260_s21] sm:$0xff] }
 0x5d7   : > { %v2265_v24 = vunpack.c.l.bf16 %v2261_v45  ;;  %v2266_v1 = vunpack.c.h.bf16 %v2261_v45 }
 0x5d9   : > { %2560 = vmatpush1.bf16.msra.mxu0 %v6766_v25  ;;  %2601 = vmatpush1.bf16.msra.mxu1 %v6767_v21  ;;  %v2262_v25 = vld [vmem:[%s2260_s21 + $0x8] sm:$0xff] }
 0x5da   : > { %2611 = vmatprep.subr.bf16.mxu0 %v6768_v33  ;;  %2652 = vmatprep.subr.bf16.mxu1 %v6769_v40  ;;  %v2267_v21 = vunpack.c.l.bf16 %v2262_v25  ;;  %v2268_v33 = vunpack.c.h.bf16 %v2262_v25 }
 0x62f   : > { %v2311_v47 = vpop.f32.mrb[32].mxu0  ;;  %v2352_v16 = vpop.f32.mrb[32].mxu1 }
 0x630   : > { %v2313_v36 = vpop.f32.mrb[33].mxu0  ;;  %v2354_v7 = vpop.f32.mrb[33].mxu1  ;;  %v2441_v27 = vadd.f32 %v2311_v47, %v2265_v24  ;;  %v2443_v40 = vadd.f32 %v2352_v16, %v2267_v21  ;;  %v2269_v16 = vunpack.c.l.bf16 %v2263_v57 }
 0x631   : > { %v2315_v9 = vpop.f32.mrb[34].mxu0  ;;  %v2356_v23 = vpop.f32.mrb[34].mxu1  ;;  %v2442_v48 = vadd.f32 %v2313_v36, %v2266_v1  ;;  %v2444_v35 = vadd.f32 %v2354_v7, %v2268_v33  ;;  %v2271_v1 = vunpack.c.l.bf16 %v2264_v0  ;;  %v2272_v33 = vunpack.c.h.bf16 %v2264_v0 }
 0x632   : > { %v2316_v34 = vpop.f32.mrb[35].mxu0  ;;  %v2357_v37 = vpop.f32.mrb[35].mxu1  ;;  %v3771_v26 = vmul.f32 -1.442695, %v2441_v27  ;;  %v3773_v2 = vmul.f32 -1.442695, %v2443_v40  ;;  %v2270_v27 = vunpack.c.h.bf16 %v2263_v57 }
 0x633   : > { %v3772_v9 = vmul.f32 -1.442695, %v2442_v48  ;;  %v3774_v23 = vmul.f32 -1.442695, %v2444_v35 }
 0x634   : > { %4005 = vpow2.f32 %v3771_v26 }
 0x635   : > { %4007 = vpow2.f32 %v3773_v2 }
 0x636   : > { %4009 = vpow2.f32 %v3772_v9 }
 0x637   : > { %4011 = vpow2.f32 %v3774_v23 }
 0x63e   : > { %v4006_v37 = vpop.eup %4005 }
 0x63f   : > { %v4008_v34 = vpop.eup %4007  ;;  %v2467_v45 = vadd.f32 1.0, %v4006_v37 }
 0x640   : > { %v4010_v13 = vpop.eup %4009  ;;  %v2469_v25 = vadd.f32 1.0, %v4008_v34 }
 0x641   : > { %v4012_v6 = vpop.eup %4011  ;;  %v2468_v47 = vadd.f32 1.0, %v4010_v13  ;;  %4013 = vrcp.f32 %v2467_v45 }
 0x642   : > { %v2470_v21 = vadd.f32 1.0, %v4012_v6  ;;  %4015 = vrcp.f32 %v2469_v25 }
 0x643   : > { %4017 = vrcp.f32 %v2468_v47 }
 0x644   : > { %4019 = vrcp.f32 %v2470_v21 }
 0x64b   : > { %v4014_v0 = vpop.eup %4013 }
 0x64c   : > { %v4016_v34 = vpop.eup %4015 }
 0x64d   : > { %v4018_v45 = vpop.eup %4017 }
 0x64e   : > { %v4020_v25 = vpop.eup %4019 }
 0x66f   : > { %v2393_v26 = vpop.f32.mrb[36].mxu0  ;;  %v2434_v2 = vpop.f32.mrb[36].mxu1 }
 0x670   : > { %v2445_v35 = vadd.f32 %v2393_v26, %v2269_v16  ;;  %v2447_v48 = vadd.f32 %v2434_v2, %v2271_v1  ;;  %v2395_v36 = vpop.f32.mrb[37].mxu0  ;;  %v2436_v7 = vpop.f32.mrb[37].mxu1  ;;  %v2489_v1 = vmul.f32 %v4016_v34, %v5396_v19  ;;  %v6773_v34 = vld [vmem:[#allocation113_spill] sm:$0xff] }
 0x671   : > { %v2446_v24 = vadd.f32 %v2395_v36, %v2270_v27  ;;  %v2448_v40 = vadd.f32 %v2436_v7, %v2272_v33  ;;  %v2397_v9 = vpop.f32.mrb[38].mxu0  ;;  %v2438_v23 = vpop.f32.mrb[38].mxu1  ;;  %v2490_v33 = vmul.f32 %v4020_v25, %v5398_v50  ;;  %v6775_v25 = vld [vmem:[#allocation115_spill] sm:$0xff] }
 0x672   : > { %v3775_v13 = vmul.f32 -1.442695, %v2445_v35  ;;  %4021 = vtanh.f32 %v2447_v48  ;;  %v2398_v37 = vpop.f32.mrb[39].mxu0  ;;  %v2439_v6 = vpop.f32.mrb[39].mxu1 }
 0x673   : > { %v3776_v57 = vmul.f32 -1.442695, %v2446_v24  ;;  %4023 = vtanh.f32 %v2448_v40  ;;  %v6770_v6 = vld [vmem:[#allocation110_spill] sm:$0xff] }
 0x674   : > { %4025 = vpow2.f32 %v3775_v13 }
 0x675   : > { %4027 = vpow2.f32 %v3776_v57  ;;  %v6771_v57 = vld [vmem:[#allocation111_spill] sm:$0xff] }
 0x67c   : > { %v4022_v47 = vpop.eup %4021 }
 0x67d   : > { %v4024_v16 = vpop.eup %4023  ;;  %v2491_v21 = vmul.f32 %v4022_v47, %v4014_v0  ;;  %v6772_v0 = vld [vmem:[#allocation112_spill] sm:$0xff] }
 0x67e   : > { %v4026_v27 = vpop.eup %4025  ;;  %v2492_v26 = vmul.f32 %v4024_v16, %v4018_v45  ;;  %v6774_v45 = vld [vmem:[#allocation114_spill] sm:$0xff]  ;;  %v6776_v47 = vld [vmem:[#allocation116_spill] sm:$0xff]  ;;  %v6777_v16 = vld [vmem:[#allocation117_spill] sm:$0xff] }
 0x67f   : > { %v4028_v2 = vpop.eup %4027  ;;  %v2471_v35 = vadd.f32 1.0, %v4026_v27  ;;  %v5546_v48 = vadd.f32 %v2491_v21, %v2489_v1  ;;  %v6778_v1 = vld [vmem:[#allocation118_spill] sm:$0xff]  ;;  %v6779_v21 = vld [vmem:[#allocation119_spill] sm:$0xff]  ;;  %v6780_v27 = vld [vmem:[#allocation120_spill] sm:$0xff] }
 0x680   : > { %v2472_v36 = vadd.f32 1.0, %v4028_v2  ;;  %v5548_v7 = vadd.f32 %v2492_v26, %v2490_v33  ;;  %v6781_v33 = vld [vmem:[#allocation121_spill] sm:$0xff]  ;;  %v6782_v26 = vld [vmem:[#allocation122_spill] sm:$0xff]  ;;  %v6783_v2 = vld [vmem:[#allocation123_spill] sm:$0xff] }
 0x681   : > { %4029 = vrcp.f32 %v2471_v35  ;;  %v6784_v35 = vld [vmem:[#allocation124_spill] sm:$0xff] }
 0x682   : > { %4031 = vtanh.f32 %v5546_v48 }
 0x683   : > { %4033 = vrcp.f32 %v2472_v36  ;;  %v6785_v36 = vld [vmem:[#allocation125_spill] sm:$0xff] }
 0x684   : > { %4035 = vtanh.f32 %v5548_v7 }
 0x68b   : > { %v4030_v19 = vpop.eup %4029 }
 0x68c   : > { %v4032_v24 = vpop.eup %4031 }
 0x68d   : > { %v4034_v50 = vpop.eup %4033  ;;  %v2497_v40 = vmul.f32 %v4032_v24, %v4030_v19  ;;  %v6786_v19 = vld [vmem:[#allocation126_spill] sm:$0xff]  ;;  %v6787_v24 = vld [vmem:[#allocation127_spill] sm:$0xff] }
 0x68e   : > { %v4036_v9 = vpop.eup %4035 }
 0x68f   : > { %v2498_v23 = vmul.f32 %v4036_v9, %v4034_v50  ;;  %2506 = vst [vmem:[%s2505_s28] sm:$0xff] %v2497_v40  ;;  %v5555_v37 = vpack.c.bf16 %v2497_v40, %v2497_v40  ;;  %v6788_v50 = vld [vmem:[#allocation128_spill] sm:$0xff]  ;;  %v6789_v40 = vld [vmem:[#allocation129_spill] sm:$0xff]  ;;  %v6790_v9 = vld [vmem:[#allocation130_spill] sm:$0xff] }
 0x691   : > { %2507 = vst [vmem:[%s2505_s28 + $0x8] sm:$0xff] %v2498_v23  ;;  %v2528_v13 = vpack.c.bf16 %v2498_v23, %v2498_v23  ;;  %v6791_v23 = vld [vmem:[#allocation131_spill] sm:$0xff]  ;;  %s3818_s28 = smul.u32 4294967184, %s4163_s23 }
 0x693   : > { %2561 = vmatprep.mubr.bf16.mxu0 %v2528_v13  ;;  %2602 = vmatprep.mubr.bf16.mxu1 %v2528_v13 }
 0x694   : > { %2562 = vmatmul.mubr.bf16.vlgmr.msra.gmra.mrb[40].mxu0 %v5555_v37  ;;  %2603 = vmatmul.mubr.bf16.vlgmr.msra.gmra.mrb[40].mxu1 %v5555_v37 }
 0x695   : > { %2612 = vmatpush1.bf16.msra.mxu0 %v6411_v55  ;;  %2653 = vmatpush1.bf16.msra.mxu1 %v6412_v15 }
 0x696   : > { %2643 = vmatprep.mubr.bf16.mxu0 %v2528_v13  ;;  %2684 = vmatprep.mubr.bf16.mxu1 %v2528_v13  ;;  %v6792_v13 = vld [vmem:[#allocation132_spill] sm:$0xff] }
 0x697   : > { %2613 = vmatprep.subr.bf16.mxu0 %v6413_v54  ;;  %2654 = vmatprep.subr.bf16.mxu1 %v6414_v44 }
 0x699   : > { %2614 = vmatpush1.bf16.msra.mxu0 %v6415_v63  ;;  %2655 = vmatpush1.bf16.msra.mxu1 %v6416_v43 }
 0x69a   : > { %2615 = vmatprep.subr.bf16.mxu0 %v6417_v39  ;;  %2656 = vmatprep.subr.bf16.mxu1 %v6418_v38 }
 0x69d   : > { %2616 = vmatpush1.bf16.msra.mxu0 %v6419_v29  ;;  %2657 = vmatpush1.bf16.msra.mxu1 %v6420_v30 }
 0x69e   : > { %2617 = vmatprep.subr.bf16.mxu0 %v6421_v31  ;;  %2658 = vmatprep.subr.bf16.mxu1 %v6500_v41 }
 0x6a1   : > { %2618 = vmatpush1.bf16.msra.mxu0 %v6501_v3  ;;  %2659 = vmatpush1.bf16.msra.mxu1 %v6502_v42 }
 0x6a2   : > { %2619 = vmatprep.subr.bf16.mxu0 %v6503_v62  ;;  %2660 = vmatprep.subr.bf16.mxu1 %v6504_v5 }
 0x6a5   : > { %2620 = vmatpush1.bf16.msra.mxu0 %v6505_v10  ;;  %2661 = vmatpush1.bf16.msra.mxu1 %v6506_v60 }
 0x6a6   : > { %2621 = vmatprep.subr.bf16.mxu0 %v6507_v11  ;;  %2662 = vmatprep.subr.bf16.mxu1 %v6508_v59 }
 0x6a9   : > { %2622 = vmatpush1.bf16.msra.mxu0 %v6509_v4  ;;  %2663 = vmatpush1.bf16.msra.mxu1 %v6510_v58 }
 0x6aa   : > { %2623 = vmatprep.subr.bf16.mxu0 %v6511_v12  ;;  %2664 = vmatprep.subr.bf16.mxu1 %v6590_v56 }
 0x6ad   : > { %2624 = vmatpush1.bf16.msra.mxu0 %v6591_v32  ;;  %2665 = vmatpush1.bf16.msra.mxu1 %v6592_v14 }
 0x6ae   : > { %2625 = vmatprep.subr.bf16.mxu0 %v6515_v53  ;;  %2666 = vmatprep.subr.bf16.mxu1 %v6516_v8 }
 0x6b1   : > { %2626 = vmatpush1.bf16.msra.mxu0 %v6517_v18  ;;  %2667 = vmatpush1.bf16.msra.mxu1 %v6593_v17 }
 0x6b2   : > { %2627 = vmatprep.subr.bf16.mxu0 %v6519_v28  ;;  %2668 = vmatprep.subr.bf16.mxu1 %v6520_v20 }
 0x6b5   : > { %2628 = vmatpush1.bf16.msra.mxu0 %v6521_v22  ;;  %2669 = vmatpush1.bf16.msra.mxu1 %v6522_v61 }
 0x6b6   : > { %2629 = vmatprep.subr.bf16.mxu0 %v6523_v52  ;;  %2670 = vmatprep.subr.bf16.mxu1 %v6524_v51 }
 0x6b9   : > { %2630 = vmatpush1.bf16.msra.mxu0 %v6525_v46  ;;  %2671 = vmatpush1.bf16.msra.mxu1 %v6448_v49 }
 0x6ba   : > { %2631 = vmatprep.subr.bf16.mxu0 %v6770_v6  ;;  %2672 = vmatprep.subr.bf16.mxu1 %v6771_v57  ;;  %v3783_v57 = vld [vmem:[%s3456_s8 + $0xb8] sm:$0xff] }
 0x6bd   : > { %2632 = vmatpush1.bf16.msra.mxu0 %v6772_v0  ;;  %2673 = vmatpush1.bf16.msra.mxu1 %v6773_v34 }
 0x6be   : > { %2633 = vmatprep.subr.bf16.mxu0 %v6774_v45  ;;  %2674 = vmatprep.subr.bf16.mxu1 %v6775_v25 }
 0x6c1   : > { %2634 = vmatpush1.bf16.msra.mxu0 %v6776_v47  ;;  %2675 = vmatpush1.bf16.msra.mxu1 %v6777_v16 }
 0x6c2   : > { %2635 = vmatprep.subr.bf16.mxu0 %v6778_v1  ;;  %2676 = vmatprep.subr.bf16.mxu1 %v6779_v21 }
 0x6c5   : > { %2636 = vmatpush1.bf16.msra.mxu0 %v6780_v27  ;;  %2677 = vmatpush1.bf16.msra.mxu1 %v6781_v33 }
 0x6c6   : > { %2637 = vmatprep.subr.bf16.mxu0 %v6782_v26  ;;  %2678 = vmatprep.subr.bf16.mxu1 %v6783_v2  ;;  %v6793_v26 = vld [vmem:[#allocation133_spill] sm:$0xff]  ;;  %v6794_v2 = vld [vmem:[#allocation6_spill] sm:$0xff] }
 0x6c9   : > { %2638 = vmatpush1.bf16.msra.mxu0 %v6784_v35  ;;  %2679 = vmatpush1.bf16.msra.mxu1 %v6785_v36  ;;  %v6795_v35 = vld [vmem:[#allocation8_spill] sm:$0xff] }
 0x6ca   : > { %2639 = vmatprep.subr.bf16.mxu0 %v6786_v19  ;;  %2680 = vmatprep.subr.bf16.mxu1 %v6787_v24  ;;  %v6796_v24 = vld [vmem:[#allocation7_spill] sm:$0xff]  ;;  %v6805_v19 = vld [vmem:[#allocation17_spill] sm:$0xff] }
 0x6cd   : > { %2640 = vmatpush1.bf16.msra.mxu0 %v6788_v50  ;;  %2681 = vmatpush1.bf16.msra.mxu1 %v6789_v40  ;;  %v6797_v50 = vld [vmem:[#allocation9_spill] sm:$0xff]  ;;  %v6798_v40 = vld [vmem:[#allocation10_spill] sm:$0xff] }
 0x6ce   : > { %2641 = vmatprep.subr.bf16.mxu0 %v6790_v9  ;;  %2682 = vmatprep.subr.bf16.mxu1 %v6791_v23  ;;  %v6799_v9 = vld [vmem:[#allocation11_spill] sm:$0xff]  ;;  %v6800_v23 = vld [vmem:[#allocation12_spill] sm:$0xff] }
 0x6d1   : > { %2642 = vmatpush1.bf16.msra.mxu0 %v6792_v13  ;;  %2683 = vmatpush1.bf16.msra.mxu1 %v6793_v26  ;;  %v6801_v13 = vld [vmem:[#allocation13_spill] sm:$0xff]  ;;  %v6802_v26 = vld [vmem:[#allocation14_spill] sm:$0xff] }
 0x6d2   : > { %2781 = vmatprep.subr.bf16.mxu0 %v6794_v2  ;;  %2822 = vmatprep.subr.bf16.mxu1 %v6795_v35  ;;  %v6803_v2 = vld [vmem:[#allocation15_spill] sm:$0xff]  ;;  %v6804_v35 = vld [vmem:[#allocation16_spill] sm:$0xff] }
 0x6d4   : > { %2644 = vmatmul.mubr.bf16.vlgmr.msra.gmra.mrb[44].mxu0 %v5555_v37  ;;  %2685 = vmatmul.mubr.bf16.vlgmr.msra.gmra.mrb[44].mxu1 %v5555_v37  ;;  %v6806_v37 = vld [vmem:[#allocation18_spill] sm:$0xff] }
 0x6d5   : > { %2782 = vmatpush1.bf16.msra.mxu0 %v6796_v24  ;;  %2823 = vmatpush1.bf16.msra.mxu1 %v6797_v50  ;;  %v6807_v24 = vld [vmem:[#allocation19_spill] sm:$0xff]  ;;  %v6808_v50 = vld [vmem:[#allocation20_spill] sm:$0xff] }
 0x6d6   : > { %2783 = vmatprep.subr.bf16.mxu0 %v6798_v40  ;;  %2824 = vmatprep.subr.bf16.mxu1 %v6799_v9  ;;  %v6809_v40 = vld [vmem:[#allocation21_spill] sm:$0xff]  ;;  %v6810_v9 = vld [vmem:[#allocation22_spill] sm:$0xff] }
 0x6d9   : > { %2784 = vmatpush1.bf16.msra.mxu0 %v6800_v23  ;;  %2825 = vmatpush1.bf16.msra.mxu1 %v6801_v13  ;;  %v6811_v23 = vld [vmem:[#allocation23_spill] sm:$0xff]  ;;  %v6812_v13 = vld [vmem:[#allocation24_spill] sm:$0xff] }
 0x6da   : > { %2785 = vmatprep.subr.bf16.mxu0 %v6802_v26  ;;  %2826 = vmatprep.subr.bf16.mxu1 %v6803_v2  ;;  %v6813_v26 = vld [vmem:[#allocation25_spill] sm:$0xff]  ;;  %v6814_v2 = vld [vmem:[#allocation26_spill] sm:$0xff] }
 0x6dd   : > { %2786 = vmatpush1.bf16.msra.mxu0 %v6804_v35  ;;  %2827 = vmatpush1.bf16.msra.mxu1 %v6805_v19  ;;  %v6815_v35 = vld [vmem:[#allocation27_spill] sm:$0xff]  ;;  %v6816_v19 = vld [vmem:[#allocation28_spill] sm:$0xff] }
 0x6de   : > { %2787 = vmatprep.subr.bf16.mxu0 %v6806_v37  ;;  %2828 = vmatprep.subr.bf16.mxu1 %v6807_v24  ;;  %v6817_v37 = vld [vmem:[#allocation29_spill] sm:$0xff]  ;;  %v6818_v24 = vld [vmem:[#allocation30_spill] sm:$0xff] }
 0x6e1   : > { %2788 = vmatpush1.bf16.msra.mxu0 %v6808_v50  ;;  %2829 = vmatpush1.bf16.msra.mxu1 %v6809_v40  ;;  %v6819_v50 = vld [vmem:[#allocation31_spill] sm:$0xff]  ;;  %v6820_v40 = vld [vmem:[#allocation32_spill] sm:$0xff] }
 0x6e2   : > { %2789 = vmatprep.subr.bf16.mxu0 %v6810_v9  ;;  %2830 = vmatprep.subr.bf16.mxu1 %v6811_v23  ;;  %v6821_v9 = vld [vmem:[#allocation33_spill] sm:$0xff]  ;;  %v6822_v23 = vld [vmem:[#allocation34_spill] sm:$0xff] }
 0x6e5   : > { %2790 = vmatpush1.bf16.msra.mxu0 %v6812_v13  ;;  %2831 = vmatpush1.bf16.msra.mxu1 %v6813_v26  ;;  %v6823_v13 = vld [vmem:[#allocation35_spill] sm:$0xff]  ;;  %v6824_v26 = vld [vmem:[#allocation36_spill] sm:$0xff] }
 0x6e6   : > { %2791 = vmatprep.subr.bf16.mxu0 %v6814_v2  ;;  %2832 = vmatprep.subr.bf16.mxu1 %v6815_v35  ;;  %v6825_v2 = vld [vmem:[#allocation37_spill] sm:$0xff]  ;;  %v6826_v35 = vld [vmem:[#allocation38_spill] sm:$0xff] }
 0x6e9   : > { %2792 = vmatpush1.bf16.msra.mxu0 %v6816_v19  ;;  %2833 = vmatpush1.bf16.msra.mxu1 %v6817_v37  ;;  %v6827_v19 = vld [vmem:[#allocation39_spill] sm:$0xff]  ;;  %v6828_v37 = vld [vmem:[#allocation40_spill] sm:$0xff] }
 0x6ea   : > { %2793 = vmatprep.subr.bf16.mxu0 %v6818_v24  ;;  %2834 = vmatprep.subr.bf16.mxu1 %v6819_v50  ;;  %v6829_v24 = vld [vmem:[#allocation41_spill] sm:$0xff]  ;;  %v6830_v50 = vld [vmem:[#allocation42_spill] sm:$0xff] }
 0x6ed   : > { %2794 = vmatpush1.bf16.msra.mxu0 %v6820_v40  ;;  %2835 = vmatpush1.bf16.msra.mxu1 %v6821_v9  ;;  %v6831_v40 = vld [vmem:[#allocation43_spill] sm:$0xff]  ;;  %v6832_v9 = vld [vmem:[#allocation44_spill] sm:$0xff] }
 0x6ee   : > { %2795 = vmatprep.subr.bf16.mxu0 %v6822_v23  ;;  %2836 = vmatprep.subr.bf16.mxu1 %v6823_v13  ;;  %v6833_v23 = vld [vmem:[#allocation45_spill] sm:$0xff]  ;;  %v6834_v13 = vld [vmem:[#allocation46_spill] sm:$0xff] }
 0x6f1   : > { %2796 = vmatpush1.bf16.msra.mxu0 %v6824_v26  ;;  %2837 = vmatpush1.bf16.msra.mxu1 %v6825_v2  ;;  %v6835_v26 = vld [vmem:[#allocation47_spill] sm:$0xff]  ;;  %v6836_v2 = vld [vmem:[#allocation48_spill] sm:$0xff] }
 0x6f2   : > { %2797 = vmatprep.subr.bf16.mxu0 %v6826_v35  ;;  %2838 = vmatprep.subr.bf16.mxu1 %v6827_v19  ;;  %v6837_v35 = vld [vmem:[#allocation49_spill] sm:$0xff]  ;;  %v6838_v19 = vld [vmem:[#allocation50_spill] sm:$0xff] }
 0x6f5   : > { %2798 = vmatpush1.bf16.msra.mxu0 %v6828_v37  ;;  %2839 = vmatpush1.bf16.msra.mxu1 %v6829_v24  ;;  %v6839_v37 = vld [vmem:[#allocation51_spill] sm:$0xff]  ;;  %v6840_v24 = vld [vmem:[#allocation52_spill] sm:$0xff] }
 0x6f6   : > { %2799 = vmatprep.subr.bf16.mxu0 %v6830_v50  ;;  %2840 = vmatprep.subr.bf16.mxu1 %v6831_v40  ;;  %v6841_v50 = vld [vmem:[#allocation53_spill] sm:$0xff]  ;;  %v6842_v40 = vld [vmem:[#allocation54_spill] sm:$0xff] }
 0x6f9   : > { %2800 = vmatpush1.bf16.msra.mxu0 %v6832_v9  ;;  %2841 = vmatpush1.bf16.msra.mxu1 %v6833_v23  ;;  %v6843_v9 = vld [vmem:[#allocation55_spill] sm:$0xff]  ;;  %v6844_v23 = vld [vmem:[#allocation56_spill] sm:$0xff] }
 0x6fa   : > { %2801 = vmatprep.subr.bf16.mxu0 %v6834_v13  ;;  %2842 = vmatprep.subr.bf16.mxu1 %v6835_v26  ;;  %v6845_v13 = vld [vmem:[#allocation57_spill] sm:$0xff]  ;;  %v6846_v26 = vld [vmem:[#allocation58_spill] sm:$0xff] }
 0x6fd   : > { %2802 = vmatpush1.bf16.msra.mxu0 %v6836_v2  ;;  %2843 = vmatpush1.bf16.msra.mxu1 %v6837_v35  ;;  %v6847_v2 = vld [vmem:[#allocation59_spill] sm:$0xff]  ;;  %v6848_v35 = vld [vmem:[#allocation60_spill] sm:$0xff] }
 0x6fe   : > { %2803 = vmatprep.subr.bf16.mxu0 %v6838_v19  ;;  %2844 = vmatprep.subr.bf16.mxu1 %v6839_v37  ;;  %v6849_v19 = vld [vmem:[#allocation61_spill] sm:$0xff]  ;;  %v6850_v37 = vld [vmem:[#allocation62_spill] sm:$0xff] }
 0x701   : > { %2804 = vmatpush1.bf16.msra.mxu0 %v6840_v24  ;;  %2845 = vmatpush1.bf16.msra.mxu1 %v6841_v50  ;;  %v6851_v24 = vld [vmem:[#allocation63_spill] sm:$0xff]  ;;  %v6852_v50 = vld [vmem:[#allocation64_spill] sm:$0xff] }
 0x702   : > { %2805 = vmatprep.subr.bf16.mxu0 %v6842_v40  ;;  %2846 = vmatprep.subr.bf16.mxu1 %v6843_v9  ;;  %v6853_v40 = vld [vmem:[#allocation65_spill] sm:$0xff] }
 0x705   : > { %2806 = vmatpush1.bf16.msra.mxu0 %v6844_v23  ;;  %2847 = vmatpush1.bf16.msra.mxu1 %v6845_v13  ;;  %v6854_v23 = vld [vmem:[#allocation66_spill] sm:$0xff]  ;;  %v6855_v13 = vld [vmem:[#allocation67_spill] sm:$0xff] }
 0x706   : > { %2807 = vmatprep.subr.bf16.mxu0 %v6846_v26  ;;  %2848 = vmatprep.subr.bf16.mxu1 %v6847_v2  ;;  %v6856_v26 = vld [vmem:[#allocation68_spill] sm:$0xff]  ;;  %v6857_v2 = vld [vmem:[#allocation69_spill] sm:$0xff] }
 0x709   : > { %2808 = vmatpush1.bf16.msra.mxu0 %v6848_v35  ;;  %2849 = vmatpush1.bf16.msra.mxu1 %v6849_v19  ;;  %v6858_v35 = vld [vmem:[#allocation70_spill] sm:$0xff]  ;;  %v6859_v19 = vld [vmem:[#allocation71_spill] sm:$0xff] }
 0x70a   : > { %2809 = vmatprep.subr.bf16.mxu0 %v6850_v37  ;;  %2850 = vmatprep.subr.bf16.mxu1 %v6851_v24 }
 0x70d   : > { %2810 = vmatpush1.bf16.msra.mxu0 %v6852_v50  ;;  %2851 = vmatpush1.bf16.msra.mxu1 %v6853_v40 }
 0x70e   : > { %2811 = vmatprep.subr.bf16.mxu0 %v6854_v23  ;;  %2852 = vmatprep.subr.bf16.mxu1 %v6855_v13  ;;  %v3780_v23 = vld [vmem:[%s3456_s8 + $0xa0] sm:$0xff]  ;;  %v3781_v13 = vld [vmem:[%s3456_s8 + $0xa8] sm:$0xff] }
 0x70f   : > { %v2517_v21 = vunpack.c.l.bf16 %v3780_v23  ;;  %v2518_v1 = vunpack.c.h.bf16 %v3780_v23 }
 0x711   : > { %2812 = vmatpush1.bf16.msra.mxu0 %v6856_v26  ;;  %2853 = vmatpush1.bf16.msra.mxu1 %v6857_v2  ;;  %v2519_v26 = vunpack.c.l.bf16 %v3781_v13  ;;  %v2520_v2 = vunpack.c.h.bf16 %v3781_v13 }
 0x712   : > { %2863 = vmatprep.subr.bf16.mxu0 %v6858_v35  ;;  %2904 = vmatprep.subr.bf16.mxu1 %v6859_v19 }
 0x767   : > { %v2563_v37 = vpop.f32.mrb[40].mxu0  ;;  %v2604_v24 = vpop.f32.mrb[40].mxu1 }
 0x768   : > { %v2565_v9 = vpop.f32.mrb[41].mxu0  ;;  %v2606_v50 = vpop.f32.mrb[41].mxu1  ;;  %v2693_v16 = vadd.f32 %v2563_v37, %v2517_v21  ;;  %v2695_v35 = vadd.f32 %v2604_v24, %v2519_v26 }
 0x769   : > { %v2567_v36 = vpop.f32.mrb[42].mxu0  ;;  %v2608_v33 = vpop.f32.mrb[42].mxu1  ;;  %v2694_v47 = vadd.f32 %v2565_v9, %v2518_v1  ;;  %v2696_v19 = vadd.f32 %v2606_v50, %v2520_v2  ;;  %v2523_v1 = vunpack.c.l.bf16 %v3783_v57 }
 0x76a   : > { %v2568_v40 = vpop.f32.mrb[43].mxu0  ;;  %v2609_v27 = vpop.f32.mrb[43].mxu1  ;;  %v3784_v25 = vmul.f32 -1.442695, %v2693_v16  ;;  %v3786_v45 = vmul.f32 -1.442695, %v2695_v35  ;;  %v2524_v35 = vunpack.c.h.bf16 %v3783_v57 }
 0x76b   : > { %v3785_v34 = vmul.f32 -1.442695, %v2694_v47  ;;  %v3787_v0 = vmul.f32 -1.442695, %v2696_v19  ;;  %v3782_v40 = vld [vmem:[%s3456_s8 + $0xb0] sm:$0xff] }
 0x76c   : > { %4037 = vpow2.f32 %v3784_v25  ;;  %v2521_v26 = vunpack.c.l.bf16 %v3782_v40  ;;  %v2522_v16 = vunpack.c.h.bf16 %v3782_v40 }
 0x76d   : > { %4039 = vpow2.f32 %v3786_v45 }
 0x76e   : > { %4041 = vpow2.f32 %v3785_v34 }
 0x76f   : > { %4043 = vpow2.f32 %v3787_v0 }
 0x776   : > { %v4038_v27 = vpop.eup %4037 }
 0x777   : > { %v4040_v33 = vpop.eup %4039  ;;  %v2719_v23 = vadd.f32 1.0, %v4038_v27 }
 0x778   : > { %v4042_v36 = vpop.eup %4041  ;;  %v2721_v13 = vadd.f32 1.0, %v4040_v33 }
 0x779   : > { %v4044_v6 = vpop.eup %4043  ;;  %v2720_v21 = vadd.f32 1.0, %v4042_v36  ;;  %4045 = vrcp.f32 %v2719_v23 }
 0x77a   : > { %v2722_v2 = vadd.f32 1.0, %v4044_v6  ;;  %4047 = vrcp.f32 %v2721_v13 }
 0x77b   : > { %4049 = vrcp.f32 %v2720_v21 }
 0x77c   : > { %4051 = vrcp.f32 %v2722_v2 }
 0x783   : > { %v4046_v57 = vpop.eup %4045 }
 0x784   : > { %v4048_v40 = vpop.eup %4047 }
 0x785   : > { %v4050_v23 = vpop.eup %4049 }
 0x786   : > { %v4052_v13 = vpop.eup %4051 }
 0x7a7   : > { %v2645_v25 = vpop.f32.mrb[44].mxu0  ;;  %v2686_v45 = vpop.f32.mrb[44].mxu1 }
 0x7a8   : > { %v2697_v0 = vadd.f32 %v2645_v25, %v2521_v26  ;;  %v2699_v34 = vadd.f32 %v2686_v45, %v2523_v1  ;;  %v2647_v47 = vpop.f32.mrb[45].mxu0  ;;  %v2688_v19 = vpop.f32.mrb[45].mxu1  ;;  %v2741_v1 = vmul.f32 %v4048_v40, %v5546_v48  ;;  %v6863_v40 = vld [vmem:[#allocation113_spill] sm:$0xff] }
 0x7a9   : > { %v2698_v24 = vadd.f32 %v2647_v47, %v2522_v16  ;;  %v2700_v50 = vadd.f32 %v2688_v19, %v2524_v35  ;;  %v2649_v9 = vpop.f32.mrb[46].mxu0  ;;  %v2690_v37 = vpop.f32.mrb[46].mxu1  ;;  %v2742_v35 = vmul.f32 %v4052_v13, %v5548_v7  ;;  %v6865_v13 = vld [vmem:[#allocation115_spill] sm:$0xff] }
 0x7aa   : > { %v3788_v27 = vmul.f32 -1.442695, %v2697_v0  ;;  %4053 = vtanh.f32 %v2699_v34  ;;  %v2650_v33 = vpop.f32.mrb[47].mxu0  ;;  %v2691_v6 = vpop.f32.mrb[47].mxu1 }
 0x7ab   : > { %v3789_v36 = vmul.f32 -1.442695, %v2698_v24  ;;  %4055 = vtanh.f32 %v2700_v50  ;;  %v6860_v6 = vld [vmem:[#allocation110_spill] sm:$0xff] }
 0x7ac   : > { %4057 = vpow2.f32 %v3788_v27 }
 0x7ad   : > { %4059 = vpow2.f32 %v3789_v36  ;;  %v6861_v36 = vld [vmem:[#allocation111_spill] sm:$0xff] }
 0x7b4   : > { %v4054_v21 = vpop.eup %4053 }
 0x7b5   : > { %v4056_v26 = vpop.eup %4055  ;;  %v2743_v2 = vmul.f32 %v4054_v21, %v4046_v57  ;;  %v6862_v57 = vld [vmem:[#allocation112_spill] sm:$0xff] }
 0x7b6   : > { %v4058_v16 = vpop.eup %4057  ;;  %v2744_v25 = vmul.f32 %v4056_v26, %v4050_v23  ;;  %v6864_v23 = vld [vmem:[#allocation114_spill] sm:$0xff]  ;;  %v6866_v21 = vld [vmem:[#allocation116_spill] sm:$0xff]  ;;  %v6867_v26 = vld [vmem:[#allocation117_spill] sm:$0xff] }
 0x7b7   : > { %v4060_v45 = vpop.eup %4059  ;;  %v2723_v0 = vadd.f32 1.0, %v4058_v16  ;;  %v5693_v34 = vadd.f32 %v2743_v2, %v2741_v1  ;;  %v6868_v1 = vld [vmem:[#allocation118_spill] sm:$0xff]  ;;  %v6869_v2 = vld [vmem:[#allocation119_spill] sm:$0xff]  ;;  %v6870_v16 = vld [vmem:[#allocation120_spill] sm:$0xff] }
 0x7b8   : > { %v2724_v47 = vadd.f32 1.0, %v4060_v45  ;;  %v5695_v19 = vadd.f32 %v2744_v25, %v2742_v35  ;;  %v6871_v35 = vld [vmem:[#allocation121_spill] sm:$0xff]  ;;  %v6872_v25 = vld [vmem:[#allocation122_spill] sm:$0xff]  ;;  %v6873_v45 = vld [vmem:[#allocation123_spill] sm:$0xff] }
 0x7b9   : > { %4061 = vrcp.f32 %v2723_v0  ;;  %v6874_v0 = vld [vmem:[#allocation124_spill] sm:$0xff] }
 0x7ba   : > { %4063 = vtanh.f32 %v5693_v34 }
 0x7bb   : > { %4065 = vrcp.f32 %v2724_v47  ;;  %v6875_v47 = vld [vmem:[#allocation125_spill] sm:$0xff] }
 0x7bc   : > { %4067 = vtanh.f32 %v5695_v19 }
 0x7c3   : > { %v4062_v48 = vpop.eup %4061 }
 0x7c4   : > { %v4064_v24 = vpop.eup %4063 }
 0x7c5   : > { %v4066_v50 = vpop.eup %4065  ;;  %v2749_v7 = vmul.f32 %v4064_v24, %v4062_v48  ;;  %v6876_v48 = vld [vmem:[#allocation126_spill] sm:$0xff]  ;;  %v6877_v24 = vld [vmem:[#allocation127_spill] sm:$0xff] }
 0x7c6   : > { %v4068_v9 = vpop.eup %4067 }
 0x7c7   : > { %v2750_v37 = vmul.f32 %v4068_v9, %v4066_v50  ;;  %3791 = vst [vmem:[%s3460_s10 + $0x50] sm:$0xff] %v2749_v7  ;;  %v5701_v33 = vpack.c.bf16 %v2749_v7, %v2749_v7  ;;  %v6878_v50 = vld [vmem:[#allocation128_spill] sm:$0xff]  ;;  %v6879_v7 = vld [vmem:[#allocation129_spill] sm:$0xff]  ;;  %v6880_v9 = vld [vmem:[#allocation130_spill] sm:$0xff] }
 0x7c9   : > { %3792 = vst [vmem:[%s3460_s10 + $0x58] sm:$0xff] %v2750_v37  ;;  %v2780_v27 = vpack.c.bf16 %v2750_v37, %v2750_v37  ;;  %v6881_v37 = vld [vmem:[#allocation131_spill] sm:$0xff]  ;;  %s3476_s10 = scalar_lea.vmem %s4963_s18, %s3818_s28 [#allocation5] }
 0x7cb   : > { %2813 = vmatprep.mubr.bf16.mxu0 %v2780_v27  ;;  %2854 = vmatprep.mubr.bf16.mxu1 %v2780_v27 }
 0x7cc   : > { %2814 = vmatmul.mubr.bf16.vlgmr.msra.gmra.mrb[48].mxu0 %v5701_v33  ;;  %2855 = vmatmul.mubr.bf16.vlgmr.msra.gmra.mrb[48].mxu1 %v5701_v33 }
 0x7cd   : > { %2864 = vmatpush1.bf16.msra.mxu0 %v6411_v55  ;;  %2905 = vmatpush1.bf16.msra.mxu1 %v6412_v15 }
 0x7ce   : > { %2895 = vmatprep.mubr.bf16.mxu0 %v2780_v27  ;;  %2936 = vmatprep.mubr.bf16.mxu1 %v2780_v27  ;;  %v6882_v27 = vld [vmem:[#allocation132_spill] sm:$0xff] }
 0x7cf   : > { %2865 = vmatprep.subr.bf16.mxu0 %v6413_v54  ;;  %2906 = vmatprep.subr.bf16.mxu1 %v6414_v44 }
 0x7d1   : > { %2866 = vmatpush1.bf16.msra.mxu0 %v6415_v63  ;;  %2907 = vmatpush1.bf16.msra.mxu1 %v6416_v43 }
 0x7d2   : > { %2867 = vmatprep.subr.bf16.mxu0 %v6417_v39  ;;  %2908 = vmatprep.subr.bf16.mxu1 %v6418_v38 }
 0x7d5   : > { %2868 = vmatpush1.bf16.msra.mxu0 %v6419_v29  ;;  %2909 = vmatpush1.bf16.msra.mxu1 %v6420_v30 }
 0x7d6   : > { %2869 = vmatprep.subr.bf16.mxu0 %v6421_v31  ;;  %2910 = vmatprep.subr.bf16.mxu1 %v6500_v41 }
 0x7d9   : > { %2870 = vmatpush1.bf16.msra.mxu0 %v6501_v3  ;;  %2911 = vmatpush1.bf16.msra.mxu1 %v6502_v42 }
 0x7da   : > { %2871 = vmatprep.subr.bf16.mxu0 %v6503_v62  ;;  %2912 = vmatprep.subr.bf16.mxu1 %v6504_v5 }
 0x7dd   : > { %2872 = vmatpush1.bf16.msra.mxu0 %v6505_v10  ;;  %2913 = vmatpush1.bf16.msra.mxu1 %v6506_v60 }
 0x7de   : > { %2873 = vmatprep.subr.bf16.mxu0 %v6507_v11  ;;  %2914 = vmatprep.subr.bf16.mxu1 %v6508_v59 }
 0x7e1   : > { %2874 = vmatpush1.bf16.msra.mxu0 %v6509_v4  ;;  %2915 = vmatpush1.bf16.msra.mxu1 %v6510_v58 }
 0x7e2   : > { %2875 = vmatprep.subr.bf16.mxu0 %v6511_v12  ;;  %2916 = vmatprep.subr.bf16.mxu1 %v6590_v56 }
 0x7e5   : > { %2876 = vmatpush1.bf16.msra.mxu0 %v6591_v32  ;;  %2917 = vmatpush1.bf16.msra.mxu1 %v6592_v14 }
 0x7e6   : > { %2877 = vmatprep.subr.bf16.mxu0 %v6515_v53  ;;  %2918 = vmatprep.subr.bf16.mxu1 %v6516_v8 }
 0x7e9   : > { %2878 = vmatpush1.bf16.msra.mxu0 %v6517_v18  ;;  %2919 = vmatpush1.bf16.msra.mxu1 %v6593_v17 }
 0x7ea   : > { %2879 = vmatprep.subr.bf16.mxu0 %v6519_v28  ;;  %2920 = vmatprep.subr.bf16.mxu1 %v6520_v20 }
 0x7ed   : > { %2880 = vmatpush1.bf16.msra.mxu0 %v6521_v22  ;;  %2921 = vmatpush1.bf16.msra.mxu1 %v6522_v61 }
 0x7ee   : > { %2881 = vmatprep.subr.bf16.mxu0 %v6523_v52  ;;  %2922 = vmatprep.subr.bf16.mxu1 %v6524_v51 }
 0x7f1   : > { %2882 = vmatpush1.bf16.msra.mxu0 %v6525_v46  ;;  %2923 = vmatpush1.bf16.msra.mxu1 %v6448_v49 }
 0x7f2   : > { %2883 = vmatprep.subr.bf16.mxu0 %v6860_v6  ;;  %2924 = vmatprep.subr.bf16.mxu1 %v6861_v36  ;;  %v3797_v36 = vld [vmem:[%s3464_s13 + $0xd8] sm:$0xff] }
 0x7f5   : > { %2884 = vmatpush1.bf16.msra.mxu0 %v6862_v57  ;;  %2925 = vmatpush1.bf16.msra.mxu1 %v6863_v40 }
 0x7f6   : > { %2885 = vmatprep.subr.bf16.mxu0 %v6864_v23  ;;  %2926 = vmatprep.subr.bf16.mxu1 %v6865_v13 }
 0x7f9   : > { %2886 = vmatpush1.bf16.msra.mxu0 %v6866_v21  ;;  %2927 = vmatpush1.bf16.msra.mxu1 %v6867_v26 }
 0x7fa   : > { %2887 = vmatprep.subr.bf16.mxu0 %v6868_v1  ;;  %2928 = vmatprep.subr.bf16.mxu1 %v6869_v2 }
 0x7fd   : > { %2888 = vmatpush1.bf16.msra.mxu0 %v6870_v16  ;;  %2929 = vmatpush1.bf16.msra.mxu1 %v6871_v35 }
 0x7fe   : > { %2889 = vmatprep.subr.bf16.mxu0 %v6872_v25  ;;  %2930 = vmatprep.subr.bf16.mxu1 %v6873_v45  ;;  %v6883_v25 = vld [vmem:[#allocation133_spill] sm:$0xff]  ;;  %v6884_v45 = vld [vmem:[#allocation6_spill] sm:$0xff] }
 0x801   : > { %2890 = vmatpush1.bf16.msra.mxu0 %v6874_v0  ;;  %2931 = vmatpush1.bf16.msra.mxu1 %v6875_v47  ;;  %v6885_v0 = vld [vmem:[#allocation8_spill] sm:$0xff] }
 0x802   : > { %2891 = vmatprep.subr.bf16.mxu0 %v6876_v48  ;;  %2932 = vmatprep.subr.bf16.mxu1 %v6877_v24  ;;  %v6886_v24 = vld [vmem:[#allocation7_spill] sm:$0xff]  ;;  %v6895_v48 = vld [vmem:[#allocation17_spill] sm:$0xff] }
 0x805   : > { %2892 = vmatpush1.bf16.msra.mxu0 %v6878_v50  ;;  %2933 = vmatpush1.bf16.msra.mxu1 %v6879_v7  ;;  %v6887_v50 = vld [vmem:[#allocation9_spill] sm:$0xff]  ;;  %v6888_v7 = vld [vmem:[#allocation10_spill] sm:$0xff] }
 0x806   : > { %2893 = vmatprep.subr.bf16.mxu0 %v6880_v9  ;;  %2934 = vmatprep.subr.bf16.mxu1 %v6881_v37  ;;  %v6889_v9 = vld [vmem:[#allocation11_spill] sm:$0xff]  ;;  %v6890_v37 = vld [vmem:[#allocation12_spill] sm:$0xff] }
 0x809   : > { %2894 = vmatpush1.bf16.msra.mxu0 %v6882_v27  ;;  %2935 = vmatpush1.bf16.msra.mxu1 %v6883_v25  ;;  %v6891_v27 = vld [vmem:[#allocation13_spill] sm:$0xff]  ;;  %v6892_v25 = vld [vmem:[#allocation14_spill] sm:$0xff] }
 0x80a   : > { %3033 = vmatprep.subr.bf16.mxu0 %v6884_v45  ;;  %3074 = vmatprep.subr.bf16.mxu1 %v6885_v0  ;;  %v6893_v45 = vld [vmem:[#allocation15_spill] sm:$0xff]  ;;  %v6894_v0 = vld [vmem:[#allocation16_spill] sm:$0xff] }
 0x80c   : > { %2896 = vmatmul.mubr.bf16.vlgmr.msra.gmra.mrb[52].mxu0 %v5701_v33  ;;  %2937 = vmatmul.mubr.bf16.vlgmr.msra.gmra.mrb[52].mxu1 %v5701_v33  ;;  %v6896_v33 = vld [vmem:[#allocation18_spill] sm:$0xff] }
 0x80d   : > { %3034 = vmatpush1.bf16.msra.mxu0 %v6886_v24  ;;  %3075 = vmatpush1.bf16.msra.mxu1 %v6887_v50  ;;  %v6897_v24 = vld [vmem:[#allocation19_spill] sm:$0xff]  ;;  %v6898_v50 = vld [vmem:[#allocation20_spill] sm:$0xff] }
 0x80e   : > { %3035 = vmatprep.subr.bf16.mxu0 %v6888_v7  ;;  %3076 = vmatprep.subr.bf16.mxu1 %v6889_v9  ;;  %v6899_v7 = vld [vmem:[#allocation21_spill] sm:$0xff]  ;;  %v6900_v9 = vld [vmem:[#allocation22_spill] sm:$0xff] }
 0x811   : > { %3036 = vmatpush1.bf16.msra.mxu0 %v6890_v37  ;;  %3077 = vmatpush1.bf16.msra.mxu1 %v6891_v27  ;;  %v6901_v37 = vld [vmem:[#allocation23_spill] sm:$0xff]  ;;  %v6902_v27 = vld [vmem:[#allocation24_spill] sm:$0xff] }
 0x812   : > { %3037 = vmatprep.subr.bf16.mxu0 %v6892_v25  ;;  %3078 = vmatprep.subr.bf16.mxu1 %v6893_v45  ;;  %v6903_v25 = vld [vmem:[#allocation25_spill] sm:$0xff]  ;;  %v6904_v45 = vld [vmem:[#allocation26_spill] sm:$0xff] }
 0x815   : > { %3038 = vmatpush1.bf16.msra.mxu0 %v6894_v0  ;;  %3079 = vmatpush1.bf16.msra.mxu1 %v6895_v48  ;;  %v6905_v0 = vld [vmem:[#allocation27_spill] sm:$0xff]  ;;  %v6906_v48 = vld [vmem:[#allocation28_spill] sm:$0xff] }
 0x816   : > { %3039 = vmatprep.subr.bf16.mxu0 %v6896_v33  ;;  %3080 = vmatprep.subr.bf16.mxu1 %v6897_v24  ;;  %v6907_v33 = vld [vmem:[#allocation29_spill] sm:$0xff]  ;;  %v6908_v24 = vld [vmem:[#allocation30_spill] sm:$0xff] }
 0x819   : > { %3040 = vmatpush1.bf16.msra.mxu0 %v6898_v50  ;;  %3081 = vmatpush1.bf16.msra.mxu1 %v6899_v7  ;;  %v6909_v50 = vld [vmem:[#allocation31_spill] sm:$0xff]  ;;  %v6910_v7 = vld [vmem:[#allocation32_spill] sm:$0xff] }
 0x81a   : > { %3041 = vmatprep.subr.bf16.mxu0 %v6900_v9  ;;  %3082 = vmatprep.subr.bf16.mxu1 %v6901_v37  ;;  %v6911_v9 = vld [vmem:[#allocation33_spill] sm:$0xff]  ;;  %v6912_v37 = vld [vmem:[#allocation34_spill] sm:$0xff] }
 0x81d   : > { %3042 = vmatpush1.bf16.msra.mxu0 %v6902_v27  ;;  %3083 = vmatpush1.bf16.msra.mxu1 %v6903_v25  ;;  %v6913_v27 = vld [vmem:[#allocation35_spill] sm:$0xff]  ;;  %v6914_v25 = vld [vmem:[#allocation36_spill] sm:$0xff] }
 0x81e   : > { %3043 = vmatprep.subr.bf16.mxu0 %v6904_v45  ;;  %3084 = vmatprep.subr.bf16.mxu1 %v6905_v0  ;;  %v6915_v45 = vld [vmem:[#allocation37_spill] sm:$0xff]  ;;  %v6916_v0 = vld [vmem:[#allocation38_spill] sm:$0xff] }
 0x821   : > { %3044 = vmatpush1.bf16.msra.mxu0 %v6906_v48  ;;  %3085 = vmatpush1.bf16.msra.mxu1 %v6907_v33  ;;  %v6917_v48 = vld [vmem:[#allocation39_spill] sm:$0xff]  ;;  %v6918_v33 = vld [vmem:[#allocation40_spill] sm:$0xff] }
 0x822   : > { %3045 = vmatprep.subr.bf16.mxu0 %v6908_v24  ;;  %3086 = vmatprep.subr.bf16.mxu1 %v6909_v50  ;;  %v6919_v24 = vld [vmem:[#allocation41_spill] sm:$0xff]  ;;  %v6920_v50 = vld [vmem:[#allocation42_spill] sm:$0xff] }
 0x825   : > { %3046 = vmatpush1.bf16.msra.mxu0 %v6910_v7  ;;  %3087 = vmatpush1.bf16.msra.mxu1 %v6911_v9  ;;  %v6921_v7 = vld [vmem:[#allocation43_spill] sm:$0xff]  ;;  %v6922_v9 = vld [vmem:[#allocation44_spill] sm:$0xff] }
 0x826   : > { %3047 = vmatprep.subr.bf16.mxu0 %v6912_v37  ;;  %3088 = vmatprep.subr.bf16.mxu1 %v6913_v27  ;;  %v6923_v37 = vld [vmem:[#allocation45_spill] sm:$0xff]  ;;  %v6924_v27 = vld [vmem:[#allocation46_spill] sm:$0xff] }
 0x829   : > { %3048 = vmatpush1.bf16.msra.mxu0 %v6914_v25  ;;  %3089 = vmatpush1.bf16.msra.mxu1 %v6915_v45  ;;  %v6925_v25 = vld [vmem:[#allocation47_spill] sm:$0xff]  ;;  %v6926_v45 = vld [vmem:[#allocation48_spill] sm:$0xff] }
 0x82a   : > { %3049 = vmatprep.subr.bf16.mxu0 %v6916_v0  ;;  %3090 = vmatprep.subr.bf16.mxu1 %v6917_v48  ;;  %v6927_v0 = vld [vmem:[#allocation49_spill] sm:$0xff]  ;;  %v6928_v48 = vld [vmem:[#allocation50_spill] sm:$0xff] }
 0x82d   : > { %3050 = vmatpush1.bf16.msra.mxu0 %v6918_v33  ;;  %3091 = vmatpush1.bf16.msra.mxu1 %v6919_v24  ;;  %v6929_v33 = vld [vmem:[#allocation51_spill] sm:$0xff]  ;;  %v6930_v24 = vld [vmem:[#allocation52_spill] sm:$0xff] }
 0x82e   : > { %3051 = vmatprep.subr.bf16.mxu0 %v6920_v50  ;;  %3092 = vmatprep.subr.bf16.mxu1 %v6921_v7  ;;  %v6931_v50 = vld [vmem:[#allocation53_spill] sm:$0xff]  ;;  %v6932_v7 = vld [vmem:[#allocation54_spill] sm:$0xff] }
 0x831   : > { %3052 = vmatpush1.bf16.msra.mxu0 %v6922_v9  ;;  %3093 = vmatpush1.bf16.msra.mxu1 %v6923_v37  ;;  %v6933_v9 = vld [vmem:[#allocation55_spill] sm:$0xff]  ;;  %v6934_v37 = vld [vmem:[#allocation56_spill] sm:$0xff] }
 0x832   : > { %3053 = vmatprep.subr.bf16.mxu0 %v6924_v27  ;;  %3094 = vmatprep.subr.bf16.mxu1 %v6925_v25  ;;  %v6935_v27 = vld [vmem:[#allocation57_spill] sm:$0xff]  ;;  %v6936_v25 = vld [vmem:[#allocation58_spill] sm:$0xff] }
 0x835   : > { %3054 = vmatpush1.bf16.msra.mxu0 %v6926_v45  ;;  %3095 = vmatpush1.bf16.msra.mxu1 %v6927_v0  ;;  %v6937_v45 = vld [vmem:[#allocation59_spill] sm:$0xff]  ;;  %v6938_v0 = vld [vmem:[#allocation60_spill] sm:$0xff] }
 0x836   : > { %3055 = vmatprep.subr.bf16.mxu0 %v6928_v48  ;;  %3096 = vmatprep.subr.bf16.mxu1 %v6929_v33  ;;  %v6939_v48 = vld [vmem:[#allocation61_spill] sm:$0xff]  ;;  %v6940_v33 = vld [vmem:[#allocation62_spill] sm:$0xff] }
 0x839   : > { %3056 = vmatpush1.bf16.msra.mxu0 %v6930_v24  ;;  %3097 = vmatpush1.bf16.msra.mxu1 %v6931_v50  ;;  %v6941_v24 = vld [vmem:[#allocation63_spill] sm:$0xff]  ;;  %v6942_v50 = vld [vmem:[#allocation64_spill] sm:$0xff] }
 0x83a   : > { %3057 = vmatprep.subr.bf16.mxu0 %v6932_v7  ;;  %3098 = vmatprep.subr.bf16.mxu1 %v6933_v9  ;;  %v6943_v7 = vld [vmem:[#allocation65_spill] sm:$0xff]  ;;  %v6944_v9 = vld [vmem:[#allocation66_spill] sm:$0xff] }
 0x83d   : > { %3058 = vmatpush1.bf16.msra.mxu0 %v6934_v37  ;;  %3099 = vmatpush1.bf16.msra.mxu1 %v6935_v27  ;;  %v6945_v37 = vld [vmem:[#allocation67_spill] sm:$0xff]  ;;  %v6946_v27 = vld [vmem:[#allocation68_spill] sm:$0xff] }
 0x83e   : > { %3059 = vmatprep.subr.bf16.mxu0 %v6936_v25  ;;  %3100 = vmatprep.subr.bf16.mxu1 %v6937_v45  ;;  %v6947_v25 = vld [vmem:[#allocation69_spill] sm:$0xff]  ;;  %v6948_v45 = vld [vmem:[#allocation70_spill] sm:$0xff] }
 0x841   : > { %3060 = vmatpush1.bf16.msra.mxu0 %v6938_v0  ;;  %3101 = vmatpush1.bf16.msra.mxu1 %v6939_v48  ;;  %v6949_v0 = vld [vmem:[#allocation71_spill] sm:$0xff] }
 0x842   : > { %3061 = vmatprep.subr.bf16.mxu0 %v6940_v33  ;;  %3102 = vmatprep.subr.bf16.mxu1 %v6941_v24 }
 0x845   : > { %3062 = vmatpush1.bf16.msra.mxu0 %v6942_v50  ;;  %3103 = vmatpush1.bf16.msra.mxu1 %v6943_v7 }
 0x846   : > { %3063 = vmatprep.subr.bf16.mxu0 %v6944_v9  ;;  %3104 = vmatprep.subr.bf16.mxu1 %v6945_v37  ;;  %v3794_v9 = vld [vmem:[%s3464_s13 + $0xc0] sm:$0xff]  ;;  %v3795_v37 = vld [vmem:[%s3464_s13 + $0xc8] sm:$0xff] }
 0x847   : > { %v2769_v2 = vunpack.c.l.bf16 %v3794_v9  ;;  %v2770_v1 = vunpack.c.h.bf16 %v3794_v9 }
 0x849   : > { %3064 = vmatpush1.bf16.msra.mxu0 %v6946_v27  ;;  %3105 = vmatpush1.bf16.msra.mxu1 %v6947_v25  ;;  %v2771_v27 = vunpack.c.l.bf16 %v3795_v37  ;;  %v2772_v25 = vunpack.c.h.bf16 %v3795_v37 }
 0x84a   : > { %3115 = vmatprep.subr.bf16.mxu0 %v6948_v45  ;;  %3156 = vmatprep.subr.bf16.mxu1 %v6949_v0 }
 0x89f   : > { %v2815_v48 = vpop.f32.mrb[48].mxu0  ;;  %v2856_v33 = vpop.f32.mrb[48].mxu1 }
 0x8a0   : > { %v2817_v24 = vpop.f32.mrb[49].mxu0  ;;  %v2858_v50 = vpop.f32.mrb[49].mxu1  ;;  %v2945_v26 = vadd.f32 %v2815_v48, %v2769_v2  ;;  %v2947_v45 = vadd.f32 %v2856_v33, %v2771_v27 }
 0x8a1   : > { %v2819_v47 = vpop.f32.mrb[50].mxu0  ;;  %v2860_v35 = vpop.f32.mrb[50].mxu1  ;;  %v2946_v21 = vadd.f32 %v2817_v24, %v2770_v1  ;;  %v2948_v0 = vadd.f32 %v2858_v50, %v2772_v25  ;;  %v2775_v1 = vunpack.c.l.bf16 %v3797_v36  ;;  %v2776_v24 = vunpack.c.h.bf16 %v3797_v36 }
 0x8a2   : > { %v2820_v7 = vpop.f32.mrb[51].mxu0  ;;  %v2861_v16 = vpop.f32.mrb[51].mxu1  ;;  %v3798_v13 = vmul.f32 -1.442695, %v2945_v26  ;;  %v3800_v23 = vmul.f32 -1.442695, %v2947_v45 }
 0x8a3   : > { %v3799_v40 = vmul.f32 -1.442695, %v2946_v21  ;;  %v3801_v57 = vmul.f32 -1.442695, %v2948_v0  ;;  %v3796_v7 = vld [vmem:[%s3464_s13 + $0xd0] sm:$0xff] }
 0x8a4   : > { %4069 = vpow2.f32 %v3798_v13  ;;  %v2773_v48 = vunpack.c.l.bf16 %v3796_v7  ;;  %v2774_v26 = vunpack.c.h.bf16 %v3796_v7 }
 0x8a5   : > { %4071 = vpow2.f32 %v3800_v23 }
 0x8a6   : > { %4073 = vpow2.f32 %v3799_v40 }
 0x8a7   : > { %4075 = vpow2.f32 %v3801_v57 }
 0x8ae   : > { %v4070_v16 = vpop.eup %4069 }
 0x8af   : > { %v4072_v35 = vpop.eup %4071  ;;  %v2971_v9 = vadd.f32 1.0, %v4070_v16 }
 0x8b0   : > { %v4074_v47 = vpop.eup %4073  ;;  %v2973_v37 = vadd.f32 1.0, %v4072_v35 }
 0x8b1   : > { %v4076_v6 = vpop.eup %4075  ;;  %v2972_v2 = vadd.f32 1.0, %v4074_v47  ;;  %4077 = vrcp.f32 %v2971_v9 }
 0x8b2   : > { %v2974_v33 = vadd.f32 1.0, %v4076_v6  ;;  %4079 = vrcp.f32 %v2973_v37 }
 0x8b3   : > { %4081 = vrcp.f32 %v2972_v2 }
 0x8b4   : > { %4083 = vrcp.f32 %v2974_v33 }
 0x8bb   : > { %v4078_v36 = vpop.eup %4077 }
 0x8bc   : > { %v4080_v7 = vpop.eup %4079 }
 0x8bd   : > { %v4082_v9 = vpop.eup %4081 }
 0x8be   : > { %v4084_v37 = vpop.eup %4083 }
 0x8df   : > { %v2897_v13 = vpop.f32.mrb[52].mxu0  ;;  %v2938_v23 = vpop.f32.mrb[52].mxu1 }
 0x8e0   : > { %v2949_v57 = vadd.f32 %v2897_v13, %v2773_v48  ;;  %v2951_v40 = vadd.f32 %v2938_v23, %v2775_v1  ;;  %v2899_v21 = vpop.f32.mrb[53].mxu0  ;;  %v2940_v50 = vpop.f32.mrb[53].mxu1  ;;  %v2993_v1 = vmul.f32 %v4080_v7, %v5693_v34 }
 0x8e1   : > { %v2950_v27 = vadd.f32 %v2899_v21, %v2774_v26  ;;  %v2952_v25 = vadd.f32 %v2940_v50, %v2776_v24  ;;  %v2901_v45 = vpop.f32.mrb[54].mxu0  ;;  %v2942_v0 = vpop.f32.mrb[54].mxu1  ;;  %v2994_v24 = vmul.f32 %v4084_v37, %v5695_v19 }
 0x8e2   : > { %v3802_v16 = vmul.f32 -1.442695, %v2949_v57  ;;  %4085 = vtanh.f32 %v2951_v40  ;;  %v2902_v35 = vpop.f32.mrb[55].mxu0  ;;  %v2943_v6 = vpop.f32.mrb[55].mxu1 }
 0x8e3   : > { %v3803_v47 = vmul.f32 -1.442695, %v2950_v27  ;;  %4087 = vtanh.f32 %v2952_v25 }
 0x8e4   : > { %4089 = vpow2.f32 %v3802_v16 }
 0x8e5   : > { %4091 = vpow2.f32 %v3803_v47 }
 0x8ec   : > { %v4086_v2 = vpop.eup %4085 }
 0x8ed   : > { %v4088_v48 = vpop.eup %4087  ;;  %v2995_v33 = vmul.f32 %v4086_v2, %v4078_v36 }
 0x8ee   : > { %v4090_v26 = vpop.eup %4089  ;;  %v2996_v13 = vmul.f32 %v4088_v48, %v4082_v9 }
 0x8ef   : > { %v4092_v23 = vpop.eup %4091  ;;  %v2975_v57 = vadd.f32 1.0, %v4090_v26  ;;  %v5839_v40 = vadd.f32 %v2995_v33, %v2993_v1 }
 0x8f0   : > { %v2976_v21 = vadd.f32 1.0, %v4092_v23  ;;  %v5841_v50 = vadd.f32 %v2996_v13, %v2994_v24  ;;  %v3810_v24 = vld [vmem:[%s3472_s19 + $0xf0] sm:$0xff]  ;;  %v3811_v13 = vld [vmem:[%s3472_s19 + $0xf8] sm:$0xff] }
 0x8f1   : > { %4093 = vrcp.f32 %v2975_v57 }
 0x8f2   : > { %4095 = vtanh.f32 %v5839_v40 }
 0x8f3   : > { %4097 = vrcp.f32 %v2976_v21 }
 0x8f4   : > { %4099 = vtanh.f32 %v5841_v50 }
 0x8fb   : > { %v4094_v34 = vpop.eup %4093 }
 0x8fc   : > { %v4096_v27 = vpop.eup %4095 }
 0x8fd   : > { %v4098_v25 = vpop.eup %4097  ;;  %v3001_v19 = vmul.f32 %v4096_v27, %v4094_v34  ;;  %v3025_v27 = vunpack.c.l.bf16 %v3810_v24 }
 0x8fe   : > { %v4100_v45 = vpop.eup %4099 }
 0x8ff   : > { %v3002_v0 = vmul.f32 %v4100_v45, %v4098_v25  ;;  %3805 = vst [vmem:[%s3468_s16 + $0x60] sm:$0xff] %v3001_v19  ;;  %v5847_v35 = vpack.c.bf16 %v3001_v19, %v3001_v19  ;;  %v3027_v25 = vunpack.c.l.bf16 %v3811_v13  ;;  %v3026_v45 = vunpack.c.h.bf16 %v3810_v24 }
 0x901   : > { %3806 = vst [vmem:[%s3468_s16 + $0x68] sm:$0xff] %v3002_v0  ;;  %v3032_v16 = vpack.c.bf16 %v3002_v0, %v3002_v0  ;;  %v3028_v0 = vunpack.c.h.bf16 %v3811_v13 }
 0x903   : > { %3065 = vmatprep.mubr.bf16.mxu0 %v3032_v16  ;;  %3106 = vmatprep.mubr.bf16.mxu1 %v3032_v16 }
 0x904   : > { %3066 = vmatmul.mubr.bf16.vlgmr.msra.gmra.mrb[56].mxu0 %v5847_v35  ;;  %3107 = vmatmul.mubr.bf16.vlgmr.msra.gmra.mrb[56].mxu1 %v5847_v35 }
 0x905   : > { %3116 = vmatpush1.bf16.msra.mxu0 %v6411_v55  ;;  %3157 = vmatpush1.bf16.msra.mxu1 %v6412_v15  ;;  %v6950_v55 = vld [vmem:[#allocation110_spill] sm:$0xff]  ;;  %v6951_v15 = vld [vmem:[#allocation111_spill] sm:$0xff] }
 0x906   : > { %3147 = vmatprep.mubr.bf16.mxu0 %v3032_v16  ;;  %3188 = vmatprep.mubr.bf16.mxu1 %v3032_v16 }
 0x907   : > { %3117 = vmatprep.subr.bf16.mxu0 %v6413_v54  ;;  %3158 = vmatprep.subr.bf16.mxu1 %v6414_v44  ;;  %v6952_v54 = vld [vmem:[#allocation112_spill] sm:$0xff]  ;;  %v6953_v44 = vld [vmem:[#allocation113_spill] sm:$0xff] }
 0x909   : > { %3118 = vmatpush1.bf16.msra.mxu0 %v6415_v63  ;;  %3159 = vmatpush1.bf16.msra.mxu1 %v6416_v43  ;;  %v6954_v63 = vld [vmem:[#allocation114_spill] sm:$0xff]  ;;  %v6955_v43 = vld [vmem:[#allocation115_spill] sm:$0xff] }
 0x90a   : > { %3119 = vmatprep.subr.bf16.mxu0 %v6417_v39  ;;  %3160 = vmatprep.subr.bf16.mxu1 %v6418_v38  ;;  %v6956_v39 = vld [vmem:[#allocation116_spill] sm:$0xff]  ;;  %v6957_v38 = vld [vmem:[#allocation117_spill] sm:$0xff] }
 0x90d   : > { %3120 = vmatpush1.bf16.msra.mxu0 %v6419_v29  ;;  %3161 = vmatpush1.bf16.msra.mxu1 %v6420_v30  ;;  %v6958_v29 = vld [vmem:[#allocation118_spill] sm:$0xff]  ;;  %v6959_v30 = vld [vmem:[#allocation119_spill] sm:$0xff] }
 0x90e   : > { %3121 = vmatprep.subr.bf16.mxu0 %v6421_v31  ;;  %3162 = vmatprep.subr.bf16.mxu1 %v6500_v41  ;;  %v6960_v31 = vld [vmem:[#allocation120_spill] sm:$0xff]  ;;  %v6962_v41 = vld [vmem:[#allocation122_spill] sm:$0xff] }
 0x911   : > { %3122 = vmatpush1.bf16.msra.mxu0 %v6501_v3  ;;  %3163 = vmatpush1.bf16.msra.mxu1 %v6502_v42  ;;  %v6963_v3 = vld [vmem:[#allocation123_spill] sm:$0xff]  ;;  %v6964_v42 = vld [vmem:[#allocation124_spill] sm:$0xff] }
 0x912   : > { %3123 = vmatprep.subr.bf16.mxu0 %v6503_v62  ;;  %3164 = vmatprep.subr.bf16.mxu1 %v6504_v5  ;;  %v6965_v62 = vld [vmem:[#allocation125_spill] sm:$0xff]  ;;  %v6966_v5 = vld [vmem:[#allocation126_spill] sm:$0xff] }
 0x915   : > { %3124 = vmatpush1.bf16.msra.mxu0 %v6505_v10  ;;  %3165 = vmatpush1.bf16.msra.mxu1 %v6506_v60  ;;  %v6967_v10 = vld [vmem:[#allocation127_spill] sm:$0xff]  ;;  %v6968_v60 = vld [vmem:[#allocation128_spill] sm:$0xff] }
 0x916   : > { %3125 = vmatprep.subr.bf16.mxu0 %v6507_v11  ;;  %3166 = vmatprep.subr.bf16.mxu1 %v6508_v59  ;;  %v6969_v11 = vld [vmem:[#allocation129_spill] sm:$0xff]  ;;  %v6970_v59 = vld [vmem:[#allocation130_spill] sm:$0xff] }
 0x919   : > { %3126 = vmatpush1.bf16.msra.mxu0 %v6509_v4  ;;  %3167 = vmatpush1.bf16.msra.mxu1 %v6510_v58  ;;  %v6971_v4 = vld [vmem:[#allocation131_spill] sm:$0xff]  ;;  %v6972_v58 = vld [vmem:[#allocation132_spill] sm:$0xff] }
 0x91a   : > { %3127 = vmatprep.subr.bf16.mxu0 %v6511_v12  ;;  %3168 = vmatprep.subr.bf16.mxu1 %v6590_v56  ;;  %v6973_v12 = vld [vmem:[#allocation133_spill] sm:$0xff] }
 0x91d   : > { %3128 = vmatpush1.bf16.msra.mxu0 %v6591_v32  ;;  %3169 = vmatpush1.bf16.msra.mxu1 %v6592_v14 }
 0x91e   : > { %3129 = vmatprep.subr.bf16.mxu0 %v6515_v53  ;;  %3170 = vmatprep.subr.bf16.mxu1 %v6516_v8 }
 0x921   : > { %3130 = vmatpush1.bf16.msra.mxu0 %v6517_v18  ;;  %3171 = vmatpush1.bf16.msra.mxu1 %v6593_v17 }
 0x922   : > { %3131 = vmatprep.subr.bf16.mxu0 %v6519_v28  ;;  %3172 = vmatprep.subr.bf16.mxu1 %v6520_v20 }
 0x925   : > { %3132 = vmatpush1.bf16.msra.mxu0 %v6521_v22  ;;  %3173 = vmatpush1.bf16.msra.mxu1 %v6522_v61  ;;  %v3808_v22 = vld [vmem:[%s3472_s19 + $0xe0] sm:$0xff]  ;;  %v3809_v61 = vld [vmem:[%s3472_s19 + $0xe8] sm:$0xff] }
 0x926   : > { %3133 = vmatprep.subr.bf16.mxu0 %v6523_v52  ;;  %3174 = vmatprep.subr.bf16.mxu1 %v6524_v51  ;;  %v3021_v56 = vunpack.c.l.bf16 %v3808_v22  ;;  %v3023_v32 = vunpack.c.l.bf16 %v3809_v61  ;;  %v3022_v14 = vunpack.c.h.bf16 %v3808_v22  ;;  %v3024_v17 = vunpack.c.h.bf16 %v3809_v61 }
 0x929   : > { %3134 = vmatpush1.bf16.msra.mxu0 %v6525_v46  ;;  %3175 = vmatpush1.bf16.msra.mxu1 %v6448_v49  ;;  %v6961_v49 = vld [vmem:[#allocation121_spill] sm:$0xff] }
 0x92a   : > { %3135 = vmatprep.subr.bf16.mxu0 %v6950_v55  ;;  %3176 = vmatprep.subr.bf16.mxu1 %v6951_v15 }
 0x92d   : > { %3136 = vmatpush1.bf16.msra.mxu0 %v6952_v54  ;;  %3177 = vmatpush1.bf16.msra.mxu1 %v6953_v44 }
 0x92e   : > { %3137 = vmatprep.subr.bf16.mxu0 %v6954_v63  ;;  %3178 = vmatprep.subr.bf16.mxu1 %v6955_v43 }
 0x931   : > { %3138 = vmatpush1.bf16.msra.mxu0 %v6956_v39  ;;  %3179 = vmatpush1.bf16.msra.mxu1 %v6957_v38 }
 0x932   : > { %3139 = vmatprep.subr.bf16.mxu0 %v6958_v29  ;;  %3180 = vmatprep.subr.bf16.mxu1 %v6959_v30 }
 0x935   : > { %3140 = vmatpush1.bf16.msra.mxu0 %v6960_v31  ;;  %3181 = vmatpush1.bf16.msra.mxu1 %v6961_v49 }
 0x936   : > { %3141 = vmatprep.subr.bf16.mxu0 %v6962_v41  ;;  %3182 = vmatprep.subr.bf16.mxu1 %v6963_v3 }
 0x939   : > { %3142 = vmatpush1.bf16.msra.mxu0 %v6964_v42  ;;  %3183 = vmatpush1.bf16.msra.mxu1 %v6965_v62 }
 0x93a   : > { %3143 = vmatprep.subr.bf16.mxu0 %v6966_v5  ;;  %3184 = vmatprep.subr.bf16.mxu1 %v6967_v10 }
 0x93d   : > { %3144 = vmatpush1.bf16.msra.mxu0 %v6968_v60  ;;  %3185 = vmatpush1.bf16.msra.mxu1 %v6969_v11 }
 0x93e   : > { %3145 = vmatprep.subr.bf16.mxu0 %v6970_v59  ;;  %3186 = vmatprep.subr.bf16.mxu1 %v6971_v4 }
 0x941   : > { %3146 = vmatpush1.bf16.msra.mxu0 %v6972_v58  ;;  %3187 = vmatpush1.bf16.msra.mxu1 %v6973_v12 }
 0x944   : > { %3148 = vmatmul.mubr.bf16.vlgmr.msra.gmra.mrb[60].mxu0 %v5847_v35  ;;  %3189 = vmatmul.mubr.bf16.vlgmr.msra.gmra.mrb[60].mxu1 %v5847_v35 }
 0x9d7   : > { %v3067_v52 = vpop.f32.mrb[56].mxu0  ;;  %v3108_v51 = vpop.f32.mrb[56].mxu1 }
 0x9d8   : > { %v3069_v46 = vpop.f32.mrb[57].mxu0  ;;  %v3110_v53 = vpop.f32.mrb[57].mxu1  ;;  %v3197_v6 = vadd.f32 %v3067_v52, %v3021_v56  ;;  %v3199_v47 = vadd.f32 %v3108_v51, %v3023_v32 }
 0x9d9   : > { %v3071_v8 = vpop.f32.mrb[58].mxu0  ;;  %v3112_v18 = vpop.f32.mrb[58].mxu1  ;;  %v3198_v36 = vadd.f32 %v3069_v46, %v3022_v14  ;;  %v3200_v7 = vadd.f32 %v3110_v53, %v3024_v17 }
 0x9da   : > { %v3072_v28 = vpop.f32.mrb[59].mxu0  ;;  %v3113_v20 = vpop.f32.mrb[59].mxu1  ;;  %v3812_v9 = vmul.f32 -1.442695, %v3197_v6  ;;  %v3814_v37 = vmul.f32 -1.442695, %v3199_v47 }
 0x9db   : > { %v3813_v2 = vmul.f32 -1.442695, %v3198_v36  ;;  %v3815_v48 = vmul.f32 -1.442695, %v3200_v7 }
 0x9dc   : > { %4101 = vpow2.f32 %v3812_v9 }
 0x9dd   : > { %4103 = vpow2.f32 %v3814_v37 }
 0x9de   : > { %4105 = vpow2.f32 %v3813_v2 }
 0x9df   : > { %4107 = vpow2.f32 %v3815_v48 }
 0x9e6   : > { %v4102_v1 = vpop.eup %4101 }
 0x9e7   : > { %v4104_v33 = vpop.eup %4103  ;;  %v3223_v57 = vadd.f32 1.0, %v4102_v1 }
 0x9e8   : > { %v4106_v26 = vpop.eup %4105  ;;  %v3225_v21 = vadd.f32 1.0, %v4104_v33 }
 0x9e9   : > { %v4108_v23 = vpop.eup %4107  ;;  %v3224_v34 = vadd.f32 1.0, %v4106_v26  ;;  %4109 = vrcp.f32 %v3223_v57 }
 0x9ea   : > { %v3226_v19 = vadd.f32 1.0, %v4108_v23  ;;  %4111 = vrcp.f32 %v3225_v21 }
 0x9eb   : > { %4113 = vrcp.f32 %v3224_v34 }
 0x9ec   : > { %4115 = vrcp.f32 %v3226_v19 }
 0x9f3   : > { %v4110_v41 = vpop.eup %4109 }
 0x9f4   : > { %v4112_v3 = vpop.eup %4111 }
 0x9f5   : > { %v4114_v42 = vpop.eup %4113  ;;  %v3245_v60 = vmul.f32 %v4112_v3, %v5839_v40 }
 0x9f6   : > { %v4116_v62 = vpop.eup %4115 }
 0x9f7   : > { %v3246_v4 = vmul.f32 %v4116_v62, %v5841_v50 }
 0xa17   : > { %v3149_v16 = vpop.f32.mrb[60].mxu0  ;;  %v3190_v35 = vpop.f32.mrb[60].mxu1 }
 0xa18   : > { %v3201_v55 = vadd.f32 %v3149_v16, %v3025_v27  ;;  %v3203_v15 = vadd.f32 %v3190_v35, %v3027_v25  ;;  %v3151_v54 = vpop.f32.mrb[61].mxu0  ;;  %v3192_v44 = vpop.f32.mrb[61].mxu1 }
 0xa19   : > { %v3202_v63 = vadd.f32 %v3151_v54, %v3026_v45  ;;  %v3204_v43 = vadd.f32 %v3192_v44, %v3028_v0  ;;  %v3153_v39 = vpop.f32.mrb[62].mxu0  ;;  %v3194_v38 = vpop.f32.mrb[62].mxu1 }
 0xa1a   : > { %v3816_v29 = vmul.f32 -1.442695, %v3201_v55  ;;  %4117 = vtanh.f32 %v3203_v15  ;;  %v3154_v30 = vpop.f32.mrb[63].mxu0  ;;  %v3195_v31 = vpop.f32.mrb[63].mxu1 }
 0xa1b   : > { %v3817_v49 = vmul.f32 -1.442695, %v3202_v63  ;;  %4119 = vtanh.f32 %v3204_v43 }
 0xa1c   : > { %4121 = vpow2.f32 %v3816_v29 }
 0xa1d   : > { %4123 = vpow2.f32 %v3817_v49 }
 0xa24   : > { %v4118_v5 = vpop.eup %4117 }
 0xa25   : > { %v4120_v10 = vpop.eup %4119  ;;  %v3247_v11 = vmul.f32 %v4118_v5, %v4110_v41 }
 0xa26   : > { %v4122_v59 = vpop.eup %4121  ;;  %v3248_v58 = vmul.f32 %v4120_v10, %v4114_v42 }
 0xa27   : > { %v4124_v12 = vpop.eup %4123  ;;  %v3227_v52 = vadd.f32 1.0, %v4122_v59  ;;  %v3249_v51 = vadd.f32 %v3247_v11, %v3245_v60 }
 0xa28   : > { %v3228_v46 = vadd.f32 1.0, %v4124_v12  ;;  %v3250_v53 = vadd.f32 %v3248_v58, %v3246_v4 }
 0xa29   : > { %4125 = vrcp.f32 %v3227_v52  ;;  %3273 = vst [vmem:[%s470_s27] sm:$0xff] %v3249_v51 }
 0xa2a   : > { %4127 = vtanh.f32 %v3249_v51  ;;  %3274 = vst [vmem:[%s470_s27 + $0x8] sm:$0xff] %v3250_v53 }
 0xa2b   : > { %4129 = vrcp.f32 %v3228_v46 }
 0xa2c   : > { %4131 = vtanh.f32 %v3250_v53 }
 0xa33   : > { %v4126_v40 = vpop.eup %4125  ;;  %3291 = sbr.rel (!%p4243_p6) target bundleno = 2633 (0xa49), region = 71 }
 0xa34   : > { %v4128_v8 = vpop.eup %4127 }
 0xa35   : > { %v4130_v50 = vpop.eup %4129  ;;  %v3253_v18 = vmul.f32 %v4128_v8, %v4126_v40 }
 0xa36   : > { %v4132_v28 = vpop.eup %4131 }
 0xa37   : > { %3819 = vst [vmem:[%s3476_s10 + $0x70] sm:$0xff] %v3253_v18  ;;  %3269 = vst [vmem:[%s465_s9] sm:$0xff] %v3253_v18  ;;  %v3254_v20 = vmul.f32 %v4132_v28, %v4130_v50 }
 0xa39   : > { %3820 = vst [vmem:[%s3476_s10 + $0x78] sm:$0xff] %v3254_v20  ;;  %3270 = vst [vmem:[%s465_s9 + $0x8] sm:$0xff] %v3254_v20 }
 0xa40   : > { %v3315_v22 = vld [vmem:[%s4963_s18] sm:$0xff]  ;;  %v3317_v61 = vld [vmem:[%s4963_s18 + $0x8] sm:$0xff]  ;;  %v3319_v56 = vld [vmem:[%s4963_s18 + $0x10] sm:$0xff] }
 0xa41   : > { %3316 = vst [vmem:[%s5936_s20] sm:$0xff] %v3315_v22  ;;  %3318 = vst [vmem:[%s5936_s20 + $0x8] sm:$0xff] %v3317_v61  ;;  %v3321_v32 = vld [vmem:[%s4963_s18 + $0x18] sm:$0xff]  ;;  %v3323_v14 = vld [vmem:[%s4963_s18 + $0x20] sm:$0xff] }
 0xa42   : > { %3320 = vst [vmem:[%s5936_s20 + $0x20] sm:$0xff] %v3319_v56  ;;  %v3325_v17 = vld [vmem:[%s4963_s18 + $0x28] sm:$0xff]  ;;  %3322 = vst [vmem:[%s5936_s20 + $0x28] sm:$0xff] %v3321_v32  ;;  %v3327_v6 = vld [vmem:[%s4963_s18 + $0x30] sm:$0xff] }
 0xa43   : > { %3324 = vst [vmem:[%s5936_s20 + $0x40] sm:$0xff] %v3323_v14  ;;  %3326 = vst [vmem:[%s5936_s20 + $0x48] sm:$0xff] %v3325_v17  ;;  %v3329_v47 = vld [vmem:[%s4963_s18 + $0x38] sm:$0xff]  ;;  %v3331_v36 = vld [vmem:[%s4963_s18 + $0x40] sm:$0xff] }
 0xa44   : > { %3328 = vst [vmem:[%s5936_s20 + $0x60] sm:$0xff] %v3327_v6  ;;  %3330 = vst [vmem:[%s5936_s20 + $0x68] sm:$0xff] %v3329_v47  ;;  %v3333_v7 = vld [vmem:[%s4963_s18 + $0x48] sm:$0xff]  ;;  %v3335_v9 = vld [vmem:[%s4963_s18 + $0x50] sm:$0xff] }
 0xa45   : > { %3332 = vst [vmem:[%s5936_s20 + $0x80] sm:$0xff] %v3331_v36  ;;  %v3337_v37 = vld [vmem:[%s4963_s18 + $0x58] sm:$0xff]  ;;  %3334 = vst [vmem:[%s5936_s20 + $0x88] sm:$0xff] %v3333_v7  ;;  %v3339_v2 = vld [vmem:[%s4963_s18 + $0x60] sm:$0xff] }
 0xa46   : > { %3336 = vst [vmem:[%s5936_s20 + $0xa0] sm:$0xff] %v3335_v9  ;;  %3338 = vst [vmem:[%s5936_s20 + $0xa8] sm:$0xff] %v3337_v37  ;;  %v3341_v48 = vld [vmem:[%s4963_s18 + $0x68] sm:$0xff]  ;;  %v3343_v1 = vld [vmem:[%s4963_s18 + $0x70] sm:$0xff] }
 0xa47   : > { %3340 = vst [vmem:[%s5936_s20 + $0xc0] sm:$0xff] %v3339_v2  ;;  %3342 = vst [vmem:[%s5936_s20 + $0xc8] sm:$0xff] %v3341_v48  ;;  %v3345_v33 = vld [vmem:[%s4963_s18 + $0x78] sm:$0xff] }
 0xa48   : > { %3344 = vst [vmem:[%s5936_s20 + $0xe0] sm:$0xff] %v3343_v1  ;;  %3346 = vst [vmem:[%s5936_s20 + $0xe8] sm:$0xff] %v3345_v33 }
 0xa49 PF: > { %s17_s25 = sadd.s32 1, %s4171_s25   ;;  %s6974_s21 = smov %s4159_s22 }
 0xa4a   : > { %p14_p12 = scmp.ge.s32.totalorder %s17_s25, 4   ;;  %s6975_s22 = smov %s4248_s7 }
 0xa4b   : > { %s6976_s23 = smov %s4167_s24  ;;  %s6977_s24 = smov %s6979_s26 }
 0xa4c   :  { %16 = sbr.rel (!%p14_p12) target bundleno = 3 (0x3), region = 174 }

// kernel: net_forward.6
= control target key start
LH: loop header
LB: loop body
LE: loop exit
PB: predicated region body
PF: predicated region fallthrough
CT: control target
= control target key end

     0   :  { %s7992_s1 = inlined_call_operand.vmem [shape: bf16[512,2048], index: 1, kind: input, shape index: {}]   ;;  %s7993_s0 = inlined_call_operand.vmem [shape: f32[64,512], index: 0, kind: input, shape index: {}]   ;;  %s7994_s2 = inlined_call_operand.vmem [shape: f32[1,2048], index: 2, kind: input, shape index: {}]   ;;  %s7995_s3 = inlined_call_operand.vmem [shape: bf16[64,2048], index: 3, kind: output, shape index: {}]  }
   0x1   :  { %v62_v0 = vld [vmem:[%s7992_s1] sm:$0xff]  ;;  %v63_v2 = vld [vmem:[%s7992_s1 + $0x8] sm:$0xff] }
   0x2   :  { %v70_v1 = vld [vmem:[%s7992_s1 + $0x40] sm:$0xff]  ;;  %v71_v4 = vld [vmem:[%s7992_s1 + $0x48] sm:$0xff] }
   0x3   :  { %v4839_v3 = vcombine.high %v62_v0, %v70_v1  ;;  %v4838_v5 = vcombine.low %v62_v0, %v70_v1  ;;  %v78_v6 = vld [vmem:[%s7992_s1 + $0x80] sm:$0xff]  ;;  %v4841_v8 = vcombine.high %v63_v2, %v71_v4  ;;  %v4840_v9 = vcombine.low %v63_v2, %v71_v4  ;;  %v79_v11 = vld [vmem:[%s7992_s1 + $0x88] sm:$0xff] }
   0x4   :  { %v86_v7 = vld [vmem:[%s7992_s1 + $0xc0] sm:$0xff]  ;;  %v87_v12 = vld [vmem:[%s7992_s1 + $0xc8] sm:$0xff] }
   0x5   :  { %v4855_v10 = vcombine.high %v78_v6, %v86_v7  ;;  %v94_v13 = vld [vmem:[%s7992_s1 + $0x100] sm:$0xff]  ;;  %3218 = vmatprep.subr.bf16.mxu0 %v4839_v3  ;;  %v4857_v14 = vcombine.high %v79_v11, %v87_v12  ;;  %v95_v16 = vld [vmem:[%s7992_s1 + $0x108] sm:$0xff]  ;;  %3364 = vmatprep.subr.bf16.mxu1 %v4841_v8  ;;  %v4854_v18 = vcombine.low %v78_v6, %v86_v7 }
   0x6   :  { %v102_v15 = vld [vmem:[%s7992_s1 + $0x140] sm:$0xff]  ;;  %v103_v17 = vld [vmem:[%s7992_s1 + $0x148] sm:$0xff]  ;;  %3219 = vmatpush1.bf16.msra.mxu0 %v4838_v5  ;;  %3365 = vmatpush1.bf16.msra.mxu1 %v4840_v9  ;;  %v4856_v19 = vcombine.low %v79_v11, %v87_v12 }
   0x7   :  { %3220 = vmatprep.subr.bf16.mxu0 %v4855_v10  ;;  %v4871_v20 = vcombine.high %v94_v13, %v102_v15  ;;  %3366 = vmatprep.subr.bf16.mxu1 %v4857_v14  ;;  %v4873_v21 = vcombine.high %v95_v16, %v103_v17  ;;  %v110_v22 = vld [vmem:[%s7992_s1 + $0x180] sm:$0xff]  ;;  %v111_v24 = vld [vmem:[%s7992_s1 + $0x188] sm:$0xff]  ;;  %v4870_v26 = vcombine.low %v94_v13, %v102_v15 }
   0x8   :  { %v118_v23 = vld [vmem:[%s7992_s1 + $0x1c0] sm:$0xff]  ;;  %v119_v25 = vld [vmem:[%s7992_s1 + $0x1c8] sm:$0xff]  ;;  %v4872_v27 = vcombine.low %v95_v16, %v103_v17 }
   0x9   :  { %v4887_v28 = vcombine.high %v110_v22, %v118_v23  ;;  %v4889_v29 = vcombine.high %v111_v24, %v119_v25  ;;  %v126_v30 = vld [vmem:[%s7992_s1 + $0x200] sm:$0xff]  ;;  %v127_v32 = vld [vmem:[%s7992_s1 + $0x208] sm:$0xff]  ;;  %v4886_v34 = vcombine.low %v110_v22, %v118_v23  ;;  %v4888_v35 = vcombine.low %v111_v24, %v119_v25 }
   0xa   :  { %3221 = vmatpush1.bf16.msra.mxu0 %v4854_v18  ;;  %3367 = vmatpush1.bf16.msra.mxu1 %v4856_v19  ;;  %v134_v31 = vld [vmem:[%s7992_s1 + $0x240] sm:$0xff]  ;;  %v135_v33 = vld [vmem:[%s7992_s1 + $0x248] sm:$0xff] }
   0xb   :  { %3222 = vmatprep.subr.bf16.mxu0 %v4871_v20  ;;  %3368 = vmatprep.subr.bf16.mxu1 %v4873_v21  ;;  %v4903_v36 = vcombine.high %v126_v30, %v134_v31  ;;  %v4905_v37 = vcombine.high %v127_v32, %v135_v33  ;;  %v142_v38 = vld [vmem:[%s7992_s1 + $0x280] sm:$0xff]  ;;  %v143_v40 = vld [vmem:[%s7992_s1 + $0x288] sm:$0xff]  ;;  %v4902_v42 = vcombine.low %v126_v30, %v134_v31 }
   0xc   :  { %v150_v39 = vld [vmem:[%s7992_s1 + $0x2c0] sm:$0xff]  ;;  %v151_v41 = vld [vmem:[%s7992_s1 + $0x2c8] sm:$0xff]  ;;  %v4904_v43 = vcombine.low %v127_v32, %v135_v33 }
   0xd   :  { %v4919_v44 = vcombine.high %v142_v38, %v150_v39  ;;  %v4921_v45 = vcombine.high %v143_v40, %v151_v41  ;;  %v158_v46 = vld [vmem:[%s7992_s1 + $0x300] sm:$0xff]  ;;  %v159_v48 = vld [vmem:[%s7992_s1 + $0x308] sm:$0xff]  ;;  %v4918_v50 = vcombine.low %v142_v38, %v150_v39  ;;  %v4920_v51 = vcombine.low %v143_v40, %v151_v41 }
   0xe   :  { %3223 = vmatpush1.bf16.msra.mxu0 %v4870_v26  ;;  %3369 = vmatpush1.bf16.msra.mxu1 %v4872_v27  ;;  %v166_v47 = vld [vmem:[%s7992_s1 + $0x340] sm:$0xff]  ;;  %v167_v49 = vld [vmem:[%s7992_s1 + $0x348] sm:$0xff] }
   0xf   :  { %3224 = vmatprep.subr.bf16.mxu0 %v4887_v28  ;;  %3370 = vmatprep.subr.bf16.mxu1 %v4889_v29  ;;  %v4935_v52 = vcombine.high %v158_v46, %v166_v47  ;;  %v15_v53 = vld [vmem:[%s7993_s0 + $0x8] sm:$0xff]  ;;  %v4937_v55 = vcombine.high %v159_v48, %v167_v49  ;;  %v174_v56 = vld [vmem:[%s7992_s1 + $0x380] sm:$0xff]  ;;  %v4934_v61 = vcombine.low %v158_v46, %v166_v47 }
  0x10   :  { %v19_v54 = vld [vmem:[%s7993_s0 + $0x28] sm:$0xff]  ;;  %v182_v57 = vld [vmem:[%s7992_s1 + $0x3c0] sm:$0xff]  ;;  %v4936_v62 = vcombine.low %v159_v48, %v167_v49 }
  0x11   :  { %v5851_v58 = vpack.c.bf16 %v19_v54, %v15_v53  ;;  %v175_v59 = vld [vmem:[%s7992_s1 + $0x388] sm:$0xff]  ;;  %v4951_v63 = vcombine.high %v174_v56, %v182_v57  ;;  %v190_v1 = vld [vmem:[%s7992_s1 + $0x400] sm:$0xff]  ;;  %v4950_v5 = vcombine.low %v174_v56, %v182_v57 }
  0x12   :  { %3225 = vmatpush1.bf16.msra.mxu0 %v4886_v34  ;;  %3371 = vmatpush1.bf16.msra.mxu1 %v4888_v35  ;;  %v183_v60 = vld [vmem:[%s7992_s1 + $0x3c8] sm:$0xff]  ;;  %v198_v2 = vld [vmem:[%s7992_s1 + $0x440] sm:$0xff] }
  0x13   :  { %3226 = vmatprep.subr.bf16.mxu0 %v4903_v36  ;;  %3372 = vmatprep.subr.bf16.mxu1 %v4905_v37  ;;  %v4953_v0 = vcombine.high %v175_v59, %v183_v60  ;;  %v191_v3 = vld [vmem:[%s7992_s1 + $0x408] sm:$0xff]  ;;  %v4952_v6 = vcombine.low %v175_v59, %v183_v60  ;;  %v4967_v7 = vcombine.high %v190_v1, %v198_v2  ;;  %v206_v9 = vld [vmem:[%s7992_s1 + $0x480] sm:$0xff] }
  0x14   :  { %3250 = vmatprep.mubr.bf16.mxu0 %v5851_v58  ;;  %3396 = vmatprep.mubr.bf16.mxu1 %v5851_v58  ;;  %v199_v4 = vld [vmem:[%s7992_s1 + $0x448] sm:$0xff]  ;;  %v214_v10 = vld [vmem:[%s7992_s1 + $0x4c0] sm:$0xff]  ;;  %v4966_v13 = vcombine.low %v190_v1, %v198_v2 }
  0x15   :  { %v4969_v8 = vcombine.high %v191_v3, %v199_v4  ;;  %v207_v11 = vld [vmem:[%s7992_s1 + $0x488] sm:$0xff]  ;;  %v4968_v14 = vcombine.low %v191_v3, %v199_v4  ;;  %v4983_v15 = vcombine.high %v206_v9, %v214_v10  ;;  %v222_v17 = vld [vmem:[%s7992_s1 + $0x500] sm:$0xff]  ;;  %v4982_v21 = vcombine.low %v206_v9, %v214_v10 }
  0x16   :  { %3227 = vmatpush1.bf16.msra.mxu0 %v4902_v42  ;;  %3373 = vmatpush1.bf16.msra.mxu1 %v4904_v43  ;;  %v215_v12 = vld [vmem:[%s7992_s1 + $0x4c8] sm:$0xff]  ;;  %v230_v18 = vld [vmem:[%s7992_s1 + $0x540] sm:$0xff] }
  0x17   :  { %3228 = vmatprep.subr.bf16.mxu0 %v4919_v44  ;;  %3374 = vmatprep.subr.bf16.mxu1 %v4921_v45  ;;  %v4985_v16 = vcombine.high %v207_v11, %v215_v12  ;;  %v223_v19 = vld [vmem:[%s7992_s1 + $0x508] sm:$0xff]  ;;  %v4984_v22 = vcombine.low %v207_v11, %v215_v12  ;;  %v4999_v23 = vcombine.high %v222_v17, %v230_v18  ;;  %v238_v25 = vld [vmem:[%s7992_s1 + $0x580] sm:$0xff] }
  0x18   :  { %v231_v20 = vld [vmem:[%s7992_s1 + $0x548] sm:$0xff]  ;;  %v246_v26 = vld [vmem:[%s7992_s1 + $0x5c0] sm:$0xff]  ;;  %v4998_v29 = vcombine.low %v222_v17, %v230_v18 }
  0x19   :  { %v5001_v24 = vcombine.high %v223_v19, %v231_v20  ;;  %v239_v27 = vld [vmem:[%s7992_s1 + $0x588] sm:$0xff]  ;;  %v5000_v30 = vcombine.low %v223_v19, %v231_v20  ;;  %v5015_v31 = vcombine.high %v238_v25, %v246_v26  ;;  %v254_v33 = vld [vmem:[%s7992_s1 + $0x600] sm:$0xff]  ;;  %v5014_v37 = vcombine.low %v238_v25, %v246_v26 }
  0x1a   :  { %3229 = vmatpush1.bf16.msra.mxu0 %v4918_v50  ;;  %3375 = vmatpush1.bf16.msra.mxu1 %v4920_v51  ;;  %v247_v28 = vld [vmem:[%s7992_s1 + $0x5c8] sm:$0xff]  ;;  %v262_v34 = vld [vmem:[%s7992_s1 + $0x640] sm:$0xff] }
  0x1b   :  { %3230 = vmatprep.subr.bf16.mxu0 %v4935_v52  ;;  %3376 = vmatprep.subr.bf16.mxu1 %v4937_v55  ;;  %v5017_v32 = vcombine.high %v239_v27, %v247_v28  ;;  %v255_v35 = vld [vmem:[%s7992_s1 + $0x608] sm:$0xff]  ;;  %v5016_v38 = vcombine.low %v239_v27, %v247_v28  ;;  %v5031_v39 = vcombine.high %v254_v33, %v262_v34  ;;  %v270_v41 = vld [vmem:[%s7992_s1 + $0x680] sm:$0xff] }
  0x1c   :  { %v263_v36 = vld [vmem:[%s7992_s1 + $0x648] sm:$0xff]  ;;  %v278_v42 = vld [vmem:[%s7992_s1 + $0x6c0] sm:$0xff]  ;;  %v5030_v45 = vcombine.low %v254_v33, %v262_v34 }
  0x1d   :  { %v5033_v40 = vcombine.high %v255_v35, %v263_v36  ;;  %v271_v43 = vld [vmem:[%s7992_s1 + $0x688] sm:$0xff]  ;;  %v5032_v46 = vcombine.low %v255_v35, %v263_v36  ;;  %v5047_v47 = vcombine.high %v270_v41, %v278_v42  ;;  %v286_v49 = vld [vmem:[%s7992_s1 + $0x700] sm:$0xff]  ;;  %v5046_v53 = vcombine.low %v270_v41, %v278_v42 }
  0x1e   :  { %3231 = vmatpush1.bf16.msra.mxu0 %v4934_v61  ;;  %3377 = vmatpush1.bf16.msra.mxu1 %v4936_v62  ;;  %v279_v44 = vld [vmem:[%s7992_s1 + $0x6c8] sm:$0xff]  ;;  %v294_v50 = vld [vmem:[%s7992_s1 + $0x740] sm:$0xff] }
  0x1f   :  { %3232 = vmatprep.subr.bf16.mxu0 %v4951_v63  ;;  %3378 = vmatprep.subr.bf16.mxu1 %v4953_v0  ;;  %v5049_v48 = vcombine.high %v271_v43, %v279_v44  ;;  %v287_v51 = vld [vmem:[%s7992_s1 + $0x708] sm:$0xff]  ;;  %v5048_v54 = vcombine.low %v271_v43, %v279_v44  ;;  %v5063_v55 = vcombine.high %v286_v49, %v294_v50  ;;  %v302_v57 = vld [vmem:[%s7992_s1 + $0x780] sm:$0xff] }
  0x20   :  { %v295_v52 = vld [vmem:[%s7992_s1 + $0x748] sm:$0xff]  ;;  %v310_v59 = vld [vmem:[%s7992_s1 + $0x7c0] sm:$0xff]  ;;  %v5062_v62 = vcombine.low %v286_v49, %v294_v50 }
  0x21   :  { %v5065_v56 = vcombine.high %v287_v51, %v295_v52  ;;  %v303_v60 = vld [vmem:[%s7992_s1 + $0x788] sm:$0xff]  ;;  %v5064_v63 = vcombine.low %v287_v51, %v295_v52  ;;  %v5079_v0 = vcombine.high %v302_v57, %v310_v59  ;;  %v318_v2 = vld [vmem:[%s7992_s1 + $0x800] sm:$0xff] }
  0x22   :  { %3233 = vmatpush1.bf16.msra.mxu0 %v4950_v5  ;;  %3379 = vmatpush1.bf16.msra.mxu1 %v4952_v6  ;;  %v311_v61 = vld [vmem:[%s7992_s1 + $0x7c8] sm:$0xff]  ;;  %v326_v3 = vld [vmem:[%s7992_s1 + $0x840] sm:$0xff]  ;;  %v5078_v6 = vcombine.low %v302_v57, %v310_v59 }
  0x23   :  { %3234 = vmatprep.subr.bf16.mxu0 %v4967_v7  ;;  %3380 = vmatprep.subr.bf16.mxu1 %v4969_v8  ;;  %v5081_v1 = vcombine.high %v303_v60, %v311_v61  ;;  %v319_v4 = vld [vmem:[%s7992_s1 + $0x808] sm:$0xff]  ;;  %v14_v7 = vld [vmem:[%s7993_s0] sm:$0xff]  ;;  %v5080_v9 = vcombine.low %v303_v60, %v311_v61  ;;  %v5095_v10 = vcombine.high %v318_v2, %v326_v3 }
  0x24   :  { %v327_v5 = vld [vmem:[%s7992_s1 + $0x848] sm:$0xff]  ;;  %v18_v8 = vld [vmem:[%s7993_s0 + $0x20] sm:$0xff]  ;;  %v5094_v19 = vcombine.low %v318_v2, %v326_v3 }
  0x25   :  { %v5097_v11 = vcombine.high %v319_v4, %v327_v5  ;;  %v334_v12 = vld [vmem:[%s7992_s1 + $0x880] sm:$0xff]  ;;  %v23_v17 = vld [vmem:[%s7993_s0 + $0x48] sm:$0xff]  ;;  %v5096_v20 = vcombine.low %v319_v4, %v327_v5 }
  0x26   :  { %3235 = vmatpush1.bf16.msra.mxu0 %v4966_v13  ;;  %3381 = vmatpush1.bf16.msra.mxu1 %v4968_v14  ;;  %v342_v13 = vld [vmem:[%s7992_s1 + $0x8c0] sm:$0xff]  ;;  %v335_v14 = vld [vmem:[%s7992_s1 + $0x888] sm:$0xff] }
  0x27   :  { %3236 = vmatprep.subr.bf16.mxu0 %v4983_v15  ;;  %3382 = vmatprep.subr.bf16.mxu1 %v4985_v16  ;;  %v5984_v15 = vpack.c.bf16 %v18_v8, %v14_v7  ;;  %v343_v16 = vld [vmem:[%s7992_s1 + $0x8c8] sm:$0xff]  ;;  %v5110_v28 = vcombine.low %v334_v12, %v342_v13  ;;  %v366_v34 = vld [vmem:[%s7992_s1 + $0x980] sm:$0xff] }
  0x28   :  { %v27_v18 = vld [vmem:[%s7993_s0 + $0x68] sm:$0xff]  ;;  %v374_v35 = vld [vmem:[%s7992_s1 + $0x9c0] sm:$0xff] }
  0x29   :  { %v6001_v25 = vpack.c.bf16 %v27_v18, %v23_v17  ;;  %v351_v26 = vld [vmem:[%s7992_s1 + $0x908] sm:$0xff]  ;;  %v5143_v43 = vcombine.high %v366_v34, %v374_v35  ;;  %v5142_v50 = vcombine.low %v366_v34, %v374_v35  ;;  %v30_v51 = vld [vmem:[%s7993_s0 + $0x80] sm:$0xff] }
  0x2a   :  { %3237 = vmatpush1.bf16.msra.mxu0 %v4982_v21  ;;  %3383 = vmatpush1.bf16.msra.mxu1 %v4984_v22  ;;  %v5111_v21 = vcombine.high %v334_v12, %v342_v13  ;;  %v5113_v22 = vcombine.high %v335_v14, %v343_v16  ;;  %v359_v27 = vld [vmem:[%s7992_s1 + $0x948] sm:$0xff]  ;;  %v34_v52 = vld [vmem:[%s7993_s0 + $0xa0] sm:$0xff] }
  0x2b   :  { %3238 = vmatprep.subr.bf16.mxu0 %v4999_v23  ;;  %3384 = vmatprep.subr.bf16.mxu1 %v5001_v24  ;;  %v350_v23 = vld [vmem:[%s7992_s1 + $0x900] sm:$0xff]  ;;  %v5129_v33 = vcombine.high %v351_v26, %v359_v27  ;;  %v367_v36 = vld [vmem:[%s7992_s1 + $0x988] sm:$0xff]  ;;  %v5128_v42 = vcombine.low %v351_v26, %v359_v27  ;;  %v6075_v61 = vpack.c.bf16 %v34_v52, %v30_v51 }
  0x2c   :  { %v358_v24 = vld [vmem:[%s7992_s1 + $0x940] sm:$0xff]  ;;  %v391_v49 = vld [vmem:[%s7992_s1 + $0xa48] sm:$0xff] }
  0x2d   :  { %v5126_v41 = vcombine.low %v350_v23, %v358_v24  ;;  %v406_v57 = vld [vmem:[%s7992_s1 + $0xac0] sm:$0xff]  ;;  %v399_v59 = vld [vmem:[%s7992_s1 + $0xa88] sm:$0xff] }
  0x2e   :  { %3239 = vmatpush1.bf16.msra.mxu0 %v4998_v29  ;;  %3385 = vmatpush1.bf16.msra.mxu1 %v5000_v30  ;;  %v22_v29 = vld [vmem:[%s7993_s0 + $0x40] sm:$0xff]  ;;  %v407_v60 = vld [vmem:[%s7992_s1 + $0xac8] sm:$0xff] }
  0x2f   :  { %3240 = vmatprep.subr.bf16.mxu0 %v5015_v31  ;;  %3386 = vmatprep.subr.bf16.mxu1 %v5017_v32  ;;  %v26_v30 = vld [vmem:[%s7993_s0 + $0x60] sm:$0xff]  ;;  %v5112_v31 = vcombine.low %v335_v14, %v343_v16  ;;  %v5127_v32 = vcombine.high %v350_v23, %v358_v24  ;;  %v5177_v3 = vcombine.high %v399_v59, %v407_v60  ;;  %v415_v7 = vld [vmem:[%s7992_s1 + $0xb08] sm:$0xff] }
  0x30   :  { %v414_v4 = vld [vmem:[%s7992_s1 + $0xb00] sm:$0xff]  ;;  %v423_v8 = vld [vmem:[%s7992_s1 + $0xb48] sm:$0xff]  ;;  %v5176_v12 = vcombine.low %v399_v59, %v407_v60 }
  0x31   :  { %v422_v5 = vld [vmem:[%s7992_s1 + $0xb40] sm:$0xff]  ;;  %v5193_v14 = vcombine.high %v415_v7, %v423_v8  ;;  %v431_v18 = vld [vmem:[%s7992_s1 + $0xb88] sm:$0xff]  ;;  %v5192_v24 = vcombine.low %v415_v7, %v423_v8 }
  0x32   :  { %3241 = vmatpush1.bf16.msra.mxu0 %v5014_v37  ;;  %3387 = vmatpush1.bf16.msra.mxu1 %v5016_v38  ;;  %v375_v37 = vld [vmem:[%s7992_s1 + $0x9c8] sm:$0xff]  ;;  %v6031_v38 = vpack.c.bf16 %v26_v30, %v22_v29  ;;  %v5191_v13 = vcombine.high %v414_v4, %v422_v5  ;;  %v430_v16 = vld [vmem:[%s7992_s1 + $0xb80] sm:$0xff]  ;;  %v5190_v23 = vcombine.low %v414_v4, %v422_v5 }
  0x33   :  { %3242 = vmatprep.subr.bf16.mxu0 %v5031_v39  ;;  %3388 = vmatprep.subr.bf16.mxu1 %v5033_v40  ;;  %v31_v39 = vld [vmem:[%s7993_s0 + $0x88] sm:$0xff]  ;;  %v5145_v44 = vcombine.high %v367_v36, %v375_v37  ;;  %v438_v17 = vld [vmem:[%s7992_s1 + $0xbc0] sm:$0xff] }
  0x34   :  { %v35_v40 = vld [vmem:[%s7993_s0 + $0xa8] sm:$0xff]  ;;  %v5207_v26 = vcombine.high %v430_v16, %v438_v17  ;;  %v454_v29 = vld [vmem:[%s7992_s1 + $0xc40] sm:$0xff] }
  0x35   :  { %v503_v59 = vld [vmem:[%s7992_s1 + $0xdc8] sm:$0xff] }
  0x36   :  { %3243 = vmatpush1.bf16.msra.mxu0 %v5030_v45  ;;  %3389 = vmatpush1.bf16.msra.mxu1 %v5032_v46  ;;  %v382_v45 = vld [vmem:[%s7992_s1 + $0xa00] sm:$0xff]  ;;  %v519_v4 = vld [vmem:[%s7992_s1 + $0xe48] sm:$0xff] }
  0x37   :  { %3244 = vmatprep.subr.bf16.mxu0 %v5047_v47  ;;  %3390 = vmatprep.subr.bf16.mxu1 %v5049_v48  ;;  %v390_v46 = vld [vmem:[%s7992_s1 + $0xa40] sm:$0xff]  ;;  %v6045_v47 = vpack.c.bf16 %v35_v40, %v31_v39  ;;  %v383_v48 = vld [vmem:[%s7992_s1 + $0xa08] sm:$0xff] }
  0x38   :  { %v470_v39 = vld [vmem:[%s7992_s1 + $0xcc0] sm:$0xff]  ;;  %v463_v40 = vld [vmem:[%s7992_s1 + $0xc88] sm:$0xff] }
  0x3a   :  { %3245 = vmatpush1.bf16.msra.mxu0 %v5046_v53  ;;  %3391 = vmatpush1.bf16.msra.mxu1 %v5048_v54  ;;  %v5144_v53 = vcombine.low %v367_v36, %v375_v37  ;;  %v5159_v54 = vcombine.high %v382_v45, %v390_v46  ;;  %v462_v37 = vld [vmem:[%s7992_s1 + $0xc80] sm:$0xff] }
  0x3b   :  { %3246 = vmatprep.subr.bf16.mxu0 %v5063_v55  ;;  %3392 = vmatprep.subr.bf16.mxu1 %v5065_v56  ;;  %v5161_v55 = vcombine.high %v383_v48, %v391_v49  ;;  %v398_v56 = vld [vmem:[%s7992_s1 + $0xa80] sm:$0xff]  ;;  %v5238_v51 = vcombine.low %v462_v37, %v470_v39 }
  0x3c   :  { %v5175_v2 = vcombine.high %v398_v56, %v406_v57 }
  0x3e   :  { %3247 = vmatpush1.bf16.msra.mxu0 %v5062_v62  ;;  %3393 = vmatpush1.bf16.msra.mxu1 %v5064_v63  ;;  %v39_v62 = vld [vmem:[%s7993_s0 + $0xc8] sm:$0xff] }
  0x3f   :  { %3248 = vmatprep.subr.bf16.mxu0 %v5079_v0  ;;  %3394 = vmatprep.subr.bf16.mxu1 %v5081_v1  ;;  %v43_v63 = vld [vmem:[%s7993_s0 + $0xe8] sm:$0xff]  ;;  %v5158_v0 = vcombine.low %v382_v45, %v390_v46  ;;  %v5160_v1 = vcombine.low %v383_v48, %v391_v49  ;;  %v478_v46 = vld [vmem:[%s7992_s1 + $0xd00] sm:$0xff] }
  0x40   :  { %v486_v48 = vld [vmem:[%s7992_s1 + $0xd40] sm:$0xff]  ;;  %v479_v49 = vld [vmem:[%s7992_s1 + $0xd08] sm:$0xff] }
  0x41   :  { %v5254_v60 = vcombine.low %v478_v46, %v486_v48 }
  0x42   :  { %3249 = vmatpush1.bf16.msra.mxu0 %v5078_v6  ;;  %3395 = vmatpush1.bf16.msra.mxu1 %v5080_v9  ;;  %v6089_v6 = vpack.c.bf16 %v43_v63, %v39_v62  ;;  %v5174_v9 = vcombine.low %v398_v56, %v406_v57  ;;  %v502_v56 = vld [vmem:[%s7992_s1 + $0xdc0] sm:$0xff]  ;;  %v495_v57 = vld [vmem:[%s7992_s1 + $0xd88] sm:$0xff] }
  0x43   :  { %3291 = vmatprep.subr.bf16.mxu0 %v5095_v10  ;;  %3437 = vmatprep.subr.bf16.mxu1 %v5097_v11  ;;  %v38_v10 = vld [vmem:[%s7993_s0 + $0xc0] sm:$0xff]  ;;  %v5272_v7 = vcombine.low %v495_v57, %v503_v59 }
  0x44   :  { %v42_v11 = vld [vmem:[%s7993_s0 + $0xe0] sm:$0xff] }
  0x45   :  { %3251 = vmatmul.mubr.bf16.vlgmr.msra.gmra.mrb[0].mxu0 %v5984_v15  ;;  %3397 = vmatmul.mubr.bf16.vlgmr.msra.gmra.mrb[0].mxu1 %v5984_v15 }
  0x46   :  { %3292 = vmatpush1.bf16.msra.mxu0 %v5094_v19  ;;  %3438 = vmatpush1.bf16.msra.mxu1 %v5096_v20  ;;  %v439_v19 = vld [vmem:[%s7992_s1 + $0xbc8] sm:$0xff]  ;;  %v6119_v20 = vpack.c.bf16 %v42_v11, %v38_v10  ;;  %v526_v10 = vld [vmem:[%s7992_s1 + $0xe80] sm:$0xff] }
  0x47   :  { %3293 = vmatprep.subr.bf16.mxu0 %v5111_v21  ;;  %3439 = vmatprep.subr.bf16.mxu1 %v5113_v22  ;;  %v17_v21 = vld [vmem:[%s7993_s0 + $0x18] sm:$0xff]  ;;  %v5209_v27 = vcombine.high %v431_v18, %v439_v19  ;;  %v5208_v34 = vcombine.low %v431_v18, %v439_v19  ;;  %v534_v11 = vld [vmem:[%s7992_s1 + $0xec0] sm:$0xff] }
  0x48   :  { %3260 = vmatprep.mubr.bf16.mxu0 %v6001_v25  ;;  %3406 = vmatprep.mubr.bf16.mxu1 %v6001_v25  ;;  %v21_v22 = vld [vmem:[%s7993_s0 + $0x38] sm:$0xff]  ;;  %v542_v19 = vld [vmem:[%s7992_s1 + $0xf00] sm:$0xff] }
  0x49   :  { %v6133_v30 = vpack.c.bf16 %v21_v22, %v17_v21  ;;  %v550_v21 = vld [vmem:[%s7992_s1 + $0xf40] sm:$0xff]  ;;  %v543_v22 = vld [vmem:[%s7992_s1 + $0xf08] sm:$0xff] }
  0x4a   :  { %3294 = vmatpush1.bf16.msra.mxu0 %v5110_v28  ;;  %3440 = vmatpush1.bf16.msra.mxu1 %v5112_v31  ;;  %v446_v28 = vld [vmem:[%s7992_s1 + $0xc00] sm:$0xff]  ;;  %v447_v31 = vld [vmem:[%s7992_s1 + $0xc08] sm:$0xff] }
  0x4b   :  { %3295 = vmatprep.subr.bf16.mxu0 %v5127_v32  ;;  %3441 = vmatprep.subr.bf16.mxu1 %v5129_v33  ;;  %v455_v32 = vld [vmem:[%s7992_s1 + $0xc48] sm:$0xff]  ;;  %v5206_v33 = vcombine.low %v430_v16, %v438_v17  ;;  %v5223_v35 = vcombine.high %v446_v28, %v454_v29  ;;  %v5303_v17 = vcombine.high %v526_v10, %v534_v11 }
  0x4c   :  { %v5225_v36 = vcombine.high %v447_v31, %v455_v32 }
  0x4d   :  { %3261 = vmatmul.mubr.bf16.gmra.mrb[4].mxu0 %v6031_v38  ;;  %3407 = vmatmul.mubr.bf16.gmra.mrb[4].mxu1 %v6031_v38 }
  0x4e   :  { %3296 = vmatpush1.bf16.msra.mxu0 %v5126_v41  ;;  %3442 = vmatpush1.bf16.msra.mxu1 %v5128_v42  ;;  %v471_v41 = vld [vmem:[%s7992_s1 + $0xcc8] sm:$0xff]  ;;  %v5222_v42 = vcombine.low %v446_v28, %v454_v29  ;;  %v558_v29 = vld [vmem:[%s7992_s1 + $0xf80] sm:$0xff] }
  0x4f   :  { %3297 = vmatprep.subr.bf16.mxu0 %v5143_v43  ;;  %3443 = vmatprep.subr.bf16.mxu1 %v5145_v44  ;;  %v5224_v43 = vcombine.low %v447_v31, %v455_v32  ;;  %v5239_v44 = vcombine.high %v462_v37, %v470_v39  ;;  %v5241_v45 = vcombine.high %v463_v40, %v471_v41  ;;  %v566_v31 = vld [vmem:[%s7992_s1 + $0xfc0] sm:$0xff]  ;;  %v559_v32 = vld [vmem:[%s7992_s1 + $0xf88] sm:$0xff]  ;;  %v64_v39 = vld [vmem:[%s7992_s1 + $0x10] sm:$0xff] }
  0x50   :  { %3270 = vmatprep.mubr.bf16.mxu0 %v6045_v47  ;;  %3416 = vmatprep.mubr.bf16.mxu1 %v6045_v47  ;;  %v5240_v52 = vcombine.low %v463_v40, %v471_v41  ;;  %v72_v40 = vld [vmem:[%s7992_s1 + $0x50] sm:$0xff]  ;;  %v65_v41 = vld [vmem:[%s7992_s1 + $0x18] sm:$0xff] }
  0x52   :  { %3298 = vmatpush1.bf16.msra.mxu0 %v5142_v50  ;;  %3444 = vmatpush1.bf16.msra.mxu1 %v5144_v53  ;;  %v487_v50 = vld [vmem:[%s7992_s1 + $0xd48] sm:$0xff]  ;;  %v5255_v53 = vcombine.high %v478_v46, %v486_v48  ;;  %v4843_v48 = vcombine.high %v64_v39, %v72_v40 }
  0x53   :  { %3299 = vmatprep.subr.bf16.mxu0 %v5159_v54  ;;  %3445 = vmatprep.subr.bf16.mxu1 %v5161_v55  ;;  %v5257_v54 = vcombine.high %v479_v49, %v487_v50  ;;  %v494_v55 = vld [vmem:[%s7992_s1 + $0xd80] sm:$0xff]  ;;  %v5256_v62 = vcombine.low %v479_v49, %v487_v50  ;;  %v80_v50 = vld [vmem:[%s7992_s1 + $0x90] sm:$0xff] }
  0x54   :  { %v5271_v63 = vcombine.high %v494_v55, %v502_v56  ;;  %v5270_v5 = vcombine.low %v494_v55, %v502_v56  ;;  %v25_v55 = vld [vmem:[%s7993_s0 + $0x58] sm:$0xff] }
  0x55   :  { %3271 = vmatmul.mubr.bf16.gmra.mrb[8].mxu0 %v6075_v61  ;;  %3417 = vmatmul.mubr.bf16.gmra.mrb[8].mxu1 %v6075_v61  ;;  %v29_v56 = vld [vmem:[%s7993_s0 + $0x78] sm:$0xff] }
  0x56   :  { %3300 = vmatpush1.bf16.msra.mxu0 %v5158_v0  ;;  %3446 = vmatpush1.bf16.msra.mxu1 %v5160_v1  ;;  %v5273_v0 = vcombine.high %v495_v57, %v503_v59  ;;  %v510_v1 = vld [vmem:[%s7992_s1 + $0xe00] sm:$0xff]  ;;  %v4842_v57 = vcombine.low %v64_v39, %v72_v40  ;;  %v152_v39 = vld [vmem:[%s7992_s1 + $0x2d0] sm:$0xff]  ;;  %v145_v40 = vld [vmem:[%s7992_s1 + $0x298] sm:$0xff] }
  0x57   :  { %3301 = vmatprep.subr.bf16.mxu0 %v5175_v2  ;;  %3447 = vmatprep.subr.bf16.mxu1 %v5177_v3  ;;  %v518_v2 = vld [vmem:[%s7992_s1 + $0xe40] sm:$0xff]  ;;  %v511_v3 = vld [vmem:[%s7992_s1 + $0xe08] sm:$0xff] }
  0x58   :  { %3280 = vmatprep.mubr.bf16.mxu0 %v6089_v6  ;;  %3426 = vmatprep.mubr.bf16.mxu1 %v6089_v6  ;;  %v5287_v8 = vcombine.high %v510_v1, %v518_v2  ;;  %v5288_v16 = vcombine.low %v511_v3, %v519_v4 }
  0x5a   :  { %3302 = vmatpush1.bf16.msra.mxu0 %v5174_v9  ;;  %3448 = vmatpush1.bf16.msra.mxu1 %v5176_v12  ;;  %v5289_v9 = vcombine.high %v511_v3, %v519_v4  ;;  %v527_v12 = vld [vmem:[%s7992_s1 + $0xe88] sm:$0xff]  ;;  %v105_v3 = vld [vmem:[%s7992_s1 + $0x158] sm:$0xff] }
  0x5b   :  { %3303 = vmatprep.subr.bf16.mxu0 %v5191_v13  ;;  %3449 = vmatprep.subr.bf16.mxu1 %v5193_v14  ;;  %v535_v13 = vld [vmem:[%s7992_s1 + $0xec8] sm:$0xff]  ;;  %v5286_v14 = vcombine.low %v510_v1, %v518_v2  ;;  %v104_v1 = vld [vmem:[%s7992_s1 + $0x150] sm:$0xff]  ;;  %v97_v2 = vld [vmem:[%s7992_s1 + $0x118] sm:$0xff] }
  0x5c   :  { %v5305_v18 = vcombine.high %v527_v12, %v535_v13 }
  0x5d   :  { %3281 = vmatmul.mubr.bf16.gmra.mrb[12].mxu0 %v6119_v20  ;;  %3427 = vmatmul.mubr.bf16.gmra.mrb[12].mxu1 %v6119_v20 }
  0x5e   :  { %3304 = vmatpush1.bf16.msra.mxu0 %v5190_v23  ;;  %3450 = vmatpush1.bf16.msra.mxu1 %v5192_v24  ;;  %v551_v23 = vld [vmem:[%s7992_s1 + $0xf48] sm:$0xff]  ;;  %v5302_v24 = vcombine.low %v526_v10, %v534_v11  ;;  %v4877_v10 = vcombine.high %v97_v2, %v105_v3  ;;  %v112_v11 = vld [vmem:[%s7992_s1 + $0x190] sm:$0xff] }
  0x5f   :  { %3305 = vmatprep.subr.bf16.mxu0 %v5207_v26  ;;  %3451 = vmatprep.subr.bf16.mxu1 %v5209_v27  ;;  %v5304_v26 = vcombine.low %v527_v12, %v535_v13  ;;  %v5319_v27 = vcombine.high %v542_v19, %v550_v21  ;;  %v5321_v28 = vcombine.high %v543_v22, %v551_v23  ;;  %v120_v12 = vld [vmem:[%s7992_s1 + $0x1d0] sm:$0xff]  ;;  %v113_v13 = vld [vmem:[%s7992_s1 + $0x198] sm:$0xff] }
  0x60   :  { %3323 = vmatprep.mubr.bf16.mxu0 %v6133_v30  ;;  %3469 = vmatprep.mubr.bf16.mxu1 %v6133_v30 }
  0x62   :  { %3306 = vmatpush1.bf16.msra.mxu0 %v5206_v33  ;;  %3452 = vmatpush1.bf16.msra.mxu1 %v5208_v34  ;;  %v567_v33 = vld [vmem:[%s7992_s1 + $0xfc8] sm:$0xff]  ;;  %v5318_v34 = vcombine.low %v542_v19, %v550_v21  ;;  %v4876_v21 = vcombine.low %v97_v2, %v105_v3  ;;  %v184_v2 = vld [vmem:[%s7992_s1 + $0x3d0] sm:$0xff] }
  0x63   :  { %3307 = vmatprep.subr.bf16.mxu0 %v5223_v35  ;;  %3453 = vmatprep.subr.bf16.mxu1 %v5225_v36  ;;  %v5320_v35 = vcombine.low %v543_v22, %v551_v23  ;;  %v5335_v36 = vcombine.high %v558_v29, %v566_v31  ;;  %v5337_v37 = vcombine.high %v559_v32, %v567_v33 }
  0x64   :  { %v5336_v46 = vcombine.low %v559_v32, %v567_v33  ;;  %v4891_v22 = vcombine.high %v112_v11, %v120_v12  ;;  %v32_v32 = vld [vmem:[%s7993_s0 + $0x90] sm:$0xff] }
  0x65   :  { %v36_v33 = vld [vmem:[%s7993_s0 + $0xb0] sm:$0xff] }
  0x66   :  { %3308 = vmatpush1.bf16.msra.mxu0 %v5222_v42  ;;  %3454 = vmatpush1.bf16.msra.mxu1 %v5224_v43  ;;  %v73_v42 = vld [vmem:[%s7992_s1 + $0x58] sm:$0xff]  ;;  %v5334_v43 = vcombine.low %v558_v29, %v566_v31  ;;  %v4890_v31 = vcombine.low %v112_v11, %v120_v12  ;;  %v192_v11 = vld [vmem:[%s7992_s1 + $0x410] sm:$0xff] }
  0x67   :  { %3309 = vmatprep.subr.bf16.mxu0 %v5239_v44  ;;  %3455 = vmatprep.subr.bf16.mxu1 %v5241_v45  ;;  %v16_v44 = vld [vmem:[%s7993_s0 + $0x10] sm:$0xff]  ;;  %v4845_v49 = vcombine.high %v65_v41, %v73_v42  ;;  %v4844_v59 = vcombine.low %v65_v41, %v73_v42  ;;  %v137_v29 = vld [vmem:[%s7992_s1 + $0x258] sm:$0xff]  ;;  %v6344_v41 = vpack.c.bf16 %v36_v33, %v32_v32 }
  0x68   :  { %v20_v45 = vld [vmem:[%s7993_s0 + $0x30] sm:$0xff]  ;;  %v153_v42 = vld [vmem:[%s7992_s1 + $0x2d8] sm:$0xff] }
  0x69   :  { %v200_v12 = vld [vmem:[%s7992_s1 + $0x450] sm:$0xff] }
  0x6a   :  { %3310 = vmatpush1.bf16.msra.mxu0 %v5238_v51  ;;  %3456 = vmatpush1.bf16.msra.mxu1 %v5240_v52  ;;  %v88_v51 = vld [vmem:[%s7992_s1 + $0xd0] sm:$0xff]  ;;  %v81_v52 = vld [vmem:[%s7992_s1 + $0x98] sm:$0xff] }
  0x6b   :  { %3311 = vmatprep.subr.bf16.mxu0 %v5255_v53  ;;  %3457 = vmatprep.subr.bf16.mxu1 %v5257_v54  ;;  %v6256_v53 = vpack.c.bf16 %v20_v45, %v16_v44  ;;  %v89_v54 = vld [vmem:[%s7992_s1 + $0xd8] sm:$0xff]  ;;  %v4858_v4 = vcombine.low %v80_v50, %v88_v51  ;;  %v224_v33 = vld [vmem:[%s7992_s1 + $0x510] sm:$0xff] }
  0x6c   :  { %v45_v44 = vld [vmem:[%s7993_s0 + $0xf8] sm:$0xff] }
  0x6e   :  { %3312 = vmatpush1.bf16.msra.mxu0 %v5254_v60  ;;  %3458 = vmatpush1.bf16.msra.mxu1 %v5256_v62  ;;  %v4859_v60 = vcombine.high %v80_v50, %v88_v51  ;;  %v4861_v62 = vcombine.high %v81_v52, %v89_v54  ;;  %v160_v51 = vld [vmem:[%s7992_s1 + $0x310] sm:$0xff] }
  0x6f   :  { %3313 = vmatprep.subr.bf16.mxu0 %v5271_v63  ;;  %3459 = vmatprep.subr.bf16.mxu1 %v5273_v0  ;;  %v6267_v63 = vpack.c.bf16 %v29_v56, %v25_v55  ;;  %v96_v0 = vld [vmem:[%s7992_s1 + $0x110] sm:$0xff]  ;;  %v169_v55 = vld [vmem:[%s7992_s1 + $0x358] sm:$0xff] }
  0x70   :  { %v4874_v19 = vcombine.low %v96_v0, %v104_v1 }
  0x72   :  { %3314 = vmatpush1.bf16.msra.mxu0 %v5270_v5  ;;  %3460 = vmatpush1.bf16.msra.mxu1 %v5272_v7  ;;  %v24_v5 = vld [vmem:[%s7993_s0 + $0x50] sm:$0xff] }
  0x73   :  { %3315 = vmatprep.subr.bf16.mxu0 %v5287_v8  ;;  %3461 = vmatprep.subr.bf16.mxu1 %v5289_v9  ;;  %v28_v7 = vld [vmem:[%s7993_s0 + $0x70] sm:$0xff]  ;;  %v4860_v8 = vcombine.low %v81_v52, %v89_v54  ;;  %v4875_v9 = vcombine.high %v96_v0, %v104_v1  ;;  %v161_v54 = vld [vmem:[%s7992_s1 + $0x318] sm:$0xff] }
  0x74   :  { %v168_v52 = vld [vmem:[%s7992_s1 + $0x350] sm:$0xff]  ;;  %v4941_v0 = vcombine.high %v161_v54, %v169_v55 }
  0x75   :  { %v176_v1 = vld [vmem:[%s7992_s1 + $0x390] sm:$0xff] }
  0x76   :  { %3316 = vmatpush1.bf16.msra.mxu0 %v5286_v14  ;;  %3462 = vmatpush1.bf16.msra.mxu1 %v5288_v16  ;;  %v6300_v14 = vpack.c.bf16 %v28_v7, %v24_v5  ;;  %v121_v16 = vld [vmem:[%s7992_s1 + $0x1d8] sm:$0xff]  ;;  %v4938_v7 = vcombine.low %v160_v51, %v168_v52 }
  0x77   :  { %3317 = vmatprep.subr.bf16.mxu0 %v5303_v17  ;;  %3463 = vmatprep.subr.bf16.mxu1 %v5305_v18  ;;  %v33_v17 = vld [vmem:[%s7993_s0 + $0x98] sm:$0xff]  ;;  %v4893_v23 = vcombine.high %v113_v13, %v121_v16 }
  0x78   :  { %v37_v18 = vld [vmem:[%s7993_s0 + $0xb8] sm:$0xff] }
  0x79   :  { %v185_v5 = vld [vmem:[%s7992_s1 + $0x3d8] sm:$0xff] }
  0x7a   :  { %3318 = vmatpush1.bf16.msra.mxu0 %v5302_v24  ;;  %3464 = vmatpush1.bf16.msra.mxu1 %v5304_v26  ;;  %v6311_v24 = vpack.c.bf16 %v37_v18, %v33_v17  ;;  %v128_v26 = vld [vmem:[%s7992_s1 + $0x210] sm:$0xff]  ;;  %v4954_v17 = vcombine.low %v176_v1, %v184_v2 }
  0x7b   :  { %3319 = vmatprep.subr.bf16.mxu0 %v5319_v27  ;;  %3465 = vmatprep.subr.bf16.mxu1 %v5321_v28  ;;  %v136_v27 = vld [vmem:[%s7992_s1 + $0x250] sm:$0xff]  ;;  %v129_v28 = vld [vmem:[%s7992_s1 + $0x218] sm:$0xff] }
  0x7c   :  { %v4906_v45 = vcombine.low %v128_v26, %v136_v27 }
  0x7e   :  { %3320 = vmatpush1.bf16.msra.mxu0 %v5318_v34  ;;  %3466 = vmatpush1.bf16.msra.mxu1 %v5320_v35  ;;  %v4892_v34 = vcombine.low %v113_v13, %v121_v16  ;;  %v4907_v35 = vcombine.high %v128_v26, %v136_v27  ;;  %v193_v13 = vld [vmem:[%s7992_s1 + $0x418] sm:$0xff] }
  0x7f   :  { %3321 = vmatprep.subr.bf16.mxu0 %v5335_v36  ;;  %3467 = vmatprep.subr.bf16.mxu1 %v5337_v37  ;;  %v4909_v36 = vcombine.high %v129_v28, %v137_v29  ;;  %v144_v37 = vld [vmem:[%s7992_s1 + $0x290] sm:$0xff]  ;;  %v201_v16 = vld [vmem:[%s7992_s1 + $0x458] sm:$0xff] }
  0x80   :  { %v4922_v56 = vcombine.low %v144_v37, %v152_v39  ;;  %v209_v26 = vld [vmem:[%s7992_s1 + $0x498] sm:$0xff] }
  0x81   :  { %v217_v27 = vld [vmem:[%s7992_s1 + $0x4d8] sm:$0xff] }
  0x82   :  { %3322 = vmatpush1.bf16.msra.mxu0 %v5334_v43  ;;  %3468 = vmatpush1.bf16.msra.mxu1 %v5336_v46  ;;  %v41_v43 = vld [vmem:[%s7993_s0 + $0xd8] sm:$0xff]  ;;  %v4908_v46 = vcombine.low %v129_v28, %v137_v29  ;;  %v4970_v28 = vcombine.low %v192_v11, %v200_v12  ;;  %v4972_v29 = vcombine.low %v193_v13, %v201_v16 }
  0x83   :  { %3510 = vmatprep.subr.bf16.mxu0 %v4843_v48  ;;  %3656 = vmatprep.subr.bf16.mxu1 %v4845_v49  ;;  %v4923_v48 = vcombine.high %v144_v37, %v152_v39  ;;  %v4925_v49 = vcombine.high %v145_v40, %v153_v42  ;;  %v6355_v50 = vpack.c.bf16 %v45_v44, %v41_v43  ;;  %v240_v43 = vld [vmem:[%s7992_s1 + $0x590] sm:$0xff] }
  0x84   :  { %v4989_v32 = vcombine.high %v209_v26, %v217_v27  ;;  %v4988_v39 = vcombine.low %v209_v26, %v217_v27  ;;  %v248_v44 = vld [vmem:[%s7992_s1 + $0x5d0] sm:$0xff]  ;;  %v305_v26 = vld [vmem:[%s7992_s1 + $0x798] sm:$0xff] }
  0x85   :  { %3324 = vmatmul.mubr.bf16.vlgmr.msra.gmra.mrb[0].mxu0 %v6256_v53  ;;  %3470 = vmatmul.mubr.bf16.vlgmr.msra.gmra.mrb[0].mxu1 %v6256_v53  ;;  %v313_v27 = vld [vmem:[%s7992_s1 + $0x7d8] sm:$0xff] }
  0x86   :  { %3511 = vmatpush1.bf16.msra.mxu0 %v4842_v57  ;;  %3657 = vmatpush1.bf16.msra.mxu1 %v4844_v59  ;;  %v40_v57 = vld [vmem:[%s7993_s0 + $0xd0] sm:$0xff] }
  0x87   :  { %3512 = vmatprep.subr.bf16.mxu0 %v4859_v60  ;;  %3658 = vmatprep.subr.bf16.mxu1 %v4861_v62  ;;  %v44_v59 = vld [vmem:[%s7993_s0 + $0xf0] sm:$0xff]  ;;  %v4924_v60 = vcombine.low %v145_v40, %v153_v42  ;;  %v4939_v62 = vcombine.high %v160_v51, %v168_v52  ;;  %v5019_v51 = vcombine.high %v240_v43, %v248_v44 }
  0x88   :  { %3333 = vmatprep.mubr.bf16.mxu0 %v6267_v63  ;;  %3479 = vmatprep.mubr.bf16.mxu1 %v6267_v63  ;;  %v6385_v3 = vpack.c.bf16 %v44_v59, %v40_v57  ;;  %v265_v57 = vld [vmem:[%s7992_s1 + $0x658] sm:$0xff]  ;;  %v5018_v59 = vcombine.low %v240_v43, %v248_v44  ;;  %v336_v43 = vld [vmem:[%s7992_s1 + $0x890] sm:$0xff] }
  0x89   :  { %v344_v44 = vld [vmem:[%s7992_s1 + $0x8d0] sm:$0xff] }
  0x8a   :  { %3513 = vmatpush1.bf16.msra.mxu0 %v4858_v4  ;;  %3659 = vmatpush1.bf16.msra.mxu1 %v4860_v8  ;;  %v177_v4 = vld [vmem:[%s7992_s1 + $0x398] sm:$0xff]  ;;  %v4940_v8 = vcombine.low %v161_v54, %v169_v55  ;;  %v256_v54 = vld [vmem:[%s7992_s1 + $0x610] sm:$0xff] }
  0x8b   :  { %3514 = vmatprep.subr.bf16.mxu0 %v4875_v9  ;;  %3660 = vmatprep.subr.bf16.mxu1 %v4877_v10  ;;  %v4955_v9 = vcombine.high %v176_v1, %v184_v2  ;;  %v4957_v10 = vcombine.high %v177_v4, %v185_v5  ;;  %v4956_v18 = vcombine.low %v177_v4, %v185_v5  ;;  %v264_v55 = vld [vmem:[%s7992_s1 + $0x650] sm:$0xff]  ;;  %v273_v4 = vld [vmem:[%s7992_s1 + $0x698] sm:$0xff] }
  0x8c   :  { %v272_v1 = vld [vmem:[%s7992_s1 + $0x690] sm:$0xff]  ;;  %v281_v5 = vld [vmem:[%s7992_s1 + $0x6d8] sm:$0xff] }
  0x8d   :  { %3334 = vmatmul.mubr.bf16.gmra.mrb[4].mxu0 %v6300_v14  ;;  %3480 = vmatmul.mubr.bf16.gmra.mrb[4].mxu1 %v6300_v14  ;;  %v280_v2 = vld [vmem:[%s7992_s1 + $0x6d0] sm:$0xff] }
  0x8e   :  { %3515 = vmatpush1.bf16.msra.mxu0 %v4874_v19  ;;  %3661 = vmatpush1.bf16.msra.mxu1 %v4876_v21  ;;  %v4971_v19 = vcombine.high %v192_v11, %v200_v12  ;;  %v4973_v21 = vcombine.high %v193_v13, %v201_v16  ;;  %v288_v11 = vld [vmem:[%s7992_s1 + $0x710] sm:$0xff]  ;;  %v289_v13 = vld [vmem:[%s7992_s1 + $0x718] sm:$0xff] }
  0x8f   :  { %3516 = vmatprep.subr.bf16.mxu0 %v4891_v22  ;;  %3662 = vmatprep.subr.bf16.mxu1 %v4893_v23  ;;  %v208_v22 = vld [vmem:[%s7992_s1 + $0x490] sm:$0xff]  ;;  %v297_v16 = vld [vmem:[%s7992_s1 + $0x758] sm:$0xff] }
  0x90   :  { %3343 = vmatprep.mubr.bf16.mxu0 %v6311_v24  ;;  %3489 = vmatprep.mubr.bf16.mxu1 %v6311_v24  ;;  %v216_v23 = vld [vmem:[%s7992_s1 + $0x4d0] sm:$0xff] }
  0x91   :  { %v4986_v37 = vcombine.low %v208_v22, %v216_v23  ;;  %v296_v12 = vld [vmem:[%s7992_s1 + $0x750] sm:$0xff] }
  0x92   :  { %3517 = vmatpush1.bf16.msra.mxu0 %v4890_v31  ;;  %3663 = vmatpush1.bf16.msra.mxu1 %v4892_v34  ;;  %v4987_v31 = vcombine.high %v208_v22, %v216_v23  ;;  %v232_v34 = vld [vmem:[%s7992_s1 + $0x550] sm:$0xff] }
  0x93   :  { %3518 = vmatprep.subr.bf16.mxu0 %v4907_v35  ;;  %3664 = vmatprep.subr.bf16.mxu1 %v4909_v36  ;;  %v225_v35 = vld [vmem:[%s7992_s1 + $0x518] sm:$0xff]  ;;  %v5003_v40 = vcombine.high %v224_v33, %v232_v34  ;;  %v304_v22 = vld [vmem:[%s7992_s1 + $0x790] sm:$0xff] }
  0x94   :  { %v233_v36 = vld [vmem:[%s7992_s1 + $0x558] sm:$0xff]  ;;  %v312_v23 = vld [vmem:[%s7992_s1 + $0x7d0] sm:$0xff] }
  0x95   :  { %3344 = vmatmul.mubr.bf16.gmra.mrb[8].mxu0 %v6344_v41  ;;  %3490 = vmatmul.mubr.bf16.gmra.mrb[8].mxu1 %v6344_v41  ;;  %v5005_v42 = vcombine.high %v225_v35, %v233_v36 }
  0x96   :  { %3519 = vmatpush1.bf16.msra.mxu0 %v4906_v45  ;;  %3665 = vmatpush1.bf16.msra.mxu1 %v4908_v46  ;;  %v241_v45 = vld [vmem:[%s7992_s1 + $0x598] sm:$0xff] }
  0x97   :  { %3520 = vmatprep.subr.bf16.mxu0 %v4923_v48  ;;  %3666 = vmatprep.subr.bf16.mxu1 %v4925_v49  ;;  %v249_v46 = vld [vmem:[%s7992_s1 + $0x5d8] sm:$0xff]  ;;  %v5002_v48 = vcombine.low %v224_v33, %v232_v34  ;;  %v5004_v49 = vcombine.low %v225_v35, %v233_v36  ;;  %v320_v33 = vld [vmem:[%s7992_s1 + $0x810] sm:$0xff] }
  0x98   :  { %3353 = vmatprep.mubr.bf16.mxu0 %v6355_v50  ;;  %3499 = vmatprep.mubr.bf16.mxu1 %v6355_v50  ;;  %v5021_v52 = vcombine.high %v241_v45, %v249_v46  ;;  %v328_v34 = vld [vmem:[%s7992_s1 + $0x850] sm:$0xff]  ;;  %v321_v35 = vld [vmem:[%s7992_s1 + $0x818] sm:$0xff] }
  0x99   :  { %v329_v36 = vld [vmem:[%s7992_s1 + $0x858] sm:$0xff] }
  0x9a   :  { %3521 = vmatpush1.bf16.msra.mxu0 %v4922_v56  ;;  %3667 = vmatpush1.bf16.msra.mxu1 %v4924_v60  ;;  %v257_v56 = vld [vmem:[%s7992_s1 + $0x618] sm:$0xff]  ;;  %v5020_v60 = vcombine.low %v241_v45, %v249_v46 }
  0x9b   :  { %3522 = vmatprep.subr.bf16.mxu0 %v4939_v62  ;;  %3668 = vmatprep.subr.bf16.mxu1 %v4941_v0  ;;  %v5035_v62 = vcombine.high %v256_v54, %v264_v55  ;;  %v5037_v0 = vcombine.high %v257_v56, %v265_v57  ;;  %v337_v45 = vld [vmem:[%s7992_s1 + $0x898] sm:$0xff] }
  0x9c   :  { %v345_v46 = vld [vmem:[%s7992_s1 + $0x8d8] sm:$0xff] }
  0x9d   :  { %3354 = vmatmul.mubr.bf16.gmra.mrb[12].mxu0 %v6385_v3  ;;  %3500 = vmatmul.mubr.bf16.gmra.mrb[12].mxu1 %v6385_v3 }
  0x9e   :  { %3523 = vmatpush1.bf16.msra.mxu0 %v4938_v7  ;;  %3669 = vmatpush1.bf16.msra.mxu1 %v4940_v8  ;;  %v5034_v7 = vcombine.low %v256_v54, %v264_v55  ;;  %v5036_v8 = vcombine.low %v257_v56, %v265_v57  ;;  %v352_v54 = vld [vmem:[%s7992_s1 + $0x910] sm:$0xff]  ;;  %v353_v56 = vld [vmem:[%s7992_s1 + $0x918] sm:$0xff] }
  0x9f   :  { %3524 = vmatprep.subr.bf16.mxu0 %v4955_v9  ;;  %3670 = vmatprep.subr.bf16.mxu1 %v4957_v10  ;;  %v5051_v9 = vcombine.high %v272_v1, %v280_v2  ;;  %v5053_v10 = vcombine.high %v273_v4, %v281_v5  ;;  %v360_v55 = vld [vmem:[%s7992_s1 + $0x950] sm:$0xff]  ;;  %v361_v57 = vld [vmem:[%s7992_s1 + $0x958] sm:$0xff] }
  0xa0   :  { %3542 = vmatprep.mubr.bf16.mxu0 %v5851_v58  ;;  %3688 = vmatprep.mubr.bf16.mxu1 %v5851_v58 }
  0xa2   :  { %3525 = vmatpush1.bf16.msra.mxu0 %v4954_v17  ;;  %3671 = vmatpush1.bf16.msra.mxu1 %v4956_v18  ;;  %v5050_v17 = vcombine.low %v272_v1, %v280_v2  ;;  %v5052_v18 = vcombine.low %v273_v4, %v281_v5  ;;  %v368_v1 = vld [vmem:[%s7992_s1 + $0x990] sm:$0xff]  ;;  %v369_v4 = vld [vmem:[%s7992_s1 + $0x998] sm:$0xff] }
  0xa3   :  { %3526 = vmatprep.subr.bf16.mxu0 %v4971_v19  ;;  %3672 = vmatprep.subr.bf16.mxu1 %v4973_v21  ;;  %v5067_v19 = vcombine.high %v288_v11, %v296_v12  ;;  %v5069_v21 = vcombine.high %v289_v13, %v297_v16  ;;  %v376_v2 = vld [vmem:[%s7992_s1 + $0x9d0] sm:$0xff]  ;;  %v377_v5 = vld [vmem:[%s7992_s1 + $0x9d8] sm:$0xff] }
  0xa6   :  { %3527 = vmatpush1.bf16.msra.mxu0 %v4970_v28  ;;  %3673 = vmatpush1.bf16.msra.mxu1 %v4972_v29  ;;  %v5066_v28 = vcombine.low %v288_v11, %v296_v12  ;;  %v5068_v29 = vcombine.low %v289_v13, %v297_v16  ;;  %v384_v11 = vld [vmem:[%s7992_s1 + $0xa10] sm:$0xff]  ;;  %v385_v13 = vld [vmem:[%s7992_s1 + $0xa18] sm:$0xff] }
  0xa7   :  { %3528 = vmatprep.subr.bf16.mxu0 %v4987_v31  ;;  %3674 = vmatprep.subr.bf16.mxu1 %v4989_v32  ;;  %v5083_v31 = vcombine.high %v304_v22, %v312_v23  ;;  %v5085_v32 = vcombine.high %v305_v26, %v313_v27  ;;  %v392_v12 = vld [vmem:[%s7992_s1 + $0xa50] sm:$0xff]  ;;  %v393_v16 = vld [vmem:[%s7992_s1 + $0xa58] sm:$0xff] }
  0xaa   :  { %3529 = vmatpush1.bf16.msra.mxu0 %v4986_v37  ;;  %3675 = vmatpush1.bf16.msra.mxu1 %v4988_v39  ;;  %v5082_v37 = vcombine.low %v304_v22, %v312_v23  ;;  %v5084_v39 = vcombine.low %v305_v26, %v313_v27  ;;  %v400_v22 = vld [vmem:[%s7992_s1 + $0xa90] sm:$0xff]  ;;  %v401_v26 = vld [vmem:[%s7992_s1 + $0xa98] sm:$0xff] }
  0xab   :  { %3530 = vmatprep.subr.bf16.mxu0 %v5003_v40  ;;  %3676 = vmatprep.subr.bf16.mxu1 %v5005_v42  ;;  %v5099_v40 = vcombine.high %v320_v33, %v328_v34  ;;  %v5101_v42 = vcombine.high %v321_v35, %v329_v36  ;;  %v408_v23 = vld [vmem:[%s7992_s1 + $0xad0] sm:$0xff]  ;;  %v409_v27 = vld [vmem:[%s7992_s1 + $0xad8] sm:$0xff] }
  0xae   :  { %3531 = vmatpush1.bf16.msra.mxu0 %v5002_v48  ;;  %3677 = vmatpush1.bf16.msra.mxu1 %v5004_v49  ;;  %v5098_v48 = vcombine.low %v320_v33, %v328_v34  ;;  %v5100_v49 = vcombine.low %v321_v35, %v329_v36  ;;  %v416_v33 = vld [vmem:[%s7992_s1 + $0xb10] sm:$0xff]  ;;  %v417_v35 = vld [vmem:[%s7992_s1 + $0xb18] sm:$0xff] }
  0xaf   :  { %3532 = vmatprep.subr.bf16.mxu0 %v5019_v51  ;;  %3678 = vmatprep.subr.bf16.mxu1 %v5021_v52  ;;  %v5115_v51 = vcombine.high %v336_v43, %v344_v44  ;;  %v5117_v52 = vcombine.high %v337_v45, %v345_v46  ;;  %v424_v34 = vld [vmem:[%s7992_s1 + $0xb50] sm:$0xff]  ;;  %v425_v36 = vld [vmem:[%s7992_s1 + $0xb58] sm:$0xff] }
  0xb2   :  { %3533 = vmatpush1.bf16.msra.mxu0 %v5018_v59  ;;  %3679 = vmatpush1.bf16.msra.mxu1 %v5020_v60  ;;  %v5114_v59 = vcombine.low %v336_v43, %v344_v44  ;;  %v5116_v60 = vcombine.low %v337_v45, %v345_v46  ;;  %v432_v43 = vld [vmem:[%s7992_s1 + $0xb90] sm:$0xff]  ;;  %v433_v45 = vld [vmem:[%s7992_s1 + $0xb98] sm:$0xff] }
  0xb3   :  { %3534 = vmatprep.subr.bf16.mxu0 %v5035_v62  ;;  %3680 = vmatprep.subr.bf16.mxu1 %v5037_v0  ;;  %v5131_v62 = vcombine.high %v352_v54, %v360_v55  ;;  %v5133_v0 = vcombine.high %v353_v56, %v361_v57  ;;  %v440_v44 = vld [vmem:[%s7992_s1 + $0xbd0] sm:$0xff]  ;;  %v441_v46 = vld [vmem:[%s7992_s1 + $0xbd8] sm:$0xff] }
  0xb6   :  { %3535 = vmatpush1.bf16.msra.mxu0 %v5034_v7  ;;  %3681 = vmatpush1.bf16.msra.mxu1 %v5036_v8  ;;  %v5130_v7 = vcombine.low %v352_v54, %v360_v55  ;;  %v5132_v8 = vcombine.low %v353_v56, %v361_v57  ;;  %v448_v54 = vld [vmem:[%s7992_s1 + $0xc10] sm:$0xff]  ;;  %v449_v56 = vld [vmem:[%s7992_s1 + $0xc18] sm:$0xff] }
  0xb7   :  { %3536 = vmatprep.subr.bf16.mxu0 %v5051_v9  ;;  %3682 = vmatprep.subr.bf16.mxu1 %v5053_v10  ;;  %v5147_v9 = vcombine.high %v368_v1, %v376_v2  ;;  %v5149_v10 = vcombine.high %v369_v4, %v377_v5  ;;  %v456_v55 = vld [vmem:[%s7992_s1 + $0xc50] sm:$0xff]  ;;  %v457_v57 = vld [vmem:[%s7992_s1 + $0xc58] sm:$0xff] }
  0xba   :  { %3537 = vmatpush1.bf16.msra.mxu0 %v5050_v17  ;;  %3683 = vmatpush1.bf16.msra.mxu1 %v5052_v18  ;;  %v5146_v17 = vcombine.low %v368_v1, %v376_v2  ;;  %v5148_v18 = vcombine.low %v369_v4, %v377_v5  ;;  %v464_v1 = vld [vmem:[%s7992_s1 + $0xc90] sm:$0xff]  ;;  %v465_v4 = vld [vmem:[%s7992_s1 + $0xc98] sm:$0xff] }
  0xbb   :  { %3538 = vmatprep.subr.bf16.mxu0 %v5067_v19  ;;  %3684 = vmatprep.subr.bf16.mxu1 %v5069_v21  ;;  %v5163_v19 = vcombine.high %v384_v11, %v392_v12  ;;  %v5165_v21 = vcombine.high %v385_v13, %v393_v16  ;;  %v472_v2 = vld [vmem:[%s7992_s1 + $0xcd0] sm:$0xff]  ;;  %v473_v5 = vld [vmem:[%s7992_s1 + $0xcd8] sm:$0xff] }
  0xbe   :  { %3539 = vmatpush1.bf16.msra.mxu0 %v5066_v28  ;;  %3685 = vmatpush1.bf16.msra.mxu1 %v5068_v29  ;;  %v5162_v28 = vcombine.low %v384_v11, %v392_v12  ;;  %v5164_v29 = vcombine.low %v385_v13, %v393_v16  ;;  %v480_v11 = vld [vmem:[%s7992_s1 + $0xd10] sm:$0xff]  ;;  %v481_v13 = vld [vmem:[%s7992_s1 + $0xd18] sm:$0xff] }
  0xbf   :  { %3540 = vmatprep.subr.bf16.mxu0 %v5083_v31  ;;  %3686 = vmatprep.subr.bf16.mxu1 %v5085_v32  ;;  %v5179_v31 = vcombine.high %v400_v22, %v408_v23  ;;  %v5181_v32 = vcombine.high %v401_v26, %v409_v27  ;;  %v488_v12 = vld [vmem:[%s7992_s1 + $0xd50] sm:$0xff]  ;;  %v489_v16 = vld [vmem:[%s7992_s1 + $0xd58] sm:$0xff] }
  0xc2   :  { %3541 = vmatpush1.bf16.msra.mxu0 %v5082_v37  ;;  %3687 = vmatpush1.bf16.msra.mxu1 %v5084_v39  ;;  %v5178_v37 = vcombine.low %v400_v22, %v408_v23  ;;  %v5180_v39 = vcombine.low %v401_v26, %v409_v27  ;;  %v496_v22 = vld [vmem:[%s7992_s1 + $0xd90] sm:$0xff]  ;;  %v497_v26 = vld [vmem:[%s7992_s1 + $0xd98] sm:$0xff] }
  0xc3   :  { %3583 = vmatprep.subr.bf16.mxu0 %v5099_v40  ;;  %3729 = vmatprep.subr.bf16.mxu1 %v5101_v42  ;;  %v5195_v40 = vcombine.high %v416_v33, %v424_v34  ;;  %v5197_v42 = vcombine.high %v417_v35, %v425_v36  ;;  %v504_v23 = vld [vmem:[%s7992_s1 + $0xdd0] sm:$0xff]  ;;  %v505_v27 = vld [vmem:[%s7992_s1 + $0xdd8] sm:$0xff] }
  0xc5   :  { %3543 = vmatmul.mubr.bf16.vlgmr.msra.gmra.mrb[16].mxu0 %v5984_v15  ;;  %3689 = vmatmul.mubr.bf16.vlgmr.msra.gmra.mrb[16].mxu1 %v5984_v15 }
  0xc6   :  { %3584 = vmatpush1.bf16.msra.mxu0 %v5098_v48  ;;  %3730 = vmatpush1.bf16.msra.mxu1 %v5100_v49  ;;  %v5194_v48 = vcombine.low %v416_v33, %v424_v34  ;;  %v5196_v49 = vcombine.low %v417_v35, %v425_v36  ;;  %v512_v33 = vld [vmem:[%s7992_s1 + $0xe10] sm:$0xff]  ;;  %v513_v35 = vld [vmem:[%s7992_s1 + $0xe18] sm:$0xff] }
  0xc7   :  { %3585 = vmatprep.subr.bf16.mxu0 %v5115_v51  ;;  %3731 = vmatprep.subr.bf16.mxu1 %v5117_v52  ;;  %v5211_v51 = vcombine.high %v432_v43, %v440_v44  ;;  %v5213_v52 = vcombine.high %v433_v45, %v441_v46  ;;  %v520_v34 = vld [vmem:[%s7992_s1 + $0xe50] sm:$0xff]  ;;  %v521_v36 = vld [vmem:[%s7992_s1 + $0xe58] sm:$0xff] }
  0xc8   :  { %3552 = vmatprep.mubr.bf16.mxu0 %v6001_v25  ;;  %3698 = vmatprep.mubr.bf16.mxu1 %v6001_v25 }
  0xca   :  { %3586 = vmatpush1.bf16.msra.mxu0 %v5114_v59  ;;  %3732 = vmatpush1.bf16.msra.mxu1 %v5116_v60  ;;  %v5210_v59 = vcombine.low %v432_v43, %v440_v44  ;;  %v5212_v60 = vcombine.low %v433_v45, %v441_v46  ;;  %v528_v43 = vld [vmem:[%s7992_s1 + $0xe90] sm:$0xff]  ;;  %v529_v45 = vld [vmem:[%s7992_s1 + $0xe98] sm:$0xff] }
  0xcb   :  { %3587 = vmatprep.subr.bf16.mxu0 %v5131_v62  ;;  %3733 = vmatprep.subr.bf16.mxu1 %v5133_v0  ;;  %v5227_v62 = vcombine.high %v448_v54, %v456_v55  ;;  %v5229_v0 = vcombine.high %v449_v56, %v457_v57  ;;  %v536_v44 = vld [vmem:[%s7992_s1 + $0xed0] sm:$0xff]  ;;  %v537_v46 = vld [vmem:[%s7992_s1 + $0xed8] sm:$0xff] }
  0xcd   :  { %3553 = vmatmul.mubr.bf16.gmra.mrb[20].mxu0 %v6031_v38  ;;  %3699 = vmatmul.mubr.bf16.gmra.mrb[20].mxu1 %v6031_v38 }
  0xce   :  { %3588 = vmatpush1.bf16.msra.mxu0 %v5130_v7  ;;  %3734 = vmatpush1.bf16.msra.mxu1 %v5132_v8  ;;  %v5226_v7 = vcombine.low %v448_v54, %v456_v55  ;;  %v5228_v8 = vcombine.low %v449_v56, %v457_v57  ;;  %v544_v54 = vld [vmem:[%s7992_s1 + $0xf10] sm:$0xff]  ;;  %v545_v56 = vld [vmem:[%s7992_s1 + $0xf18] sm:$0xff] }
  0xcf   :  { %3589 = vmatprep.subr.bf16.mxu0 %v5147_v9  ;;  %3735 = vmatprep.subr.bf16.mxu1 %v5149_v10  ;;  %v5243_v9 = vcombine.high %v464_v1, %v472_v2  ;;  %v5245_v10 = vcombine.high %v465_v4, %v473_v5  ;;  %v552_v55 = vld [vmem:[%s7992_s1 + $0xf50] sm:$0xff]  ;;  %v553_v57 = vld [vmem:[%s7992_s1 + $0xf58] sm:$0xff] }
  0xd0   :  { %3562 = vmatprep.mubr.bf16.mxu0 %v6045_v47  ;;  %3708 = vmatprep.mubr.bf16.mxu1 %v6045_v47 }
  0xd2   :  { %3590 = vmatpush1.bf16.msra.mxu0 %v5146_v17  ;;  %3736 = vmatpush1.bf16.msra.mxu1 %v5148_v18  ;;  %v5242_v17 = vcombine.low %v464_v1, %v472_v2  ;;  %v5244_v18 = vcombine.low %v465_v4, %v473_v5  ;;  %v560_v1 = vld [vmem:[%s7992_s1 + $0xf90] sm:$0xff]  ;;  %v561_v4 = vld [vmem:[%s7992_s1 + $0xf98] sm:$0xff] }
  0xd3   :  { %3591 = vmatprep.subr.bf16.mxu0 %v5163_v19  ;;  %3737 = vmatprep.subr.bf16.mxu1 %v5165_v21  ;;  %v5259_v19 = vcombine.high %v480_v11, %v488_v12  ;;  %v5261_v21 = vcombine.high %v481_v13, %v489_v16  ;;  %v568_v2 = vld [vmem:[%s7992_s1 + $0xfd0] sm:$0xff]  ;;  %v569_v5 = vld [vmem:[%s7992_s1 + $0xfd8] sm:$0xff] }
  0xd5   :  { %3563 = vmatmul.mubr.bf16.gmra.mrb[24].mxu0 %v6075_v61  ;;  %3709 = vmatmul.mubr.bf16.gmra.mrb[24].mxu1 %v6075_v61 }
  0xd6   :  { %3592 = vmatpush1.bf16.msra.mxu0 %v5162_v28  ;;  %3738 = vmatpush1.bf16.msra.mxu1 %v5164_v29  ;;  %v5258_v28 = vcombine.low %v480_v11, %v488_v12  ;;  %v5260_v29 = vcombine.low %v481_v13, %v489_v16  ;;  %v66_v11 = vld [vmem:[%s7992_s1 + $0x20] sm:$0xff]  ;;  %v67_v13 = vld [vmem:[%s7992_s1 + $0x28] sm:$0xff] }
  0xd7   :  { %3593 = vmatprep.subr.bf16.mxu0 %v5179_v31  ;;  %3739 = vmatprep.subr.bf16.mxu1 %v5181_v32  ;;  %v5275_v31 = vcombine.high %v496_v22, %v504_v23  ;;  %v5277_v32 = vcombine.high %v497_v26, %v505_v27  ;;  %v74_v12 = vld [vmem:[%s7992_s1 + $0x60] sm:$0xff]  ;;  %v75_v16 = vld [vmem:[%s7992_s1 + $0x68] sm:$0xff] }
  0xd8   :  { %3572 = vmatprep.mubr.bf16.mxu0 %v6089_v6  ;;  %3718 = vmatprep.mubr.bf16.mxu1 %v6089_v6 }
  0xda   :  { %3594 = vmatpush1.bf16.msra.mxu0 %v5178_v37  ;;  %3740 = vmatpush1.bf16.msra.mxu1 %v5180_v39  ;;  %v5274_v37 = vcombine.low %v496_v22, %v504_v23  ;;  %v5276_v39 = vcombine.low %v497_v26, %v505_v27  ;;  %v82_v22 = vld [vmem:[%s7992_s1 + $0xa0] sm:$0xff]  ;;  %v83_v26 = vld [vmem:[%s7992_s1 + $0xa8] sm:$0xff] }
  0xdb   :  { %3595 = vmatprep.subr.bf16.mxu0 %v5195_v40  ;;  %3741 = vmatprep.subr.bf16.mxu1 %v5197_v42  ;;  %v5291_v40 = vcombine.high %v512_v33, %v520_v34  ;;  %v5293_v42 = vcombine.high %v513_v35, %v521_v36  ;;  %v90_v23 = vld [vmem:[%s7992_s1 + $0xe0] sm:$0xff]  ;;  %v91_v27 = vld [vmem:[%s7992_s1 + $0xe8] sm:$0xff] }
  0xdd   :  { %3573 = vmatmul.mubr.bf16.gmra.mrb[28].mxu0 %v6119_v20  ;;  %3719 = vmatmul.mubr.bf16.gmra.mrb[28].mxu1 %v6119_v20 }
  0xde   :  { %3596 = vmatpush1.bf16.msra.mxu0 %v5194_v48  ;;  %3742 = vmatpush1.bf16.msra.mxu1 %v5196_v49  ;;  %v5290_v48 = vcombine.low %v512_v33, %v520_v34  ;;  %v5292_v49 = vcombine.low %v513_v35, %v521_v36  ;;  %v98_v33 = vld [vmem:[%s7992_s1 + $0x120] sm:$0xff]  ;;  %v99_v35 = vld [vmem:[%s7992_s1 + $0x128] sm:$0xff] }
  0xdf   :  { %3597 = vmatprep.subr.bf16.mxu0 %v5211_v51  ;;  %3743 = vmatprep.subr.bf16.mxu1 %v5213_v52  ;;  %v5307_v51 = vcombine.high %v528_v43, %v536_v44  ;;  %v5309_v52 = vcombine.high %v529_v45, %v537_v46  ;;  %v106_v34 = vld [vmem:[%s7992_s1 + $0x160] sm:$0xff]  ;;  %v107_v36 = vld [vmem:[%s7992_s1 + $0x168] sm:$0xff] }
  0xe0   :  { %3615 = vmatprep.mubr.bf16.mxu0 %v6133_v30  ;;  %3761 = vmatprep.mubr.bf16.mxu1 %v6133_v30 }
  0xe2   :  { %3598 = vmatpush1.bf16.msra.mxu0 %v5210_v59  ;;  %3744 = vmatpush1.bf16.msra.mxu1 %v5212_v60  ;;  %v5306_v59 = vcombine.low %v528_v43, %v536_v44  ;;  %v5308_v60 = vcombine.low %v529_v45, %v537_v46  ;;  %v114_v43 = vld [vmem:[%s7992_s1 + $0x1a0] sm:$0xff]  ;;  %v115_v45 = vld [vmem:[%s7992_s1 + $0x1a8] sm:$0xff] }
  0xe3   :  { %3599 = vmatprep.subr.bf16.mxu0 %v5227_v62  ;;  %3745 = vmatprep.subr.bf16.mxu1 %v5229_v0  ;;  %v5323_v62 = vcombine.high %v544_v54, %v552_v55  ;;  %v5325_v0 = vcombine.high %v545_v56, %v553_v57  ;;  %v122_v44 = vld [vmem:[%s7992_s1 + $0x1e0] sm:$0xff]  ;;  %v123_v46 = vld [vmem:[%s7992_s1 + $0x1e8] sm:$0xff] }
  0xe6   :  { %3600 = vmatpush1.bf16.msra.mxu0 %v5226_v7  ;;  %3746 = vmatpush1.bf16.msra.mxu1 %v5228_v8  ;;  %v5322_v7 = vcombine.low %v544_v54, %v552_v55  ;;  %v5324_v8 = vcombine.low %v545_v56, %v553_v57  ;;  %v130_v54 = vld [vmem:[%s7992_s1 + $0x220] sm:$0xff]  ;;  %v131_v56 = vld [vmem:[%s7992_s1 + $0x228] sm:$0xff] }
  0xe7   :  { %3601 = vmatprep.subr.bf16.mxu0 %v5243_v9  ;;  %3747 = vmatprep.subr.bf16.mxu1 %v5245_v10  ;;  %v5339_v9 = vcombine.high %v560_v1, %v568_v2  ;;  %v5341_v10 = vcombine.high %v561_v4, %v569_v5  ;;  %v138_v55 = vld [vmem:[%s7992_s1 + $0x260] sm:$0xff]  ;;  %v139_v57 = vld [vmem:[%s7992_s1 + $0x268] sm:$0xff] }
  0xea   :  { %3602 = vmatpush1.bf16.msra.mxu0 %v5242_v17  ;;  %3748 = vmatpush1.bf16.msra.mxu1 %v5244_v18  ;;  %v5338_v17 = vcombine.low %v560_v1, %v568_v2  ;;  %v5340_v18 = vcombine.low %v561_v4, %v569_v5  ;;  %v146_v1 = vld [vmem:[%s7992_s1 + $0x2a0] sm:$0xff]  ;;  %v147_v4 = vld [vmem:[%s7992_s1 + $0x2a8] sm:$0xff] }
  0xeb   :  { %3603 = vmatprep.subr.bf16.mxu0 %v5259_v19  ;;  %3749 = vmatprep.subr.bf16.mxu1 %v5261_v21  ;;  %v4847_v19 = vcombine.high %v66_v11, %v74_v12  ;;  %v4849_v21 = vcombine.high %v67_v13, %v75_v16  ;;  %v154_v2 = vld [vmem:[%s7992_s1 + $0x2e0] sm:$0xff]  ;;  %v155_v5 = vld [vmem:[%s7992_s1 + $0x2e8] sm:$0xff] }
  0xee   :  { %3604 = vmatpush1.bf16.msra.mxu0 %v5258_v28  ;;  %3750 = vmatpush1.bf16.msra.mxu1 %v5260_v29  ;;  %v4846_v28 = vcombine.low %v66_v11, %v74_v12  ;;  %v4848_v29 = vcombine.low %v67_v13, %v75_v16  ;;  %v162_v11 = vld [vmem:[%s7992_s1 + $0x320] sm:$0xff]  ;;  %v163_v13 = vld [vmem:[%s7992_s1 + $0x328] sm:$0xff] }
  0xef   :  { %3605 = vmatprep.subr.bf16.mxu0 %v5275_v31  ;;  %3751 = vmatprep.subr.bf16.mxu1 %v5277_v32  ;;  %v4863_v31 = vcombine.high %v82_v22, %v90_v23  ;;  %v4865_v32 = vcombine.high %v83_v26, %v91_v27  ;;  %v170_v12 = vld [vmem:[%s7992_s1 + $0x360] sm:$0xff]  ;;  %v171_v16 = vld [vmem:[%s7992_s1 + $0x368] sm:$0xff] }
  0xf2   :  { %3606 = vmatpush1.bf16.msra.mxu0 %v5274_v37  ;;  %3752 = vmatpush1.bf16.msra.mxu1 %v5276_v39  ;;  %v4862_v37 = vcombine.low %v82_v22, %v90_v23  ;;  %v4864_v39 = vcombine.low %v83_v26, %v91_v27  ;;  %v178_v22 = vld [vmem:[%s7992_s1 + $0x3a0] sm:$0xff]  ;;  %v179_v26 = vld [vmem:[%s7992_s1 + $0x3a8] sm:$0xff] }
  0xf3   :  { %3607 = vmatprep.subr.bf16.mxu0 %v5291_v40  ;;  %3753 = vmatprep.subr.bf16.mxu1 %v5293_v42  ;;  %v4879_v40 = vcombine.high %v98_v33, %v106_v34  ;;  %v4881_v42 = vcombine.high %v99_v35, %v107_v36  ;;  %v186_v23 = vld [vmem:[%s7992_s1 + $0x3e0] sm:$0xff]  ;;  %v187_v27 = vld [vmem:[%s7992_s1 + $0x3e8] sm:$0xff] }
  0xf6   :  { %3608 = vmatpush1.bf16.msra.mxu0 %v5290_v48  ;;  %3754 = vmatpush1.bf16.msra.mxu1 %v5292_v49  ;;  %v4878_v48 = vcombine.low %v98_v33, %v106_v34  ;;  %v4880_v49 = vcombine.low %v99_v35, %v107_v36  ;;  %v194_v33 = vld [vmem:[%s7992_s1 + $0x420] sm:$0xff]  ;;  %v195_v35 = vld [vmem:[%s7992_s1 + $0x428] sm:$0xff] }
  0xf7   :  { %3609 = vmatprep.subr.bf16.mxu0 %v5307_v51  ;;  %3755 = vmatprep.subr.bf16.mxu1 %v5309_v52  ;;  %v4895_v51 = vcombine.high %v114_v43, %v122_v44  ;;  %v4897_v52 = vcombine.high %v115_v45, %v123_v46  ;;  %v202_v34 = vld [vmem:[%s7992_s1 + $0x460] sm:$0xff]  ;;  %v203_v36 = vld [vmem:[%s7992_s1 + $0x468] sm:$0xff] }
  0xfa   :  { %3610 = vmatpush1.bf16.msra.mxu0 %v5306_v59  ;;  %3756 = vmatpush1.bf16.msra.mxu1 %v5308_v60  ;;  %v4894_v59 = vcombine.low %v114_v43, %v122_v44  ;;  %v4896_v60 = vcombine.low %v115_v45, %v123_v46  ;;  %v210_v43 = vld [vmem:[%s7992_s1 + $0x4a0] sm:$0xff]  ;;  %v211_v45 = vld [vmem:[%s7992_s1 + $0x4a8] sm:$0xff] }
  0xfb   :  { %3611 = vmatprep.subr.bf16.mxu0 %v5323_v62  ;;  %3757 = vmatprep.subr.bf16.mxu1 %v5325_v0  ;;  %v4911_v62 = vcombine.high %v130_v54, %v138_v55  ;;  %v4913_v0 = vcombine.high %v131_v56, %v139_v57  ;;  %v218_v44 = vld [vmem:[%s7992_s1 + $0x4e0] sm:$0xff]  ;;  %v219_v46 = vld [vmem:[%s7992_s1 + $0x4e8] sm:$0xff] }
  0xfe   :  { %3612 = vmatpush1.bf16.msra.mxu0 %v5322_v7  ;;  %3758 = vmatpush1.bf16.msra.mxu1 %v5324_v8  ;;  %v4910_v7 = vcombine.low %v130_v54, %v138_v55  ;;  %v4912_v8 = vcombine.low %v131_v56, %v139_v57  ;;  %v226_v54 = vld [vmem:[%s7992_s1 + $0x520] sm:$0xff]  ;;  %v227_v56 = vld [vmem:[%s7992_s1 + $0x528] sm:$0xff] }
  0xff   :  { %3613 = vmatprep.subr.bf16.mxu0 %v5339_v9  ;;  %3759 = vmatprep.subr.bf16.mxu1 %v5341_v10  ;;  %v4927_v9 = vcombine.high %v146_v1, %v154_v2  ;;  %v4929_v10 = vcombine.high %v147_v4, %v155_v5  ;;  %v234_v55 = vld [vmem:[%s7992_s1 + $0x560] sm:$0xff]  ;;  %v235_v57 = vld [vmem:[%s7992_s1 + $0x568] sm:$0xff] }
 0x102   :  { %3614 = vmatpush1.bf16.msra.mxu0 %v5338_v17  ;;  %3760 = vmatpush1.bf16.msra.mxu1 %v5340_v18  ;;  %v4926_v17 = vcombine.low %v146_v1, %v154_v2  ;;  %v4928_v18 = vcombine.low %v147_v4, %v155_v5  ;;  %v242_v1 = vld [vmem:[%s7992_s1 + $0x5a0] sm:$0xff]  ;;  %v243_v4 = vld [vmem:[%s7992_s1 + $0x5a8] sm:$0xff] }
 0x103   :  { %3802 = vmatprep.subr.bf16.mxu0 %v4847_v19  ;;  %3948 = vmatprep.subr.bf16.mxu1 %v4849_v21  ;;  %v4943_v19 = vcombine.high %v162_v11, %v170_v12  ;;  %v4945_v21 = vcombine.high %v163_v13, %v171_v16  ;;  %v250_v2 = vld [vmem:[%s7992_s1 + $0x5e0] sm:$0xff]  ;;  %v251_v5 = vld [vmem:[%s7992_s1 + $0x5e8] sm:$0xff] }
 0x105   :  { %3616 = vmatmul.mubr.bf16.vlgmr.msra.gmra.mrb[16].mxu0 %v6256_v53  ;;  %3762 = vmatmul.mubr.bf16.vlgmr.msra.gmra.mrb[16].mxu1 %v6256_v53 }
 0x106   :  { %3803 = vmatpush1.bf16.msra.mxu0 %v4846_v28  ;;  %3949 = vmatpush1.bf16.msra.mxu1 %v4848_v29  ;;  %v4942_v28 = vcombine.low %v162_v11, %v170_v12  ;;  %v4944_v29 = vcombine.low %v163_v13, %v171_v16  ;;  %v258_v11 = vld [vmem:[%s7992_s1 + $0x620] sm:$0xff]  ;;  %v259_v13 = vld [vmem:[%s7992_s1 + $0x628] sm:$0xff] }
 0x107   :  { %3804 = vmatprep.subr.bf16.mxu0 %v4863_v31  ;;  %3950 = vmatprep.subr.bf16.mxu1 %v4865_v32  ;;  %v4959_v31 = vcombine.high %v178_v22, %v186_v23  ;;  %v4961_v32 = vcombine.high %v179_v26, %v187_v27  ;;  %v266_v12 = vld [vmem:[%s7992_s1 + $0x660] sm:$0xff]  ;;  %v267_v16 = vld [vmem:[%s7992_s1 + $0x668] sm:$0xff] }
 0x108   :  { %3625 = vmatprep.mubr.bf16.mxu0 %v6267_v63  ;;  %3771 = vmatprep.mubr.bf16.mxu1 %v6267_v63 }
 0x10a   :  { %3805 = vmatpush1.bf16.msra.mxu0 %v4862_v37  ;;  %3951 = vmatpush1.bf16.msra.mxu1 %v4864_v39  ;;  %v4958_v37 = vcombine.low %v178_v22, %v186_v23  ;;  %v4960_v39 = vcombine.low %v179_v26, %v187_v27  ;;  %v274_v22 = vld [vmem:[%s7992_s1 + $0x6a0] sm:$0xff]  ;;  %v275_v26 = vld [vmem:[%s7992_s1 + $0x6a8] sm:$0xff] }
 0x10b   :  { %3806 = vmatprep.subr.bf16.mxu0 %v4879_v40  ;;  %3952 = vmatprep.subr.bf16.mxu1 %v4881_v42  ;;  %v4975_v40 = vcombine.high %v194_v33, %v202_v34  ;;  %v4977_v42 = vcombine.high %v195_v35, %v203_v36  ;;  %v282_v23 = vld [vmem:[%s7992_s1 + $0x6e0] sm:$0xff]  ;;  %v283_v27 = vld [vmem:[%s7992_s1 + $0x6e8] sm:$0xff] }
 0x10d   :  { %3626 = vmatmul.mubr.bf16.gmra.mrb[20].mxu0 %v6300_v14  ;;  %3772 = vmatmul.mubr.bf16.gmra.mrb[20].mxu1 %v6300_v14 }
 0x10e   :  { %3807 = vmatpush1.bf16.msra.mxu0 %v4878_v48  ;;  %3953 = vmatpush1.bf16.msra.mxu1 %v4880_v49  ;;  %v4974_v48 = vcombine.low %v194_v33, %v202_v34  ;;  %v4976_v49 = vcombine.low %v195_v35, %v203_v36  ;;  %v290_v33 = vld [vmem:[%s7992_s1 + $0x720] sm:$0xff]  ;;  %v291_v35 = vld [vmem:[%s7992_s1 + $0x728] sm:$0xff] }
 0x10f   :  { %3808 = vmatprep.subr.bf16.mxu0 %v4895_v51  ;;  %3954 = vmatprep.subr.bf16.mxu1 %v4897_v52  ;;  %v4991_v51 = vcombine.high %v210_v43, %v218_v44  ;;  %v4993_v52 = vcombine.high %v211_v45, %v219_v46  ;;  %v298_v34 = vld [vmem:[%s7992_s1 + $0x760] sm:$0xff]  ;;  %v299_v36 = vld [vmem:[%s7992_s1 + $0x768] sm:$0xff] }
 0x110   :  { %3635 = vmatprep.mubr.bf16.mxu0 %v6311_v24  ;;  %3781 = vmatprep.mubr.bf16.mxu1 %v6311_v24 }
 0x112   :  { %3809 = vmatpush1.bf16.msra.mxu0 %v4894_v59  ;;  %3955 = vmatpush1.bf16.msra.mxu1 %v4896_v60  ;;  %v4990_v59 = vcombine.low %v210_v43, %v218_v44  ;;  %v4992_v60 = vcombine.low %v211_v45, %v219_v46  ;;  %v306_v43 = vld [vmem:[%s7992_s1 + $0x7a0] sm:$0xff]  ;;  %v307_v45 = vld [vmem:[%s7992_s1 + $0x7a8] sm:$0xff] }
 0x113   :  { %3810 = vmatprep.subr.bf16.mxu0 %v4911_v62  ;;  %3956 = vmatprep.subr.bf16.mxu1 %v4913_v0  ;;  %v5007_v62 = vcombine.high %v226_v54, %v234_v55  ;;  %v5009_v0 = vcombine.high %v227_v56, %v235_v57  ;;  %v314_v44 = vld [vmem:[%s7992_s1 + $0x7e0] sm:$0xff]  ;;  %v315_v46 = vld [vmem:[%s7992_s1 + $0x7e8] sm:$0xff] }
 0x115   :  { %3636 = vmatmul.mubr.bf16.gmra.mrb[24].mxu0 %v6344_v41  ;;  %3782 = vmatmul.mubr.bf16.gmra.mrb[24].mxu1 %v6344_v41 }
 0x116   :  { %3811 = vmatpush1.bf16.msra.mxu0 %v4910_v7  ;;  %3957 = vmatpush1.bf16.msra.mxu1 %v4912_v8  ;;  %v5006_v7 = vcombine.low %v226_v54, %v234_v55  ;;  %v5008_v8 = vcombine.low %v227_v56, %v235_v57  ;;  %v322_v54 = vld [vmem:[%s7992_s1 + $0x820] sm:$0xff]  ;;  %v323_v56 = vld [vmem:[%s7992_s1 + $0x828] sm:$0xff] }
 0x117   :  { %3812 = vmatprep.subr.bf16.mxu0 %v4927_v9  ;;  %3958 = vmatprep.subr.bf16.mxu1 %v4929_v10  ;;  %v5023_v9 = vcombine.high %v242_v1, %v250_v2  ;;  %v5025_v10 = vcombine.high %v243_v4, %v251_v5  ;;  %v330_v55 = vld [vmem:[%s7992_s1 + $0x860] sm:$0xff]  ;;  %v331_v57 = vld [vmem:[%s7992_s1 + $0x868] sm:$0xff] }
 0x118   :  { %3645 = vmatprep.mubr.bf16.mxu0 %v6355_v50  ;;  %3791 = vmatprep.mubr.bf16.mxu1 %v6355_v50 }
 0x11a   :  { %3813 = vmatpush1.bf16.msra.mxu0 %v4926_v17  ;;  %3959 = vmatpush1.bf16.msra.mxu1 %v4928_v18  ;;  %v5022_v17 = vcombine.low %v242_v1, %v250_v2  ;;  %v5024_v18 = vcombine.low %v243_v4, %v251_v5  ;;  %v338_v1 = vld [vmem:[%s7992_s1 + $0x8a0] sm:$0xff]  ;;  %v339_v4 = vld [vmem:[%s7992_s1 + $0x8a8] sm:$0xff] }
 0x11b   :  { %3814 = vmatprep.subr.bf16.mxu0 %v4943_v19  ;;  %3960 = vmatprep.subr.bf16.mxu1 %v4945_v21  ;;  %v5039_v19 = vcombine.high %v258_v11, %v266_v12  ;;  %v5041_v21 = vcombine.high %v259_v13, %v267_v16  ;;  %v346_v2 = vld [vmem:[%s7992_s1 + $0x8e0] sm:$0xff]  ;;  %v347_v5 = vld [vmem:[%s7992_s1 + $0x8e8] sm:$0xff] }
 0x11d   :  { %3646 = vmatmul.mubr.bf16.gmra.mrb[28].mxu0 %v6385_v3  ;;  %3792 = vmatmul.mubr.bf16.gmra.mrb[28].mxu1 %v6385_v3 }
 0x11e   :  { %3815 = vmatpush1.bf16.msra.mxu0 %v4942_v28  ;;  %3961 = vmatpush1.bf16.msra.mxu1 %v4944_v29  ;;  %v5038_v28 = vcombine.low %v258_v11, %v266_v12  ;;  %v5040_v29 = vcombine.low %v259_v13, %v267_v16  ;;  %v354_v11 = vld [vmem:[%s7992_s1 + $0x920] sm:$0xff]  ;;  %v355_v13 = vld [vmem:[%s7992_s1 + $0x928] sm:$0xff] }
 0x11f   :  { %3816 = vmatprep.subr.bf16.mxu0 %v4959_v31  ;;  %3962 = vmatprep.subr.bf16.mxu1 %v4961_v32  ;;  %v5055_v31 = vcombine.high %v274_v22, %v282_v23  ;;  %v5057_v32 = vcombine.high %v275_v26, %v283_v27  ;;  %v362_v12 = vld [vmem:[%s7992_s1 + $0x960] sm:$0xff]  ;;  %v363_v16 = vld [vmem:[%s7992_s1 + $0x968] sm:$0xff] }
 0x120   :  { %3834 = vmatprep.mubr.bf16.mxu0 %v5851_v58  ;;  %3980 = vmatprep.mubr.bf16.mxu1 %v5851_v58 }
 0x122   :  { %3817 = vmatpush1.bf16.msra.mxu0 %v4958_v37  ;;  %3963 = vmatpush1.bf16.msra.mxu1 %v4960_v39  ;;  %v5054_v37 = vcombine.low %v274_v22, %v282_v23  ;;  %v5056_v39 = vcombine.low %v275_v26, %v283_v27  ;;  %v370_v22 = vld [vmem:[%s7992_s1 + $0x9a0] sm:$0xff]  ;;  %v371_v26 = vld [vmem:[%s7992_s1 + $0x9a8] sm:$0xff] }
 0x123   :  { %3818 = vmatprep.subr.bf16.mxu0 %v4975_v40  ;;  %3964 = vmatprep.subr.bf16.mxu1 %v4977_v42  ;;  %v5071_v40 = vcombine.high %v290_v33, %v298_v34  ;;  %v5073_v42 = vcombine.high %v291_v35, %v299_v36  ;;  %v378_v23 = vld [vmem:[%s7992_s1 + $0x9e0] sm:$0xff]  ;;  %v379_v27 = vld [vmem:[%s7992_s1 + $0x9e8] sm:$0xff] }
 0x126   :  { %3819 = vmatpush1.bf16.msra.mxu0 %v4974_v48  ;;  %3965 = vmatpush1.bf16.msra.mxu1 %v4976_v49  ;;  %v5070_v48 = vcombine.low %v290_v33, %v298_v34  ;;  %v5072_v49 = vcombine.low %v291_v35, %v299_v36  ;;  %v5153_v33 = vcombine.high %v371_v26, %v379_v27  ;;  %v386_v34 = vld [vmem:[%s7992_s1 + $0xa20] sm:$0xff]  ;;  %v387_v36 = vld [vmem:[%s7992_s1 + $0xa28] sm:$0xff] }
 0x127   :  { %3820 = vmatprep.subr.bf16.mxu0 %v4991_v51  ;;  %3966 = vmatprep.subr.bf16.mxu1 %v4993_v52  ;;  %v5087_v51 = vcombine.high %v306_v43, %v314_v44  ;;  %v5089_v52 = vcombine.high %v307_v45, %v315_v46  ;;  %v394_v35 = vld [vmem:[%s7992_s1 + $0xa60] sm:$0xff] }
 0x12a   :  { %3821 = vmatpush1.bf16.msra.mxu0 %v4990_v59  ;;  %3967 = vmatpush1.bf16.msra.mxu1 %v4992_v60  ;;  %v5086_v59 = vcombine.low %v306_v43, %v314_v44  ;;  %v5088_v60 = vcombine.low %v307_v45, %v315_v46  ;;  %v5167_v43 = vcombine.high %v386_v34, %v394_v35  ;;  %v402_v45 = vld [vmem:[%s7992_s1 + $0xaa0] sm:$0xff] }
 0x12b   :  { %3822 = vmatprep.subr.bf16.mxu0 %v5007_v62  ;;  %3968 = vmatprep.subr.bf16.mxu1 %v5009_v0  ;;  %v5103_v62 = vcombine.high %v322_v54, %v330_v55  ;;  %v5105_v0 = vcombine.high %v323_v56, %v331_v57  ;;  %v410_v46 = vld [vmem:[%s7992_s1 + $0xae0] sm:$0xff] }
 0x12e   :  { %3823 = vmatpush1.bf16.msra.mxu0 %v5006_v7  ;;  %3969 = vmatpush1.bf16.msra.mxu1 %v5008_v8  ;;  %v5102_v7 = vcombine.low %v322_v54, %v330_v55  ;;  %v5104_v8 = vcombine.low %v323_v56, %v331_v57  ;;  %v574_v54 = vld [vmem:[%s7994_s2] sm:$0xff] }
 0x12f   :  { %3824 = vmatprep.subr.bf16.mxu0 %v5023_v9  ;;  %3970 = vmatprep.subr.bf16.mxu1 %v5025_v10  ;;  %v5119_v9 = vcombine.high %v338_v1, %v346_v2  ;;  %v5121_v10 = vcombine.high %v339_v4, %v347_v5 }
 0x132   :  { %3825 = vmatpush1.bf16.msra.mxu0 %v5022_v17  ;;  %3971 = vmatpush1.bf16.msra.mxu1 %v5024_v18  ;;  %v5118_v17 = vcombine.low %v338_v1, %v346_v2  ;;  %v5120_v18 = vcombine.low %v339_v4, %v347_v5  ;;  %v426_v1 = vld [vmem:[%s7992_s1 + $0xb60] sm:$0xff]  ;;  %v419_v4 = vld [vmem:[%s7992_s1 + $0xb28] sm:$0xff] }
 0x133   :  { %3826 = vmatprep.subr.bf16.mxu0 %v5039_v19  ;;  %3972 = vmatprep.subr.bf16.mxu1 %v5041_v21  ;;  %v5135_v19 = vcombine.high %v354_v11, %v362_v12  ;;  %v5137_v21 = vcombine.high %v355_v13, %v363_v16  ;;  %v427_v5 = vld [vmem:[%s7992_s1 + $0xb68] sm:$0xff] }
 0x136   :  { %3827 = vmatpush1.bf16.msra.mxu0 %v5038_v28  ;;  %3973 = vmatpush1.bf16.msra.mxu1 %v5040_v29  ;;  %v578_v28 = vlaneseq  ;;  %v5134_v29 = vcombine.low %v354_v11, %v362_v12 }
 0x137   :  { %3828 = vmatprep.subr.bf16.mxu0 %v5055_v31  ;;  %3974 = vmatprep.subr.bf16.mxu1 %v5057_v32  ;;  %v5136_v31 = vcombine.low %v355_v13, %v363_v16  ;;  %v5151_v32 = vcombine.high %v370_v22, %v378_v23  ;;  %v5201_v16 = vcombine.high %v419_v4, %v427_v5 }
 0x13a   :  { %3829 = vmatpush1.bf16.msra.mxu0 %v5054_v37  ;;  %3975 = vmatpush1.bf16.msra.mxu1 %v5056_v39  ;;  %v395_v37 = vld [vmem:[%s7992_s1 + $0xa68] sm:$0xff]  ;;  %v6973_v39 = vshrl.u32 %v578_v28, 7 }
 0x13b   :  { %3830 = vmatprep.subr.bf16.mxu0 %v5071_v40  ;;  %3976 = vmatprep.subr.bf16.mxu1 %v5073_v42  ;;  %v5150_v40 = vcombine.low %v370_v22, %v378_v23  ;;  %v5152_v42 = vcombine.low %v371_v26, %v379_v27  ;;  %v5169_v44 = vcombine.high %v387_v36, %v395_v37  ;;  %v7043_v23 = vld [vmem:[%s7992_s1 + $0xba8] sm:$0xff] }
 0x13c   :  { %v588_v55 = vsub.s32 2, %v6973_v39  ;;  %v584_v56 = vsub.s32 1, %v6973_v39  ;;  %v5168_v57 = vcombine.low %v387_v36, %v395_v37  ;;  %v7048_v26 = vld [vmem:[%s7992_s1 + $0xbe8] sm:$0xff] }
 0x13e   :  { %3831 = vmatpush1.bf16.msra.mxu0 %v5070_v48  ;;  %3977 = vmatpush1.bf16.msra.mxu1 %v5072_v49  ;;  %v580_v48 = vsub.s32 0, %v6973_v39  ;;  %v403_v49 = vld [vmem:[%s7992_s1 + $0xaa8] sm:$0xff] }
 0x13f   :  { %3832 = vmatprep.subr.bf16.mxu0 %v5087_v51  ;;  %3978 = vmatprep.subr.bf16.mxu1 %v5089_v52  ;;  %v411_v51 = vld [vmem:[%s7992_s1 + $0xae8] sm:$0xff]  ;;  %v5166_v52 = vcombine.low %v386_v34, %v394_v35 }
 0x140   :  { %v7006_v2 = vrot.slane %v574_v54, %v580_v48  ;;  %v5184_v11 = vcombine.low %v403_v49, %v411_v51 }
 0x142   :  { %3833 = vmatpush1.bf16.msra.mxu0 %v5086_v59  ;;  %3979 = vmatpush1.bf16.msra.mxu1 %v5088_v60  ;;  %v592_v59 = vsub.s32 3, %v6973_v39  ;;  %v5183_v60 = vcombine.high %v402_v45, %v410_v46 }
 0x143   :  { %3875 = vmatprep.subr.bf16.mxu0 %v5103_v62  ;;  %4021 = vmatprep.subr.bf16.mxu1 %v5105_v0  ;;  %v5185_v62 = vcombine.high %v403_v49, %v411_v51  ;;  %v418_v0 = vld [vmem:[%s7992_s1 + $0xb20] sm:$0xff] }
 0x144   :  { %v5199_v12 = vcombine.high %v418_v0, %v426_v1  ;;  %v450_v49 = vld [vmem:[%s7992_s1 + $0xc20] sm:$0xff] }
 0x145   :  { %3835 = vmatmul.mubr.bf16.vlgmr.msra.gmra.mrb[32].mxu0 %v5984_v15  ;;  %3981 = vmatmul.mubr.bf16.vlgmr.msra.gmra.mrb[32].mxu1 %v5984_v15  ;;  %v458_v51 = vld [vmem:[%s7992_s1 + $0xc60] sm:$0xff] }
 0x146   :  { %3876 = vmatpush1.bf16.msra.mxu0 %v5102_v7  ;;  %4022 = vmatpush1.bf16.msra.mxu1 %v5104_v8  ;;  %v7017_v7 = vrot.slane %v574_v54, %v588_v55  ;;  %v7021_v8 = vrot.slane %v574_v54, %v584_v56 }
 0x147   :  { %3877 = vmatprep.subr.bf16.mxu0 %v5119_v9  ;;  %4023 = vmatprep.subr.bf16.mxu1 %v5121_v10  ;;  %v5182_v9 = vcombine.low %v402_v45, %v410_v46  ;;  %v7026_v10 = vrot.slane %v574_v54, %v592_v59  ;;  %v5217_v46 = vcombine.high %v7043_v23, %v7048_v26 }
 0x148   :  { %3844 = vmatprep.mubr.bf16.mxu0 %v6001_v25  ;;  %3990 = vmatprep.mubr.bf16.mxu1 %v6001_v25 }
 0x14a   :  { %3878 = vmatpush1.bf16.msra.mxu0 %v5118_v17  ;;  %4024 = vmatpush1.bf16.msra.mxu1 %v5120_v18  ;;  %v7031_v17 = vld [vmem:[%s7992_s1 + $0xba0] sm:$0xff] }
 0x14b   :  { %3879 = vmatprep.subr.bf16.mxu0 %v5135_v19  ;;  %4025 = vmatprep.subr.bf16.mxu1 %v5137_v21  ;;  %v7036_v18 = vld [vmem:[%s7992_s1 + $0xbe0] sm:$0xff] }
 0x14d   :  { %3845 = vmatmul.mubr.bf16.gmra.mrb[36].mxu0 %v6031_v38  ;;  %3991 = vmatmul.mubr.bf16.gmra.mrb[36].mxu1 %v6031_v38 }
 0x14e   :  { %3880 = vmatpush1.bf16.msra.mxu0 %v5134_v29  ;;  %4026 = vmatpush1.bf16.msra.mxu1 %v5136_v31 }
 0x14f   :  { %3881 = vmatprep.subr.bf16.mxu0 %v5151_v32  ;;  %4027 = vmatprep.subr.bf16.mxu1 %v5153_v33  ;;  %v5198_v32 = vcombine.low %v418_v0, %v426_v1  ;;  %v5200_v33 = vcombine.low %v419_v4, %v427_v5  ;;  %v5214_v0 = vcombine.low %v7031_v17, %v7036_v18 }
 0x150   :  { %3854 = vmatprep.mubr.bf16.mxu0 %v6045_v47  ;;  %4000 = vmatprep.mubr.bf16.mxu1 %v6045_v47  ;;  %v5216_v4 = vcombine.low %v7043_v23, %v7048_v26  ;;  %v5231_v5 = vcombine.high %v450_v49, %v458_v51 }
 0x152   :  { %3882 = vmatpush1.bf16.msra.mxu0 %v5150_v40  ;;  %4028 = vmatpush1.bf16.msra.mxu1 %v5152_v42  ;;  %v5215_v40 = vcombine.high %v7031_v17, %v7036_v18 }
 0x153   :  { %3883 = vmatprep.subr.bf16.mxu0 %v5167_v43  ;;  %4029 = vmatprep.subr.bf16.mxu1 %v5169_v44 }
 0x155   :  { %3855 = vmatmul.mubr.bf16.gmra.mrb[40].mxu0 %v6075_v61  ;;  %4001 = vmatmul.mubr.bf16.gmra.mrb[40].mxu1 %v6075_v61 }
 0x156   :  { %3884 = vmatpush1.bf16.msra.mxu0 %v5166_v52  ;;  %4030 = vmatpush1.bf16.msra.mxu1 %v5168_v57  ;;  %v451_v57 = vld [vmem:[%s7992_s1 + $0xc28] sm:$0xff] }
 0x157   :  { %3885 = vmatprep.subr.bf16.mxu0 %v5183_v60  ;;  %4031 = vmatprep.subr.bf16.mxu1 %v5185_v62  ;;  %v459_v60 = vld [vmem:[%s7992_s1 + $0xc68] sm:$0xff] }
 0x158   :  { %v3325_v13 = vpop.f32.mrb[0].mxu0  ;;  %3864 = vmatprep.mubr.bf16.mxu0 %v6089_v6  ;;  %v3471_v21 = vpop.f32.mrb[0].mxu1  ;;  %4010 = vmatprep.mubr.bf16.mxu1 %v6089_v6 }
 0x159   :  { %v5478_v19 = vadd.f32 %v3325_v13, %v7006_v2  ;;  %v3327_v22 = vpop.f32.mrb[1].mxu0  ;;  %v5494_v27 = vadd.f32 %v3471_v21, %v7017_v7  ;;  %v3473_v29 = vpop.f32.mrb[1].mxu1  ;;  %v474_v13 = vld [vmem:[%s7992_s1 + $0xce0] sm:$0xff]  ;;  %v475_v21 = vld [vmem:[%s7992_s1 + $0xce8] sm:$0xff] }
 0x15a   :  { %v5479_v28 = vadd.f32 %v3327_v22, %v7021_v8  ;;  %v3329_v31 = vpop.f32.mrb[2].mxu0  ;;  %3886 = vmatpush1.bf16.msra.mxu0 %v5182_v9  ;;  %v5495_v34 = vadd.f32 %v3473_v29, %v7026_v10  ;;  %v3475_v36 = vpop.f32.mrb[2].mxu1  ;;  %4032 = vmatpush1.bf16.msra.mxu1 %v5184_v11  ;;  %v5233_v11 = vcombine.high %v451_v57, %v459_v60 }
 0x15b   :  { %v5480_v35 = vadd.f32 %v3329_v31, %v7006_v2  ;;  %v3331_v37 = vpop.f32.mrb[3].mxu0  ;;  %3887 = vmatprep.subr.bf16.mxu0 %v5199_v12  ;;  %v5496_v43 = vadd.f32 %v3475_v36, %v7017_v7  ;;  %v3477_v45 = vpop.f32.mrb[3].mxu1  ;;  %4033 = vmatprep.subr.bf16.mxu1 %v5201_v16  ;;  %v466_v12 = vld [vmem:[%s7992_s1 + $0xca0] sm:$0xff]  ;;  %v5232_v29 = vcombine.low %v451_v57, %v459_v60 }
 0x15c   :  { %v5414_v42 = vpack.c.bf16 %v5479_v28, %v5478_v19  ;;  %v5481_v44 = vadd.f32 %v3331_v37, %v7021_v8  ;;  %v5415_v52 = vpack.c.bf16 %v5495_v34, %v5494_v27  ;;  %v5497_v54 = vadd.f32 %v3477_v45, %v7026_v10  ;;  %v467_v19 = vld [vmem:[%s7992_s1 + $0xca8] sm:$0xff]  ;;  %v490_v45 = vld [vmem:[%s7992_s1 + $0xd60] sm:$0xff] }
 0x15d   :  { %3865 = vmatmul.mubr.bf16.gmra.mrb[44].mxu0 %v6119_v20  ;;  %4011 = vmatmul.mubr.bf16.gmra.mrb[44].mxu1 %v6119_v20  ;;  %v5230_v28 = vcombine.low %v450_v49, %v458_v51  ;;  %v483_v51 = vld [vmem:[%s7992_s1 + $0xd28] sm:$0xff]  ;;  %v5246_v57 = vcombine.low %v466_v12, %v474_v13 }
 0x15e   :  { %4770 = vst [vmem:[%s7995_s3] sm:$0xff] %v5414_v42  ;;  %v5422_v62 = vpack.c.bf16 %v5481_v44, %v5480_v35  ;;  %3888 = vmatpush1.bf16.msra.mxu0 %v5198_v32  ;;  %4771 = vst [vmem:[%s7995_s3 + $0x8] sm:$0xff] %v5415_v52  ;;  %v5423_v1 = vpack.c.bf16 %v5497_v54, %v5496_v43  ;;  %4034 = vmatpush1.bf16.msra.mxu1 %v5200_v33  ;;  %v482_v44 = vld [vmem:[%s7992_s1 + $0xd20] sm:$0xff]  ;;  %v491_v52 = vld [vmem:[%s7992_s1 + $0xd68] sm:$0xff] }
 0x15f   :  { %3889 = vmatprep.subr.bf16.mxu0 %v5215_v40  ;;  %4035 = vmatprep.subr.bf16.mxu1 %v5217_v46  ;;  %v5247_v35 = vcombine.high %v466_v12, %v474_v13  ;;  %v5249_v43 = vcombine.high %v467_v19, %v475_v21 }
 0x160   :  { %4778 = vst [vmem:[%s7995_s3 + $0x40] sm:$0xff] %v5422_v62  ;;  %v3335_v9 = vpop.f32.mrb[4].mxu0  ;;  %3907 = vmatprep.mubr.bf16.mxu0 %v6133_v30  ;;  %4779 = vst [vmem:[%s7995_s3 + $0x48] sm:$0xff] %v5423_v1  ;;  %v3481_v17 = vpop.f32.mrb[4].mxu1  ;;  %4053 = vmatprep.mubr.bf16.mxu1 %v6133_v30  ;;  %v5248_v62 = vcombine.low %v467_v19, %v475_v21 }
 0x161   :  { %v5482_v16 = vadd.f32 %v3335_v9, %v7006_v2  ;;  %v3337_v18 = vpop.f32.mrb[5].mxu0  ;;  %v5498_v22 = vadd.f32 %v3481_v17, %v7017_v7  ;;  %v3483_v26 = vpop.f32.mrb[5].mxu1  ;;  %v506_v9 = vld [vmem:[%s7992_s1 + $0xde0] sm:$0xff]  ;;  %v507_v17 = vld [vmem:[%s7992_s1 + $0xde8] sm:$0xff] }
 0x162   :  { %v5483_v23 = vadd.f32 %v3337_v18, %v7021_v8  ;;  %v3339_v27 = vpop.f32.mrb[6].mxu0  ;;  %3890 = vmatpush1.bf16.msra.mxu0 %v5214_v0  ;;  %v5499_v31 = vadd.f32 %v3483_v26, %v7026_v10  ;;  %v3485_v33 = vpop.f32.mrb[6].mxu1  ;;  %4036 = vmatpush1.bf16.msra.mxu1 %v5216_v4  ;;  %v5263_v0 = vcombine.high %v482_v44, %v490_v45 }
 0x163   :  { %v5484_v32 = vadd.f32 %v3339_v27, %v7006_v2  ;;  %v3341_v34 = vpop.f32.mrb[7].mxu0  ;;  %3891 = vmatprep.subr.bf16.mxu0 %v5231_v5  ;;  %v5500_v37 = vadd.f32 %v3485_v33, %v7017_v7  ;;  %v3487_v42 = vpop.f32.mrb[7].mxu1  ;;  %4037 = vmatprep.subr.bf16.mxu1 %v5233_v11  ;;  %v5265_v4 = vcombine.high %v483_v51, %v491_v52  ;;  %v498_v5 = vld [vmem:[%s7992_s1 + $0xda0] sm:$0xff] }
 0x164   :  { %v5430_v36 = vpack.c.bf16 %v5483_v23, %v5482_v16  ;;  %v5485_v40 = vadd.f32 %v3341_v34, %v7021_v8  ;;  %v5431_v46 = vpack.c.bf16 %v5499_v31, %v5498_v22  ;;  %v5501_v49 = vadd.f32 %v3487_v42, %v7026_v10  ;;  %v499_v16 = vld [vmem:[%s7992_s1 + $0xda8] sm:$0xff]  ;;  %v522_v42 = vld [vmem:[%s7992_s1 + $0xe60] sm:$0xff] }
 0x165   :  { %v5262_v23 = vcombine.low %v482_v44, %v490_v45  ;;  %v5264_v26 = vcombine.low %v483_v51, %v491_v52  ;;  %v515_v45 = vld [vmem:[%s7992_s1 + $0xe28] sm:$0xff]  ;;  %v5278_v51 = vcombine.low %v498_v5, %v506_v9 }
 0x166   :  { %4786 = vst [vmem:[%s7995_s3 + $0x80] sm:$0xff] %v5430_v36  ;;  %v5438_v54 = vpack.c.bf16 %v5485_v40, %v5484_v32  ;;  %3892 = vmatpush1.bf16.msra.mxu0 %v5230_v28  ;;  %4787 = vst [vmem:[%s7995_s3 + $0x88] sm:$0xff] %v5431_v46  ;;  %v5439_v60 = vpack.c.bf16 %v5501_v49, %v5500_v37  ;;  %4038 = vmatpush1.bf16.msra.mxu1 %v5232_v29  ;;  %v514_v40 = vld [vmem:[%s7992_s1 + $0xe20] sm:$0xff]  ;;  %v523_v46 = vld [vmem:[%s7992_s1 + $0xe68] sm:$0xff] }
 0x167   :  { %3893 = vmatprep.subr.bf16.mxu0 %v5247_v35  ;;  %4039 = vmatprep.subr.bf16.mxu1 %v5249_v43  ;;  %v5279_v32 = vcombine.high %v498_v5, %v506_v9  ;;  %v5281_v37 = vcombine.high %v499_v16, %v507_v17 }
 0x168   :  { %4794 = vst [vmem:[%s7995_s3 + $0xc0] sm:$0xff] %v5438_v54  ;;  %v3345_v1 = vpop.f32.mrb[8].mxu0  ;;  %4795 = vst [vmem:[%s7995_s3 + $0xc8] sm:$0xff] %v5439_v60  ;;  %v3491_v12 = vpop.f32.mrb[8].mxu1  ;;  %v5280_v54 = vcombine.low %v499_v16, %v507_v17 }
 0x169   :  { %v5486_v11 = vadd.f32 %v3345_v1, %v7006_v2  ;;  %v3347_v13 = vpop.f32.mrb[9].mxu0  ;;  %v5502_v18 = vadd.f32 %v3491_v12, %v7017_v7  ;;  %v3493_v21 = vpop.f32.mrb[9].mxu1  ;;  %v538_v1 = vld [vmem:[%s7992_s1 + $0xee0] sm:$0xff]  ;;  %v539_v12 = vld [vmem:[%s7992_s1 + $0xee8] sm:$0xff] }
 0x16a   :  { %v5487_v19 = vadd.f32 %v3347_v13, %v7021_v8  ;;  %v3349_v22 = vpop.f32.mrb[10].mxu0  ;;  %3894 = vmatpush1.bf16.msra.mxu0 %v5246_v57  ;;  %v5503_v27 = vadd.f32 %v3493_v21, %v7026_v10  ;;  %v3495_v29 = vpop.f32.mrb[10].mxu1  ;;  %4040 = vmatpush1.bf16.msra.mxu1 %v5248_v62  ;;  %v5295_v57 = vcombine.high %v514_v40, %v522_v42 }
 0x16b   :  { %v5488_v28 = vadd.f32 %v3349_v22, %v7006_v2  ;;  %v3351_v31 = vpop.f32.mrb[11].mxu0  ;;  %3895 = vmatprep.subr.bf16.mxu0 %v5263_v0  ;;  %v5504_v34 = vadd.f32 %v3495_v29, %v7017_v7  ;;  %v3497_v36 = vpop.f32.mrb[11].mxu1  ;;  %4041 = vmatprep.subr.bf16.mxu1 %v5265_v4  ;;  %v5297_v62 = vcombine.high %v515_v45, %v523_v46  ;;  %v530_v0 = vld [vmem:[%s7992_s1 + $0xea0] sm:$0xff] }
 0x16c   :  { %v5446_v33 = vpack.c.bf16 %v5487_v19, %v5486_v11  ;;  %v5489_v35 = vadd.f32 %v3351_v31, %v7021_v8  ;;  %v5447_v43 = vpack.c.bf16 %v5503_v27, %v5502_v18  ;;  %v5505_v44 = vadd.f32 %v3497_v36, %v7026_v10  ;;  %v531_v11 = vld [vmem:[%s7992_s1 + $0xea8] sm:$0xff] }
 0x16d   :  { %v5294_v19 = vcombine.low %v514_v40, %v522_v42  ;;  %v5296_v21 = vcombine.low %v515_v45, %v523_v46  ;;  %v5310_v42 = vcombine.low %v530_v0, %v538_v1  ;;  %v562_v46 = vld [vmem:[%s7992_s1 + $0xfa0] sm:$0xff] }
 0x16e   :  { %4802 = vst [vmem:[%s7995_s3 + $0x100] sm:$0xff] %v5446_v33  ;;  %v5454_v49 = vpack.c.bf16 %v5489_v35, %v5488_v28  ;;  %3896 = vmatpush1.bf16.msra.mxu0 %v5262_v23  ;;  %4803 = vst [vmem:[%s7995_s3 + $0x108] sm:$0xff] %v5447_v43  ;;  %v5455_v52 = vpack.c.bf16 %v5505_v44, %v5504_v34  ;;  %4042 = vmatpush1.bf16.msra.mxu1 %v5264_v26  ;;  %v546_v35 = vld [vmem:[%s7992_s1 + $0xf20] sm:$0xff] }
 0x16f   :  { %3897 = vmatprep.subr.bf16.mxu0 %v5279_v32  ;;  %4043 = vmatprep.subr.bf16.mxu1 %v5281_v37  ;;  %v5311_v28 = vcombine.high %v530_v0, %v538_v1  ;;  %v5313_v34 = vcombine.high %v531_v11, %v539_v12  ;;  %v5312_v43 = vcombine.low %v531_v11, %v539_v12  ;;  %v68_v0 = vld [vmem:[%s7992_s1 + $0x30] sm:$0xff] }
 0x170   :  { %4810 = vst [vmem:[%s7995_s3 + $0x140] sm:$0xff] %v5454_v49  ;;  %v3355_v60 = vpop.f32.mrb[12].mxu0  ;;  %4811 = vst [vmem:[%s7995_s3 + $0x148] sm:$0xff] %v5455_v52  ;;  %v3501_v5 = vpop.f32.mrb[12].mxu1  ;;  %v570_v49 = vld [vmem:[%s7992_s1 + $0xfe0] sm:$0xff]  ;;  %v571_v52 = vld [vmem:[%s7992_s1 + $0xfe8] sm:$0xff] }
 0x171   :  { %v5490_v4 = vadd.f32 %v3355_v60, %v7006_v2  ;;  %v3357_v9 = vpop.f32.mrb[13].mxu0  ;;  %v5506_v13 = vadd.f32 %v3501_v5, %v7017_v7  ;;  %v3503_v17 = vpop.f32.mrb[13].mxu1  ;;  %v5343_v60 = vcombine.high %v562_v46, %v570_v49  ;;  %v76_v1 = vld [vmem:[%s7992_s1 + $0x70] sm:$0xff]  ;;  %v77_v5 = vld [vmem:[%s7992_s1 + $0x78] sm:$0xff] }
 0x172   :  { %v5491_v16 = vadd.f32 %v3357_v9, %v7021_v8  ;;  %v3359_v18 = vpop.f32.mrb[14].mxu0  ;;  %3898 = vmatpush1.bf16.msra.mxu0 %v5278_v51  ;;  %v5507_v22 = vadd.f32 %v3503_v17, %v7026_v10  ;;  %v3505_v26 = vpop.f32.mrb[14].mxu1  ;;  %4044 = vmatpush1.bf16.msra.mxu1 %v5280_v54  ;;  %v563_v51 = vld [vmem:[%s7992_s1 + $0xfa8] sm:$0xff]  ;;  %v5342_v9 = vcombine.low %v562_v46, %v570_v49  ;;  %v92_v17 = vld [vmem:[%s7992_s1 + $0xf0] sm:$0xff]  ;;  %v141_v46 = vld [vmem:[%s7992_s1 + $0x278] sm:$0xff] }
 0x173   :  { %v5492_v23 = vadd.f32 %v3359_v18, %v7006_v2  ;;  %v3361_v27 = vpop.f32.mrb[15].mxu0  ;;  %3899 = vmatprep.subr.bf16.mxu0 %v5295_v57  ;;  %v5508_v31 = vadd.f32 %v3505_v26, %v7017_v7  ;;  %v3507_v33 = vpop.f32.mrb[15].mxu1  ;;  %4045 = vmatprep.subr.bf16.mxu1 %v5297_v62  ;;  %v554_v2 = vld [vmem:[%s7992_s1 + $0xf60] sm:$0xff]  ;;  %v547_v7 = vld [vmem:[%s7992_s1 + $0xf28] sm:$0xff]  ;;  %v5345_v62 = vcombine.high %v563_v51, %v571_v52  ;;  %v85_v18 = vld [vmem:[%s7992_s1 + $0xb8] sm:$0xff] }
 0x174   :  { %v5462_v29 = vpack.c.bf16 %v5491_v16, %v5490_v4  ;;  %v5493_v32 = vadd.f32 %v3361_v27, %v7021_v8  ;;  %v5463_v36 = vpack.c.bf16 %v5507_v22, %v5506_v13  ;;  %v5509_v37 = vadd.f32 %v3507_v33, %v7026_v10  ;;  %v555_v8 = vld [vmem:[%s7992_s1 + $0xf68] sm:$0xff]  ;;  %v69_v4 = vld [vmem:[%s7992_s1 + $0x38] sm:$0xff]  ;;  %v84_v16 = vld [vmem:[%s7992_s1 + $0xb0] sm:$0xff] }
 0x175   :  { %v5327_v44 = vcombine.high %v546_v35, %v554_v2  ;;  %v5329_v45 = vcombine.high %v547_v7, %v555_v8  ;;  %v5326_v54 = vcombine.low %v546_v35, %v554_v2  ;;  %v5328_v57 = vcombine.low %v547_v7, %v555_v8  ;;  %v100_v27 = vld [vmem:[%s7992_s1 + $0x130] sm:$0xff]  ;;  %v125_v7 = vld [vmem:[%s7992_s1 + $0x1f8] sm:$0xff] }
 0x176   :  { %4818 = vst [vmem:[%s7995_s3 + $0x180] sm:$0xff] %v5462_v29  ;;  %v5470_v40 = vpack.c.bf16 %v5493_v32, %v5492_v23  ;;  %3900 = vmatpush1.bf16.msra.mxu0 %v5294_v19  ;;  %4819 = vst [vmem:[%s7995_s3 + $0x188] sm:$0xff] %v5463_v36  ;;  %v5471_v10 = vpack.c.bf16 %v5509_v37, %v5508_v31  ;;  %4046 = vmatpush1.bf16.msra.mxu1 %v5296_v21  ;;  %v93_v19 = vld [vmem:[%s7992_s1 + $0xf8] sm:$0xff]  ;;  %v116_v2 = vld [vmem:[%s7992_s1 + $0x1b0] sm:$0xff] }
 0x177   :  { %3901 = vmatprep.subr.bf16.mxu0 %v5311_v28  ;;  %4047 = vmatprep.subr.bf16.mxu1 %v5313_v34  ;;  %v5344_v11 = vcombine.low %v563_v51, %v571_v52  ;;  %v4851_v12 = vcombine.high %v68_v0, %v76_v1  ;;  %v4853_v13 = vcombine.high %v69_v4, %v77_v5  ;;  %v108_v28 = vld [vmem:[%s7992_s1 + $0x170] sm:$0xff]  ;;  %v101_v29 = vld [vmem:[%s7992_s1 + $0x138] sm:$0xff] }
 0x178   :  { %4826 = vst [vmem:[%s7995_s3 + $0x1c0] sm:$0xff] %v5470_v40  ;;  %4827 = vst [vmem:[%s7995_s3 + $0x1c8] sm:$0xff] %v5471_v10  ;;  %v4850_v21 = vcombine.low %v68_v0, %v76_v1  ;;  %v4852_v22 = vcombine.low %v69_v4, %v77_v5  ;;  %v4867_v23 = vcombine.high %v84_v16, %v92_v17  ;;  %v109_v31 = vld [vmem:[%s7992_s1 + $0x178] sm:$0xff]  ;;  %v124_v36 = vld [vmem:[%s7992_s1 + $0x1f0] sm:$0xff] }
 0x179   :  { %v4869_v26 = vcombine.high %v85_v18, %v93_v19  ;;  %v4866_v32 = vcombine.low %v84_v16, %v92_v17  ;;  %v4868_v33 = vcombine.low %v85_v18, %v93_v19  ;;  %v4883_v34 = vcombine.high %v100_v27, %v108_v28  ;;  %v117_v37 = vld [vmem:[%s7992_s1 + $0x1b8] sm:$0xff] }
 0x17a   :  { %3902 = vmatpush1.bf16.msra.mxu0 %v5310_v42  ;;  %4048 = vmatpush1.bf16.msra.mxu1 %v5312_v43  ;;  %v4885_v35 = vcombine.high %v101_v29, %v109_v31  ;;  %v4882_v8 = vcombine.low %v100_v27, %v108_v28  ;;  %v4884_v40 = vcombine.low %v101_v29, %v109_v31  ;;  %v132_v43 = vld [vmem:[%s7992_s1 + $0x230] sm:$0xff]  ;;  %v157_v0 = vld [vmem:[%s7992_s1 + $0x2f8] sm:$0xff] }
 0x17b   :  { %3903 = vmatprep.subr.bf16.mxu0 %v5327_v44  ;;  %4049 = vmatprep.subr.bf16.mxu1 %v5329_v45  ;;  %v4899_v42 = vcombine.high %v116_v2, %v124_v36  ;;  %v4901_v10 = vcombine.high %v117_v37, %v125_v7  ;;  %v140_v44 = vld [vmem:[%s7992_s1 + $0x270] sm:$0xff]  ;;  %v133_v45 = vld [vmem:[%s7992_s1 + $0x238] sm:$0xff]  ;;  %v4898_v49 = vcombine.low %v116_v2, %v124_v36 }
 0x17c   :  { %v4900_v51 = vcombine.low %v117_v37, %v125_v7  ;;  %v4915_v52 = vcombine.high %v132_v43, %v140_v44  ;;  %v4914_v1 = vcombine.low %v132_v43, %v140_v44  ;;  %v4916_v4 = vcombine.low %v133_v45, %v141_v46  ;;  %v173_v16 = vld [vmem:[%s7992_s1 + $0x378] sm:$0xff] }
 0x17d   :  { %v189_v27 = vld [vmem:[%s7992_s1 + $0x3f8] sm:$0xff] }
 0x17e   :  { %3904 = vmatpush1.bf16.msra.mxu0 %v5326_v54  ;;  %4050 = vmatpush1.bf16.msra.mxu1 %v5328_v57  ;;  %v4917_v54 = vcombine.high %v133_v45, %v141_v46  ;;  %v148_v57 = vld [vmem:[%s7992_s1 + $0x2b0] sm:$0xff]  ;;  %v205_v2 = vld [vmem:[%s7992_s1 + $0x478] sm:$0xff] }
 0x17f   :  { %3905 = vmatprep.subr.bf16.mxu0 %v5343_v60  ;;  %4051 = vmatprep.subr.bf16.mxu1 %v5345_v62  ;;  %v156_v60 = vld [vmem:[%s7992_s1 + $0x2f0] sm:$0xff]  ;;  %v149_v62 = vld [vmem:[%s7992_s1 + $0x2b8] sm:$0xff] }
 0x180   :  { %v4931_v5 = vcombine.high %v148_v57, %v156_v60  ;;  %v4930_v17 = vcombine.low %v148_v57, %v156_v60  ;;  %v4932_v18 = vcombine.low %v149_v62, %v157_v0  ;;  %v221_v43 = vld [vmem:[%s7992_s1 + $0x4f8] sm:$0xff] }
 0x182   :  { %3906 = vmatpush1.bf16.msra.mxu0 %v5342_v9  ;;  %4052 = vmatpush1.bf16.msra.mxu1 %v5344_v11  ;;  %v4933_v9 = vcombine.high %v149_v62, %v157_v0  ;;  %v164_v11 = vld [vmem:[%s7992_s1 + $0x330] sm:$0xff] }
 0x183   :  { %4094 = vmatprep.subr.bf16.mxu0 %v4851_v12  ;;  %4240 = vmatprep.subr.bf16.mxu1 %v4853_v13  ;;  %v172_v12 = vld [vmem:[%s7992_s1 + $0x370] sm:$0xff]  ;;  %v165_v13 = vld [vmem:[%s7992_s1 + $0x338] sm:$0xff] }
 0x184   :  { %v4947_v19 = vcombine.high %v164_v11, %v172_v12  ;;  %v4946_v28 = vcombine.low %v164_v11, %v172_v12  ;;  %v4948_v29 = vcombine.low %v165_v13, %v173_v16 }
 0x185   :  { %3908 = vmatmul.mubr.bf16.vlgmr.msra.gmra.mrb[32].mxu0 %v6256_v53  ;;  %4054 = vmatmul.mubr.bf16.vlgmr.msra.gmra.mrb[32].mxu1 %v6256_v53 }
 0x186   :  { %4095 = vmatpush1.bf16.msra.mxu0 %v4850_v21  ;;  %4241 = vmatpush1.bf16.msra.mxu1 %v4852_v22  ;;  %v4949_v21 = vcombine.high %v165_v13, %v173_v16  ;;  %v180_v22 = vld [vmem:[%s7992_s1 + $0x3b0] sm:$0xff] }
 0x187   :  { %4096 = vmatprep.subr.bf16.mxu0 %v4867_v23  ;;  %4242 = vmatprep.subr.bf16.mxu1 %v4869_v26  ;;  %v188_v23 = vld [vmem:[%s7992_s1 + $0x3f0] sm:$0xff]  ;;  %v181_v26 = vld [vmem:[%s7992_s1 + $0x3b8] sm:$0xff] }
 0x188   :  { %3917 = vmatprep.mubr.bf16.mxu0 %v6267_v63  ;;  %4063 = vmatprep.mubr.bf16.mxu1 %v6267_v63  ;;  %v4963_v31 = vcombine.high %v180_v22, %v188_v23  ;;  %v4962_v36 = vcombine.low %v180_v22, %v188_v23  ;;  %v4964_v37 = vcombine.low %v181_v26, %v189_v27 }
 0x18a   :  { %4097 = vmatpush1.bf16.msra.mxu0 %v4866_v32  ;;  %4243 = vmatpush1.bf16.msra.mxu1 %v4868_v33  ;;  %v4965_v32 = vcombine.high %v181_v26, %v189_v27  ;;  %v196_v33 = vld [vmem:[%s7992_s1 + $0x430] sm:$0xff] }
 0x18b   :  { %4098 = vmatprep.subr.bf16.mxu0 %v4883_v34  ;;  %4244 = vmatprep.subr.bf16.mxu1 %v4885_v35  ;;  %v204_v34 = vld [vmem:[%s7992_s1 + $0x470] sm:$0xff]  ;;  %v197_v35 = vld [vmem:[%s7992_s1 + $0x438] sm:$0xff] }
 0x18c   :  { %v4979_v7 = vcombine.high %v196_v33, %v204_v34  ;;  %v4978_v44 = vcombine.low %v196_v33, %v204_v34  ;;  %v4980_v45 = vcombine.low %v197_v35, %v205_v2 }
 0x18d   :  { %3918 = vmatmul.mubr.bf16.gmra.mrb[36].mxu0 %v6300_v14  ;;  %4064 = vmatmul.mubr.bf16.gmra.mrb[36].mxu1 %v6300_v14 }
 0x18e   :  { %4099 = vmatpush1.bf16.msra.mxu0 %v4882_v8  ;;  %4245 = vmatpush1.bf16.msra.mxu1 %v4884_v40  ;;  %v4981_v8 = vcombine.high %v197_v35, %v205_v2  ;;  %v212_v40 = vld [vmem:[%s7992_s1 + $0x4b0] sm:$0xff] }
 0x18f   :  { %4100 = vmatprep.subr.bf16.mxu0 %v4899_v42  ;;  %4246 = vmatprep.subr.bf16.mxu1 %v4901_v10  ;;  %v220_v42 = vld [vmem:[%s7992_s1 + $0x4f0] sm:$0xff]  ;;  %v213_v10 = vld [vmem:[%s7992_s1 + $0x4b8] sm:$0xff] }
 0x190   :  { %3927 = vmatprep.mubr.bf16.mxu0 %v6311_v24  ;;  %4073 = vmatprep.mubr.bf16.mxu1 %v6311_v24  ;;  %v4995_v46 = vcombine.high %v212_v40, %v220_v42  ;;  %v4994_v57 = vcombine.low %v212_v40, %v220_v42  ;;  %v4996_v60 = vcombine.low %v213_v10, %v221_v43 }
 0x192   :  { %4101 = vmatpush1.bf16.msra.mxu0 %v4898_v49  ;;  %4247 = vmatpush1.bf16.msra.mxu1 %v4900_v51  ;;  %v4997_v49 = vcombine.high %v213_v10, %v221_v43  ;;  %v228_v51 = vld [vmem:[%s7992_s1 + $0x530] sm:$0xff] }
 0x193   :  { %4102 = vmatprep.subr.bf16.mxu0 %v4915_v52  ;;  %4248 = vmatprep.subr.bf16.mxu1 %v4917_v54  ;;  %v236_v52 = vld [vmem:[%s7992_s1 + $0x570] sm:$0xff]  ;;  %v237_v54 = vld [vmem:[%s7992_s1 + $0x578] sm:$0xff] }
 0x194   :  { %v5011_v62 = vcombine.high %v228_v51, %v236_v52  ;;  %v5010_v11 = vcombine.low %v228_v51, %v236_v52 }
 0x195   :  { %3928 = vmatmul.mubr.bf16.gmra.mrb[40].mxu0 %v6344_v41  ;;  %4074 = vmatmul.mubr.bf16.gmra.mrb[40].mxu1 %v6344_v41 }
 0x196   :  { %4103 = vmatpush1.bf16.msra.mxu0 %v4914_v1  ;;  %4249 = vmatpush1.bf16.msra.mxu1 %v4916_v4  ;;  %v244_v1 = vld [vmem:[%s7992_s1 + $0x5b0] sm:$0xff] }
 0x197   :  { %4104 = vmatprep.subr.bf16.mxu0 %v4931_v5  ;;  %4250 = vmatprep.subr.bf16.mxu1 %v4933_v9  ;;  %v252_v4 = vld [vmem:[%s7992_s1 + $0x5f0] sm:$0xff]  ;;  %v245_v5 = vld [vmem:[%s7992_s1 + $0x5b8] sm:$0xff] }
 0x198   :  { %3937 = vmatprep.mubr.bf16.mxu0 %v6355_v50  ;;  %4083 = vmatprep.mubr.bf16.mxu1 %v6355_v50  ;;  %v253_v9 = vld [vmem:[%s7992_s1 + $0x5f8] sm:$0xff]  ;;  %v5027_v13 = vcombine.high %v244_v1, %v252_v4  ;;  %v5026_v22 = vcombine.low %v244_v1, %v252_v4 }
 0x199   :  { %v5029_v16 = vcombine.high %v245_v5, %v253_v9  ;;  %v5028_v23 = vcombine.low %v245_v5, %v253_v9 }
 0x19a   :  { %4105 = vmatpush1.bf16.msra.mxu0 %v4930_v17  ;;  %4251 = vmatpush1.bf16.msra.mxu1 %v4932_v18  ;;  %v260_v17 = vld [vmem:[%s7992_s1 + $0x630] sm:$0xff] }
 0x19b   :  { %4106 = vmatprep.subr.bf16.mxu0 %v4947_v19  ;;  %4252 = vmatprep.subr.bf16.mxu1 %v4949_v21  ;;  %v268_v18 = vld [vmem:[%s7992_s1 + $0x670] sm:$0xff]  ;;  %v261_v19 = vld [vmem:[%s7992_s1 + $0x638] sm:$0xff] }
 0x19c   :  { %v269_v21 = vld [vmem:[%s7992_s1 + $0x678] sm:$0xff]  ;;  %v5043_v26 = vcombine.high %v260_v17, %v268_v18  ;;  %v5042_v33 = vcombine.low %v260_v17, %v268_v18 }
 0x19d   :  { %3938 = vmatmul.mubr.bf16.gmra.mrb[44].mxu0 %v6385_v3  ;;  %4084 = vmatmul.mubr.bf16.gmra.mrb[44].mxu1 %v6385_v3  ;;  %v5045_v27 = vcombine.high %v261_v19, %v269_v21  ;;  %v5044_v34 = vcombine.low %v261_v19, %v269_v21 }
 0x19e   :  { %4107 = vmatpush1.bf16.msra.mxu0 %v4946_v28  ;;  %4253 = vmatpush1.bf16.msra.mxu1 %v4948_v29  ;;  %v276_v28 = vld [vmem:[%s7992_s1 + $0x6b0] sm:$0xff] }
 0x19f   :  { %4108 = vmatprep.subr.bf16.mxu0 %v4963_v31  ;;  %4254 = vmatprep.subr.bf16.mxu1 %v4965_v32  ;;  %v284_v29 = vld [vmem:[%s7992_s1 + $0x6f0] sm:$0xff]  ;;  %v277_v31 = vld [vmem:[%s7992_s1 + $0x6b8] sm:$0xff] }
 0x1a0   :  { %4126 = vmatprep.mubr.bf16.mxu0 %v5851_v58  ;;  %4272 = vmatprep.mubr.bf16.mxu1 %v5851_v58  ;;  %v229_v58 = vld [vmem:[%s7992_s1 + $0x538] sm:$0xff]  ;;  %v5059_v35 = vcombine.high %v276_v28, %v284_v29  ;;  %v5058_v40 = vcombine.low %v276_v28, %v284_v29 }
 0x1a1   :  { %v5013_v0 = vcombine.high %v229_v58, %v237_v54  ;;  %v5012_v12 = vcombine.low %v229_v58, %v237_v54  ;;  %v285_v32 = vld [vmem:[%s7992_s1 + $0x6f8] sm:$0xff] }
 0x1a2   :  { %4109 = vmatpush1.bf16.msra.mxu0 %v4962_v36  ;;  %4255 = vmatpush1.bf16.msra.mxu1 %v4964_v37  ;;  %v5061_v2 = vcombine.high %v277_v31, %v285_v32  ;;  %v292_v36 = vld [vmem:[%s7992_s1 + $0x730] sm:$0xff]  ;;  %v5060_v42 = vcombine.low %v277_v31, %v285_v32 }
 0x1a3   :  { %4110 = vmatprep.subr.bf16.mxu0 %v4979_v7  ;;  %4256 = vmatprep.subr.bf16.mxu1 %v4981_v8  ;;  %v300_v37 = vld [vmem:[%s7992_s1 + $0x770] sm:$0xff]  ;;  %v293_v7 = vld [vmem:[%s7992_s1 + $0x738] sm:$0xff] }
 0x1a4   :  { %v301_v8 = vld [vmem:[%s7992_s1 + $0x778] sm:$0xff]  ;;  %v5075_v10 = vcombine.high %v292_v36, %v300_v37  ;;  %v5074_v51 = vcombine.low %v292_v36, %v300_v37 }
 0x1a5   :  { %v5077_v43 = vcombine.high %v293_v7, %v301_v8  ;;  %v5076_v52 = vcombine.low %v293_v7, %v301_v8  ;;  %v388_v8 = vld [vmem:[%s7992_s1 + $0xa30] sm:$0xff] }
 0x1a6   :  { %4111 = vmatpush1.bf16.msra.mxu0 %v4978_v44  ;;  %4257 = vmatpush1.bf16.msra.mxu1 %v4980_v45  ;;  %v308_v44 = vld [vmem:[%s7992_s1 + $0x7b0] sm:$0xff] }
 0x1a7   :  { %4112 = vmatprep.subr.bf16.mxu0 %v4995_v46  ;;  %4258 = vmatprep.subr.bf16.mxu1 %v4997_v49  ;;  %v316_v45 = vld [vmem:[%s7992_s1 + $0x7f0] sm:$0xff]  ;;  %v309_v46 = vld [vmem:[%s7992_s1 + $0x7b8] sm:$0xff] }
 0x1a8   :  { %v317_v49 = vld [vmem:[%s7992_s1 + $0x7f8] sm:$0xff]  ;;  %v5091_v58 = vcombine.high %v308_v44, %v316_v45  ;;  %v5090_v1 = vcombine.low %v308_v44, %v316_v45 }
 0x1a9   :  { %v5093_v54 = vcombine.high %v309_v46, %v317_v49  ;;  %v5092_v4 = vcombine.low %v309_v46, %v317_v49  ;;  %v404_v46 = vld [vmem:[%s7992_s1 + $0xab0] sm:$0xff] }
 0x1aa   :  { %4113 = vmatpush1.bf16.msra.mxu0 %v4994_v57  ;;  %4259 = vmatpush1.bf16.msra.mxu1 %v4996_v60  ;;  %v324_v57 = vld [vmem:[%s7992_s1 + $0x830] sm:$0xff] }
 0x1ab   :  { %4114 = vmatprep.subr.bf16.mxu0 %v5011_v62  ;;  %4260 = vmatprep.subr.bf16.mxu1 %v5013_v0  ;;  %v332_v60 = vld [vmem:[%s7992_s1 + $0x870] sm:$0xff]  ;;  %v325_v62 = vld [vmem:[%s7992_s1 + $0x838] sm:$0xff] }
 0x1ac   :  { %v333_v0 = vld [vmem:[%s7992_s1 + $0x878] sm:$0xff]  ;;  %v5107_v5 = vcombine.high %v324_v57, %v332_v60  ;;  %v5106_v17 = vcombine.low %v324_v57, %v332_v60  ;;  %v412_v49 = vld [vmem:[%s7992_s1 + $0xaf0] sm:$0xff]  ;;  %v600_v57 = vsub.s32 5, %v6973_v39 }
 0x1ad   :  { %v5109_v9 = vcombine.high %v325_v62, %v333_v0  ;;  %v5108_v18 = vcombine.low %v325_v62, %v333_v0  ;;  %v608_v62 = vsub.s32 7, %v6973_v39  ;;  %v5187_v0 = vcombine.high %v404_v46, %v412_v49 }
 0x1ae   :  { %4115 = vmatpush1.bf16.msra.mxu0 %v5010_v11  ;;  %4261 = vmatpush1.bf16.msra.mxu1 %v5012_v12  ;;  %v340_v11 = vld [vmem:[%s7992_s1 + $0x8b0] sm:$0xff] }
 0x1af   :  { %4116 = vmatprep.subr.bf16.mxu0 %v5027_v13  ;;  %4262 = vmatprep.subr.bf16.mxu1 %v5029_v16  ;;  %v348_v12 = vld [vmem:[%s7992_s1 + $0x8f0] sm:$0xff]  ;;  %v341_v13 = vld [vmem:[%s7992_s1 + $0x8b8] sm:$0xff] }
 0x1b0   :  { %v349_v16 = vld [vmem:[%s7992_s1 + $0x8f8] sm:$0xff]  ;;  %v5123_v19 = vcombine.high %v340_v11, %v348_v12  ;;  %v5122_v28 = vcombine.low %v340_v11, %v348_v12 }
 0x1b1   :  { %v5125_v21 = vcombine.high %v341_v13, %v349_v16  ;;  %v5124_v29 = vcombine.low %v341_v13, %v349_v16  ;;  %v421_v11 = vld [vmem:[%s7992_s1 + $0xb38] sm:$0xff] }
 0x1b2   :  { %4117 = vmatpush1.bf16.msra.mxu0 %v5026_v22  ;;  %4263 = vmatpush1.bf16.msra.mxu1 %v5028_v23  ;;  %v356_v22 = vld [vmem:[%s7992_s1 + $0x930] sm:$0xff]  ;;  %v429_v12 = vld [vmem:[%s7992_s1 + $0xb78] sm:$0xff] }
 0x1b3   :  { %4118 = vmatprep.subr.bf16.mxu0 %v5043_v26  ;;  %4264 = vmatprep.subr.bf16.mxu1 %v5045_v27  ;;  %v364_v23 = vld [vmem:[%s7992_s1 + $0x970] sm:$0xff]  ;;  %v357_v26 = vld [vmem:[%s7992_s1 + $0x938] sm:$0xff] }
 0x1b4   :  { %v365_v27 = vld [vmem:[%s7992_s1 + $0x978] sm:$0xff]  ;;  %v5139_v31 = vcombine.high %v356_v22, %v364_v23 }
 0x1b5   :  { %v5141_v32 = vcombine.high %v357_v26, %v365_v27  ;;  %v5140_v36 = vcombine.low %v357_v26, %v365_v27  ;;  %v7566_v26 = vld [vmem:[%s7992_s1 + $0xbb0] sm:$0xff] }
 0x1b6   :  { %4119 = vmatpush1.bf16.msra.mxu0 %v5042_v33  ;;  %4265 = vmatpush1.bf16.msra.mxu1 %v5044_v34  ;;  %v372_v33 = vld [vmem:[%s7992_s1 + $0x9b0] sm:$0xff] }
 0x1b7   :  { %4120 = vmatprep.subr.bf16.mxu0 %v5059_v35  ;;  %4266 = vmatprep.subr.bf16.mxu1 %v5061_v2  ;;  %v380_v34 = vld [vmem:[%s7992_s1 + $0x9f0] sm:$0xff]  ;;  %v381_v35 = vld [vmem:[%s7992_s1 + $0x9f8] sm:$0xff]  ;;  %v5138_v2 = vcombine.low %v356_v22, %v364_v23  ;;  %v5205_v23 = vcombine.high %v421_v11, %v429_v12 }
 0x1b8   :  { %v5155_v37 = vcombine.high %v372_v33, %v380_v34 }
 0x1ba   :  { %4121 = vmatpush1.bf16.msra.mxu0 %v5058_v40  ;;  %4267 = vmatpush1.bf16.msra.mxu1 %v5060_v42  ;;  %v396_v40 = vld [vmem:[%s7992_s1 + $0xa70] sm:$0xff]  ;;  %v397_v42 = vld [vmem:[%s7992_s1 + $0xa78] sm:$0xff] }
 0x1bb   :  { %4122 = vmatprep.subr.bf16.mxu0 %v5075_v10  ;;  %4268 = vmatprep.subr.bf16.mxu1 %v5077_v43  ;;  %v5154_v10 = vcombine.low %v372_v33, %v380_v34  ;;  %v5171_v44 = vcombine.high %v388_v8, %v396_v40 }
 0x1be   :  { %4123 = vmatpush1.bf16.msra.mxu0 %v5074_v51  ;;  %4269 = vmatpush1.bf16.msra.mxu1 %v5076_v52  ;;  %v596_v51 = vsub.s32 4, %v6973_v39  ;;  %v413_v52 = vld [vmem:[%s7992_s1 + $0xaf8] sm:$0xff] }
 0x1bf   :  { %4124 = vmatprep.subr.bf16.mxu0 %v5091_v58  ;;  %4270 = vmatprep.subr.bf16.mxu1 %v5093_v54  ;;  %v5170_v58 = vcombine.low %v388_v8, %v396_v40  ;;  %v604_v54 = vsub.s32 6, %v6973_v39 }
 0x1c2   :  { %4125 = vmatpush1.bf16.msra.mxu0 %v5090_v1  ;;  %4271 = vmatpush1.bf16.msra.mxu1 %v5092_v4  ;;  %v420_v4 = vld [vmem:[%s7992_s1 + $0xb30] sm:$0xff] }
 0x1c3   :  { %4167 = vmatprep.subr.bf16.mxu0 %v5107_v5  ;;  %4313 = vmatprep.subr.bf16.mxu1 %v5109_v9  ;;  %v5734_v5 = vld [vmem:[%s7994_s2] sm:$0xff] }
 0x1c4   :  { %v7541_v9 = vrot.slane %v5734_v5, %v596_v51  ;;  %v7552_v13 = vrot.slane %v5734_v5, %v604_v54  ;;  %v7556_v16 = vrot.slane %v5734_v5, %v600_v57 }
 0x1c5   :  { %4127 = vmatmul.mubr.bf16.vlgmr.msra.gmra.mrb[48].mxu0 %v5984_v15  ;;  %4273 = vmatmul.mubr.bf16.vlgmr.msra.gmra.mrb[48].mxu1 %v5984_v15  ;;  %v373_v15 = vld [vmem:[%s7992_s1 + $0x9b8] sm:$0xff] }
 0x1c6   :  { %4168 = vmatpush1.bf16.msra.mxu0 %v5106_v17  ;;  %4314 = vmatpush1.bf16.msra.mxu1 %v5108_v18  ;;  %v5157_v7 = vcombine.high %v373_v15, %v381_v35  ;;  %v5156_v43 = vcombine.low %v373_v15, %v381_v35  ;;  %v5186_v17 = vcombine.low %v404_v46, %v412_v49  ;;  %v460_v46 = vld [vmem:[%s7992_s1 + $0xc70] sm:$0xff] }
 0x1c7   :  { %4169 = vmatprep.subr.bf16.mxu0 %v5123_v19  ;;  %4315 = vmatprep.subr.bf16.mxu1 %v5125_v21  ;;  %v7561_v18 = vrot.slane %v5734_v5, %v608_v62 }
 0x1c8   :  { %4136 = vmatprep.mubr.bf16.mxu0 %v6001_v25  ;;  %4282 = vmatprep.mubr.bf16.mxu1 %v6001_v25  ;;  %v389_v25 = vld [vmem:[%s7992_s1 + $0xa38] sm:$0xff] }
 0x1c9   :  { %v5173_v45 = vcombine.high %v389_v25, %v397_v42  ;;  %v5172_v60 = vcombine.low %v389_v25, %v397_v42 }
 0x1ca   :  { %4170 = vmatpush1.bf16.msra.mxu0 %v5122_v28  ;;  %4316 = vmatpush1.bf16.msra.mxu1 %v5124_v29 }
 0x1cb   :  { %4171 = vmatprep.subr.bf16.mxu0 %v5139_v31  ;;  %4317 = vmatprep.subr.bf16.mxu1 %v5141_v32  ;;  %v7578_v31 = vld [vmem:[%s7992_s1 + $0xbb8] sm:$0xff] }
 0x1cc   :  { %v7583_v32 = vld [vmem:[%s7992_s1 + $0xbf8] sm:$0xff] }
 0x1cd   :  { %4137 = vmatmul.mubr.bf16.gmra.mrb[52].mxu0 %v6031_v38  ;;  %4283 = vmatmul.mubr.bf16.gmra.mrb[52].mxu1 %v6031_v38  ;;  %v405_v38 = vld [vmem:[%s7992_s1 + $0xab8] sm:$0xff] }
 0x1ce   :  { %4172 = vmatpush1.bf16.msra.mxu0 %v5138_v2  ;;  %4318 = vmatpush1.bf16.msra.mxu1 %v5140_v36  ;;  %v5189_v1 = vcombine.high %v405_v38, %v413_v52  ;;  %v5188_v19 = vcombine.low %v405_v38, %v413_v52  ;;  %v5204_v36 = vcombine.low %v421_v11, %v429_v12  ;;  %v453_v52 = vld [vmem:[%s7992_s1 + $0xc38] sm:$0xff]  ;;  %v476_v12 = vld [vmem:[%s7992_s1 + $0xcf0] sm:$0xff] }
 0x1cf   :  { %4173 = vmatprep.subr.bf16.mxu0 %v5155_v37  ;;  %4319 = vmatprep.subr.bf16.mxu1 %v5157_v7 }
 0x1d0   :  { %4146 = vmatprep.mubr.bf16.mxu0 %v6045_v47  ;;  %4292 = vmatprep.mubr.bf16.mxu1 %v6045_v47  ;;  %v428_v47 = vld [vmem:[%s7992_s1 + $0xb70] sm:$0xff] }
 0x1d1   :  { %v5203_v21 = vcombine.high %v420_v4, %v428_v47  ;;  %v5202_v2 = vcombine.low %v420_v4, %v428_v47  ;;  %v5220_v4 = vcombine.low %v7578_v31, %v7583_v32 }
 0x1d2   :  { %4174 = vmatpush1.bf16.msra.mxu0 %v5154_v10  ;;  %4320 = vmatpush1.bf16.msra.mxu1 %v5156_v43 }
 0x1d3   :  { %4175 = vmatprep.subr.bf16.mxu0 %v5171_v44  ;;  %4321 = vmatprep.subr.bf16.mxu1 %v5173_v45  ;;  %v5221_v44 = vcombine.high %v7578_v31, %v7583_v32  ;;  %v452_v45 = vld [vmem:[%s7992_s1 + $0xc30] sm:$0xff] }
 0x1d4   :  { %v5235_v47 = vcombine.high %v452_v45, %v460_v46 }
 0x1d5   :  { %4147 = vmatmul.mubr.bf16.gmra.mrb[56].mxu0 %v6075_v61  ;;  %4293 = vmatmul.mubr.bf16.gmra.mrb[56].mxu1 %v6075_v61  ;;  %v7571_v61 = vld [vmem:[%s7992_s1 + $0xbf0] sm:$0xff] }
 0x1d6   :  { %4176 = vmatpush1.bf16.msra.mxu0 %v5170_v58  ;;  %4322 = vmatpush1.bf16.msra.mxu1 %v5172_v60  ;;  %v461_v58 = vld [vmem:[%s7992_s1 + $0xc78] sm:$0xff] }
 0x1d7   :  { %4177 = vmatprep.subr.bf16.mxu0 %v5187_v0  ;;  %4323 = vmatprep.subr.bf16.mxu1 %v5189_v1  ;;  %v5218_v0 = vcombine.low %v7566_v26, %v7571_v61  ;;  %v5237_v11 = vcombine.high %v453_v52, %v461_v58  ;;  %v5236_v31 = vcombine.low %v453_v52, %v461_v58  ;;  %v500_v58 = vld [vmem:[%s7992_s1 + $0xdb0] sm:$0xff] }
 0x1d8   :  { %v3617_v22 = vpop.f32.mrb[16].mxu0  ;;  %4156 = vmatprep.mubr.bf16.mxu0 %v6089_v6  ;;  %v3763_v28 = vpop.f32.mrb[16].mxu1  ;;  %4302 = vmatprep.mubr.bf16.mxu1 %v6089_v6  ;;  %v5219_v6 = vcombine.high %v7566_v26, %v7571_v61 }
 0x1d9   :  { %v5510_v27 = vadd.f32 %v3617_v22, %v7541_v9  ;;  %v3619_v29 = vpop.f32.mrb[17].mxu0  ;;  %v5526_v33 = vadd.f32 %v3763_v28, %v7552_v13  ;;  %v3765_v15 = vpop.f32.mrb[17].mxu1  ;;  %v469_v22 = vld [vmem:[%s7992_s1 + $0xcb8] sm:$0xff] }
 0x1da   :  { %v5511_v34 = vadd.f32 %v3619_v29, %v7556_v16  ;;  %v3621_v35 = vpop.f32.mrb[18].mxu0  ;;  %4178 = vmatpush1.bf16.msra.mxu0 %v5186_v17  ;;  %v5527_v37 = vadd.f32 %v3765_v15, %v7561_v18  ;;  %v3767_v8 = vpop.f32.mrb[18].mxu1  ;;  %4324 = vmatpush1.bf16.msra.mxu1 %v5188_v19  ;;  %v5234_v29 = vcombine.low %v452_v45, %v460_v46 }
 0x1db   :  { %v5512_v7 = vadd.f32 %v3621_v35, %v7541_v9  ;;  %v3623_v40 = vpop.f32.mrb[19].mxu0  ;;  %4179 = vmatprep.subr.bf16.mxu0 %v5203_v21  ;;  %v5528_v42 = vadd.f32 %v3767_v8, %v7552_v13  ;;  %v3769_v43 = vpop.f32.mrb[19].mxu1  ;;  %4325 = vmatprep.subr.bf16.mxu1 %v5205_v23  ;;  %v477_v23 = vld [vmem:[%s7992_s1 + $0xcf8] sm:$0xff]  ;;  %v484_v8 = vld [vmem:[%s7992_s1 + $0xd30] sm:$0xff] }
 0x1dc   :  { %v5416_v25 = vpack.c.bf16 %v5511_v34, %v5510_v27  ;;  %v5513_v10 = vadd.f32 %v3623_v40, %v7556_v16  ;;  %v5417_v49 = vpack.c.bf16 %v5527_v37, %v5526_v33  ;;  %v5529_v38 = vadd.f32 %v3769_v43, %v7561_v18  ;;  %v492_v40 = vld [vmem:[%s7992_s1 + $0xd70] sm:$0xff] }
 0x1dd   :  { %4157 = vmatmul.mubr.bf16.gmra.mrb[60].mxu0 %v6119_v20  ;;  %4303 = vmatmul.mubr.bf16.gmra.mrb[60].mxu1 %v6119_v20  ;;  %v468_v20 = vld [vmem:[%s7992_s1 + $0xcb0] sm:$0xff]  ;;  %v5252_v46 = vcombine.low %v469_v22, %v477_v23 }
 0x1de   :  { %4772 = vst [vmem:[%s7995_s3 + $0x10] sm:$0xff] %v5416_v25  ;;  %v5424_v60 = vpack.c.bf16 %v5513_v10, %v5512_v7  ;;  %4180 = vmatpush1.bf16.msra.mxu0 %v5202_v2  ;;  %4773 = vst [vmem:[%s7995_s3 + $0x18] sm:$0xff] %v5417_v49  ;;  %v5425_v1 = vpack.c.bf16 %v5529_v38, %v5528_v42  ;;  %4326 = vmatpush1.bf16.msra.mxu1 %v5204_v36  ;;  %v485_v42 = vld [vmem:[%s7992_s1 + $0xd38] sm:$0xff] }
 0x1df   :  { %4181 = vmatprep.subr.bf16.mxu0 %v5219_v6  ;;  %4327 = vmatprep.subr.bf16.mxu1 %v5221_v44  ;;  %v5251_v35 = vcombine.high %v468_v20, %v476_v12  ;;  %v5253_v7 = vcombine.high %v469_v22, %v477_v23  ;;  %v493_v10 = vld [vmem:[%s7992_s1 + $0xd78] sm:$0xff]  ;;  %v5250_v44 = vcombine.low %v468_v20, %v476_v12 }
 0x1e0   :  { %4780 = vst [vmem:[%s7995_s3 + $0x50] sm:$0xff] %v5424_v60  ;;  %v3627_v5 = vpop.f32.mrb[20].mxu0  ;;  %4199 = vmatprep.mubr.bf16.mxu0 %v6133_v30  ;;  %4781 = vst [vmem:[%s7995_s3 + $0x58] sm:$0xff] %v5425_v1  ;;  %v3773_v19 = vpop.f32.mrb[20].mxu1  ;;  %4345 = vmatprep.mubr.bf16.mxu1 %v6133_v30  ;;  %v5267_v49 = vcombine.high %v484_v8, %v492_v40  ;;  %v5269_v52 = vcombine.high %v485_v42, %v493_v10  ;;  %v508_v60 = vld [vmem:[%s7992_s1 + $0xdf0] sm:$0xff] }
 0x1e1   :  { %v5514_v17 = vadd.f32 %v3627_v5, %v7541_v9  ;;  %v3629_v21 = vpop.f32.mrb[21].mxu0  ;;  %v5530_v26 = vadd.f32 %v3773_v19, %v7552_v13  ;;  %v3775_v27 = vpop.f32.mrb[21].mxu1  ;;  %v509_v5 = vld [vmem:[%s7992_s1 + $0xdf8] sm:$0xff]  ;;  %v5266_v19 = vcombine.low %v484_v8, %v492_v40 }
 0x1e2   :  { %v5515_v61 = vadd.f32 %v3629_v21, %v7556_v16  ;;  %v3631_v28 = vpop.f32.mrb[22].mxu0  ;;  %4182 = vmatpush1.bf16.msra.mxu0 %v5218_v0  ;;  %v5531_v32 = vadd.f32 %v3775_v27, %v7561_v18  ;;  %v3777_v34 = vpop.f32.mrb[22].mxu1  ;;  %4328 = vmatpush1.bf16.msra.mxu1 %v5220_v4  ;;  %v5268_v21 = vcombine.low %v485_v42, %v493_v10  ;;  %v532_v10 = vld [vmem:[%s7992_s1 + $0xeb0] sm:$0xff] }
 0x1e3   :  { %v5516_v33 = vadd.f32 %v3631_v28, %v7541_v9  ;;  %v3633_v15 = vpop.f32.mrb[23].mxu0  ;;  %4183 = vmatprep.subr.bf16.mxu0 %v5235_v47  ;;  %v5532_v30 = vadd.f32 %v3777_v34, %v7552_v13  ;;  %v3779_v37 = vpop.f32.mrb[23].mxu1  ;;  %4329 = vmatprep.subr.bf16.mxu1 %v5237_v11  ;;  %v501_v47 = vld [vmem:[%s7992_s1 + $0xdb8] sm:$0xff]  ;;  %v5283_v27 = vcombine.high %v500_v58, %v508_v60  ;;  %v516_v34 = vld [vmem:[%s7992_s1 + $0xe30] sm:$0xff] }
 0x1e4   :  { %v5432_v2 = vpack.c.bf16 %v5515_v61, %v5514_v17  ;;  %v5517_v36 = vadd.f32 %v3633_v15, %v7556_v16  ;;  %v5433_v6 = vpack.c.bf16 %v5531_v32, %v5530_v26  ;;  %v5533_v25 = vadd.f32 %v3779_v37, %v7561_v18  ;;  %v524_v15 = vld [vmem:[%s7992_s1 + $0xe70] sm:$0xff] }
 0x1e5   :  { %v5284_v40 = vcombine.low %v501_v47, %v509_v5 }
 0x1e6   :  { %4788 = vst [vmem:[%s7995_s3 + $0x90] sm:$0xff] %v5432_v2  ;;  %v5440_v43 = vpack.c.bf16 %v5517_v36, %v5516_v33  ;;  %4184 = vmatpush1.bf16.msra.mxu0 %v5234_v29  ;;  %4789 = vst [vmem:[%s7995_s3 + $0x98] sm:$0xff] %v5433_v6  ;;  %v5441_v45 = vpack.c.bf16 %v5533_v25, %v5532_v30  ;;  %4330 = vmatpush1.bf16.msra.mxu1 %v5236_v31  ;;  %v517_v30 = vld [vmem:[%s7992_s1 + $0xe38] sm:$0xff] }
 0x1e7   :  { %4185 = vmatprep.subr.bf16.mxu0 %v5251_v35  ;;  %4331 = vmatprep.subr.bf16.mxu1 %v5253_v7  ;;  %v5285_v33 = vcombine.high %v501_v47, %v509_v5  ;;  %v525_v36 = vld [vmem:[%s7992_s1 + $0xe78] sm:$0xff]  ;;  %v5282_v7 = vcombine.low %v500_v58, %v508_v60  ;;  %v5299_v6 = vcombine.high %v516_v34, %v524_v15 }
 0x1e8   :  { %4796 = vst [vmem:[%s7995_s3 + $0xd0] sm:$0xff] %v5440_v43  ;;  %v3637_v38 = vpop.f32.mrb[24].mxu0  ;;  %4797 = vst [vmem:[%s7995_s3 + $0xd8] sm:$0xff] %v5441_v45  ;;  %v3783_v1 = vpop.f32.mrb[24].mxu1  ;;  %v5301_v42 = vcombine.high %v517_v30, %v525_v36  ;;  %v540_v43 = vld [vmem:[%s7992_s1 + $0xef0] sm:$0xff] }
 0x1e9   :  { %v5518_v0 = vadd.f32 %v3637_v38, %v7541_v9  ;;  %v3639_v4 = vpop.f32.mrb[25].mxu0  ;;  %v5534_v11 = vadd.f32 %v3783_v1, %v7552_v13  ;;  %v3785_v12 = vpop.f32.mrb[25].mxu1  ;;  %v541_v38 = vld [vmem:[%s7992_s1 + $0xef8] sm:$0xff]  ;;  %v5298_v1 = vcombine.low %v516_v34, %v524_v15  ;;  %v564_v34 = vld [vmem:[%s7992_s1 + $0xfb0] sm:$0xff] }
 0x1ea   :  { %v5519_v20 = vadd.f32 %v3639_v4, %v7556_v16  ;;  %v3641_v17 = vpop.f32.mrb[26].mxu0  ;;  %4186 = vmatpush1.bf16.msra.mxu0 %v5250_v44  ;;  %v5535_v22 = vadd.f32 %v3785_v12, %v7561_v18  ;;  %v3787_v26 = vpop.f32.mrb[26].mxu1  ;;  %4332 = vmatpush1.bf16.msra.mxu1 %v5252_v46  ;;  %v5300_v4 = vcombine.low %v517_v30, %v525_v36  ;;  %v572_v15 = vld [vmem:[%s7992_s1 + $0xff0] sm:$0xff] }
 0x1eb   :  { %v5520_v23 = vadd.f32 %v3641_v17, %v7541_v9  ;;  %v3643_v61 = vpop.f32.mrb[27].mxu0  ;;  %4187 = vmatprep.subr.bf16.mxu0 %v5267_v49  ;;  %v5536_v29 = vadd.f32 %v3787_v26, %v7552_v13  ;;  %v3789_v32 = vpop.f32.mrb[27].mxu1  ;;  %4333 = vmatprep.subr.bf16.mxu1 %v5269_v52  ;;  %v533_v49 = vld [vmem:[%s7992_s1 + $0xeb8] sm:$0xff]  ;;  %v5315_v12 = vcombine.high %v532_v10, %v540_v43  ;;  %v548_v26 = vld [vmem:[%s7992_s1 + $0xf30] sm:$0xff] }
 0x1ec   :  { %v5448_v28 = vpack.c.bf16 %v5519_v20, %v5518_v0  ;;  %v5521_v31 = vadd.f32 %v3643_v61, %v7556_v16  ;;  %v5449_v35 = vpack.c.bf16 %v5535_v22, %v5534_v11  ;;  %v5537_v2 = vadd.f32 %v3789_v32, %v7561_v18 }
 0x1ee   :  { %4804 = vst [vmem:[%s7995_s3 + $0x110] sm:$0xff] %v5448_v28  ;;  %v5456_v37 = vpack.c.bf16 %v5521_v31, %v5520_v23  ;;  %4188 = vmatpush1.bf16.msra.mxu0 %v5266_v19  ;;  %4805 = vst [vmem:[%s7995_s3 + $0x118] sm:$0xff] %v5449_v35  ;;  %v5457_v8 = vpack.c.bf16 %v5537_v2, %v5536_v29  ;;  %4334 = vmatpush1.bf16.msra.mxu1 %v5268_v21  ;;  %v565_v35 = vld [vmem:[%s7992_s1 + $0xfb8] sm:$0xff] }
 0x1ef   :  { %4189 = vmatprep.subr.bf16.mxu0 %v5283_v27  ;;  %4335 = vmatprep.subr.bf16.mxu1 %v5285_v33  ;;  %v5317_v23 = vcombine.high %v533_v49, %v541_v38  ;;  %v5314_v29 = vcombine.low %v532_v10, %v540_v43  ;;  %v5316_v31 = vcombine.low %v533_v49, %v541_v38  ;;  %v573_v2 = vld [vmem:[%s7992_s1 + $0xff8] sm:$0xff] }
 0x1f0   :  { %4812 = vst [vmem:[%s7995_s3 + $0x150] sm:$0xff] %v5456_v37  ;;  %v3647_v25 = vpop.f32.mrb[28].mxu0  ;;  %4813 = vst [vmem:[%s7995_s3 + $0x158] sm:$0xff] %v5457_v8  ;;  %v3793_v45 = vpop.f32.mrb[28].mxu1  ;;  %v5347_v37 = vcombine.high %v564_v34, %v572_v15  ;;  %v5346_v8 = vcombine.low %v564_v34, %v572_v15 }
 0x1f1   :  { %v5522_v44 = vadd.f32 %v3647_v25, %v7541_v9  ;;  %v3649_v46 = vpop.f32.mrb[29].mxu0  ;;  %v5538_v52 = vadd.f32 %v3793_v45, %v7552_v13  ;;  %v3795_v60 = vpop.f32.mrb[29].mxu1 }
 0x1f2   :  { %v5523_v58 = vadd.f32 %v3649_v46, %v7556_v16  ;;  %v3651_v0 = vpop.f32.mrb[30].mxu0  ;;  %4190 = vmatpush1.bf16.msra.mxu0 %v5282_v7  ;;  %v5539_v47 = vadd.f32 %v3795_v60, %v7561_v18  ;;  %v3797_v11 = vpop.f32.mrb[30].mxu1  ;;  %4336 = vmatpush1.bf16.msra.mxu1 %v5284_v40  ;;  %v5349_v7 = vcombine.high %v565_v35, %v573_v2 }
 0x1f3   :  { %v5524_v5 = vadd.f32 %v3651_v0, %v7541_v9  ;;  %v3653_v20 = vpop.f32.mrb[31].mxu0  ;;  %4191 = vmatprep.subr.bf16.mxu0 %v5299_v6  ;;  %v5540_v19 = vadd.f32 %v3797_v11, %v7552_v13  ;;  %v3799_v22 = vpop.f32.mrb[31].mxu1  ;;  %4337 = vmatprep.subr.bf16.mxu1 %v5301_v42  ;;  %v556_v9 = vld [vmem:[%s7992_s1 + $0xf70] sm:$0xff]  ;;  %v549_v13 = vld [vmem:[%s7992_s1 + $0xf38] sm:$0xff]  ;;  %v5348_v40 = vcombine.low %v565_v35, %v573_v2 }
 0x1f4   :  { %v5464_v17 = vpack.c.bf16 %v5523_v58, %v5522_v44  ;;  %v5525_v21 = vadd.f32 %v3653_v20, %v7556_v16  ;;  %v5465_v61 = vpack.c.bf16 %v5539_v47, %v5538_v52  ;;  %v5541_v27 = vadd.f32 %v3799_v22, %v7561_v18  ;;  %v557_v16 = vld [vmem:[%s7992_s1 + $0xf78] sm:$0xff] }
 0x1f5   :  { %v5331_v32 = vcombine.high %v548_v26, %v556_v9  ;;  %v5333_v33 = vcombine.high %v549_v13, %v557_v16  ;;  %v5330_v30 = vcombine.low %v548_v26, %v556_v9  ;;  %v5332_v36 = vcombine.low %v549_v13, %v557_v16 }
 0x1f6   :  { %4820 = vst [vmem:[%s7995_s3 + $0x190] sm:$0xff] %v5464_v17  ;;  %v5472_v28 = vpack.c.bf16 %v5525_v21, %v5524_v5  ;;  %4192 = vmatpush1.bf16.msra.mxu0 %v5298_v1  ;;  %4821 = vst [vmem:[%s7995_s3 + $0x198] sm:$0xff] %v5465_v61  ;;  %v5473_v18 = vpack.c.bf16 %v5541_v27, %v5540_v19  ;;  %4338 = vmatpush1.bf16.msra.mxu1 %v5300_v4 }
 0x1f7   :  { %4193 = vmatprep.subr.bf16.mxu0 %v5315_v12  ;;  %4339 = vmatprep.subr.bf16.mxu1 %v5317_v23 }
 0x1f8   :  { %4828 = vst [vmem:[%s7995_s3 + $0x1d0] sm:$0xff] %v5472_v28  ;;  %4829 = vst [vmem:[%s7995_s3 + $0x1d8] sm:$0xff] %v5473_v18 }
 0x1fa   :  { %4194 = vmatpush1.bf16.msra.mxu0 %v5314_v29  ;;  %4340 = vmatpush1.bf16.msra.mxu1 %v5316_v31 }
 0x1fb   :  { %4195 = vmatprep.subr.bf16.mxu0 %v5331_v32  ;;  %4341 = vmatprep.subr.bf16.mxu1 %v5333_v33 }
 0x1fe   :  { %4196 = vmatpush1.bf16.msra.mxu0 %v5330_v30  ;;  %4342 = vmatpush1.bf16.msra.mxu1 %v5332_v36 }
 0x1ff   :  { %4197 = vmatprep.subr.bf16.mxu0 %v5347_v37  ;;  %4343 = vmatprep.subr.bf16.mxu1 %v5349_v7 }
 0x202   :  { %4198 = vmatpush1.bf16.msra.mxu0 %v5346_v8  ;;  %4344 = vmatpush1.bf16.msra.mxu1 %v5348_v40 }
 0x205   :  { %4200 = vmatmul.mubr.bf16.vlgmr.msra.gmra.mrb[48].mxu0 %v6256_v53  ;;  %4346 = vmatmul.mubr.bf16.vlgmr.msra.gmra.mrb[48].mxu1 %v6256_v53  ;;  %v7790_v53 = vld [vmem:[%s7994_s2 + $0x8] sm:$0xff] }
 0x206   :  { %4209 = vmatprep.mubr.bf16.mxu0 %v6267_v63  ;;  %4355 = vmatprep.mubr.bf16.mxu1 %v6267_v63  ;;  %v7795_v63 = vrot.slane %v7790_v53, %v580_v48 }
 0x20d   :  { %4210 = vmatmul.mubr.bf16.gmra.mrb[52].mxu0 %v6300_v14  ;;  %4356 = vmatmul.mubr.bf16.gmra.mrb[52].mxu1 %v6300_v14  ;;  %v7800_v14 = vrot.slane %v7790_v53, %v588_v55 }
 0x20e   :  { %4219 = vmatprep.mubr.bf16.mxu0 %v6311_v24  ;;  %4365 = vmatprep.mubr.bf16.mxu1 %v6311_v24  ;;  %v7805_v24 = vrot.slane %v7790_v53, %v584_v56 }
 0x215   :  { %4220 = vmatmul.mubr.bf16.gmra.mrb[56].mxu0 %v6344_v41  ;;  %4366 = vmatmul.mubr.bf16.gmra.mrb[56].mxu1 %v6344_v41  ;;  %v7810_v41 = vrot.slane %v7790_v53, %v592_v59 }
 0x216   :  { %4229 = vmatprep.mubr.bf16.mxu0 %v6355_v50  ;;  %4375 = vmatprep.mubr.bf16.mxu1 %v6355_v50 }
 0x21d   :  { %4230 = vmatmul.mubr.bf16.gmra.mrb[60].mxu0 %v6385_v3  ;;  %4376 = vmatmul.mubr.bf16.gmra.mrb[60].mxu1 %v6385_v3 }
 0x258   :  { %v3909_v50 = vpop.f32.mrb[32].mxu0  ;;  %v4055_v48 = vpop.f32.mrb[32].mxu1 }
 0x259   :  { %v5542_v3 = vadd.f32 %v3909_v50, %v7795_v63  ;;  %v3911_v6 = vpop.f32.mrb[33].mxu0  ;;  %v5558_v25 = vadd.f32 %v4055_v48, %v7800_v14  ;;  %v4057_v42 = vpop.f32.mrb[33].mxu1 }
 0x25a   :  { %v5543_v55 = vadd.f32 %v3911_v6, %v7805_v24  ;;  %v3913_v10 = vpop.f32.mrb[34].mxu0  ;;  %v5559_v43 = vadd.f32 %v4057_v42, %v7810_v41  ;;  %v4059_v44 = vpop.f32.mrb[34].mxu1 }
 0x25b   :  { %v5544_v56 = vadd.f32 %v3913_v10, %v7795_v63  ;;  %v3915_v45 = vpop.f32.mrb[35].mxu0  ;;  %v5560_v59 = vadd.f32 %v4059_v44, %v7800_v14  ;;  %v4061_v38 = vpop.f32.mrb[35].mxu1 }
 0x25c   :  { %v5418_v46 = vpack.c.bf16 %v5543_v55, %v5542_v3  ;;  %v5545_v49 = vadd.f32 %v3915_v45, %v7805_v24  ;;  %v5419_v52 = vpack.c.bf16 %v5559_v43, %v5558_v25  ;;  %v5561_v58 = vadd.f32 %v4061_v38, %v7810_v41 }
 0x25e   :  { %4774 = vst [vmem:[%s7995_s3 + $0x20] sm:$0xff] %v5418_v46  ;;  %v5426_v60 = vpack.c.bf16 %v5545_v49, %v5544_v56  ;;  %4775 = vst [vmem:[%s7995_s3 + $0x28] sm:$0xff] %v5419_v52  ;;  %v5427_v0 = vpack.c.bf16 %v5561_v58, %v5560_v59 }
 0x260   :  { %4782 = vst [vmem:[%s7995_s3 + $0x60] sm:$0xff] %v5426_v60  ;;  %v3919_v1 = vpop.f32.mrb[36].mxu0  ;;  %4783 = vst [vmem:[%s7995_s3 + $0x68] sm:$0xff] %v5427_v0  ;;  %v4065_v47 = vpop.f32.mrb[36].mxu1 }
 0x261   :  { %v5546_v4 = vadd.f32 %v3919_v1, %v7795_v63  ;;  %v3921_v5 = vpop.f32.mrb[37].mxu0  ;;  %v5562_v11 = vadd.f32 %v4065_v47, %v7800_v14  ;;  %v4067_v12 = vpop.f32.mrb[37].mxu1 }
 0x262   :  { %v5547_v20 = vadd.f32 %v3921_v5, %v7805_v24  ;;  %v3923_v17 = vpop.f32.mrb[38].mxu0  ;;  %v5563_v19 = vadd.f32 %v4067_v12, %v7810_v41  ;;  %v4069_v22 = vpop.f32.mrb[38].mxu1 }
 0x263   :  { %v5548_v21 = vadd.f32 %v3923_v17, %v7795_v63  ;;  %v3925_v23 = vpop.f32.mrb[39].mxu0  ;;  %v5564_v9 = vadd.f32 %v4069_v22, %v7800_v14  ;;  %v4071_v27 = vpop.f32.mrb[39].mxu1 }
 0x264   :  { %v5434_v26 = vpack.c.bf16 %v5547_v20, %v5546_v4  ;;  %v5549_v61 = vadd.f32 %v3925_v23, %v7805_v24  ;;  %v5435_v13 = vpack.c.bf16 %v5563_v19, %v5562_v11  ;;  %v5565_v16 = vadd.f32 %v4071_v27, %v7810_v41 }
 0x265   :  { %v7910_v20 = vrot.slane %v7790_v53, %v608_v62 }
 0x266   :  { %4790 = vst [vmem:[%s7995_s3 + $0xa0] sm:$0xff] %v5434_v26  ;;  %v5442_v28 = vpack.c.bf16 %v5549_v61, %v5548_v21  ;;  %4791 = vst [vmem:[%s7995_s3 + $0xa8] sm:$0xff] %v5435_v13  ;;  %v5443_v29 = vpack.c.bf16 %v5565_v16, %v5564_v9 }
 0x268   :  { %4798 = vst [vmem:[%s7995_s3 + $0xe0] sm:$0xff] %v5442_v28  ;;  %v3929_v18 = vpop.f32.mrb[40].mxu0  ;;  %4799 = vst [vmem:[%s7995_s3 + $0xe8] sm:$0xff] %v5443_v29  ;;  %v4075_v32 = vpop.f32.mrb[40].mxu1 }
 0x269   :  { %v5550_v31 = vadd.f32 %v3929_v18, %v7795_v63  ;;  %v3931_v33 = vpop.f32.mrb[41].mxu0  ;;  %v5566_v34 = vadd.f32 %v4075_v32, %v7800_v14  ;;  %v4077_v35 = vpop.f32.mrb[41].mxu1 }
 0x26a   :  { %v5551_v15 = vadd.f32 %v3931_v33, %v7805_v24  ;;  %v3933_v2 = vpop.f32.mrb[42].mxu0  ;;  %v5567_v30 = vadd.f32 %v4077_v35, %v7810_v41  ;;  %v4079_v37 = vpop.f32.mrb[42].mxu1 }
 0x26b   :  { %v5552_v36 = vadd.f32 %v3933_v2, %v7795_v63  ;;  %v3935_v7 = vpop.f32.mrb[43].mxu0  ;;  %v5568_v40 = vadd.f32 %v4079_v37, %v7800_v14  ;;  %v4081_v3 = vpop.f32.mrb[43].mxu1 }
 0x26c   :  { %v5450_v8 = vpack.c.bf16 %v5551_v15, %v5550_v31  ;;  %v5553_v50 = vadd.f32 %v3935_v7, %v7805_v24  ;;  %v5451_v48 = vpack.c.bf16 %v5567_v30, %v5566_v34  ;;  %v5569_v6 = vadd.f32 %v4081_v3, %v7810_v41 }
 0x26e   :  { %4806 = vst [vmem:[%s7995_s3 + $0x120] sm:$0xff] %v5450_v8  ;;  %v5458_v25 = vpack.c.bf16 %v5553_v50, %v5552_v36  ;;  %4807 = vst [vmem:[%s7995_s3 + $0x128] sm:$0xff] %v5451_v48  ;;  %v5459_v55 = vpack.c.bf16 %v5569_v6, %v5568_v40 }
 0x270   :  { %4814 = vst [vmem:[%s7995_s3 + $0x160] sm:$0xff] %v5458_v25  ;;  %v3939_v42 = vpop.f32.mrb[44].mxu0  ;;  %4815 = vst [vmem:[%s7995_s3 + $0x168] sm:$0xff] %v5459_v55  ;;  %v4085_v43 = vpop.f32.mrb[44].mxu1 }
 0x271   :  { %v5554_v10 = vadd.f32 %v3939_v42, %v7795_v63  ;;  %v3941_v56 = vpop.f32.mrb[45].mxu0  ;;  %v5570_v44 = vadd.f32 %v4085_v43, %v7800_v14  ;;  %v4087_v46 = vpop.f32.mrb[45].mxu1 }
 0x272   :  { %v5555_v45 = vadd.f32 %v3941_v56, %v7805_v24  ;;  %v3943_v59 = vpop.f32.mrb[46].mxu0  ;;  %v5571_v49 = vadd.f32 %v4087_v46, %v7810_v41  ;;  %v4089_v52 = vpop.f32.mrb[46].mxu1 }
 0x273   :  { %v5556_v38 = vadd.f32 %v3943_v59, %v7795_v63  ;;  %v3945_v58 = vpop.f32.mrb[47].mxu0  ;;  %v5572_v0 = vadd.f32 %v4089_v52, %v7800_v14  ;;  %v4091_v4 = vpop.f32.mrb[47].mxu1  ;;  %v7895_v14 = vrot.slane %v7790_v53, %v596_v51 }
 0x274   :  { %v5466_v60 = vpack.c.bf16 %v5555_v45, %v5554_v10  ;;  %v5557_v1 = vadd.f32 %v3945_v58, %v7805_v24  ;;  %v5467_v47 = vpack.c.bf16 %v5571_v49, %v5570_v44  ;;  %v5573_v5 = vadd.f32 %v4091_v4, %v7810_v41 }
 0x275   :  { %v7900_v24 = vrot.slane %v7790_v53, %v604_v54  ;;  %v7905_v41 = vrot.slane %v7790_v53, %v600_v57 }
 0x276   :  { %4822 = vst [vmem:[%s7995_s3 + $0x1a0] sm:$0xff] %v5466_v60  ;;  %v5474_v11 = vpack.c.bf16 %v5557_v1, %v5556_v38  ;;  %4823 = vst [vmem:[%s7995_s3 + $0x1a8] sm:$0xff] %v5467_v47  ;;  %v5475_v63 = vpack.c.bf16 %v5573_v5, %v5572_v0 }
 0x278   :  { %4830 = vst [vmem:[%s7995_s3 + $0x1e0] sm:$0xff] %v5474_v11  ;;  %4831 = vst [vmem:[%s7995_s3 + $0x1e8] sm:$0xff] %v5475_v63 }
 0x2d8   :  { %v4201_v12 = vpop.f32.mrb[48].mxu0  ;;  %v4347_v51 = vpop.f32.mrb[48].mxu1 }
 0x2d9   :  { %v5574_v17 = vadd.f32 %v4201_v12, %v7895_v14  ;;  %v4203_v19 = vpop.f32.mrb[49].mxu0  ;;  %v5590_v21 = vadd.f32 %v4347_v51, %v7900_v24  ;;  %v4349_v22 = vpop.f32.mrb[49].mxu1 }
 0x2da   :  { %v5575_v54 = vadd.f32 %v4203_v19, %v7905_v41  ;;  %v4205_v23 = vpop.f32.mrb[50].mxu0  ;;  %v5591_v26 = vadd.f32 %v4349_v22, %v7910_v20  ;;  %v4351_v9 = vpop.f32.mrb[50].mxu1 }
 0x2db   :  { %v5576_v57 = vadd.f32 %v4205_v23, %v7895_v14  ;;  %v4207_v39 = vpop.f32.mrb[51].mxu0  ;;  %v5592_v62 = vadd.f32 %v4351_v9, %v7900_v24  ;;  %v4353_v27 = vpop.f32.mrb[51].mxu1 }
 0x2dc   :  { %v5420_v61 = vpack.c.bf16 %v5575_v54, %v5574_v17  ;;  %v5577_v53 = vadd.f32 %v4207_v39, %v7905_v41  ;;  %v5421_v13 = vpack.c.bf16 %v5591_v26, %v5590_v21  ;;  %v5593_v16 = vadd.f32 %v4353_v27, %v7910_v20 }
 0x2de   :  { %4776 = vst [vmem:[%s7995_s3 + $0x30] sm:$0xff] %v5420_v61  ;;  %v5428_v28 = vpack.c.bf16 %v5577_v53, %v5576_v57  ;;  %4777 = vst [vmem:[%s7995_s3 + $0x38] sm:$0xff] %v5421_v13  ;;  %v5429_v29 = vpack.c.bf16 %v5593_v16, %v5592_v62 }
 0x2e0   :  { %4784 = vst [vmem:[%s7995_s3 + $0x70] sm:$0xff] %v5428_v28  ;;  %v4211_v18 = vpop.f32.mrb[52].mxu0  ;;  %4785 = vst [vmem:[%s7995_s3 + $0x78] sm:$0xff] %v5429_v29  ;;  %v4357_v32 = vpop.f32.mrb[52].mxu1 }
 0x2e1   :  { %v5578_v31 = vadd.f32 %v4211_v18, %v7895_v14  ;;  %v4213_v33 = vpop.f32.mrb[53].mxu0  ;;  %v5594_v34 = vadd.f32 %v4357_v32, %v7900_v24  ;;  %v4359_v35 = vpop.f32.mrb[53].mxu1 }
 0x2e2   :  { %v5579_v15 = vadd.f32 %v4213_v33, %v7905_v41  ;;  %v4215_v2 = vpop.f32.mrb[54].mxu0  ;;  %v5595_v30 = vadd.f32 %v4359_v35, %v7910_v20  ;;  %v4361_v37 = vpop.f32.mrb[54].mxu1 }
 0x2e3   :  { %v5580_v36 = vadd.f32 %v4215_v2, %v7895_v14  ;;  %v4217_v7 = vpop.f32.mrb[55].mxu0  ;;  %v5596_v40 = vadd.f32 %v4361_v37, %v7900_v24  ;;  %v4363_v3 = vpop.f32.mrb[55].mxu1 }
 0x2e4   :  { %v5436_v8 = vpack.c.bf16 %v5579_v15, %v5578_v31  ;;  %v5581_v50 = vadd.f32 %v4217_v7, %v7905_v41  ;;  %v5437_v48 = vpack.c.bf16 %v5595_v30, %v5594_v34  ;;  %v5597_v6 = vadd.f32 %v4363_v3, %v7910_v20 }
 0x2e6   :  { %4792 = vst [vmem:[%s7995_s3 + $0xb0] sm:$0xff] %v5436_v8  ;;  %v5444_v25 = vpack.c.bf16 %v5581_v50, %v5580_v36  ;;  %4793 = vst [vmem:[%s7995_s3 + $0xb8] sm:$0xff] %v5437_v48  ;;  %v5445_v55 = vpack.c.bf16 %v5597_v6, %v5596_v40 }
 0x2e8   :  { %4800 = vst [vmem:[%s7995_s3 + $0xf0] sm:$0xff] %v5444_v25  ;;  %v4221_v42 = vpop.f32.mrb[56].mxu0  ;;  %4801 = vst [vmem:[%s7995_s3 + $0xf8] sm:$0xff] %v5445_v55  ;;  %v4367_v43 = vpop.f32.mrb[56].mxu1 }
 0x2e9   :  { %v5582_v10 = vadd.f32 %v4221_v42, %v7895_v14  ;;  %v4223_v56 = vpop.f32.mrb[57].mxu0  ;;  %v5598_v44 = vadd.f32 %v4367_v43, %v7900_v24  ;;  %v4369_v46 = vpop.f32.mrb[57].mxu1 }
 0x2ea   :  { %v5583_v45 = vadd.f32 %v4223_v56, %v7905_v41  ;;  %v4225_v59 = vpop.f32.mrb[58].mxu0  ;;  %v5599_v49 = vadd.f32 %v4369_v46, %v7910_v20  ;;  %v4371_v52 = vpop.f32.mrb[58].mxu1 }
 0x2eb   :  { %v5584_v38 = vadd.f32 %v4225_v59, %v7895_v14  ;;  %v4227_v58 = vpop.f32.mrb[59].mxu0  ;;  %v5600_v0 = vadd.f32 %v4371_v52, %v7900_v24  ;;  %v4373_v4 = vpop.f32.mrb[59].mxu1 }
 0x2ec   :  { %v5452_v60 = vpack.c.bf16 %v5583_v45, %v5582_v10  ;;  %v5585_v1 = vadd.f32 %v4227_v58, %v7905_v41  ;;  %v5453_v47 = vpack.c.bf16 %v5599_v49, %v5598_v44  ;;  %v5601_v5 = vadd.f32 %v4373_v4, %v7910_v20 }
 0x2ee   :  { %4808 = vst [vmem:[%s7995_s3 + $0x130] sm:$0xff] %v5452_v60  ;;  %v5460_v11 = vpack.c.bf16 %v5585_v1, %v5584_v38  ;;  %4809 = vst [vmem:[%s7995_s3 + $0x138] sm:$0xff] %v5453_v47  ;;  %v5461_v63 = vpack.c.bf16 %v5601_v5, %v5600_v0 }
 0x2f0   :  { %4816 = vst [vmem:[%s7995_s3 + $0x170] sm:$0xff] %v5460_v11  ;;  %v4231_v12 = vpop.f32.mrb[60].mxu0  ;;  %4817 = vst [vmem:[%s7995_s3 + $0x178] sm:$0xff] %v5461_v63  ;;  %v4377_v51 = vpop.f32.mrb[60].mxu1 }
 0x2f1   :  { %v5586_v17 = vadd.f32 %v4231_v12, %v7895_v14  ;;  %v4233_v19 = vpop.f32.mrb[61].mxu0  ;;  %v5602_v21 = vadd.f32 %v4377_v51, %v7900_v24  ;;  %v4379_v22 = vpop.f32.mrb[61].mxu1 }
 0x2f2   :  { %v5587_v54 = vadd.f32 %v4233_v19, %v7905_v41  ;;  %v4235_v23 = vpop.f32.mrb[62].mxu0  ;;  %v5603_v26 = vadd.f32 %v4379_v22, %v7910_v20  ;;  %v4381_v9 = vpop.f32.mrb[62].mxu1 }
 0x2f3   :  { %v5588_v57 = vadd.f32 %v4235_v23, %v7895_v14  ;;  %v4237_v39 = vpop.f32.mrb[63].mxu0  ;;  %v5604_v62 = vadd.f32 %v4381_v9, %v7900_v24  ;;  %v4383_v27 = vpop.f32.mrb[63].mxu1 }
 0x2f4   :  { %v5468_v61 = vpack.c.bf16 %v5587_v54, %v5586_v17  ;;  %v5589_v53 = vadd.f32 %v4237_v39, %v7905_v41  ;;  %v5469_v13 = vpack.c.bf16 %v5603_v26, %v5602_v21  ;;  %v5605_v16 = vadd.f32 %v4383_v27, %v7910_v20 }
 0x2f6   :  { %4824 = vst [vmem:[%s7995_s3 + $0x1b0] sm:$0xff] %v5468_v61  ;;  %v5476_v28 = vpack.c.bf16 %v5589_v53, %v5588_v57  ;;  %4825 = vst [vmem:[%s7995_s3 + $0x1b8] sm:$0xff] %v5469_v13  ;;  %v5477_v14 = vpack.c.bf16 %v5605_v16, %v5604_v62 }
 0x2f8   :  { %4832 = vst [vmem:[%s7995_s3 + $0x1f0] sm:$0xff] %v5476_v28  ;;  %4833 = vst [vmem:[%s7995_s3 + $0x1f8] sm:$0xff] %v5477_v14 }

</bundles_post_ra>
